<compile_context>
chip_gen: v6e
topology: v6e:2x2x1
jax: 0.10.0
libtpu: 0.0.40
codegen_flags: <defaults>
</compile_context>

<pallas_src>
import functools

import numpy as np
import jax
import jax.numpy as jnp
from jax import lax
from jax.experimental import pallas as pl
from jax.experimental.pallas import tpu as pltpu


# ----------------------------------------------------------------------------
# Pallas kernels
# ----------------------------------------------------------------------------
def _elu(y):
    # alpha = 1.0; clamp the exp argument so the unselected branch stays finite.
    return jnp.where(y > 0, y, jnp.exp(jnp.minimum(y, 0.0)) - 1.0)


def _sigmoid(x):
    return 1.0 / (1.0 + jnp.exp(-x))


def conv_gemm_kernel(w_ref, p_ref, b_ref, o_ref):
    """One conv layer as a transposed im2col GEMM: ELU(W(32,K) @ P(K,M) + b).

    Output is channel-major (Cout, M) so the big M dimension is lane-dense.
    """
    y = jnp.dot(w_ref[...], p_ref[...], preferred_element_type=jnp.float32)
    y = y + b_ref[...]
    o_ref[...] = _elu(y).astype(o_ref.dtype)


def lstm_heads_kernel(x_ref, h_ref, c_ref, wih_ref, whh_ref, b_ref,
                      wh_ref, bh_ref, h_out_ref, c_out_ref, heads_ref):
    """Fused nn.LSTMCell (gate order i, f, g, o) + critic/actor linear heads."""
    gates = (jnp.dot(x_ref[...], wih_ref[...], preferred_element_type=jnp.float32)
             + jnp.dot(h_ref[...], whh_ref[...], preferred_element_type=jnp.float32)
             + b_ref[...])
    H = h_ref.shape[-1]
    i = _sigmoid(gates[:, 0 * H:1 * H])
    f = _sigmoid(gates[:, 1 * H:2 * H])
    g = jnp.tanh(gates[:, 2 * H:3 * H])
    o = _sigmoid(gates[:, 3 * H:4 * H])
    c_new = f * c_ref[...] + i * g
    h_new = o * jnp.tanh(c_new)
    c_out_ref[...] = c_new.astype(c_out_ref.dtype)
    h_out_ref[...] = h_new.astype(h_out_ref.dtype)
    # Heads while h_new is still resident in VMEM: one lane-dense (B, 128) store.
    heads_ref[...] = (jnp.dot(h_new, wh_ref[...], preferred_element_type=jnp.float32)
                      + bh_ref[...]).astype(heads_ref.dtype)


# ----------------------------------------------------------------------------
# Per-layer wrappers
# ----------------------------------------------------------------------------
def conv3x3_s2_elu_cmajor(feat_cnhw, w2d, b2d):
    """ELU(Conv2d(k=3, s=2, p=1)) on a channel-major (C, B, H, W) feature map.

    Patch extraction (im2col, transposed to (K, M)) is tiny XLA glue; the GEMM +
    bias + ELU run in a single-step Pallas kernel.  Returns (Cout, B, Ho, Wo).
    """
    Cin, B, H, W = feat_cnhw.shape
    Ho, Wo = H // 2, W // 2
    Cout, K = w2d.shape                       # K = Cin * 9, ordered (ci, kh, kw)
    M = B * Ho * Wo

    fp = jnp.pad(feat_cnhw, ((0, 0), (0, 0), (1, 1), (1, 1)))
    slabs = [fp[:, :, dh:dh + 2 * Ho:2, dw:dw + 2 * Wo:2]        # (Cin, B, Ho, Wo)
             for dh in range(3) for dw in range(3)]
    patches = jnp.stack(slabs, axis=1).reshape(K, M)             # (Cin*9, B*Ho*Wo)

    out = pl.pallas_call(
        conv_gemm_kernel,
        out_shape=jax.ShapeDtypeStruct((Cout, M), jnp.float32),
        grid=(1,),
        in_specs=[pl.BlockSpec((Cout, K), lambda i: (0, 0)),
                  pl.BlockSpec((K, M), lambda i: (0, 0)),
                  pl.BlockSpec((Cout, 1), lambda i: (0, 0))],
        out_specs=pl.BlockSpec((Cout, M), lambda i: (0, 0)),
        compiler_params=pltpu.CompilerParams(dimension_semantics=("arbitrary",)),
    )(w2d, patches, b2d)

    return out.reshape(Cout, B, Ho, Wo)


def lstm_and_heads(x, hx, cx, prep):
    B, D = x.shape
    H = hx.shape[-1]
    P = prep["w_heads"].shape[-1]

    h_new, c_new, heads = pl.pallas_call(
        lstm_heads_kernel,
        out_shape=(jax.ShapeDtypeStruct((B, H), jnp.float32),
                   jax.ShapeDtypeStruct((B, H), jnp.float32),
                   jax.ShapeDtypeStruct((B, P), jnp.float32)),
        grid=(1,),
        in_specs=[pl.BlockSpec((B, D), lambda i: (0, 0)),
                  pl.BlockSpec((B, H), lambda i: (0, 0)),
                  pl.BlockSpec((B, H), lambda i: (0, 0)),
                  pl.BlockSpec((D, 4 * H), lambda i: (0, 0)),
                  pl.BlockSpec((H, 4 * H), lambda i: (0, 0)),
                  pl.BlockSpec((1, 4 * H), lambda i: (0, 0)),
                  pl.BlockSpec((H, P), lambda i: (0, 0)),
                  pl.BlockSpec((1, P), lambda i: (0, 0))],
        out_specs=(pl.BlockSpec((B, H), lambda i: (0, 0)),
                   pl.BlockSpec((B, H), lambda i: (0, 0)),
                   pl.BlockSpec((B, P), lambda i: (0, 0))),
        compiler_params=pltpu.CompilerParams(dimension_semantics=("arbitrary",)),
    )(x, hx, cx, prep["wih_t"], prep["whh_t"], prep["lstm_b"],
      prep["w_heads"], prep["b_heads"])
    return h_new, c_new, heads


# ----------------------------------------------------------------------------
# Parameters (PyTorch-style uniform(+/-1/sqrt(fan_in)) synthetic init)
# ----------------------------------------------------------------------------
def init_params(key, channels, num_actions, hidden=256):
    ks = jax.random.split(key, 16)

    def u(k, shape, fan_in):
        bound = 1.0 / np.sqrt(fan_in)
        return jax.random.uniform(k, shape, jnp.float32, -bound, bound)

    p = {}
    cin = channels
    for li in range(4):
        fan = cin * 3 * 3
        p[f"conv{li+1}_w"] = u(ks[2 * li], (32, cin, 3, 3), fan)
        p[f"conv{li+1}_b"] = u(ks[2 * li + 1], (32,), fan)
        cin = 32
    D = 32 * 5 * 5
    p["lstm_w_ih"] = u(ks[8], (4 * hidden, D), hidden)
    p["lstm_w_hh"] = u(ks[9], (4 * hidden, hidden), hidden)
    p["lstm_b_ih"] = u(ks[10], (4 * hidden,), hidden)
    p["lstm_b_hh"] = u(ks[11], (4 * hidden,), hidden)
    p["critic_w"] = u(ks[12], (1, hidden), hidden)
    p["critic_b"] = u(ks[13], (1,), hidden)
    p["actor_w"] = u(ks[14], (num_actions, hidden), hidden)
    p["actor_b"] = u(ks[15], (num_actions,), hidden)
    return p


def prepare_params(params, num_actions, hidden=256, head_pad=128):
    """One-time weight packing (kept OUT of the per-call path, per perf review)."""
    prep = {}
    for li in range(4):
        w = params[f"conv{li+1}_w"]                      # (32, Cin, 3, 3)
        prep[f"conv{li+1}_w2d"] = w.reshape(w.shape[0], -1)   # (32, Cin*9), (ci,kh,kw) order
        prep[f"conv{li+1}_b"] = params[f"conv{li+1}_b"].reshape(-1, 1)
    prep["wih_t"] = params["lstm_w_ih"].T                # (800, 1024)
    prep["whh_t"] = params["lstm_w_hh"].T                # (256, 1024)
    prep["lstm_b"] = (params["lstm_b_ih"] + params["lstm_b_hh"]).reshape(1, -1)

    w_heads = jnp.zeros((hidden, head_pad), jnp.float32)
    w_heads = w_heads.at[:, 0].set(params["critic_w"][0])
    w_heads = w_heads.at[:, 1:1 + num_actions].set(params["actor_w"].T)
    b_heads = jnp.zeros((1, head_pad), jnp.float32)
    b_heads = b_heads.at[0, 0].set(params["critic_b"][0])
    b_heads = b_heads.at[0, 1:1 + num_actions].set(params["actor_b"])
    prep["w_heads"] = w_heads
    prep["b_heads"] = b_heads
    return prep


# ----------------------------------------------------------------------------
# Forward passes
# ----------------------------------------------------------------------------
def nn_policy_forward_pallas(prep, x_nchw, hx, cx, *, num_actions):
    # Channel-major ("CNHW") activations: matches the transposed GEMM output layout
    # and makes the final torch-style NCHW flatten a free reshape of a tiny tensor.
    feat = jnp.transpose(x_nchw, (1, 0, 2, 3))           # (C, B, H, W)
    for li in range(4):
        feat = conv3x3_s2_elu_cmajor(feat, prep[f"conv{li+1}_w2d"], prep[f"conv{li+1}_b"])
    Cout, B, Ho, Wo = feat.shape
    x_flat = jnp.transpose(feat, (1, 0, 2, 3)).reshape(B, Cout * Ho * Wo)  # == x.view(-1, 32*5*5)
    h_new, c_new, heads = lstm_and_heads(x_flat, hx, cx, prep)
    critic = heads[:, 0:1]
    actor = heads[:, 1:1 + num_actions]
    return critic, actor, (h_new, c_new)


def nn_policy_forward_ref(params, x_nchw, hx, cx):
    """Plain-JAX reference used only to validate the Pallas kernels."""
    x = jnp.transpose(x_nchw, (0, 2, 3, 1))
    for li in range(4):
        w = params[f"conv{li+1}_w"]
        b = params[f"conv{li+1}_b"]
        w_hwio = jnp.transpose(w, (2, 3, 1, 0))
        x = lax.conv_general_dilated(x, w_hwio, (2, 2), ((1, 1), (1, 1)),
                                     dimension_numbers=("NHWC", "HWIO", "NHWC"))
        x = jax.nn.elu(x + b[None, None, None, :])
    B = x.shape[0]
    x_flat = jnp.transpose(x, (0, 3, 1, 2)).reshape(B, 32 * 5 * 5)
    gates = (x_flat @ params["lstm_w_ih"].T + params["lstm_b_ih"]
             + hx @ params["lstm_w_hh"].T + params["lstm_b_hh"])
    H = hx.shape[-1]
    i, f, g, o = (jax.nn.sigmoid(gates[:, :H]),
                  jax.nn.sigmoid(gates[:, H:2 * H]),
                  jnp.tanh(gates[:, 2 * H:3 * H]),
                  jax.nn.sigmoid(gates[:, 3 * H:]))
    cx = f * cx + i * g
    hx = o * jnp.tanh(cx)
    critic = hx @ params["critic_w"].T + params["critic_b"]
    actor = hx @ params["actor_w"].T + params["actor_b"]
    return critic, actor, (hx, cx)


# ----------------------------------------------------------------------------
if __name__ == "__main__":
    # Spatial size 80x80 is dictated by the hard-coded 32*5*5 flatten (80->40->20->10->5).
    B, C, Hs, Ws = 2, 1, 80, 80
    NUM_ACTIONS, HIDDEN = 6, 256

    key = jax.random.PRNGKey(0)
    kp, kx, kh, kc = jax.random.split(key, 4)
    params = init_params(kp, C, NUM_ACTIONS, HIDDEN)
    x = jax.random.normal(kx, (B, C, Hs, Ws), jnp.float32)      # NCHW like PyTorch
    hx = jax.random.normal(kh, (B, HIDDEN), jnp.float32) * 0.1
    cx = jax.random.normal(kc, (B, HIDDEN), jnp.float32) * 0.1

    # One-time weight packing, then a single jitted forward executable.
    prep = prepare_params(params, NUM_ACTIONS, HIDDEN)
    prep = jax.tree_util.tree_map(jnp.asarray, prep)
    fwd = jax.jit(functools.partial(nn_policy_forward_pallas, num_actions=NUM_ACTIONS))

    critic, actor, (h_new, c_new) = fwd(prep, x, hx, cx)
    jax.block_until_ready((critic, actor, h_new, c_new))

    critic_r, actor_r, (h_r, c_r) = nn_policy_forward_ref(params, x, hx, cx)
    ok = all(bool(jnp.allclose(a, b, rtol=1e-3, atol=1e-3)) for a, b in
             [(critic, critic_r), (actor, actor_r), (h_new, h_r), (c_new, c_r)])
    assert critic.shape == (B, 1) and actor.shape == (B, NUM_ACTIONS)
    assert h_new.shape == (B, HIDDEN) and c_new.shape == (B, HIDDEN)
    if not ok:
        raise SystemExit("Pallas output mismatch vs reference")
    print("KERNEL_OK")
</pallas_src>

<mosaic_0001>
module attributes {stable_mosaic.version = 11 : i64} {
  func.func @conv_gemm_kernel(%arg0: i32, %arg1: memref<32x9xf32, #tpu.memory_space<vmem>>, %arg2: memref<9x3200xf32, #tpu.memory_space<vmem>>, %arg3: memref<32x1xf32, #tpu.memory_space<vmem>>, %arg4: memref<32x3200xf32, #tpu.memory_space<vmem>>) attributes {dimension_semantics = [#tpu.dimension_semantics<arbitrary>], iteration_bounds = array<i64: 1>, scalar_prefetch = 0 : i64, scratch_operands = 0 : i64, tpu.core_type = #tpu.core_type<tc>, window_params = [{pipeline_mode = #tpu.pipeline_mode<synchronous>, transform_indices = @transform_0, window_bounds = array<i64: 32, 9>}, {pipeline_mode = #tpu.pipeline_mode<synchronous>, transform_indices = @transform_1, window_bounds = array<i64: 9, 3200>}, {pipeline_mode = #tpu.pipeline_mode<synchronous>, transform_indices = @transform_2, window_bounds = array<i64: 32, 1>}, {pipeline_mode = #tpu.pipeline_mode<synchronous>, transform_indices = @transform_3, window_bounds = array<i64: 32, 3200>}]} {
    %c0 = arith.constant 0 : index
    %c0_0 = arith.constant 0 : index
    %0 = vector.load %arg1[%c0, %c0_0] : memref<32x9xf32, #tpu.memory_space<vmem>>, vector<32x9xf32>
    %c0_1 = arith.constant 0 : index
    %c0_2 = arith.constant 0 : index
    %1 = vector.load %arg2[%c0_1, %c0_2] : memref<9x3200xf32, #tpu.memory_space<vmem>>, vector<9x3200xf32>
    %cst = arith.constant dense<0.000000e+00> : vector<32x3200xf32>
    %2 = tpu.matmul %0, %1, %cst {dimension_numbers = #tpu.dot_dimension_numbers<[1], [0], [0], [1], [0, 0, 1, 1], [], []>} : vector<32x9xf32>, vector<9x3200xf32>, vector<32x3200xf32> -> vector<32x3200xf32>
    %c0_3 = arith.constant 0 : index
    %c0_4 = arith.constant 0 : index
    %3 = vector.load %arg3[%c0_3, %c0_4] : memref<32x1xf32, #tpu.memory_space<vmem>>, vector<32x1xf32>
    %4 = vector.broadcast %3 : vector<32x1xf32> to vector<32x3200xf32>
    %5 = arith.addf %2, %4 : vector<32x3200xf32>
    %cst_5 = arith.constant 0.000000e+00 : f32
    %6 = vector.broadcast %cst_5 : f32 to vector<32x3200xf32>
    %7 = arith.cmpf ogt, %5, %6 : vector<32x3200xf32>
    %cst_6 = arith.constant 0.000000e+00 : f32
    %8 = vector.broadcast %cst_6 : f32 to vector<32x3200xf32>
    %9 = arith.minimumf %5, %8 : vector<32x3200xf32>
    %10 = math.exp %9 : vector<32x3200xf32>
    %cst_7 = arith.constant 1.000000e+00 : f32
    %11 = vector.broadcast %cst_7 : f32 to vector<32x3200xf32>
    %12 = arith.subf %10, %11 : vector<32x3200xf32>
    %13 = arith.select %7, %5, %12 : vector<32x3200xi1>, vector<32x3200xf32>
    %c0_8 = arith.constant 0 : index
    %c0_9 = arith.constant 0 : index
    %14 = vector.load %arg4[%c0_8, %c0_9] : memref<32x3200xf32, #tpu.memory_space<vmem>>, vector<32x3200xf32>
    tpu.vector_store %arg4[%c0_8, %c0_9], %13 {strides = array<i32>} : memref<32x3200xf32, #tpu.memory_space<vmem>>, vector<32x3200xf32>,
    return
  }
  func.func @transform_0(%arg0: i32) -> (i32, i32) {
    %c0_i32 = arith.constant 0 : i32
    %c0_i32_0 = arith.constant 0 : i32
    %c0_i32_1 = arith.constant 0 : i32
    return %c0_i32, %c0_i32_0 : i32, i32
  }
  func.func @transform_1(%arg0: i32) -> (i32, i32) {
    %c0_i32 = arith.constant 0 : i32
    %c0_i32_0 = arith.constant 0 : i32
    %c0_i32_1 = arith.constant 0 : i32
    return %c0_i32, %c0_i32_0 : i32, i32
  }
  func.func @transform_2(%arg0: i32) -> (i32, i32) {
    %c0_i32 = arith.constant 0 : i32
    %c0_i32_0 = arith.constant 0 : i32
    %c0_i32_1 = arith.constant 0 : i32
    return %c0_i32, %c0_i32_0 : i32, i32
  }
  func.func @transform_3(%arg0: i32) -> (i32, i32) {
    %c0_i32 = arith.constant 0 : i32
    %c0_i32_0 = arith.constant 0 : i32
    %c0_i32_1 = arith.constant 0 : i32
    return %c0_i32, %c0_i32_0 : i32, i32
  }
}

module attributes {stable_mosaic.version = 11 : i64} {
  func.func @conv_gemm_kernel(%arg0: i32, %arg1: memref<32x288xf32, #tpu.memory_space<vmem>>, %arg2: memref<288x800xf32, #tpu.memory_space<vmem>>, %arg3: memref<32x1xf32, #tpu.memory_space<vmem>>, %arg4: memref<32x800xf32, #tpu.memory_space<vmem>>) attributes {dimension_semantics = [#tpu.dimension_semantics<arbitrary>], iteration_bounds = array<i64: 1>, scalar_prefetch = 0 : i64, scratch_operands = 0 : i64, tpu.core_type = #tpu.core_type<tc>, window_params = [{pipeline_mode = #tpu.pipeline_mode<synchronous>, transform_indices = @transform_0, window_bounds = array<i64: 32, 288>}, {pipeline_mode = #tpu.pipeline_mode<synchronous>, transform_indices = @transform_1, window_bounds = array<i64: 288, 800>}, {pipeline_mode = #tpu.pipeline_mode<synchronous>, transform_indices = @transform_2, window_bounds = array<i64: 32, 1>}, {pipeline_mode = #tpu.pipeline_mode<synchronous>, transform_indices = @transform_3, window_bounds = array<i64: 32, 800>}]} {
    %c0 = arith.constant 0 : index
    %c0_0 = arith.constant 0 : index
    %0 = vector.load %arg1[%c0, %c0_0] : memref<32x288xf32, #tpu.memory_space<vmem>>, vector<32x288xf32>
    %c0_1 = arith.constant 0 : index
    %c0_2 = arith.constant 0 : index
    %1 = vector.load %arg2[%c0_1, %c0_2] : memref<288x800xf32, #tpu.memory_space<vmem>>, vector<288x800xf32>
    %cst = arith.constant dense<0.000000e+00> : vector<32x800xf32>
    %2 = tpu.matmul %0, %1, %cst {dimension_numbers = #tpu.dot_dimension_numbers<[1], [0], [0], [1], [0, 0, 1, 1], [], []>} : vector<32x288xf32>, vector<288x800xf32>, vector<32x800xf32> -> vector<32x800xf32>
    %c0_3 = arith.constant 0 : index
    %c0_4 = arith.constant 0 : index
    %3 = vector.load %arg3[%c0_3, %c0_4] : memref<32x1xf32, #tpu.memory_space<vmem>>, vector<32x1xf32>
    %4 = vector.broadcast %3 : vector<32x1xf32> to vector<32x800xf32>
    %5 = arith.addf %2, %4 : vector<32x800xf32>
    %cst_5 = arith.constant 0.000000e+00 : f32
    %6 = vector.broadcast %cst_5 : f32 to vector<32x800xf32>
    %7 = arith.cmpf ogt, %5, %6 : vector<32x800xf32>
    %cst_6 = arith.constant 0.000000e+00 : f32
    %8 = vector.broadcast %cst_6 : f32 to vector<32x800xf32>
    %9 = arith.minimumf %5, %8 : vector<32x800xf32>
    %10 = math.exp %9 : vector<32x800xf32>
    %cst_7 = arith.constant 1.000000e+00 : f32
    %11 = vector.broadcast %cst_7 : f32 to vector<32x800xf32>
    %12 = arith.subf %10, %11 : vector<32x800xf32>
    %13 = arith.select %7, %5, %12 : vector<32x800xi1>, vector<32x800xf32>
    %c0_8 = arith.constant 0 : index
    %c0_9 = arith.constant 0 : index
    %14 = vector.load %arg4[%c0_8, %c0_9] : memref<32x800xf32, #tpu.memory_space<vmem>>, vector<32x800xf32>
    tpu.vector_store %arg4[%c0_8, %c0_9], %13 {strides = array<i32>} : memref<32x800xf32, #tpu.memory_space<vmem>>, vector<32x800xf32>,
    return
  }
  func.func @transform_0(%arg0: i32) -> (i32, i32) {
    %c0_i32 = arith.constant 0 : i32
    %c0_i32_0 = arith.constant 0 : i32
    %c0_i32_1 = arith.constant 0 : i32
    return %c0_i32, %c0_i32_0 : i32, i32
  }
  func.func @transform_1(%arg0: i32) -> (i32, i32) {
    %c0_i32 = arith.constant 0 : i32
    %c0_i32_0 = arith.constant 0 : i32
    %c0_i32_1 = arith.constant 0 : i32
    return %c0_i32, %c0_i32_0 : i32, i32
  }
  func.func @transform_2(%arg0: i32) -> (i32, i32) {
    %c0_i32 = arith.constant 0 : i32
    %c0_i32_0 = arith.constant 0 : i32
    %c0_i32_1 = arith.constant 0 : i32
    return %c0_i32, %c0_i32_0 : i32, i32
  }
  func.func @transform_3(%arg0: i32) -> (i32, i32) {
    %c0_i32 = arith.constant 0 : i32
    %c0_i32_0 = arith.constant 0 : i32
    %c0_i32_1 = arith.constant 0 : i32
    return %c0_i32, %c0_i32_0 : i32, i32
  }
}

module attributes {stable_mosaic.version = 11 : i64} {
  func.func @conv_gemm_kernel(%arg0: i32, %arg1: memref<32x288xf32, #tpu.memory_space<vmem>>, %arg2: memref<288x200xf32, #tpu.memory_space<vmem>>, %arg3: memref<32x1xf32, #tpu.memory_space<vmem>>, %arg4: memref<32x200xf32, #tpu.memory_space<vmem>>) attributes {dimension_semantics = [#tpu.dimension_semantics<arbitrary>], iteration_bounds = array<i64: 1>, scalar_prefetch = 0 : i64, scratch_operands = 0 : i64, tpu.core_type = #tpu.core_type<tc>, window_params = [{pipeline_mode = #tpu.pipeline_mode<synchronous>, transform_indices = @transform_0, window_bounds = array<i64: 32, 288>}, {pipeline_mode = #tpu.pipeline_mode<synchronous>, transform_indices = @transform_1, window_bounds = array<i64: 288, 200>}, {pipeline_mode = #tpu.pipeline_mode<synchronous>, transform_indices = @transform_2, window_bounds = array<i64: 32, 1>}, {pipeline_mode = #tpu.pipeline_mode<synchronous>, transform_indices = @transform_3, window_bounds = array<i64: 32, 200>}]} {
    %c0 = arith.constant 0 : index
    %c0_0 = arith.constant 0 : index
    %0 = vector.load %arg1[%c0, %c0_0] : memref<32x288xf32, #tpu.memory_space<vmem>>, vector<32x288xf32>
    %c0_1 = arith.constant 0 : index
    %c0_2 = arith.constant 0 : index
    %1 = vector.load %arg2[%c0_1, %c0_2] : memref<288x200xf32, #tpu.memory_space<vmem>>, vector<288x200xf32>
    %cst = arith.constant dense<0.000000e+00> : vector<32x200xf32>
    %2 = tpu.matmul %0, %1, %cst {dimension_numbers = #tpu.dot_dimension_numbers<[1], [0], [0], [1], [0, 0, 1, 1], [], []>} : vector<32x288xf32>, vector<288x200xf32>, vector<32x200xf32> -> vector<32x200xf32>
    %c0_3 = arith.constant 0 : index
    %c0_4 = arith.constant 0 : index
    %3 = vector.load %arg3[%c0_3, %c0_4] : memref<32x1xf32, #tpu.memory_space<vmem>>, vector<32x1xf32>
    %4 = vector.broadcast %3 : vector<32x1xf32> to vector<32x200xf32>
    %5 = arith.addf %2, %4 : vector<32x200xf32>
    %cst_5 = arith.constant 0.000000e+00 : f32
    %6 = vector.broadcast %cst_5 : f32 to vector<32x200xf32>
    %7 = arith.cmpf ogt, %5, %6 : vector<32x200xf32>
    %cst_6 = arith.constant 0.000000e+00 : f32
    %8 = vector.broadcast %cst_6 : f32 to vector<32x200xf32>
    %9 = arith.minimumf %5, %8 : vector<32x200xf32>
    %10 = math.exp %9 : vector<32x200xf32>
    %cst_7 = arith.constant 1.000000e+00 : f32
    %11 = vector.broadcast %cst_7 : f32 to vector<32x200xf32>
    %12 = arith.subf %10, %11 : vector<32x200xf32>
    %13 = arith.select %7, %5, %12 : vector<32x200xi1>, vector<32x200xf32>
    %c0_8 = arith.constant 0 : index
    %c0_9 = arith.constant 0 : index
    %14 = vector.load %arg4[%c0_8, %c0_9] : memref<32x200xf32, #tpu.memory_space<vmem>>, vector<32x200xf32>
    tpu.vector_store %arg4[%c0_8, %c0_9], %13 {strides = array<i32>} : memref<32x200xf32, #tpu.memory_space<vmem>>, vector<32x200xf32>,
    return
  }
  func.func @transform_0(%arg0: i32) -> (i32, i32) {
    %c0_i32 = arith.constant 0 : i32
    %c0_i32_0 = arith.constant 0 : i32
    %c0_i32_1 = arith.constant 0 : i32
    return %c0_i32, %c0_i32_0 : i32, i32
  }
  func.func @transform_1(%arg0: i32) -> (i32, i32) {
    %c0_i32 = arith.constant 0 : i32
    %c0_i32_0 = arith.constant 0 : i32
    %c0_i32_1 = arith.constant 0 : i32
    return %c0_i32, %c0_i32_0 : i32, i32
  }
  func.func @transform_2(%arg0: i32) -> (i32, i32) {
    %c0_i32 = arith.constant 0 : i32
    %c0_i32_0 = arith.constant 0 : i32
    %c0_i32_1 = arith.constant 0 : i32
    return %c0_i32, %c0_i32_0 : i32, i32
  }
  func.func @transform_3(%arg0: i32) -> (i32, i32) {
    %c0_i32 = arith.constant 0 : i32
    %c0_i32_0 = arith.constant 0 : i32
    %c0_i32_1 = arith.constant 0 : i32
    return %c0_i32, %c0_i32_0 : i32, i32
  }
}

module attributes {stable_mosaic.version = 11 : i64} {
  func.func @conv_gemm_kernel(%arg0: i32, %arg1: memref<32x288xf32, #tpu.memory_space<vmem>>, %arg2: memref<288x50xf32, #tpu.memory_space<vmem>>, %arg3: memref<32x1xf32, #tpu.memory_space<vmem>>, %arg4: memref<32x50xf32, #tpu.memory_space<vmem>>) attributes {dimension_semantics = [#tpu.dimension_semantics<arbitrary>], iteration_bounds = array<i64: 1>, scalar_prefetch = 0 : i64, scratch_operands = 0 : i64, tpu.core_type = #tpu.core_type<tc>, window_params = [{pipeline_mode = #tpu.pipeline_mode<synchronous>, transform_indices = @transform_0, window_bounds = array<i64: 32, 288>}, {pipeline_mode = #tpu.pipeline_mode<synchronous>, transform_indices = @transform_1, window_bounds = array<i64: 288, 50>}, {pipeline_mode = #tpu.pipeline_mode<synchronous>, transform_indices = @transform_2, window_bounds = array<i64: 32, 1>}, {pipeline_mode = #tpu.pipeline_mode<synchronous>, transform_indices = @transform_3, window_bounds = array<i64: 32, 50>}]} {
    %c0 = arith.constant 0 : index
    %c0_0 = arith.constant 0 : index
    %0 = vector.load %arg1[%c0, %c0_0] : memref<32x288xf32, #tpu.memory_space<vmem>>, vector<32x288xf32>
    %c0_1 = arith.constant 0 : index
    %c0_2 = arith.constant 0 : index
    %1 = vector.load %arg2[%c0_1, %c0_2] : memref<288x50xf32, #tpu.memory_space<vmem>>, vector<288x50xf32>
    %cst = arith.constant dense<0.000000e+00> : vector<32x50xf32>
    %2 = tpu.matmul %0, %1, %cst {dimension_numbers = #tpu.dot_dimension_numbers<[1], [0], [0], [1], [0, 0, 1, 1], [], []>} : vector<32x288xf32>, vector<288x50xf32>, vector<32x50xf32> -> vector<32x50xf32>
    %c0_3 = arith.constant 0 : index
    %c0_4 = arith.constant 0 : index
    %3 = vector.load %arg3[%c0_3, %c0_4] : memref<32x1xf32, #tpu.memory_space<vmem>>, vector<32x1xf32>
    %4 = vector.broadcast %3 : vector<32x1xf32> to vector<32x50xf32>
    %5 = arith.addf %2, %4 : vector<32x50xf32>
    %cst_5 = arith.constant 0.000000e+00 : f32
    %6 = vector.broadcast %cst_5 : f32 to vector<32x50xf32>
    %7 = arith.cmpf ogt, %5, %6 : vector<32x50xf32>
    %cst_6 = arith.constant 0.000000e+00 : f32
    %8 = vector.broadcast %cst_6 : f32 to vector<32x50xf32>
    %9 = arith.minimumf %5, %8 : vector<32x50xf32>
    %10 = math.exp %9 : vector<32x50xf32>
    %cst_7 = arith.constant 1.000000e+00 : f32
    %11 = vector.broadcast %cst_7 : f32 to vector<32x50xf32>
    %12 = arith.subf %10, %11 : vector<32x50xf32>
    %13 = arith.select %7, %5, %12 : vector<32x50xi1>, vector<32x50xf32>
    %c0_8 = arith.constant 0 : index
    %c0_9 = arith.constant 0 : index
    %14 = vector.load %arg4[%c0_8, %c0_9] : memref<32x50xf32, #tpu.memory_space<vmem>>, vector<32x50xf32>
    tpu.vector_store %arg4[%c0_8, %c0_9], %13 {strides = array<i32>} : memref<32x50xf32, #tpu.memory_space<vmem>>, vector<32x50xf32>,
    return
  }
  func.func @transform_0(%arg0: i32) -> (i32, i32) {
    %c0_i32 = arith.constant 0 : i32
    %c0_i32_0 = arith.constant 0 : i32
    %c0_i32_1 = arith.constant 0 : i32
    return %c0_i32, %c0_i32_0 : i32, i32
  }
  func.func @transform_1(%arg0: i32) -> (i32, i32) {
    %c0_i32 = arith.constant 0 : i32
    %c0_i32_0 = arith.constant 0 : i32
    %c0_i32_1 = arith.constant 0 : i32
    return %c0_i32, %c0_i32_0 : i32, i32
  }
  func.func @transform_2(%arg0: i32) -> (i32, i32) {
    %c0_i32 = arith.constant 0 : i32
    %c0_i32_0 = arith.constant 0 : i32
    %c0_i32_1 = arith.constant 0 : i32
    return %c0_i32, %c0_i32_0 : i32, i32
  }
  func.func @transform_3(%arg0: i32) -> (i32, i32) {
    %c0_i32 = arith.constant 0 : i32
    %c0_i32_0 = arith.constant 0 : i32
    %c0_i32_1 = arith.constant 0 : i32
    return %c0_i32, %c0_i32_0 : i32, i32
  }
}

module attributes {stable_mosaic.version = 11 : i64} {
  func.func @lstm_heads_kernel(%arg0: i32, %arg1: memref<2x800xf32, #tpu.memory_space<vmem>>, %arg2: memref<2x256xf32, #tpu.memory_space<vmem>>, %arg3: memref<2x256xf32, #tpu.memory_space<vmem>>, %arg4: memref<800x1024xf32, #tpu.memory_space<vmem>>, %arg5: memref<256x1024xf32, #tpu.memory_space<vmem>>, %arg6: memref<1x1024xf32, #tpu.memory_space<vmem>>, %arg7: memref<256x128xf32, #tpu.memory_space<vmem>>, %arg8: memref<1x128xf32, #tpu.memory_space<vmem>>, %arg9: memref<2x256xf32, #tpu.memory_space<vmem>>, %arg10: memref<2x256xf32, #tpu.memory_space<vmem>>, %arg11: memref<2x128xf32, #tpu.memory_space<vmem>>) attributes {dimension_semantics = [#tpu.dimension_semantics<arbitrary>], iteration_bounds = array<i64: 1>, scalar_prefetch = 0 : i64, scratch_operands = 0 : i64, tpu.core_type = #tpu.core_type<tc>, window_params = [{pipeline_mode = #tpu.pipeline_mode<synchronous>, transform_indices = @transform_0, window_bounds = array<i64: 2, 800>}, {pipeline_mode = #tpu.pipeline_mode<synchronous>, transform_indices = @transform_1, window_bounds = array<i64: 2, 256>}, {pipeline_mode = #tpu.pipeline_mode<synchronous>, transform_indices = @transform_2, window_bounds = array<i64: 2, 256>}, {pipeline_mode = #tpu.pipeline_mode<synchronous>, transform_indices = @transform_3, window_bounds = array<i64: 800, 1024>}, {pipeline_mode = #tpu.pipeline_mode<synchronous>, transform_indices = @transform_4, window_bounds = array<i64: 256, 1024>}, {pipeline_mode = #tpu.pipeline_mode<synchronous>, transform_indices = @transform_5, window_bounds = array<i64: 1, 1024>}, {pipeline_mode = #tpu.pipeline_mode<synchronous>, transform_indices = @transform_6, window_bounds = array<i64: 256, 128>}, {pipeline_mode = #tpu.pipeline_mode<synchronous>, transform_indices = @transform_7, window_bounds = array<i64: 1, 128>}, {pipeline_mode = #tpu.pipeline_mode<synchronous>, transform_indices = @transform_8, window_bounds = array<i64: 2, 256>}, {pipeline_mode = #tpu.pipeline_mode<synchronous>, transform_indices = @transform_9, window_bounds = array<i64: 2, 256>}, {pipeline_mode = #tpu.pipeline_mode<synchronous>, transform_indices = @transform_10, window_bounds = array<i64: 2, 128>}]} {
    %c0 = arith.constant 0 : index
    %c0_0 = arith.constant 0 : index
    %0 = vector.load %arg1[%c0, %c0_0] : memref<2x800xf32, #tpu.memory_space<vmem>>, vector<2x800xf32>
    %c0_1 = arith.constant 0 : index
    %c0_2 = arith.constant 0 : index
    %1 = vector.load %arg4[%c0_1, %c0_2] : memref<800x1024xf32, #tpu.memory_space<vmem>>, vector<800x1024xf32>
    %cst = arith.constant dense<0.000000e+00> : vector<2x1024xf32>
    %2 = tpu.matmul %0, %1, %cst {dimension_numbers = #tpu.dot_dimension_numbers<[1], [0], [0], [1], [0, 0, 1, 1], [], []>} : vector<2x800xf32>, vector<800x1024xf32>, vector<2x1024xf32> -> vector<2x1024xf32>
    %c0_3 = arith.constant 0 : index
    %c0_4 = arith.constant 0 : index
    %3 = vector.load %arg2[%c0_3, %c0_4] : memref<2x256xf32, #tpu.memory_space<vmem>>, vector<2x256xf32>
    %c0_5 = arith.constant 0 : index
    %c0_6 = arith.constant 0 : index
    %4 = vector.load %arg5[%c0_5, %c0_6] : memref<256x1024xf32, #tpu.memory_space<vmem>>, vector<256x1024xf32>
    %cst_7 = arith.constant dense<0.000000e+00> : vector<2x1024xf32>
    %5 = tpu.matmul %3, %4, %cst_7 {dimension_numbers = #tpu.dot_dimension_numbers<[1], [0], [0], [1], [0, 0, 1, 1], [], []>} : vector<2x256xf32>, vector<256x1024xf32>, vector<2x1024xf32> -> vector<2x1024xf32>
    %6 = arith.addf %2, %5 : vector<2x1024xf32>
    %c0_8 = arith.constant 0 : index
    %c0_9 = arith.constant 0 : index
    %7 = vector.load %arg6[%c0_8, %c0_9] : memref<1x1024xf32, #tpu.memory_space<vmem>>, vector<1x1024xf32>
    %8 = vector.broadcast %7 : vector<1x1024xf32> to vector<2x1024xf32>
    %9 = arith.addf %6, %8 : vector<2x1024xf32>
    %10 = vector.extract_strided_slice %9 {offsets = [0, 0], sizes = [2, 256], strides = [1, 1]} : vector<2x1024xf32> to vector<2x256xf32>
    %cst_10 = arith.constant 0.000000e+00 : f32
    %11 = vector.broadcast %cst_10 : f32 to vector<2x256xf32>
    %12 = arith.subf %11, %10 : vector<2x256xf32>
    %13 = math.exp %12 : vector<2x256xf32>
    %cst_11 = arith.constant 1.000000e+00 : f32
    %14 = vector.broadcast %cst_11 : f32 to vector<2x256xf32>
    %15 = arith.addf %14, %13 : vector<2x256xf32>
    %cst_12 = arith.constant 1.000000e+00 : f32
    %16 = vector.broadcast %cst_12 : f32 to vector<2x256xf32>
    %17 = arith.divf %16, %15 : vector<2x256xf32>
    %18 = vector.extract_strided_slice %9 {offsets = [0, 256], sizes = [2, 256], strides = [1, 1]} : vector<2x1024xf32> to vector<2x256xf32>
    %cst_13 = arith.constant 0.000000e+00 : f32
    %19 = vector.broadcast %cst_13 : f32 to vector<2x256xf32>
    %20 = arith.subf %19, %18 : vector<2x256xf32>
    %21 = math.exp %20 : vector<2x256xf32>
    %cst_14 = arith.constant 1.000000e+00 : f32
    %22 = vector.broadcast %cst_14 : f32 to vector<2x256xf32>
    %23 = arith.addf %22, %21 : vector<2x256xf32>
    %cst_15 = arith.constant 1.000000e+00 : f32
    %24 = vector.broadcast %cst_15 : f32 to vector<2x256xf32>
    %25 = arith.divf %24, %23 : vector<2x256xf32>
    %26 = vector.extract_strided_slice %9 {offsets = [0, 512], sizes = [2, 256], strides = [1, 1]} : vector<2x1024xf32> to vector<2x256xf32>
    %27 = math.tanh %26 : vector<2x256xf32>
    %28 = vector.extract_strided_slice %9 {offsets = [0, 768], sizes = [2, 256], strides = [1, 1]} : vector<2x1024xf32> to vector<2x256xf32>
    %cst_16 = arith.constant 0.000000e+00 : f32
    %29 = vector.broadcast %cst_16 : f32 to vector<2x256xf32>
    %30 = arith.subf %29, %28 : vector<2x256xf32>
    %31 = math.exp %30 : vector<2x256xf32>
    %cst_17 = arith.constant 1.000000e+00 : f32
    %32 = vector.broadcast %cst_17 : f32 to vector<2x256xf32>
    %33 = arith.addf %32, %31 : vector<2x256xf32>
    %cst_18 = arith.constant 1.000000e+00 : f32
    %34 = vector.broadcast %cst_18 : f32 to vector<2x256xf32>
    %35 = arith.divf %34, %33 : vector<2x256xf32>
    %c0_19 = arith.constant 0 : index
    %c0_20 = arith.constant 0 : index
    %36 = vector.load %arg3[%c0_19, %c0_20] : memref<2x256xf32, #tpu.memory_space<vmem>>, vector<2x256xf32>
    %37 = arith.mulf %25, %36 : vector<2x256xf32>
    %38 = arith.mulf %17, %27 : vector<2x256xf32>
    %39 = arith.addf %37, %38 : vector<2x256xf32>
    %40 = math.tanh %39 : vector<2x256xf32>
    %41 = arith.mulf %35, %40 : vector<2x256xf32>
    %c0_21 = arith.constant 0 : index
    %c0_22 = arith.constant 0 : index
    %42 = vector.load %arg10[%c0_21, %c0_22] : memref<2x256xf32, #tpu.memory_space<vmem>>, vector<2x256xf32>
    tpu.vector_store %arg10[%c0_21, %c0_22], %39 {strides = array<i32>} : memref<2x256xf32, #tpu.memory_space<vmem>>, vector<2x256xf32>,
    %c0_23 = arith.constant 0 : index
    %c0_24 = arith.constant 0 : index
    %43 = vector.load %arg9[%c0_23, %c0_24] : memref<2x256xf32, #tpu.memory_space<vmem>>, vector<2x256xf32>
    tpu.vector_store %arg9[%c0_23, %c0_24], %41 {strides = array<i32>} : memref<2x256xf32, #tpu.memory_space<vmem>>, vector<2x256xf32>,
    %c0_25 = arith.constant 0 : index
    %c0_26 = arith.constant 0 : index
    %44 = vector.load %arg7[%c0_25, %c0_26] : memref<256x128xf32, #tpu.memory_space<vmem>>, vector<256x128xf32>
    %cst_27 = arith.constant dense<0.000000e+00> : vector<2x128xf32>
    %45 = tpu.matmul %41, %44, %cst_27 {dimension_numbers = #tpu.dot_dimension_numbers<[1], [0], [0], [1], [0, 0, 1, 1], [], []>} : vector<2x256xf32>, vector<256x128xf32>, vector<2x128xf32> -> vector<2x128xf32>
    %c0_28 = arith.constant 0 : index
    %c0_29 = arith.constant 0 : index
    %46 = vector.load %arg8[%c0_28, %c0_29] : memref<1x128xf32, #tpu.memory_space<vmem>>, vector<1x128xf32>
    %47 = vector.broadcast %46 : vector<1x128xf32> to vector<2x128xf32>
    %48 = arith.addf %45, %47 : vector<2x128xf32>
    %c0_30 = arith.constant 0 : index
    %c0_31 = arith.constant 0 : index
    %49 = vector.load %arg11[%c0_30, %c0_31] : memref<2x128xf32, #tpu.memory_space<vmem>>, vector<2x128xf32>
    tpu.vector_store %arg11[%c0_30, %c0_31], %48 {strides = array<i32>} : memref<2x128xf32, #tpu.memory_space<vmem>>, vector<2x128xf32>,
    return
  }
  func.func @transform_0(%arg0: i32) -> (i32, i32) {
    %c0_i32 = arith.constant 0 : i32
    %c0_i32_0 = arith.constant 0 : i32
    %c0_i32_1 = arith.constant 0 : i32
    return %c0_i32, %c0_i32_0 : i32, i32
  }
  func.func @transform_1(%arg0: i32) -> (i32, i32) {
    %c0_i32 = arith.constant 0 : i32
    %c0_i32_0 = arith.constant 0 : i32
    %c0_i32_1 = arith.constant 0 : i32
    return %c0_i32, %c0_i32_0 : i32, i32
  }
  func.func @transform_2(%arg0: i32) -> (i32, i32) {
    %c0_i32 = arith.constant 0 : i32
    %c0_i32_0 = arith.constant 0 : i32
    %c0_i32_1 = arith.constant 0 : i32
    return %c0_i32, %c0_i32_0 : i32, i32
  }
  func.func @transform_3(%arg0: i32) -> (i32, i32) {
    %c0_i32 = arith.constant 0 : i32
    %c0_i32_0 = arith.constant 0 : i32
    %c0_i32_1 = arith.constant 0 : i32
    return %c0_i32, %c0_i32_0 : i32, i32
  }
  func.func @transform_4(%arg0: i32) -> (i32, i32) {
    %c0_i32 = arith.constant 0 : i32
    %c0_i32_0 = arith.constant 0 : i32
    %c0_i32_1 = arith.constant 0 : i32
    return %c0_i32, %c0_i32_0 : i32, i32
  }
  func.func @transform_5(%arg0: i32) -> (i32, i32) {
    %c0_i32 = arith.constant 0 : i32
    %c0_i32_0 = arith.constant 0 : i32
    %c0_i32_1 = arith.constant 0 : i32
    return %c0_i32, %c0_i32_0 : i32, i32
  }
  func.func @transform_6(%arg0: i32) -> (i32, i32) {
    %c0_i32 = arith.constant 0 : i32
    %c0_i32_0 = arith.constant 0 : i32
    %c0_i32_1 = arith.constant 0 : i32
    return %c0_i32, %c0_i32_0 : i32, i32
  }
  func.func @transform_7(%arg0: i32) -> (i32, i32) {
    %c0_i32 = arith.constant 0 : i32
    %c0_i32_0 = arith.constant 0 : i32
    %c0_i32_1 = arith.constant 0 : i32
    return %c0_i32, %c0_i32_0 : i32, i32
  }
  func.func @transform_8(%arg0: i32) -> (i32, i32) {
    %c0_i32 = arith.constant 0 : i32
    %c0_i32_0 = arith.constant 0 : i32
    %c0_i32_1 = arith.constant 0 : i32
    return %c0_i32, %c0_i32_0 : i32, i32
  }
  func.func @transform_9(%arg0: i32) -> (i32, i32) {
    %c0_i32 = arith.constant 0 : i32
    %c0_i32_0 = arith.constant 0 : i32
    %c0_i32_1 = arith.constant 0 : i32
    return %c0_i32, %c0_i32_0 : i32, i32
  }
  func.func @transform_10(%arg0: i32) -> (i32, i32) {
    %c0_i32 = arith.constant 0 : i32
    %c0_i32_0 = arith.constant 0 : i32
    %c0_i32_1 = arith.constant 0 : i32
    return %c0_i32, %c0_i32_0 : i32, i32
  }
}

</mosaic_0001>

<bundles_post_ra>
// kernel: nn_policy_forward_pallas.5
= control target key start
LH: loop header
LB: loop body
LE: loop exit
PB: predicated region body
PF: predicated region fallthrough
CT: control target
= control target key end

     0   :  { %vm105_vm0 = vcmask 1040384   ;;  %v2439_v3 = vmov 0.0   ;;  %vm92_vm1 = vcmask 72704   ;;  %v2440_v24 = vmov 0   ;;  %s3983_s1 = inlined_call_operand.vmem [shape: f32[9,3200], index: 1, kind: input, shape index: {}]   ;;  %s3984_s0 = inlined_call_operand.vmem [shape: f32[32,9], index: 0, kind: input, shape index: {}]   ;;  %s3985_s2 = inlined_call_operand.vmem [shape: f32[32,1], index: 2, kind: input, shape index: {}]   ;;  %s3986_s3 = inlined_call_operand.vmem [shape: f32[32,3200], index: 3, kind: output, shape index: {}]  }
   0x1   :  { %v44_v0 = vld [vmem:[%s3983_s1 + $0xd0] sm:$0x1]  ;;  %v43_v1 = vld [vmem:[%s3983_s1 + $0xc8] sm:$0x1]  ;;  %245 = vmatprep.mubr.f32.mxu0 %v2439_v3  ;;  %263 = vmatprep.mubr.f32.mxu1 %v2439_v3  ;;  %v18_v4 = vld [vmem:[%s3983_s1] sm:$0xff] }
   0x2   :  { %v19_v2 = vld [vmem:[%s3983_s1 + $0x8] sm:$0xff]  ;;  %2038 = vmatprep.subr.msk.mxu0 %vm105_vm0, %v44_v0  ;;  %2231 = vmatprep.subr.msk.mxu1 %vm105_vm0, %v44_v0  ;;  %v2482_v5 = vld [vmem:[%s3984_s0] sm:$0xff]  ;;  %v2487_v6 = vld [vmem:[%s3984_s0 + $0x18] sm:$0xff] }
   0x3   :  { %2039 = vmatpush1.msk.msra.mxu0 %vm105_vm0, %v43_v1  ;;  %2233 = vmatpush1.msk.msra.mxu1 %vm105_vm0, %v43_v1  ;;  %v46_v7 = vld [vmem:[%s3983_s1 + $0xe0] sm:$0x1]  ;;  %v48_v8 = vld [vmem:[%s3983_s1 + $0xf0] sm:$0x1]  ;;  %v45_v9 = vld [vmem:[%s3983_s1 + $0xd8] sm:$0x1] }
   0x4   :  { %211 = vmatprep.subr.mxu0 %v19_v2  ;;  %2232 = vmatprep.subr.mxu1 %v19_v2  ;;  %v47_v10 = vld [vmem:[%s3983_s1 + $0xe8] sm:$0x1]  ;;  %v21_v11 = vld [vmem:[%s3983_s1 + $0x18] sm:$0xff]  ;;  %v20_v12 = vld [vmem:[%s3983_s1 + $0x10] sm:$0xff] }
   0x5   :  { %212 = vmatpush1.msra.mxu0 %v18_v4  ;;  %2234 = vmatpush1.msra.mxu1 %v18_v4  ;;  %v2518_v13 = vld [vmem:[%s3984_s0 + $0x8] sm:$0xff]  ;;  %v50_v14 = vld [vmem:[%s3983_s1 + $0x100] sm:$0x1]  ;;  %v49_v16 = vld [vmem:[%s3983_s1 + $0xf8] sm:$0x1] }
   0x6   :  { %2040 = vmatmul.mubr.msk.f32.vlgmr.msra.gmra.mxu0 %vm92_vm1, %v2482_v5  ;;  %2043 = vmatmul.mubr.msk.f32.vlgmr.msra.gmra.mxu1 %vm92_vm1, %v2487_v6  ;;  %v23_v15 = vld [vmem:[%s3983_s1 + $0x28] sm:$0xff]  ;;  %v22_v17 = vld [vmem:[%s3983_s1 + $0x20] sm:$0xff]  ;;  %v2542_v18 = vld [vmem:[%s3984_s0 + $0x10] sm:$0xff] }
   0x7   :  { %2044 = vmatprep.subr.msk.mxu1 %vm105_vm0, %v46_v7  ;;  %2050 = vmatprep.subr.msk.mxu0 %vm105_vm0, %v48_v8  ;;  %v25_v19 = vld [vmem:[%s3983_s1 + $0x38] sm:$0xff]  ;;  %v52_v20 = vld [vmem:[%s3983_s1 + $0x110] sm:$0x1]  ;;  %v51_v22 = vld [vmem:[%s3983_s1 + $0x108] sm:$0x1] }
   0x8   :  { %2045 = vmatpush1.msk.msra.mxu1 %vm105_vm0, %v45_v9  ;;  %2051 = vmatpush1.msk.msra.mxu0 %vm105_vm0, %v47_v10  ;;  %v24_v21 = vld [vmem:[%s3983_s1 + $0x30] sm:$0xff]  ;;  %v27_v23 = vld [vmem:[%s3983_s1 + $0x48] sm:$0xff]  ;;  %v54_v25 = vld [vmem:[%s3983_s1 + $0x120] sm:$0x1] }
   0x9   :  { %300 = vmatprep.subr.mxu1 %v21_v11  ;;  %251 = vmatprep.mubr.f32.mxu0 %v2439_v3  ;;  %v26_v26 = vld [vmem:[%s3983_s1 + $0x40] sm:$0xff]  ;;  %v56_v27 = vld [vmem:[%s3983_s1 + $0x130] sm:$0x1]  ;;  %v53_v29 = vld [vmem:[%s3983_s1 + $0x118] sm:$0x1] }
   0xa   :  { %301 = vmatpush1.msra.mxu1 %v20_v12  ;;  %334 = vmatprep.mubr.f32.mxu1 %v2439_v3  ;;  %v70_v28 = vld [vmem:[%s3985_s2 + $0x10] sm:$0xff]  ;;  %v29_v30 = vld [vmem:[%s3983_s1 + $0x58] sm:$0xff]  ;;  %v58_v33 = vld [vmem:[%s3983_s1 + $0x140] sm:$0x1] }
   0xb   :  { %2041 = vmatmul.mubr.msk.f32.gmra.mxu0 %vm92_vm1, %v2518_v13  ;;  %2046 = vmatmul.mubr.msk.f32.vlgmr.msra.gmra.mxu1 %vm92_vm1, %v2482_v5  ;;  %v28_v31 = vld [vmem:[%s3983_s1 + $0x50] sm:$0xff]  ;;  %v71_v32 = vld [vmem:[%s3985_s2 + $0x18] sm:$0xff]  ;;  %v68_v34 = vld [vmem:[%s3985_s2] sm:$0xff] }
   0xc   :  { %2056 = vmatprep.subr.msk.mxu1 %vm105_vm0, %v50_v14  ;;  %389 = vmatprep.subr.mxu0 %v23_v15  ;;  %v55_v35 = vld [vmem:[%s3983_s1 + $0x128] sm:$0x1]  ;;  %v30_v37 = vld [vmem:[%s3983_s1 + $0x60] sm:$0xff]  ;;  %v60_v39 = vld [vmem:[%s3983_s1 + $0x150] sm:$0x1] }
   0xd   :  { %2057 = vmatpush1.msk.msra.mxu1 %vm105_vm0, %v49_v16  ;;  %257 = vmatprep.mubr.f32.mxu0 %v2439_v3  ;;  %v31_v36 = vld [vmem:[%s3983_s1 + $0x68] sm:$0xff]  ;;  %v57_v40 = vld [vmem:[%s3983_s1 + $0x138] sm:$0x1]  ;;  %v32_v42 = vld [vmem:[%s3983_s1 + $0x70] sm:$0xff] }
   0xe   :  { %340 = vmatprep.mubr.f32.mxu1 %v2439_v3  ;;  %390 = vmatpush1.msra.mxu0 %v22_v17  ;;  %v69_v38 = vld [vmem:[%s3985_s2 + $0x8] sm:$0xff]  ;;  %v33_v41 = vld [vmem:[%s3983_s1 + $0x78] sm:$0xff]  ;;  %v62_v43 = vld [vmem:[%s3983_s1 + $0x160] sm:$0x1] }
   0xf   :  { %2042 = vmatmul.mubr.msk.f32.gmra.mxu0 %vm92_vm1, %v2542_v18  ;;  %2047 = vmatmul.mubr.msk.f32.gmra.mxu1 %vm92_vm1, %v2518_v13  ;;  %v59_v44 = vld [vmem:[%s3983_s1 + $0x148] sm:$0x1]  ;;  %v34_v46 = vld [vmem:[%s3983_s1 + $0x80] sm:$0xff]  ;;  %v64_v47 = vld [vmem:[%s3983_s1 + $0x170] sm:$0x1] }
  0x10   :  { %346 = vmatprep.mubr.f32.mxu1 %v2439_v3  ;;  %423 = vmatprep.mubr.f32.mxu0 %v2439_v3  ;;  %v35_v45 = vld [vmem:[%s3983_s1 + $0x88] sm:$0xff]  ;;  %v61_v48 = vld [vmem:[%s3983_s1 + $0x158] sm:$0x1]  ;;  %v36_v50 = vld [vmem:[%s3983_s1 + $0x90] sm:$0xff] }
  0x11   :  { %478 = vmatprep.subr.mxu1 %v25_v19  ;;  %2062 = vmatprep.subr.msk.mxu0 %vm105_vm0, %v52_v20  ;;  %v37_v49 = vld [vmem:[%s3983_s1 + $0x98] sm:$0xff]  ;;  %v66_v51 = vld [vmem:[%s3983_s1 + $0x180] sm:$0x1]  ;;  %v63_v52 = vld [vmem:[%s3983_s1 + $0x168] sm:$0x1] }
  0x12   :  { %479 = vmatpush1.msra.mxu1 %v24_v21  ;;  %2238 = vset.pattern.permute.xlu1 %v2440_v24  ;;  %v39_v53 = vld [vmem:[%s3983_s1 + $0xa8] sm:$0xff]  ;;  %v38_v54 = vld [vmem:[%s3983_s1 + $0xa0] sm:$0xff]  ;;  %v65_v56 = vld [vmem:[%s3983_s1 + $0x178] sm:$0x1] }
  0x13   :  { %2048 = vmatmul.mubr.msk.f32.gmra.mxu1 %vm92_vm1, %v2542_v18  ;;  %2052 = vmatmul.mubr.msk.f32.vlgmr.msra.gmra.mxu0 %vm92_vm1, %v2482_v5  ;;  %v67_v55 = vld [vmem:[%s3983_s1 + $0x188] sm:$0x1]  ;;  %v41_v57 = vld [vmem:[%s3983_s1 + $0xb8] sm:$0xff]  ;;  %v40_v58 = vld [vmem:[%s3983_s1 + $0xb0] sm:$0xff] }
  0x14   :  { %2063 = vmatpush1.msk.msra.mxu0 %vm105_vm0, %v51_v22  ;;  %352 = vmatprep.mubr.f32.mxu1 %v2439_v3  ;;  %v42_v59 = vld [vmem:[%s3983_s1 + $0xc0] sm:$0xff] }
  0x15   :  { %429 = vmatprep.mubr.f32.mxu0 %v2439_v3  ;;  %567 = vmatprep.subr.mxu0 %v27_v23 }
  0x16   :  { %2068 = vmatprep.subr.msk.mxu1 %vm105_vm0, %v54_v25  ;;  %568 = vmatpush1.msra.mxu0 %v26_v26 }
  0x17   :  { %2049 = vmatmul.mubr.msk.f32.gmra.mxu1 %vm92_vm1, %v2487_v6  ;;  %2053 = vmatmul.mubr.msk.f32.gmra.mxu0 %vm92_vm1, %v2518_v13 }
  0x18   :  { %435 = vmatprep.mubr.f32.mxu0 %v2439_v3  ;;  %512 = vmatprep.mubr.f32.mxu1 %v2439_v3 }
  0x19   :  { %2074 = vmatprep.subr.msk.mxu0 %vm105_vm0, %v56_v27  ;;  %84 = vperm.xlu1 %2238, %v70_v28  }
  0x1a   :  { %2237 = vset.pattern.permute.xlu0 %v2440_v24 }
  0x1b   :  { %2054 = vmatmul.mubr.msk.f32.gmra.mxu0 %vm92_vm1, %v2542_v18  ;;  %2058 = vmatmul.mubr.msk.f32.vlgmr.msra.gmra.mxu1 %vm92_vm1, %v2482_v5 }
  0x1c   :  { %2069 = vmatpush1.msk.msra.mxu1 %vm105_vm0, %v53_v29  ;;  %441 = vmatprep.mubr.f32.mxu0 %v2439_v3 }
  0x1d   :  { %518 = vmatprep.mubr.f32.mxu1 %v2439_v3  ;;  %656 = vmatprep.subr.mxu1 %v29_v30 }
  0x1e   :  { %657 = vmatpush1.msra.mxu1 %v28_v31  ;;  %89 = vperm.xlu1 %2238, %v71_v32  }
  0x1f   :  { %2055 = vmatmul.mubr.msk.f32.gmra.mxu0 %vm92_vm1, %v2487_v6  ;;  %2059 = vmatmul.mubr.msk.f32.gmra.mxu1 %vm92_vm1, %v2518_v13 }
  0x20   :  { %524 = vmatprep.mubr.f32.mxu1 %v2439_v3  ;;  %601 = vmatprep.mubr.f32.mxu0 %v2439_v3 }
  0x21   :  { %2080 = vmatprep.subr.msk.mxu1 %vm105_vm0, %v58_v33  ;;  %74 = vperm.xlu0 %2237, %v68_v34  }
  0x23   :  { %2060 = vmatmul.mubr.msk.f32.gmra.mxu1 %vm92_vm1, %v2542_v18  ;;  %2064 = vmatmul.mubr.msk.f32.vlgmr.msra.gmra.mxu0 %vm92_vm1, %v2482_v5 }
  0x24   :  { %2075 = vmatpush1.msk.msra.mxu0 %vm105_vm0, %v55_v35  ;;  %530 = vmatprep.mubr.f32.mxu1 %v2439_v3 }
  0x25   :  { %607 = vmatprep.mubr.f32.mxu0 %v2439_v3  ;;  %745 = vmatprep.subr.mxu0 %v31_v36 }
  0x26   :  { %746 = vmatpush1.msra.mxu0 %v30_v37  ;;  %79 = vperm.xlu0 %2237, %v69_v38  }
  0x27   :  { %2061 = vmatmul.mubr.msk.f32.gmra.mxu1 %vm92_vm1, %v2487_v6  ;;  %2065 = vmatmul.mubr.msk.f32.gmra.mxu0 %vm92_vm1, %v2518_v13 }
  0x28   :  { %613 = vmatprep.mubr.f32.mxu0 %v2439_v3  ;;  %690 = vmatprep.mubr.f32.mxu1 %v2439_v3 }
  0x29   :  { %2086 = vmatprep.subr.msk.mxu0 %vm105_vm0, %v60_v39 }
  0x2b   :  { %2066 = vmatmul.mubr.msk.f32.gmra.mxu0 %vm92_vm1, %v2542_v18  ;;  %2070 = vmatmul.mubr.msk.f32.vlgmr.msra.gmra.mxu1 %vm92_vm1, %v2482_v5 }
  0x2c   :  { %2081 = vmatpush1.msk.msra.mxu1 %vm105_vm0, %v57_v40  ;;  %619 = vmatprep.mubr.f32.mxu0 %v2439_v3 }
  0x2d   :  { %696 = vmatprep.mubr.f32.mxu1 %v2439_v3  ;;  %834 = vmatprep.subr.mxu1 %v33_v41 }
  0x2e   :  { %835 = vmatpush1.msra.mxu1 %v32_v42 }
  0x2f   :  { %2067 = vmatmul.mubr.msk.f32.gmra.mxu0 %vm92_vm1, %v2487_v6  ;;  %2071 = vmatmul.mubr.msk.f32.gmra.mxu1 %vm92_vm1, %v2518_v13 }
  0x30   :  { %702 = vmatprep.mubr.f32.mxu1 %v2439_v3  ;;  %779 = vmatprep.mubr.f32.mxu0 %v2439_v3 }
  0x31   :  { %2092 = vmatprep.subr.msk.mxu1 %vm105_vm0, %v62_v43 }
  0x33   :  { %2072 = vmatmul.mubr.msk.f32.gmra.mxu1 %vm92_vm1, %v2542_v18  ;;  %2076 = vmatmul.mubr.msk.f32.vlgmr.msra.gmra.mxu0 %vm92_vm1, %v2482_v5 }
  0x34   :  { %2087 = vmatpush1.msk.msra.mxu0 %vm105_vm0, %v59_v44  ;;  %708 = vmatprep.mubr.f32.mxu1 %v2439_v3 }
  0x35   :  { %785 = vmatprep.mubr.f32.mxu0 %v2439_v3  ;;  %923 = vmatprep.subr.mxu0 %v35_v45 }
  0x36   :  { %924 = vmatpush1.msra.mxu0 %v34_v46 }
  0x37   :  { %2073 = vmatmul.mubr.msk.f32.gmra.mxu1 %vm92_vm1, %v2487_v6  ;;  %2077 = vmatmul.mubr.msk.f32.gmra.mxu0 %vm92_vm1, %v2518_v13 }
  0x38   :  { %791 = vmatprep.mubr.f32.mxu0 %v2439_v3  ;;  %868 = vmatprep.mubr.f32.mxu1 %v2439_v3 }
  0x39   :  { %2098 = vmatprep.subr.msk.mxu0 %vm105_vm0, %v64_v47 }
  0x3b   :  { %2078 = vmatmul.mubr.msk.f32.gmra.mxu0 %vm92_vm1, %v2542_v18  ;;  %2082 = vmatmul.mubr.msk.f32.vlgmr.msra.gmra.mxu1 %vm92_vm1, %v2482_v5 }
  0x3c   :  { %2093 = vmatpush1.msk.msra.mxu1 %vm105_vm0, %v61_v48  ;;  %797 = vmatprep.mubr.f32.mxu0 %v2439_v3 }
  0x3d   :  { %874 = vmatprep.mubr.f32.mxu1 %v2439_v3  ;;  %1012 = vmatprep.subr.mxu1 %v37_v49 }
  0x3e   :  { %1013 = vmatpush1.msra.mxu1 %v36_v50 }
  0x3f   :  { %2079 = vmatmul.mubr.msk.f32.gmra.mxu0 %vm92_vm1, %v2487_v6  ;;  %2083 = vmatmul.mubr.msk.f32.gmra.mxu1 %vm92_vm1, %v2518_v13 }
  0x40   :  { %880 = vmatprep.mubr.f32.mxu1 %v2439_v3  ;;  %957 = vmatprep.mubr.f32.mxu0 %v2439_v3 }
  0x41   :  { %2104 = vmatprep.subr.msk.mxu1 %vm105_vm0, %v66_v51 }
  0x43   :  { %2084 = vmatmul.mubr.msk.f32.gmra.mxu1 %vm92_vm1, %v2542_v18  ;;  %2088 = vmatmul.mubr.msk.f32.vlgmr.msra.gmra.mxu0 %vm92_vm1, %v2482_v5 }
  0x44   :  { %2099 = vmatpush1.msk.msra.mxu0 %vm105_vm0, %v63_v52  ;;  %886 = vmatprep.mubr.f32.mxu1 %v2439_v3 }
  0x45   :  { %963 = vmatprep.mubr.f32.mxu0 %v2439_v3  ;;  %1101 = vmatprep.subr.mxu0 %v39_v53 }
  0x46   :  { %1102 = vmatpush1.msra.mxu0 %v38_v54 }
  0x47   :  { %2085 = vmatmul.mubr.msk.f32.gmra.mxu1 %vm92_vm1, %v2487_v6  ;;  %2089 = vmatmul.mubr.msk.f32.gmra.mxu0 %vm92_vm1, %v2518_v13 }
  0x48   :  { %969 = vmatprep.mubr.f32.mxu0 %v2439_v3  ;;  %1046 = vmatprep.mubr.f32.mxu1 %v2439_v3 }
  0x49   :  { %2221 = vmatprep.subr.msk.mxu0 %vm105_vm0, %v67_v55 }
  0x4b   :  { %2090 = vmatmul.mubr.msk.f32.gmra.mxu0 %vm92_vm1, %v2542_v18  ;;  %2094 = vmatmul.mubr.msk.f32.vlgmr.msra.gmra.mxu1 %vm92_vm1, %v2482_v5 }
  0x4c   :  { %2105 = vmatpush1.msk.msra.mxu1 %vm105_vm0, %v65_v56  ;;  %975 = vmatprep.mubr.f32.mxu0 %v2439_v3 }
  0x4d   :  { %1052 = vmatprep.mubr.f32.mxu1 %v2439_v3  ;;  %1190 = vmatprep.subr.mxu1 %v41_v57 }
  0x4e   :  { %1191 = vmatpush1.msra.mxu1 %v40_v58 }
  0x4f   :  { %2091 = vmatmul.mubr.msk.f32.gmra.mxu0 %vm92_vm1, %v2487_v6  ;;  %2095 = vmatmul.mubr.msk.f32.gmra.mxu1 %vm92_vm1, %v2518_v13 }
  0x50   :  { %1058 = vmatprep.mubr.f32.mxu1 %v2439_v3  ;;  %1135 = vmatprep.mubr.f32.mxu0 %v2439_v3 }
  0x53   :  { %2096 = vmatmul.mubr.msk.f32.gmra.mxu1 %vm92_vm1, %v2542_v18  ;;  %2100 = vmatmul.mubr.msk.f32.vlgmr.msra.gmra.mxu0 %vm92_vm1, %v2482_v5 }
  0x54   :  { %2222 = vmatpush3.msk.msra.mxu0 %vm105_vm0, %v67_v55  ;;  %1064 = vmatprep.mubr.f32.mxu1 %v2439_v3 }
  0x55   :  { %1141 = vmatprep.mubr.f32.mxu0 %v2439_v3  ;;  %2223 = vmatprep.subr.mxu0 %v42_v59 }
  0x56   :  { %2224 = vmatpush3.msra.mxu0 %v42_v59 }
  0x57   :  { %2097 = vmatmul.mubr.msk.f32.gmra.mxu1 %vm92_vm1, %v2487_v6  ;;  %2101 = vmatmul.mubr.msk.f32.gmra.mxu0 %vm92_vm1, %v2518_v13 }
  0x58   :  { %1147 = vmatprep.mubr.f32.mxu0 %v2439_v3  ;;  %1224 = vmatprep.mubr.f32.mxu1 %v2439_v3 }
  0x5b   :  { %2102 = vmatmul.mubr.msk.f32.gmra.mxu0 %vm92_vm1, %v2542_v18  ;;  %2106 = vmatmul.mubr.msk.f32.vlgmr.msra.gmra.mxu1 %vm92_vm1, %v2482_v5 }
  0x5c   :  { %1153 = vmatprep.mubr.f32.mxu0 %v2439_v3  ;;  %1230 = vmatprep.mubr.f32.mxu1 %v2439_v3 }
  0x5f   :  { %2103 = vmatmul.mubr.msk.f32.gmra.mxu0 %vm92_vm1, %v2487_v6  ;;  %2107 = vmatmul.mubr.msk.f32.gmra.mxu1 %vm92_vm1, %v2518_v13 }
  0x60   :  { %1236 = vmatprep.mubr.f32.mxu1 %v2439_v3  ;;  %2225 = vmatprep.mubr.msk.f32.mxu0 %vm92_vm1, %v2482_v5 }
  0x63   :  { %2108 = vmatmul.mubr.msk.f32.gmra.mxu1 %vm92_vm1, %v2542_v18  ;;  %2226 = vmatmul.mubr.msk.f32.vlgmr.msra.gmra.mxu0 %vm92_vm1, %v2518_v13 }
  0x64   :  { %1242 = vmatprep.mubr.f32.mxu1 %v2439_v3  ;;  %2228 = vmatprep.mubr.msk.f32.mxu0 %vm92_vm1, %v2542_v18 }
  0x67   :  { %2109 = vmatmul.mubr.msk.f32.gmra.mxu1 %vm92_vm1, %v2487_v6  ;;  %2229 = vmatmul.mubr.msk.f32.gmra.mxu0 %vm92_vm1, %v2487_v6 }
  0x94   :  { %v2823_v60 = vpop.permute.xlu1 %84 }
  0x99   :  { %v2825_v61 = vpop.permute.xlu1 %89 }
  0x9c   :  { %v2827_v62 = vpop.permute.xlu0 %74 }
  0xa1   :  { %v2843_v9 = vpop.permute.xlu0 %79 }
  0xc6   :  { %v247_v63 = vpop.f32.mrf.mxu0  ;;  %v265_v0 = vpop.f32.mrf.mxu1 }
  0xc7   :  { %v2830_v1 = vadd.f32 %v247_v63, %v2827_v62  ;;  %v2833_v2 = vadd.f32 %v265_v0, %v2825_v61 }
  0xc8   :  { %v249_v3 = vpop.f32.mrf.mxu0  ;;  %v267_v4 = vpop.f32.mrf.mxu1 }
  0xc9   :  { %v1434_v5 = vmin.f32 %v2830_v1, 0.0  ;;  %v1509_v6 = vmin.f32 %v2833_v2, 0.0  ;;  %v2838_v7 = vadd.f32 %v249_v3, %v2827_v62  ;;  %v2841_v8 = vadd.f32 %v267_v4, %v2825_v61 }
  0xca   :  { %vm1334_vm2 = vcmp.gt.f32.partialorder %v2830_v1, 0.0  ;;  %vm1409_vm3 = vcmp.gt.f32.partialorder %v2833_v2, 0.0 }
  0xcb   :  { %v1534_v10 = vmul.f32 1.442695, %v1434_v5  ;;  %v1684_v11 = vmul.f32 1.442695, %v1509_v6  ;;  %v253_v12 = vpop.f32.mrf.mxu0  ;;  %v336_v13 = vpop.f32.mrf.mxu1  ;;  %v1435_v14 = vmin.f32 %v2838_v7, 0.0  ;;  %v1510_v15 = vmin.f32 %v2841_v8, 0.0 }
  0xcc   :  { %v2848_v16 = vadd.f32 %v253_v12, %v2843_v9  ;;  %v2851_v17 = vadd.f32 %v336_v13, %v2827_v62  ;;  %vm1335_vm4 = vcmp.gt.f32.partialorder %v2838_v7, 0.0  ;;  %vm1410_vm5 = vcmp.gt.f32.partialorder %v2841_v8, 0.0 }
  0xcd   :  { %2239 = vpow2.f32 %v1534_v10  ;;  %v255_v18 = vpop.f32.mrf.mxu0  ;;  %v338_v19 = vpop.f32.mrf.mxu1  ;;  %v1536_v20 = vmul.f32 1.442695, %v1435_v14  ;;  %v1686_v21 = vmul.f32 1.442695, %v1510_v15 }
  0xce   :  { %2241 = vpow2.f32 %v1684_v11  ;;  %v2854_v22 = vadd.f32 %v255_v18, %v2843_v9  ;;  %v1459_v23 = vmin.f32 %v2848_v16, 0.0  ;;  %v1436_v24 = vmin.f32 %v2851_v17, 0.0 }
  0xcf   :  { %v259_v25 = vpop.f32.mrf.mxu0  ;;  %v342_v26 = vpop.f32.mrf.mxu1  ;;  %2243 = vpow2.f32 %v1536_v20  ;;  %v2860_v28 = vadd.f32 %v338_v19, %v2827_v62  ;;  %vm1359_vm6 = vcmp.gt.f32.partialorder %v2848_v16, 0.0  ;;  %vm1336_vm7 = vcmp.gt.f32.partialorder %v2851_v17, 0.0 }
  0xd0   :  { %v1460_v27 = vmin.f32 %v2854_v22, 0.0  ;;  %2245 = vpow2.f32 %v1686_v21  ;;  %v1584_v29 = vmul.f32 1.442695, %v1459_v23  ;;  %v1538_v30 = vmul.f32 1.442695, %v1436_v24 }
  0xd1   :  { %v2863_v31 = vadd.f32 %v259_v25, %v2823_v60  ;;  %v261_v32 = vpop.f32.mrf.mxu0  ;;  %v344_v33 = vpop.f32.mrf.mxu1  ;;  %v1437_v35 = vmin.f32 %v2860_v28, 0.0  ;;  %v2867_v36 = vadd.f32 %v342_v26, %v2843_v9  ;;  %vm1360_vm8 = vcmp.gt.f32.partialorder %v2854_v22, 0.0 }
  0xd2   :  { %v1586_v34 = vmul.f32 1.442695, %v1460_v27  ;;  %2247 = vpow2.f32 %v1584_v29  ;;  %v2871_v38 = vadd.f32 %v261_v32, %v2823_v60  ;;  %v2877_v48 = vadd.f32 %v344_v33, %v2843_v9 }
  0xd3   :  { %v1484_v37 = vmin.f32 %v2863_v31, 0.0  ;;  %v348_v39 = vpop.f32.mrf.mxu1  ;;  %v425_v40 = vpop.f32.mrf.mxu0  ;;  %2249 = vpow2.f32 %v1538_v30  ;;  %v1540_v41 = vmul.f32 1.442695, %v1437_v35  ;;  %v1461_v42 = vmin.f32 %v2867_v36, 0.0 }
  0xd4   :  { %2251 = vpow2.f32 %v1586_v34  ;;  %v1485_v44 = vmin.f32 %v2871_v38, 0.0  ;;  %v2880_v49 = vadd.f32 %v348_v39, %v2823_v60  ;;  %v2883_v51 = vadd.f32 %v425_v40, %v2827_v62 }
  0xd5   :  { %v1634_v43 = vmul.f32 1.442695, %v1484_v37  ;;  %v350_v45 = vpop.f32.mrf.mxu1  ;;  %v427_v46 = vpop.f32.mrf.mxu0  ;;  %2253 = vpow2.f32 %v1540_v41  ;;  %v1588_v47 = vmul.f32 1.442695, %v1461_v42  ;;  %v1462_v55 = vmin.f32 %v2877_v48, 0.0 }
  0xd6   :  { %v1636_v50 = vmul.f32 1.442695, %v1485_v44  ;;  %v2886_v52 = vadd.f32 %v350_v45, %v2823_v60  ;;  %v1486_v56 = vmin.f32 %v2880_v49, 0.0  ;;  %v1438_v57 = vmin.f32 %v2883_v51, 0.0 }
  0xd7   :  { %2255 = vpow2.f32 %v1634_v43  ;;  %v354_v53 = vpop.f32.mrf.mxu1  ;;  %v431_v54 = vpop.f32.mrf.mxu0  ;;  %v1590_v0 = vmul.f32 1.442695, %v1462_v55  ;;  %v2897_v4 = vadd.f32 %v427_v46, %v2827_v62  ;;  %vm1337_vm9 = vcmp.gt.f32.partialorder %v2860_v28, 0.0 }
  0xd8   :  { %2257 = vpow2.f32 %v1588_v47  ;;  %v1487_v3 = vmin.f32 %v2886_v52, 0.0  ;;  %v1638_v10 = vmul.f32 1.442695, %v1486_v56  ;;  %v1542_v11 = vmul.f32 1.442695, %v1438_v57 }
  0xd9   :  { %2259 = vpow2.f32 %v1636_v50  ;;  %v356_v58 = vpop.f32.mrf.mxu1  ;;  %v433_v59 = vpop.f32.mrf.mxu0  ;;  %v2901_v12 = vadd.f32 %v354_v53, %v2825_v61  ;;  %v1439_v21 = vmin.f32 %v2897_v4, 0.0  ;;  %vm1384_vm10 = vcmp.gt.f32.partialorder %v2863_v31, 0.0 }
  0xda   :  { %v2240_v63 = vpop.eup %2239  ;;  %2261 = vpow2.f32 %v1590_v0  ;;  %v1640_v18 = vmul.f32 1.442695, %v1487_v3  ;;  %v2929_v32 = vadd.f32 %v431_v54, %v2843_v9  ;;  %v2939_v39 = vadd.f32 %v356_v58, %v2825_v61 }
  0xdb   :  { %v2242_v5 = vpop.eup %2241  ;;  %v2115_v6 = vadd.f32 -1.0, %v2240_v63  ;;  %v2903_v13 = vpop.f32.mrf.mxu0  ;;  %2263 = vpow2.f32 %v1638_v10  ;;  %v1544_v30 = vmul.f32 1.442695, %v1439_v21  ;;  %v2942_v40 = vadd.f32 %v433_v59, %v2843_v9 }
  0xdc   :  { %v2905_v14 = vpop.f32.mrf.mxu1  ;;  %v2190_v15 = vadd.f32 -1.0, %v2242_v5  ;;  %v2244_v19 = vpop.eup %2243  ;;  %2265 = vpow2.f32 %v1542_v11  ;;  %vm1361_vm11 = vcmp.gt.f32.partialorder %v2867_v36, 0.0  ;;  %vm1385_vm12 = vcmp.gt.f32.partialorder %v2871_v38, 0.0 }
  0xdd   :  { %v1834_v20 = vsel %vm1334_vm2, %v2830_v1, %v2115_v6  ;;  %v2913_v23 = vpop.f32.mrf.mxu0  ;;  %v2246_v25 = vpop.eup %2245  ;;  %v2116_v27 = vadd.f32 -1.0, %v2244_v19  ;;  %v1511_v1 = vmin.f32 %v2901_v12, 0.0  ;;  %2267 = vpow2.f32 %v1640_v18 }
  0xde   :  { %v2915_v24 = vpop.f32.mrf.mxu1  ;;  %1934 = vst [vmem:[%s3986_s3] sm:$0xff] %v1834_v20  ;;  %v1909_v26 = vsel %vm1409_vm3, %v2833_v2, %v2190_v15  ;;  %v2191_v29 = vadd.f32 -1.0, %v2246_v25  ;;  %2269 = vpow2.f32 %v1544_v30  ;;  %v1463_v47 = vmin.f32 %v2929_v32, 0.0 }
  0xdf   :  { %2009 = vst [vmem:[%s3986_s3 + $0x258] sm:$0xff] %v1909_v26  ;;  %v2931_v33 = vpop.f32.mrf.mxu0  ;;  %v2248_v2 = vpop.eup %2247  ;;  %v1835_v35 = vsel %vm1335_vm4, %v2838_v7, %v2116_v27  ;;  %v1688_v37 = vmul.f32 1.442695, %v1511_v1  ;;  %vm1362_vm13 = vcmp.gt.f32.partialorder %v2877_v48, 0.0  ;;  %v1512_v54 = vmin.f32 %v2939_v39, 0.0 }
  0xe0   :  { %v2933_v34 = vpop.f32.mrf.mxu1  ;;  %v2250_v41 = vpop.eup %2249  ;;  %1935 = vst [vmem:[%s3986_s3 + $0x8] sm:$0xff] %v1835_v35  ;;  %v1910_v42 = vsel %vm1410_vm5, %v2841_v8, %v2191_v29  ;;  %v2140_v43 = vadd.f32 -1.0, %v2248_v2  ;;  %v1464_v63 = vmin.f32 %v2942_v40, 0.0  ;;  %v2984_v10 = vadd.f32 %v2903_v13, %v2823_v60 }
  0xe1   :  { %v2951_v7 = vpop.f32.mrf.mxu0  ;;  %v2252_v45 = vpop.eup %2251  ;;  %2010 = vst [vmem:[%s3986_s3 + $0x260] sm:$0xff] %v1910_v42  ;;  %v2117_v46 = vadd.f32 -1.0, %v2250_v41  ;;  %2271 = vpow2.f32 %v1688_v37  ;;  %v1690_v6 = vmul.f32 1.442695, %v1512_v54  ;;  %vm1386_vm14 = vcmp.gt.f32.partialorder %v2880_v49, 0.0 }
  0xe2   :  { %v2953_v44 = vpop.f32.mrf.mxu1  ;;  %v2254_v8 = vpop.eup %2253  ;;  %v1859_v50 = vsel %vm1359_vm6, %v2848_v16, %v2140_v43  ;;  %v2141_v53 = vadd.f32 -1.0, %v2252_v45  ;;  %v1592_v16 = vmul.f32 1.442695, %v1463_v47  ;;  %v1594_v19 = vmul.f32 1.442695, %v1464_v63 }
  0xe3   :  { %v2967_v56 = vpop.f32.mrf.mxu0  ;;  %1959 = vst [vmem:[%s3986_s3 + $0xc8] sm:$0xff] %v1859_v50  ;;  %v1836_v58 = vsel %vm1336_vm7, %v2851_v17, %v2117_v46  ;;  %v2118_v59 = vadd.f32 -1.0, %v2254_v8  ;;  %v1488_v26 = vmin.f32 %v2984_v10, 0.0  ;;  %vm1338_vm15 = vcmp.gt.f32.partialorder %v2883_v51, 0.0 }
  0xe4   :  { %v2965_v55 = vpop.f32.mrf.mxu1  ;;  %v2256_v57 = vpop.eup %2255  ;;  %1936 = vst [vmem:[%s3986_s3 + $0x10] sm:$0xff] %v1836_v58  ;;  %v1860_v3 = vsel %vm1360_vm8, %v2854_v22, %v2141_v53  ;;  %2273 = vpow2.f32 %v1592_v16  ;;  %v3031_v29 = vadd.f32 %v2915_v24, %v2827_v62  ;;  %v3041_v37 = vadd.f32 %v2931_v33, %v2825_v61 }
  0xe5   :  { %v2258_v0 = vpop.eup %2257  ;;  %v2165_v5 = vadd.f32 -1.0, %v2256_v57  ;;  %v2988_v11 = vpop.f32.mrf.mxu0  ;;  %1960 = vst [vmem:[%s3986_s3 + $0xd0] sm:$0xff] %v1860_v3  ;;  %v1837_v18 = vsel %vm1337_vm9, %v2860_v28, %v2118_v59  ;;  %2275 = vpow2.f32 %v1690_v6  ;;  %v1642_v35 = vmul.f32 1.442695, %v1488_v26 }
  0xe6   :  { %v2986_v17 = vpop.f32.mrf.mxu1  ;;  %v2260_v15 = vpop.eup %2259  ;;  %v2142_v22 = vadd.f32 -1.0, %v2258_v0  ;;  %1937 = vst [vmem:[%s3986_s3 + $0x18] sm:$0xff] %v1837_v18  ;;  %2277 = vpow2.f32 %v1594_v19  ;;  %vm1387_vm0 = vcmp.gt.f32.partialorder %v2886_v52, 0.0  ;;  %vm1339_vm1 = vcmp.gt.f32.partialorder %v2897_v4, 0.0 }
  0xe7   :  { %v1884_v13 = vsel %vm1384_vm10, %v2863_v31, %v2165_v5  ;;  %v2166_v20 = vadd.f32 -1.0, %v2260_v15  ;;  %v3005_v25 = vpop.f32.mrf.mxu0  ;;  %v3016_v31 = vadd.f32 %v2905_v14, %v2827_v62  ;;  %v2262_v27 = vpop.eup %2261  ;;  %2279 = vpow2.f32 %v1642_v35 }
  0xe8   :  { %v3003_v21 = vpop.f32.mrf.mxu1  ;;  %1984 = vst [vmem:[%s3986_s3 + $0x190] sm:$0xff] %v1884_v13  ;;  %v1861_v28 = vsel %vm1361_vm11, %v2867_v36, %v2142_v22  ;;  %v3027_v36 = vadd.f32 %v2913_v23, %v2823_v60  ;;  %v2264_v30 = vpop.eup %2263  ;;  %v2143_v2 = vadd.f32 -1.0, %v2262_v27  ;;  %v1441_v53 = vmin.f32 %v3031_v29, 0.0 }
  0xe9   :  { %1961 = vst [vmem:[%s3986_s3 + $0xd8] sm:$0xff] %v1861_v28  ;;  %v1885_v1 = vsel %vm1385_vm12, %v2871_v38, %v2166_v20  ;;  %v1440_v38 = vmin.f32 %v3016_v31, 0.0  ;;  %v3043_v23 = vpop.f32.mrf.mxu0  ;;  %v2266_v41 = vpop.eup %2265  ;;  %v2167_v24 = vadd.f32 -1.0, %v2264_v30  ;;  %vm1411_vm2 = vcmp.gt.f32.partialorder %v2901_v12, 0.0 }
  0xea   :  { %v3033_v14 = vpop.f32.mrf.mxu1  ;;  %1985 = vst [vmem:[%s3986_s3 + $0x198] sm:$0xff] %v1885_v1  ;;  %v1489_v42 = vmin.f32 %v3027_v36, 0.0  ;;  %v2268_v43 = vpop.eup %2267  ;;  %v1862_v45 = vsel %vm1362_vm13, %v2877_v48, %v2143_v2  ;;  %v2119_v46 = vadd.f32 -1.0, %v2266_v41  ;;  %v1548_v0 = vmul.f32 1.442695, %v1441_v53 }
  0xeb   :  { %v1546_v47 = vmul.f32 1.442695, %v1440_v38  ;;  %1962 = vst [vmem:[%s3986_s3 + $0xe0] sm:$0xff] %v1862_v45  ;;  %v1886_v33 = vsel %vm1386_vm14, %v2880_v49, %v2167_v24  ;;  %v2168_v8 = vadd.f32 -1.0, %v2268_v43  ;;  %v2270_v57 = vpop.eup %2269  ;;  %v1513_v49 = vmin.f32 %v3041_v37, 0.0  ;;  %v3068_v58 = vpop.f32.mrf.mxu0 }
  0xec   :  { %v1644_v50 = vmul.f32 1.442695, %v1489_v42  ;;  %v3058_v54 = vpop.f32.mrf.mxu1  ;;  %1986 = vst [vmem:[%s3986_s3 + $0x1a0] sm:$0xff] %v1886_v33  ;;  %v1838_v48 = vsel %vm1338_vm15, %v2883_v51, %v2119_v46  ;;  %v2120_v63 = vadd.f32 -1.0, %v2270_v57  ;;  %v3081_v5 = vadd.f32 %v2933_v34, %v2843_v9 }
  0xed   :  { %2281 = vpow2.f32 %v1546_v47  ;;  %1938 = vst [vmem:[%s3986_s3 + $0x20] sm:$0xff] %v1838_v48  ;;  %v1887_v16 = vsel %vm1387_vm0, %v2886_v52, %v2168_v8  ;;  %v1692_v3 = vmul.f32 1.442695, %v1513_v49  ;;  %v3085_v6 = vadd.f32 %v2951_v7, %v2825_v61  ;;  %v3107_v7 = vpop.f32.mrf.mxu0 }
  0xee   :  { %v2272_v59 = vpop.eup %2271  ;;  %2283 = vpow2.f32 %v1644_v50  ;;  %1987 = vst [vmem:[%s3986_s3 + $0x1a8] sm:$0xff] %v1887_v16  ;;  %v1839_v52 = vsel %vm1339_vm1, %v2897_v4, %v2120_v63  ;;  %v3092_v15 = vadd.f32 %v2953_v44, %v2843_v9  ;;  %v3096_v18 = vadd.f32 %v2965_v55, %v2823_v60  ;;  %v3098_v22 = vpop.f32.mrf.mxu1 }
  0xef   :  { %v2192_v51 = vadd.f32 -1.0, %v2272_v59  ;;  %2285 = vpow2.f32 %v1548_v0  ;;  %1939 = vst [vmem:[%s3986_s3 + $0x28] sm:$0xff] %v1839_v52  ;;  %v1465_v4 = vmin.f32 %v3081_v5, 0.0  ;;  %vm1363_vm3 = vcmp.gt.f32.partialorder %v2929_v32, 0.0  ;;  %v3124_v42 = vpop.f32.mrf.mxu0 }
  0xf0   :  { %2287 = vpow2.f32 %v1692_v3  ;;  %v1514_v55 = vmin.f32 %v3085_v6, 0.0  ;;  %v1466_v19 = vmin.f32 %v3092_v15, 0.0  ;;  %vm1412_vm4 = vcmp.gt.f32.partialorder %v2939_v39, 0.0  ;;  %v3121_v35 = vpop.f32.mrf.mxu1 }
  0xf1   :  { %v1911_v34 = vsel %vm1411_vm2, %v2901_v12, %v2192_v51  ;;  %v2274_v44 = vpop.eup %2273  ;;  %v1596_v12 = vmul.f32 1.442695, %v1465_v4  ;;  %v1490_v28 = vmin.f32 %v3096_v18, 0.0  ;;  %v3119_v2 = vadd.f32 %v2967_v56, %v2827_v62  ;;  %v3160_v50 = vpop.f32.mrf.mxu0 }
  0xf2   :  { %2011 = vst [vmem:[%s3986_s3 + $0x268] sm:$0xff] %v1911_v34  ;;  %v2276_v13 = vpop.eup %2275  ;;  %v2144_v20 = vadd.f32 -1.0, %v2274_v44  ;;  %v1694_v1 = vmul.f32 1.442695, %v1514_v55  ;;  %v1598_v30 = vmul.f32 1.442695, %v1466_v19  ;;  %v3138_v45 = vadd.f32 %v2986_v17, %v2823_v60  ;;  %v3155_v17 = vpop.f32.mrf.mxu1 }
  0xf3   :  { %v2278_v26 = vpop.eup %2277  ;;  %v2193_v27 = vadd.f32 -1.0, %v2276_v13  ;;  %2289 = vpow2.f32 %v1596_v12  ;;  %v1646_v24 = vmul.f32 1.442695, %v1490_v28  ;;  %vm1364_vm5 = vcmp.gt.f32.partialorder %v2942_v40, 0.0  ;;  %v3184_v44 = vpop.f32.mrf.mxu0 }
  0xf4   :  { %v1863_v38 = vsel %vm1363_vm3, %v2929_v32, %v2144_v20  ;;  %v2145_v41 = vadd.f32 -1.0, %v2278_v26  ;;  %2291 = vpow2.f32 %v1694_v1  ;;  %v1442_v56 = vmin.f32 %v3119_v2, 0.0  ;;  %v3171_v3 = vpop.f32.mrf.mxu1 }
  0xf5   :  { %1963 = vst [vmem:[%s3986_s3 + $0xe8] sm:$0xff] %v1863_v38  ;;  %v1912_v43 = vsel %vm1412_vm4, %v2939_v39, %v2193_v27  ;;  %2293 = vpow2.f32 %v1598_v30  ;;  %v3142_v46 = vadd.f32 %v2988_v11, %v2827_v62  ;;  %v2280_v39 = vpop.eup %2279  ;;  %v3149_v33 = vadd.f32 %v3003_v21, %v2825_v61  ;;  %v3216_v1 = vpop.f32.mrf.mxu0 }
  0xf6   :  { %2012 = vst [vmem:[%s3986_s3 + $0x270] sm:$0xff] %v1912_v43  ;;  %v1864_v32 = vsel %vm1364_vm5, %v2942_v40, %v2145_v41  ;;  %2295 = vpow2.f32 %v1646_v24  ;;  %v1550_v47 = vmul.f32 1.442695, %v1442_v56  ;;  %v3153_v40 = vadd.f32 %v3005_v25, %v2843_v9  ;;  %v3202_v12 = vpop.f32.mrf.mxu1 }
  0xf7   :  { %1964 = vst [vmem:[%s3986_s3 + $0xf0] sm:$0xff] %v1864_v32  ;;  %vm1388_vm6 = vcmp.gt.f32.partialorder %v2984_v10, 0.0  ;;  %v2169_v11 = vadd.f32 -1.0, %v2280_v39  ;;  %vm1340_vm7 = vcmp.gt.f32.partialorder %v3016_v31, 0.0  ;;  %v1491_v8 = vmin.f32 %v3138_v45, 0.0 }
  0xf8   :  { %vm1389_vm8 = vcmp.gt.f32.partialorder %v3027_v36, 0.0  ;;  %2297 = vpow2.f32 %v1550_v47  ;;  %v1443_v21 = vmin.f32 %v3142_v46, 0.0  ;;  %v1515_v25 = vmin.f32 %v3149_v33, 0.0  ;;  %v3234_v39 = vpop.f32.mrf.mxu1 }
  0xf9   :  { %v1888_v48 = vsel %vm1388_vm6, %v2984_v10, %v2169_v11  ;;  %vm1341_vm9 = vcmp.gt.f32.partialorder %v3031_v29, 0.0  ;;  %v1648_v59 = vmul.f32 1.442695, %v1491_v8  ;;  %v1467_v51 = vmin.f32 %v3153_v40, 0.0 }
  0xfa   :  { %v2282_v53 = vpop.eup %2281  ;;  %1988 = vst [vmem:[%s3986_s3 + $0x1b0] sm:$0xff] %v1888_v48  ;;  %v1552_v63 = vmul.f32 1.442695, %v1443_v21  ;;  %v1696_v0 = vmul.f32 1.442695, %v1515_v25  ;;  %v3178_v34 = vadd.f32 %v3033_v14, %v2825_v61  ;;  %v3182_v4 = vadd.f32 %v3043_v23, %v2843_v9 }
  0xfb   :  { %v2284_v57 = vpop.eup %2283  ;;  %v2121_v49 = vadd.f32 -1.0, %v2282_v53  ;;  %2299 = vpow2.f32 %v1648_v59  ;;  %v1600_v13 = vmul.f32 1.442695, %v1467_v51  ;;  %vm1413_vm10 = vcmp.gt.f32.partialorder %v3041_v37, 0.0  ;;  %v3243_v53 = vpop.f32.mrf.mxu0 }
  0xfc   :  { %v2170_v16 = vadd.f32 -1.0, %v2284_v57  ;;  %v2286_v52 = vpop.eup %2285  ;;  %2301 = vpow2.f32 %v1552_v63  ;;  %v1516_v23 = vmin.f32 %v3178_v34, 0.0  ;;  %vm1365_vm11 = vcmp.gt.f32.partialorder %v3081_v5, 0.0  ;;  %v3266_v63 = vpop.f32.mrf.mxu1 }
  0xfd   :  { %v1840_v10 = vsel %vm1340_vm7, %v3016_v31, %v2121_v49  ;;  %v2288_v55 = vpop.eup %2287  ;;  %v2122_v19 = vadd.f32 -1.0, %v2286_v52  ;;  %2303 = vpow2.f32 %v1696_v0  ;;  %v3210_v27 = vadd.f32 %v3068_v58, %v2823_v60  ;;  %v3277_v52 = vpop.f32.mrf.mxu0 }
  0xfe   :  { %1940 = vst [vmem:[%s3986_s3 + $0x30] sm:$0xff] %v1840_v10  ;;  %v1889_v31 = vsel %vm1389_vm8, %v3027_v36, %v2170_v16  ;;  %v2194_v14 = vadd.f32 -1.0, %v2288_v55  ;;  %2305 = vpow2.f32 %v1600_v13  ;;  %v1468_v36 = vmin.f32 %v3182_v4, 0.0 }
  0xff   :  { %1989 = vst [vmem:[%s3986_s3 + $0x1b8] sm:$0xff] %v1889_v31  ;;  %v1841_v20 = vsel %vm1341_vm9, %v3031_v29, %v2122_v19  ;;  %v1698_v26 = vmul.f32 1.442695, %v1516_v23  ;;  %v3214_v29 = vadd.f32 %v3058_v54, %v2827_v62  ;;  %vm1414_vm12 = vcmp.gt.f32.partialorder %v3085_v6, 0.0 }
 0x100   :  { %1941 = vst [vmem:[%s3986_s3 + $0x38] sm:$0xff] %v1841_v20  ;;  %v1913_v28 = vsel %vm1413_vm10, %v3041_v37, %v2194_v14  ;;  %v2290_v30 = vpop.eup %2289  ;;  %vm1366_vm13 = vcmp.gt.f32.partialorder %v3092_v15, 0.0  ;;  %v1602_v37 = vmul.f32 1.442695, %v1468_v36  ;;  %v3225_v58 = vadd.f32 %v3107_v7, %v2823_v60  ;;  %v3297_v20 = vpop.f32.mrf.mxu1 }
 0x101   :  { %2013 = vst [vmem:[%s3986_s3 + $0x278] sm:$0xff] %v1913_v28  ;;  %v2292_v38 = vpop.eup %2291  ;;  %v2146_v41 = vadd.f32 -1.0, %v2290_v30  ;;  %2307 = vpow2.f32 %v1698_v26  ;;  %v1492_v54 = vmin.f32 %v3210_v27, 0.0  ;;  %v3230_v24 = vadd.f32 %v3098_v22, %v2827_v62 }
 0x102   :  { %v2294_v43 = vpop.eup %2293  ;;  %v2195_v56 = vadd.f32 -1.0, %v2292_v38  ;;  %vm1390_vm14 = vcmp.gt.f32.partialorder %v3096_v18, 0.0  ;;  %2309 = vpow2.f32 %v1602_v37  ;;  %v1444_v32 = vmin.f32 %v3214_v29, 0.0 }
 0x103   :  { %v2296_v7 = vpop.eup %2295  ;;  %v1865_v47 = vsel %vm1365_vm11, %v3081_v5, %v2146_v41  ;;  %v2147_v11 = vadd.f32 -1.0, %v2294_v43  ;;  %v1650_v8 = vmul.f32 1.442695, %v1492_v54  ;;  %v3241_v22 = vadd.f32 %v3124_v42, %v2825_v61 }
 0x104   :  { %1965 = vst [vmem:[%s3986_s3 + $0xf8] sm:$0xff] %v1865_v47  ;;  %v1914_v21 = vsel %vm1414_vm12, %v3085_v6, %v2195_v56  ;;  %v2171_v25 = vadd.f32 -1.0, %v2296_v7  ;;  %v1554_v57 = vmul.f32 1.442695, %v1444_v32  ;;  %v1493_v5 = vmin.f32 %v3225_v58, 0.0 }
 0x105   :  { %v2298_v48 = vpop.eup %2297  ;;  %2014 = vst [vmem:[%s3986_s3 + $0x280] sm:$0xff] %v1914_v21  ;;  %v1866_v42 = vsel %vm1366_vm13, %v3092_v15, %v2147_v11  ;;  %vm1342_vm15 = vcmp.gt.f32.partialorder %v3119_v2, 0.0  ;;  %2311 = vpow2.f32 %v1650_v8  ;;  %v1445_v49 = vmin.f32 %v3230_v24, 0.0 }
 0x106   :  { %1966 = vst [vmem:[%s3986_s3 + $0x100] sm:$0xff] %v1866_v42  ;;  %v1890_v6 = vsel %vm1390_vm14, %v3096_v18, %v2171_v25  ;;  %v2123_v59 = vadd.f32 -1.0, %v2298_v48  ;;  %2313 = vpow2.f32 %v1554_v57  ;;  %v1652_v16 = vmul.f32 1.442695, %v1493_v5 }
 0x107   :  { %1990 = vst [vmem:[%s3986_s3 + $0x1c0] sm:$0xff] %v1890_v6  ;;  %vm1391_vm0 = vcmp.gt.f32.partialorder %v3138_v45, 0.0  ;;  %v1556_v15 = vmul.f32 1.442695, %v1445_v49  ;;  %v1517_v0 = vmin.f32 %v3241_v22, 0.0  ;;  %v3275_v51 = vadd.f32 %v3121_v35, %v2843_v9 }
 0x108   :  { %v2300_v18 = vpop.eup %2299  ;;  %v1842_v10 = vsel %vm1342_vm15, %v3119_v2, %v2123_v59  ;;  %vm1343_vm1 = vcmp.gt.f32.partialorder %v3142_v46, 0.0  ;;  %2315 = vpow2.f32 %v1652_v16  ;;  %v3285_v55 = vadd.f32 %v3160_v50, %v2825_v61 }
 0x109   :  { %v2302_v31 = vpop.eup %2301  ;;  %1942 = vst [vmem:[%s3986_s3 + $0x40] sm:$0xff] %v1842_v10  ;;  %v2172_v35 = vadd.f32 -1.0, %v2300_v18  ;;  %2317 = vpow2.f32 %v1556_v15  ;;  %v1700_v19 = vmul.f32 1.442695, %v1517_v0  ;;  %v3292_v13 = vadd.f32 %v3155_v17, %v2843_v9  ;;  %v3303_v17 = vpop.f32.mrf.mxu0 }
 0x10a   :  { %v2304_v2 = vpop.eup %2303  ;;  %v2124_v14 = vadd.f32 -1.0, %v2302_v31  ;;  %vm1415_vm2 = vcmp.gt.f32.partialorder %v3149_v33, 0.0  ;;  %v1469_v23 = vmin.f32 %v3275_v51, 0.0  ;;  %v1518_v50 = vmin.f32 %v3285_v55, 0.0 }
 0x10b   :  { %v2306_v36 = vpop.eup %2305  ;;  %v1891_v28 = vsel %vm1391_vm0, %v3138_v45, %v2172_v35  ;;  %v2196_v26 = vadd.f32 -1.0, %v2304_v2  ;;  %vm1367_vm3 = vcmp.gt.f32.partialorder %v3153_v40, 0.0  ;;  %2319 = vpow2.f32 %v1700_v19  ;;  %v3344_v11 = vpop.f32.mrf.mxu0 }
 0x10c   :  { %1991 = vst [vmem:[%s3986_s3 + $0x1c8] sm:$0xff] %v1891_v28  ;;  %v1843_v30 = vsel %vm1343_vm1, %v3142_v46, %v2124_v14  ;;  %v2148_v37 = vadd.f32 -1.0, %v2306_v36  ;;  %v1604_v38 = vmul.f32 1.442695, %v1469_v23  ;;  %v1702_v41 = vmul.f32 1.442695, %v1518_v50 }
 0x10d   :  { %1943 = vst [vmem:[%s3986_s3 + $0x48] sm:$0xff] %v1843_v30  ;;  %v1915_v45 = vsel %vm1415_vm2, %v3149_v33, %v2196_v26  ;;  %v1470_v54 = vmin.f32 %v3292_v13, 0.0  ;;  %v3320_v43 = vadd.f32 %v3171_v3, %v2823_v60  ;;  %v3324_v46 = vadd.f32 %v3184_v44, %v2827_v62  ;;  %v3335_v3 = vpop.f32.mrf.mxu1 }
 0x10e   :  { %v2308_v56 = vpop.eup %2307  ;;  %2015 = vst [vmem:[%s3986_s3 + $0x288] sm:$0xff] %v1915_v45  ;;  %v1867_v32 = vsel %vm1367_vm3, %v3153_v40, %v2148_v37  ;;  %vm1416_vm4 = vcmp.gt.f32.partialorder %v3178_v34, 0.0  ;;  %2321 = vpow2.f32 %v1604_v38  ;;  %v3333_v33 = vadd.f32 %v3202_v12, %v2823_v60 }
 0x10f   :  { %v2310_v7 = vpop.eup %2309  ;;  %1967 = vst [vmem:[%s3986_s3 + $0x108] sm:$0xff] %v1867_v32  ;;  %v2197_v44 = vadd.f32 -1.0, %v2308_v56  ;;  %2323 = vpow2.f32 %v1702_v41  ;;  %v1606_v47 = vmul.f32 1.442695, %v1470_v54  ;;  %v3342_v40 = vadd.f32 %v3216_v1, %v2827_v62  ;;  %v3357_v49 = vpop.f32.mrf.mxu1 }
 0x110   :  { %vm1368_vm5 = vcmp.gt.f32.partialorder %v3182_v4, 0.0  ;;  %v2149_v12 = vadd.f32 -1.0, %v2310_v7  ;;  %v1494_v8 = vmin.f32 %v3320_v43, 0.0  ;;  %v1446_v21 = vmin.f32 %v3324_v46, 0.0 }
 0x111   :  { %v1916_v25 = vsel %vm1416_vm4, %v3178_v34, %v2197_v44  ;;  %vm1392_vm6 = vcmp.gt.f32.partialorder %v3210_v27, 0.0  ;;  %2325 = vpow2.f32 %v1606_v47  ;;  %v1495_v57 = vmin.f32 %v3333_v33, 0.0  ;;  %v3388_v14 = vpop.f32.mrf.mxu1 }
 0x112   :  { %v2312_v5 = vpop.eup %2311  ;;  %2016 = vst [vmem:[%s3986_s3 + $0x290] sm:$0xff] %v1916_v25  ;;  %v1868_v1 = vsel %vm1368_vm5, %v3182_v4, %v2149_v12  ;;  %vm1344_vm7 = vcmp.gt.f32.partialorder %v3214_v29, 0.0  ;;  %v1654_v48 = vmul.f32 1.442695, %v1494_v8  ;;  %v1558_v42 = vmul.f32 1.442695, %v1446_v21  ;;  %v3367_v4 = vpop.f32.mrf.mxu0 }
 0x113   :  { %v2314_v6 = vpop.eup %2313  ;;  %1968 = vst [vmem:[%s3986_s3 + $0x110] sm:$0xff] %v1868_v1  ;;  %v2173_v34 = vadd.f32 -1.0, %v2312_v5  ;;  %v1656_v59 = vmul.f32 1.442695, %v1495_v57  ;;  %v1447_v16 = vmin.f32 %v3342_v40, 0.0  ;;  %v3365_v15 = vadd.f32 %v3234_v39, %v2825_v61 }
 0x114   :  { %v2125_v0 = vadd.f32 -1.0, %v2314_v6  ;;  %2327 = vpow2.f32 %v1654_v48  ;;  %v3371_v18 = vadd.f32 %v3243_v53, %v2843_v9  ;;  %v3375_v10 = vadd.f32 %v3266_v63, %v2825_v61  ;;  %v801_v50 = vpop.f32.mrf.mxu0 }
 0x115   :  { %v2316_v31 = vpop.eup %2315  ;;  %v1892_v35 = vsel %vm1392_vm6, %v3210_v27, %v2173_v34  ;;  %vm1393_vm8 = vcmp.gt.f32.partialorder %v3225_v58, 0.0  ;;  %2329 = vpow2.f32 %v1558_v42  ;;  %v1560_v39 = vmul.f32 1.442695, %v1447_v16 }
 0x116   :  { %v2318_v19 = vpop.eup %2317  ;;  %1992 = vst [vmem:[%s3986_s3 + $0x1d0] sm:$0xff] %v1892_v35  ;;  %v1844_v53 = vsel %vm1344_vm7, %v3214_v29, %v2125_v0  ;;  %v2174_v63 = vadd.f32 -1.0, %v2316_v31  ;;  %2331 = vpow2.f32 %v1656_v59  ;;  %v1519_v2 = vmin.f32 %v3365_v15, 0.0  ;;  %v3424_v7 = vpop.f32.mrf.mxu0 }
 0x117   :  { %1944 = vst [vmem:[%s3986_s3 + $0x50] sm:$0xff] %v1844_v53  ;;  %vm1345_vm9 = vcmp.gt.f32.partialorder %v3230_v24, 0.0  ;;  %v2126_v27 = vadd.f32 -1.0, %v2318_v19  ;;  %2333 = vpow2.f32 %v1560_v39  ;;  %v1471_v23 = vmin.f32 %v3371_v18, 0.0 }
 0x118   :  { %v2320_v36 = vpop.eup %2319  ;;  %v1893_v29 = vsel %vm1393_vm8, %v3225_v58, %v2174_v63  ;;  %vm1417_vm10 = vcmp.gt.f32.partialorder %v3241_v22, 0.0  ;;  %v1704_v28 = vmul.f32 1.442695, %v1519_v2  ;;  %v1520_v26 = vmin.f32 %v3375_v10, 0.0  ;;  %v3448_v6 = vpop.f32.mrf.mxu0 }
 0x119   :  { %1993 = vst [vmem:[%s3986_s3 + $0x1d8] sm:$0xff] %v1893_v29  ;;  %v1845_v30 = vsel %vm1345_vm9, %v3230_v24, %v2126_v27  ;;  %v2198_v37 = vadd.f32 -1.0, %v2320_v36  ;;  %v1608_v38 = vmul.f32 1.442695, %v1471_v23  ;;  %v3406_v41 = vadd.f32 %v3277_v52, %v2843_v9  ;;  %v3419_v24 = vpop.f32.mrf.mxu1 }
 0x11a   :  { %1945 = vst [vmem:[%s3986_s3 + $0x58] sm:$0xff] %v1845_v30  ;;  %2335 = vpow2.f32 %v1704_v28  ;;  %v1706_v58 = vmul.f32 1.442695, %v1520_v26  ;;  %v3413_v45 = vadd.f32 %v3303_v17, %v2823_v60  ;;  %v3417_v54 = vadd.f32 %v3297_v20, %v2827_v62  ;;  %v3478_v2 = vpop.f32.mrf.mxu0 }
 0x11b   :  { %v2322_v56 = vpop.eup %2321  ;;  %v1917_v52 = vsel %vm1417_vm10, %v3241_v22, %v2198_v37  ;;  %vm1369_vm11 = vcmp.gt.f32.partialorder %v3275_v51, 0.0  ;;  %2337 = vpow2.f32 %v1608_v38  ;;  %v1472_v32 = vmin.f32 %v3406_v41, 0.0  ;;  %v3442_v1 = vpop.f32.mrf.mxu1 }
 0x11c   :  { %v2324_v44 = vpop.eup %2323  ;;  %2017 = vst [vmem:[%s3986_s3 + $0x298] sm:$0xff] %v1917_v52  ;;  %v2150_v17 = vadd.f32 -1.0, %v2322_v56  ;;  %vm1418_vm12 = vcmp.gt.f32.partialorder %v3285_v55, 0.0  ;;  %2339 = vpow2.f32 %v1706_v58  ;;  %v1496_v20 = vmin.f32 %v3413_v45, 0.0  ;;  %v967_v58 = vpop.f32.mrf.mxu0 }
 0x11d   :  { %v2199_v47 = vadd.f32 -1.0, %v2324_v44  ;;  %vm1370_vm13 = vcmp.gt.f32.partialorder %v3292_v13, 0.0  ;;  %v1610_v22 = vmul.f32 1.442695, %v1472_v32  ;;  %v1448_v12 = vmin.f32 %v3417_v54, 0.0  ;;  %v3474_v39 = vpop.f32.mrf.mxu1 }
 0x11e   :  { %v2326_v8 = vpop.eup %2325  ;;  %v1869_v21 = vsel %vm1369_vm11, %v3275_v51, %v2150_v17  ;;  %v1658_v25 = vmul.f32 1.442695, %v1496_v20  ;;  %v3436_v57 = vadd.f32 %v3344_v11, %v2823_v60  ;;  %v3440_v5 = vadd.f32 %v3335_v3, %v2827_v62 }
 0x11f   :  { %1969 = vst [vmem:[%s3986_s3 + $0x118] sm:$0xff] %v1869_v21  ;;  %v1918_v48 = vsel %vm1418_vm12, %v3285_v55, %v2199_v47  ;;  %v2151_v42 = vadd.f32 -1.0, %v2326_v8  ;;  %2341 = vpow2.f32 %v1610_v22  ;;  %v1562_v51 = vmul.f32 1.442695, %v1448_v12  ;;  %v3497_v30 = vpop.f32.mrf.mxu1  ;;  %v971_v21 = vpop.f32.mrf.mxu0 }
 0x120   :  { %2018 = vst [vmem:[%s3986_s3 + $0x2a0] sm:$0xff] %v1918_v48  ;;  %vm1394_vm14 = vcmp.gt.f32.partialorder %v3320_v43, 0.0  ;;  %vm1346_vm15 = vcmp.gt.f32.partialorder %v3324_v46, 0.0  ;;  %2343 = vpow2.f32 %v1658_v25  ;;  %v1497_v3 = vmin.f32 %v3436_v57, 0.0 }
 0x121   :  { %v2328_v11 = vpop.eup %2327  ;;  %v1870_v55 = vsel %vm1370_vm13, %v3292_v13, %v2151_v42  ;;  %2345 = vpow2.f32 %v1562_v51  ;;  %v1449_v34 = vmin.f32 %v3440_v5, 0.0  ;;  %v3462_v59 = vadd.f32 %v3367_v4, %v2825_v61  ;;  %v3525_v12 = vpop.f32.mrf.mxu1 }
 0x122   :  { %v2330_v16 = vpop.eup %2329  ;;  %1970 = vst [vmem:[%s3986_s3 + $0x120] sm:$0xff] %v1870_v55  ;;  %v2175_v0 = vadd.f32 -1.0, %v2328_v11  ;;  %v1660_v31 = vmul.f32 1.442695, %v1497_v3  ;;  %v3469_v35 = vadd.f32 %v3357_v49, %v2843_v9  ;;  %v3472_v13 = vadd.f32 %v801_v50, %v2825_v61 }
 0x123   :  { %v2332_v19 = vpop.eup %2331  ;;  %v2127_v53 = vadd.f32 -1.0, %v2330_v16  ;;  %vm1395_vm0 = vcmp.gt.f32.partialorder %v3333_v33, 0.0  ;;  %v1564_v4 = vmul.f32 1.442695, %v1449_v34  ;;  %v1521_v63 = vmin.f32 %v3462_v59, 0.0  ;;  %v3553_v16 = vpop.f32.mrf.mxu1 }
 0x124   :  { %v2334_v27 = vpop.eup %2333  ;;  %v1894_v49 = vsel %vm1394_vm14, %v3320_v43, %v2175_v0  ;;  %v2176_v23 = vadd.f32 -1.0, %v2332_v19  ;;  %vm1347_vm1 = vcmp.gt.f32.partialorder %v3342_v40, 0.0  ;;  %2347 = vpow2.f32 %v1660_v31  ;;  %v973_v19 = vpop.f32.mrf.mxu0 }
 0x125   :  { %1994 = vst [vmem:[%s3986_s3 + $0x1e0] sm:$0xff] %v1894_v49  ;;  %v1846_v50 = vsel %vm1346_vm15, %v3324_v46, %v2127_v53  ;;  %v2128_v36 = vadd.f32 -1.0, %v2334_v27  ;;  %2349 = vpow2.f32 %v1564_v4  ;;  %v1708_v29 = vmul.f32 1.442695, %v1521_v63 }
 0x126   :  { %1946 = vst [vmem:[%s3986_s3 + $0x60] sm:$0xff] %v1846_v50  ;;  %v1895_v43 = vsel %vm1395_vm0, %v3333_v33, %v2176_v23  ;;  %vm1419_vm2 = vcmp.gt.f32.partialorder %v3365_v15, 0.0  ;;  %v1473_v28 = vmin.f32 %v3469_v35, 0.0  ;;  %v1522_v26 = vmin.f32 %v3472_v13, 0.0 }
 0x127   :  { %v2336_v37 = vpop.eup %2335  ;;  %1995 = vst [vmem:[%s3986_s3 + $0x1e8] sm:$0xff] %v1895_v43  ;;  %v1847_v46 = vsel %vm1347_vm1, %v3342_v40, %v2128_v36  ;;  %2351 = vpow2.f32 %v1708_v29  ;;  %v3505_v38 = vadd.f32 %v3388_v14, %v2843_v9  ;;  %v3509_v33 = vadd.f32 %v3419_v24, %v2823_v60  ;;  %v1054_v29 = vpop.f32.mrf.mxu1 }
 0x128   :  { %v2338_v56 = vpop.eup %2337  ;;  %1947 = vst [vmem:[%s3986_s3 + $0x68] sm:$0xff] %v1847_v46  ;;  %v2200_v52 = vadd.f32 -1.0, %v2336_v37  ;;  %v1612_v32 = vmul.f32 1.442695, %v1473_v28  ;;  %v1710_v44 = vmul.f32 1.442695, %v1522_v26  ;;  %v3516_v40 = vadd.f32 %v3424_v7, %v2827_v62  ;;  %v977_v28 = vpop.f32.mrf.mxu0 }
 0x129   :  { %v2340_v17 = vpop.eup %2339  ;;  %vm1371_vm3 = vcmp.gt.f32.partialorder %v3371_v18, 0.0  ;;  %v2152_v14 = vadd.f32 -1.0, %v2338_v56  ;;  %vm1420_vm4 = vcmp.gt.f32.partialorder %v3375_v10, 0.0  ;;  %v1474_v24 = vmin.f32 %v3505_v38, 0.0 }
 0x12a   :  { %v1919_v20 = vsel %vm1419_vm2, %v3365_v15, %v2200_v52  ;;  %v2201_v47 = vadd.f32 -1.0, %v2340_v17  ;;  %2353 = vpow2.f32 %v1612_v32  ;;  %v1498_v22 = vmin.f32 %v3509_v33, 0.0 }
 0x12b   :  { %2019 = vst [vmem:[%s3986_s3 + $0x2a8] sm:$0xff] %v1919_v20  ;;  %v1871_v7 = vsel %vm1371_vm3, %v3371_v18, %v2152_v14  ;;  %vm1372_vm5 = vcmp.gt.f32.partialorder %v3406_v41, 0.0  ;;  %2355 = vpow2.f32 %v1710_v44  ;;  %v1614_v8 = vmul.f32 1.442695, %v1474_v24  ;;  %v1056_v44 = vpop.f32.mrf.mxu1 }
 0x12c   :  { %v2342_v25 = vpop.eup %2341  ;;  %1971 = vst [vmem:[%s3986_s3 + $0x128] sm:$0xff] %v1871_v7  ;;  %v1920_v15 = vsel %vm1420_vm4, %v3375_v10, %v2201_v47  ;;  %v1662_v48 = vmul.f32 1.442695, %v1498_v22  ;;  %v1450_v42 = vmin.f32 %v3516_v40, 0.0  ;;  %v3539_v51 = vadd.f32 %v3442_v1, %v2823_v60  ;;  %v979_v47 = vpop.f32.mrf.mxu0 }
 0x12d   :  { %v2344_v18 = vpop.eup %2343  ;;  %2020 = vst [vmem:[%s3986_s3 + $0x2b0] sm:$0xff] %v1920_v15  ;;  %v2153_v3 = vadd.f32 -1.0, %v2342_v25  ;;  %2357 = vpow2.f32 %v1614_v8  ;;  %v3546_v11 = vadd.f32 %v3448_v6, %v2827_v62  ;;  %v3550_v10 = vadd.f32 %v3474_v39, %v2825_v61 }
 0x12e   :  { %v2346_v55 = vpop.eup %2345  ;;  %vm1396_vm6 = vcmp.gt.f32.partialorder %v3413_v45, 0.0  ;;  %v2177_v1 = vadd.f32 -1.0, %v2344_v18  ;;  %2359 = vpow2.f32 %v1662_v48  ;;  %v1566_v34 = vmul.f32 1.442695, %v1450_v42  ;;  %v1060_v48 = vpop.f32.mrf.mxu1 }
 0x12f   :  { %v1872_v0 = vsel %vm1372_vm5, %v3406_v41, %v2153_v3  ;;  %vm1348_vm7 = vcmp.gt.f32.partialorder %v3417_v54, 0.0  ;;  %v2129_v6 = vadd.f32 -1.0, %v2346_v55  ;;  %v1499_v31 = vmin.f32 %v3539_v51, 0.0 }
 0x130   :  { %1972 = vst [vmem:[%s3986_s3 + $0x130] sm:$0xff] %v1872_v0  ;;  %v1896_v39 = vsel %vm1396_vm6, %v3413_v45, %v2177_v1  ;;  %vm1397_vm8 = vcmp.gt.f32.partialorder %v3436_v57, 0.0  ;;  %2361 = vpow2.f32 %v1566_v34  ;;  %v1451_v53 = vmin.f32 %v3546_v11, 0.0  ;;  %v1137_v34 = vpop.f32.mrf.mxu0 }
 0x131   :  { %v2348_v4 = vpop.eup %2347  ;;  %1996 = vst [vmem:[%s3986_s3 + $0x1f0] sm:$0xff] %v1896_v39  ;;  %v1848_v41 = vsel %vm1348_vm7, %v3417_v54, %v2129_v6  ;;  %v1664_v63 = vmul.f32 1.442695, %v1499_v31  ;;  %v1523_v27 = vmin.f32 %v3550_v10, 0.0  ;;  %v3573_v49 = vadd.f32 %v3478_v2, %v2843_v9 }
 0x132   :  { %v2350_v45 = vpop.eup %2349  ;;  %1948 = vst [vmem:[%s3986_s3 + $0x70] sm:$0xff] %v1848_v41  ;;  %v2178_v23 = vadd.f32 -1.0, %v2348_v4  ;;  %v1568_v50 = vmul.f32 1.442695, %v1451_v53  ;;  %v3580_v36 = vadd.f32 %v3497_v30, %v2825_v61  ;;  %v3583_v54 = vadd.f32 %v967_v58, %v2843_v9  ;;  %v1062_v41 = vpop.f32.mrf.mxu1 }
 0x133   :  { %vm1349_vm9 = vcmp.gt.f32.partialorder %v3440_v5, 0.0  ;;  %v2130_v43 = vadd.f32 -1.0, %v2350_v45  ;;  %2363 = vpow2.f32 %v1664_v63  ;;  %v1712_v2 = vmul.f32 1.442695, %v1523_v27  ;;  %v1139_v27 = vpop.f32.mrf.mxu0 }
 0x134   :  { %v2352_v26 = vpop.eup %2351  ;;  %v1897_v37 = vsel %vm1397_vm8, %v3436_v57, %v2178_v23  ;;  %vm1421_vm10 = vcmp.gt.f32.partialorder %v3462_v59, 0.0  ;;  %2365 = vpow2.f32 %v1568_v50  ;;  %v1475_v30 = vmin.f32 %v3573_v49, 0.0 }
 0x135   :  { %1997 = vst [vmem:[%s3986_s3 + $0x1f8] sm:$0xff] %v1897_v37  ;;  %v1849_v46 = vsel %vm1349_vm9, %v3440_v5, %v2130_v43  ;;  %v2202_v58 = vadd.f32 -1.0, %v2352_v26  ;;  %2367 = vpow2.f32 %v1712_v2  ;;  %v1524_v56 = vmin.f32 %v3580_v36, 0.0 }
 0x136   :  { %1949 = vst [vmem:[%s3986_s3 + $0x78] sm:$0xff] %v1849_v46  ;;  %vm1373_vm11 = vcmp.gt.f32.partialorder %v3469_v35, 0.0  ;;  %v1616_v57 = vmul.f32 1.442695, %v1475_v30  ;;  %v1476_v52 = vmin.f32 %v3583_v54, 0.0  ;;  %v3602_v32 = vadd.f32 %v971_v21, %v2823_v60 }
 0x137   :  { %v2354_v17 = vpop.eup %2353  ;;  %v1921_v5 = vsel %vm1421_vm10, %v3462_v59, %v2202_v58  ;;  %v1714_v14 = vmul.f32 1.442695, %v1524_v56  ;;  %v3607_v24 = vadd.f32 %v3525_v12, %v2827_v62  ;;  %v3610_v20 = vadd.f32 %v973_v19, %v2823_v60  ;;  %v1066_v58 = vpop.f32.mrf.mxu1 }
 0x138   :  { %v2356_v22 = vpop.eup %2355  ;;  %2021 = vst [vmem:[%s3986_s3 + $0x2b8] sm:$0xff] %v1921_v5  ;;  %v2154_v7 = vadd.f32 -1.0, %v2354_v17  ;;  %vm1422_vm12 = vcmp.gt.f32.partialorder %v3472_v13, 0.0  ;;  %2369 = vpow2.f32 %v1616_v57  ;;  %v1618_v8 = vmul.f32 1.442695, %v1476_v52  ;;  %v1143_v52 = vpop.f32.mrf.mxu0 }
 0x139   :  { %v2203_v59 = vadd.f32 -1.0, %v2356_v22  ;;  %vm1374_vm13 = vcmp.gt.f32.partialorder %v3505_v38, 0.0  ;;  %2371 = vpow2.f32 %v1714_v14  ;;  %v1500_v12 = vmin.f32 %v3602_v32, 0.0 }
 0x13a   :  { %v2358_v21 = vpop.eup %2357  ;;  %v1873_v25 = vsel %vm1373_vm11, %v3469_v35, %v2154_v7  ;;  %vm1398_vm14 = vcmp.gt.f32.partialorder %v3509_v33, 0.0  ;;  %2373 = vpow2.f32 %v1618_v8  ;;  %v1452_v15 = vmin.f32 %v3607_v24, 0.0 }
 0x13b   :  { %v2360_v42 = vpop.eup %2359  ;;  %1973 = vst [vmem:[%s3986_s3 + $0x138] sm:$0xff] %v1873_v25  ;;  %v1922_v18 = vsel %vm1422_vm12, %v3472_v13, %v2203_v59  ;;  %v2155_v3 = vadd.f32 -1.0, %v2358_v21  ;;  %v1666_v55 = vmul.f32 1.442695, %v1500_v12  ;;  %v1501_v1 = vmin.f32 %v3610_v20, 0.0  ;;  %v1068_v12 = vpop.f32.mrf.mxu1 }
 0x13c   :  { %2022 = vst [vmem:[%s3986_s3 + $0x2c0] sm:$0xff] %v1922_v18  ;;  %v2179_v35 = vadd.f32 -1.0, %v2360_v42  ;;  %v1570_v0 = vmul.f32 1.442695, %v1452_v15  ;;  %v3633_v6 = vadd.f32 %v3553_v16, %v2827_v62  ;;  %v3636_v31 = vadd.f32 %v977_v28, %v2825_v61  ;;  %v1145_v15 = vpop.f32.mrf.mxu0 }
 0x13d   :  { %v2362_v19 = vpop.eup %2361  ;;  %v1874_v13 = vsel %vm1374_vm13, %v3505_v38, %v2155_v3  ;;  %2375 = vpow2.f32 %v1666_v55  ;;  %v1668_v39 = vmul.f32 1.442695, %v1501_v1  ;;  %v3642_v53 = vadd.f32 %v1054_v29, %v2843_v9 }
 0x13e   :  { %1974 = vst [vmem:[%s3986_s3 + $0x140] sm:$0xff] %v1874_v13  ;;  %v1898_v16 = vsel %vm1398_vm14, %v3509_v33, %v2179_v35  ;;  %vm1350_vm15 = vcmp.gt.f32.partialorder %v3516_v40, 0.0  ;;  %v2131_v4 = vadd.f32 -1.0, %v2362_v19  ;;  %2377 = vpow2.f32 %v1570_v0 }
 0x13f   :  { %1998 = vst [vmem:[%s3986_s3 + $0x200] sm:$0xff] %v1898_v16  ;;  %vm1399_vm0 = vcmp.gt.f32.partialorder %v3539_v51, 0.0  ;;  %2379 = vpow2.f32 %v1668_v39  ;;  %v1453_v38 = vmin.f32 %v3633_v6, 0.0  ;;  %v1525_v63 = vmin.f32 %v3636_v31, 0.0 }
 0x140   :  { %v2364_v45 = vpop.eup %2363  ;;  %v1850_v33 = vsel %vm1350_vm15, %v3516_v40, %v2131_v4  ;;  %vm1351_vm1 = vcmp.gt.f32.partialorder %v3546_v11, 0.0  ;;  %v1477_v23 = vmin.f32 %v3642_v53, 0.0  ;;  %v3661_v50 = vadd.f32 %v979_v47, %v2825_v61 }
 0x141   :  { %v2366_v29 = vpop.eup %2365  ;;  %1950 = vst [vmem:[%s3986_s3 + $0x80] sm:$0xff] %v1850_v33  ;;  %v2180_v43 = vadd.f32 -1.0, %v2364_v45  ;;  %v1572_v2 = vmul.f32 1.442695, %v1453_v38  ;;  %v1716_v28 = vmul.f32 1.442695, %v1525_v63  ;;  %v3667_v26 = vadd.f32 %v1056_v44, %v2843_v9 }
 0x142   :  { %v2368_v37 = vpop.eup %2367  ;;  %v2132_v40 = vadd.f32 -1.0, %v2366_v29  ;;  %vm1423_vm2 = vcmp.gt.f32.partialorder %v3550_v10, 0.0  ;;  %v1620_v30 = vmul.f32 1.442695, %v1477_v23  ;;  %v1526_v46 = vmin.f32 %v3661_v50, 0.0 }
 0x143   :  { %v1899_v56 = vsel %vm1399_vm0, %v3539_v51, %v2180_v43  ;;  %v2204_v57 = vadd.f32 -1.0, %v2368_v37  ;;  %vm1375_vm3 = vcmp.gt.f32.partialorder %v3573_v49, 0.0  ;;  %2381 = vpow2.f32 %v1572_v2 }
 0x144   :  { %1999 = vst [vmem:[%s3986_s3 + $0x208] sm:$0xff] %v1899_v56  ;;  %v1851_v44 = vsel %vm1351_vm1, %v3546_v11, %v2132_v40  ;;  %2383 = vpow2.f32 %v1716_v28  ;;  %v1718_v17 = vmul.f32 1.442695, %v1526_v46  ;;  %v1478_v5 = vmin.f32 %v3667_v26, 0.0 }
 0x145   :  { %v2370_v14 = vpop.eup %2369  ;;  %1951 = vst [vmem:[%s3986_s3 + $0x88] sm:$0xff] %v1851_v44  ;;  %v1923_v51 = vsel %vm1423_vm2, %v3550_v10, %v2204_v57  ;;  %2385 = vpow2.f32 %v1620_v30  ;;  %v3689_v47 = vadd.f32 %v1060_v48, %v2823_v60  ;;  %v3692_v22 = vadd.f32 %v1137_v34, %v2827_v62 }
 0x146   :  { %v2372_v11 = vpop.eup %2371  ;;  %2023 = vst [vmem:[%s3986_s3 + $0x2c8] sm:$0xff] %v1923_v51  ;;  %v2156_v7 = vadd.f32 -1.0, %v2370_v14  ;;  %2387 = vpow2.f32 %v1718_v17  ;;  %v1622_v8 = vmul.f32 1.442695, %v1478_v5  ;;  %v3698_v59 = vadd.f32 %v1062_v41, %v2823_v60 }
 0x147   :  { %v2374_v10 = vpop.eup %2373  ;;  %vm1424_vm4 = vcmp.gt.f32.partialorder %v3580_v36, 0.0  ;;  %v2205_v21 = vadd.f32 -1.0, %v2372_v11  ;;  %vm1376_vm5 = vcmp.gt.f32.partialorder %v3583_v54, 0.0  ;;  %v1502_v25 = vmin.f32 %v3689_v47, 0.0 }
 0x148   :  { %v1875_v48 = vsel %vm1375_vm3, %v3573_v49, %v2156_v7  ;;  %v2157_v42 = vadd.f32 -1.0, %v2374_v10  ;;  %2389 = vpow2.f32 %v1622_v8  ;;  %v1454_v18 = vmin.f32 %v3692_v22, 0.0 }
 0x149   :  { %1975 = vst [vmem:[%s3986_s3 + $0x148] sm:$0xff] %v1875_v48  ;;  %v1924_v3 = vsel %vm1424_vm4, %v3580_v36, %v2205_v21  ;;  %vm1400_vm6 = vcmp.gt.f32.partialorder %v3602_v32, 0.0  ;;  %v1670_v55 = vmul.f32 1.442695, %v1502_v25  ;;  %v1503_v1 = vmin.f32 %v3698_v59, 0.0  ;;  %v1226_v36 = vpop.f32.mrf.mxu1 }
 0x14a   :  { %v2376_v34 = vpop.eup %2375  ;;  %2024 = vst [vmem:[%s3986_s3 + $0x2d0] sm:$0xff] %v1924_v3  ;;  %v1876_v49 = vsel %vm1376_vm5, %v3583_v54, %v2157_v42  ;;  %v1574_v35 = vmul.f32 1.442695, %v1454_v18  ;;  %v3718_v0 = vadd.f32 %v1139_v27, %v2827_v62  ;;  %v3721_v19 = vadd.f32 %v1066_v58, %v2825_v61  ;;  %v1149_v54 = vpop.f32.mrf.mxu0 }
 0x14b   :  { %v2378_v13 = vpop.eup %2377  ;;  %1976 = vst [vmem:[%s3986_s3 + $0x150] sm:$0xff] %v1876_v49  ;;  %v2181_v39 = vadd.f32 -1.0, %v2376_v34  ;;  %2391 = vpow2.f32 %v1670_v55  ;;  %v1672_v16 = vmul.f32 1.442695, %v1503_v1  ;;  %v3727_v4 = vadd.f32 %v1143_v52, %v2843_v9  ;;  %v1228_v43 = vpop.f32.mrf.mxu1 }
 0x14c   :  { %v2380_v41 = vpop.eup %2379  ;;  %vm1352_vm7 = vcmp.gt.f32.partialorder %v3607_v24, 0.0  ;;  %v2133_v38 = vadd.f32 -1.0, %v2378_v13  ;;  %2393 = vpow2.f32 %v1574_v35  ;;  %v1455_v63 = vmin.f32 %v3718_v0, 0.0 }
 0x14d   :  { %v1900_v27 = vsel %vm1400_vm6, %v3602_v32, %v2181_v39  ;;  %vm1401_vm8 = vcmp.gt.f32.partialorder %v3610_v20, 0.0  ;;  %v2182_v45 = vadd.f32 -1.0, %v2380_v41  ;;  %2395 = vpow2.f32 %v1672_v16  ;;  %v1232_v14 = vpop.f32.mrf.mxu1 }
 0x14e   :  { %2000 = vst [vmem:[%s3986_s3 + $0x210] sm:$0xff] %v1900_v27  ;;  %v1852_v33 = vsel %vm1352_vm7, %v3607_v24, %v2133_v38  ;;  %vm1353_vm9 = vcmp.gt.f32.partialorder %v3633_v6, 0.0  ;;  %v1576_v23 = vmul.f32 1.442695, %v1455_v63  ;;  %v1527_v29 = vmin.f32 %v3721_v19, 0.0  ;;  %v1151_v24 = vpop.f32.mrf.mxu0 }
 0x14f   :  { %1952 = vst [vmem:[%s3986_s3 + $0x90] sm:$0xff] %v1852_v33  ;;  %v1901_v32 = vsel %vm1401_vm8, %v3610_v20, %v2182_v45  ;;  %v1479_v2 = vmin.f32 %v3727_v4, 0.0  ;;  %v3747_v28 = vadd.f32 %v1068_v12, %v2825_v61  ;;  %v3750_v37 = vadd.f32 %v1145_v15, %v2843_v9  ;;  %v1234_v3 = vpop.f32.mrf.mxu1 }
 0x150   :  { %v2382_v40 = vpop.eup %2381  ;;  %2001 = vst [vmem:[%s3986_s3 + $0x218] sm:$0xff] %v1901_v32  ;;  %vm1425_vm10 = vcmp.gt.f32.partialorder %v3636_v31, 0.0  ;;  %vm1377_vm11 = vcmp.gt.f32.partialorder %v3642_v53, 0.0  ;;  %2397 = vpow2.f32 %v1576_v23  ;;  %v1720_v20 = vmul.f32 1.442695, %v1527_v29  ;;  %v1155_v12 = vpop.f32.mrf.mxu0 }
 0x151   :  { %v2384_v30 = vpop.eup %2383  ;;  %v2134_v46 = vadd.f32 -1.0, %v2382_v40  ;;  %v1624_v58 = vmul.f32 1.442695, %v1479_v2  ;;  %v1528_v56 = vmin.f32 %v3747_v28, 0.0  ;;  %v3759_v57 = vadd.f32 %v1149_v54, %v2823_v60  ;;  %v1238_v27 = vpop.f32.mrf.mxu1 }
 0x152   :  { %v2386_v52 = vpop.eup %2385  ;;  %v2206_v44 = vadd.f32 -1.0, %v2384_v30  ;;  %2399 = vpow2.f32 %v1720_v20  ;;  %v1480_v17 = vmin.f32 %v3750_v37, 0.0  ;;  %v3763_v5 = vadd.f32 %v1226_v36, %v2827_v62  ;;  %v1157_v34 = vpop.f32.mrf.mxu0 }
 0x153   :  { %v2388_v51 = vpop.eup %2387  ;;  %v1853_v11 = vsel %vm1353_vm9, %v3633_v6, %v2134_v46  ;;  %v2158_v7 = vadd.f32 -1.0, %v2386_v52  ;;  %2401 = vpow2.f32 %v1624_v58  ;;  %v1722_v8 = vmul.f32 1.442695, %v1528_v56  ;;  %v1240_v46 = vpop.f32.mrf.mxu1 }
 0x154   :  { %1953 = vst [vmem:[%s3986_s3 + $0x98] sm:$0xff] %v1853_v11  ;;  %v1925_v10 = vsel %vm1425_vm10, %v3636_v31, %v2206_v44  ;;  %vm1426_vm12 = vcmp.gt.f32.partialorder %v3661_v50, 0.0  ;;  %v2207_v21 = vadd.f32 -1.0, %v2388_v51  ;;  %v1626_v25 = vmul.f32 1.442695, %v1480_v17  ;;  %v2227_v29 = vpop.f32.mrf.mxu0 }
 0x155   :  { %v2390_v15 = vpop.eup %2389  ;;  %2025 = vst [vmem:[%s3986_s3 + $0x2d8] sm:$0xff] %v1925_v10  ;;  %v1877_v6 = vsel %vm1377_vm11, %v3642_v53, %v2158_v7  ;;  %vm1378_vm13 = vcmp.gt.f32.partialorder %v3667_v26, 0.0  ;;  %2403 = vpow2.f32 %v1722_v8  ;;  %v1504_v48 = vmin.f32 %v3759_v57, 0.0 }
 0x156   :  { %1977 = vst [vmem:[%s3986_s3 + $0x158] sm:$0xff] %v1877_v6  ;;  %v1926_v31 = vsel %vm1426_vm12, %v3661_v50, %v2207_v21  ;;  %v2159_v42 = vadd.f32 -1.0, %v2390_v15  ;;  %2405 = vpow2.f32 %v1626_v25  ;;  %v1456_v18 = vmin.f32 %v3763_v5, 0.0  ;;  %v1315_v17 = vpop.f32.mrf.mxu0  ;;  %v1244_v21 = vpop.f32.mrf.mxu1 }
 0x157   :  { %2026 = vst [vmem:[%s3986_s3 + $0x2e0] sm:$0xff] %v1926_v31  ;;  %vm1402_vm14 = vcmp.gt.f32.partialorder %v3689_v47, 0.0  ;;  %v1674_v53 = vmul.f32 1.442695, %v1504_v48  ;;  %v3793_v55 = vadd.f32 %v1151_v24, %v2823_v60  ;;  %v3796_v1 = vadd.f32 %v1228_v43, %v2827_v62 }
 0x158   :  { %v2392_v50 = vpop.eup %2391  ;;  %v1878_v49 = vsel %vm1378_vm13, %v3667_v26, %v2159_v42  ;;  %vm1354_vm15 = vcmp.gt.f32.partialorder %v3692_v22, 0.0  ;;  %v1578_v35 = vmul.f32 1.442695, %v1456_v18  ;;  %v3803_v36 = vadd.f32 %v1155_v12, %v2825_v61  ;;  %v2230_v31 = vpop.f32.mrf.mxu0 }
 0x159   :  { %v2394_v13 = vpop.eup %2393  ;;  %1978 = vst [vmem:[%s3986_s3 + $0x160] sm:$0xff] %v1878_v49  ;;  %v2183_v39 = vadd.f32 -1.0, %v2392_v50  ;;  %2407 = vpow2.f32 %v1674_v53  ;;  %v1505_v16 = vmin.f32 %v3793_v55, 0.0  ;;  %v3810_v54 = vadd.f32 %v1232_v14, %v2843_v9 }
 0x15a   :  { %v2396_v41 = vpop.eup %2395  ;;  %v2135_v26 = vadd.f32 -1.0, %v2394_v13  ;;  %2409 = vpow2.f32 %v1578_v35  ;;  %v1457_v38 = vmin.f32 %v3796_v1, 0.0  ;;  %v3814_v63 = vadd.f32 %v1157_v34, %v2825_v61 }
 0x15b   :  { %v1902_v45 = vsel %vm1402_vm14, %v3689_v47, %v2183_v39  ;;  %vm1403_vm0 = vcmp.gt.f32.partialorder %v3698_v59, 0.0  ;;  %v2184_v33 = vadd.f32 -1.0, %v2396_v41  ;;  %v1676_v23 = vmul.f32 1.442695, %v1505_v16  ;;  %v1246_v16 = vpop.f32.mrf.mxu1  ;;  %v1325_v41 = vpop.f32.mrf.mxu0 }
 0x15c   :  { %2002 = vst [vmem:[%s3986_s3 + $0x220] sm:$0xff] %v1902_v45  ;;  %v1854_v43 = vsel %vm1354_vm15, %v3692_v22, %v2135_v26  ;;  %vm1355_vm1 = vcmp.gt.f32.partialorder %v3718_v0, 0.0  ;;  %v1580_v32 = vmul.f32 1.442695, %v1457_v38  ;;  %v1529_v2 = vmin.f32 %v3803_v36, 0.0 }
 0x15d   :  { %v2398_v24 = vpop.eup %2397  ;;  %1954 = vst [vmem:[%s3986_s3 + $0xa0] sm:$0xff] %v1854_v43  ;;  %v1903_v47 = vsel %vm1403_vm0, %v3698_v59, %v2184_v33  ;;  %vm1427_vm2 = vcmp.gt.f32.partialorder %v3721_v19, 0.0  ;;  %2411 = vpow2.f32 %v1676_v23  ;;  %v1481_v40 = vmin.f32 %v3810_v54, 0.0 }
 0x15e   :  { %2003 = vst [vmem:[%s3986_s3 + $0x228] sm:$0xff] %v1903_v47  ;;  %v2136_v22 = vadd.f32 -1.0, %v2398_v24  ;;  %2413 = vpow2.f32 %v1580_v32  ;;  %v1724_v20 = vmul.f32 1.442695, %v1529_v2  ;;  %v1530_v30 = vmin.f32 %v3814_v63, 0.0 }
 0x15f   :  { %v2400_v58 = vpop.eup %2399  ;;  %v1628_v56 = vmul.f32 1.442695, %v1481_v40  ;;  %v3839_v52 = vadd.f32 %v1234_v3, %v2843_v9  ;;  %v3842_v59 = vadd.f32 %v1238_v27, %v2823_v60  ;;  %v3845_v44 = vadd.f32 %v2227_v29, %v2843_v9 }
 0x160   :  { %v2402_v14 = vpop.eup %2401  ;;  %v1855_v51 = vsel %vm1355_vm1, %v3718_v0, %v2136_v22  ;;  %v2208_v11 = vadd.f32 -1.0, %v2400_v58  ;;  %2415 = vpow2.f32 %v1724_v20  ;;  %v1726_v7 = vmul.f32 1.442695, %v1530_v30 }
 0x161   :  { %1955 = vst [vmem:[%s3986_s3 + $0xa8] sm:$0xff] %v1855_v51  ;;  %vm1379_vm3 = vcmp.gt.f32.partialorder %v3727_v4, 0.0  ;;  %v2160_v8 = vadd.f32 -1.0, %v2402_v14  ;;  %2417 = vpow2.f32 %v1628_v56  ;;  %v1482_v9 = vmin.f32 %v3839_v52, 0.0 }
 0x162   :  { %v2404_v12 = vpop.eup %2403  ;;  %v1927_v10 = vsel %vm1427_vm2, %v3721_v19, %v2208_v11  ;;  %vm1428_vm4 = vcmp.gt.f32.partialorder %v3747_v28, 0.0  ;;  %2419 = vpow2.f32 %v1726_v7  ;;  %v1506_v0 = vmin.f32 %v3842_v59, 0.0 }
 0x163   :  { %v2406_v25 = vpop.eup %2405  ;;  %2027 = vst [vmem:[%s3986_s3 + $0x2e8] sm:$0xff] %v1927_v10  ;;  %v1879_v15 = vsel %vm1379_vm3, %v3727_v4, %v2160_v8  ;;  %v2209_v6 = vadd.f32 -1.0, %v2404_v12  ;;  %vm1380_vm5 = vcmp.gt.f32.partialorder %v3750_v37, 0.0  ;;  %v1630_v48 = vmul.f32 1.442695, %v1482_v9 }
 0x164   :  { %1979 = vst [vmem:[%s3986_s3 + $0x168] sm:$0xff] %v1879_v15  ;;  %v2161_v19 = vadd.f32 -1.0, %v2406_v25  ;;  %v1678_v42 = vmul.f32 1.442695, %v1506_v0  ;;  %v1483_v18 = vmin.f32 %v3845_v44, 0.0  ;;  %v3870_v3 = vadd.f32 %v1240_v46, %v2823_v60 }
 0x165   :  { %v1928_v4 = vsel %vm1428_vm4, %v3747_v28, %v2209_v6  ;;  %2421 = vpow2.f32 %v1630_v48  ;;  %v3876_v53 = vadd.f32 %v1315_v17, %v2827_v62  ;;  %v3879_v34 = vadd.f32 %v1244_v21, %v2825_v61 }
 0x166   :  { %v2408_v50 = vpop.eup %2407  ;;  %2028 = vst [vmem:[%s3986_s3 + $0x2f0] sm:$0xff] %v1928_v4  ;;  %v1880_v49 = vsel %vm1380_vm5, %v3750_v37, %v2161_v19  ;;  %2423 = vpow2.f32 %v1678_v42  ;;  %v1632_v35 = vmul.f32 1.442695, %v1483_v18  ;;  %vm1404_vm6 = vcmp.gt.f32.partialorder %v3759_v57, 0.0 }
 0x167   :  { %v2410_v13 = vpop.eup %2409  ;;  %1980 = vst [vmem:[%s3986_s3 + $0x170] sm:$0xff] %v1880_v49  ;;  %v2185_v62 = vadd.f32 -1.0, %v2408_v50  ;;  %v1507_v28 = vmin.f32 %v3870_v3, 0.0  ;;  %v1458_v39 = vmin.f32 %v3876_v53, 0.0  ;;  %vm1356_vm7 = vcmp.gt.f32.partialorder %v3763_v5, 0.0 }
 0x168   :  { %v2137_v26 = vadd.f32 -1.0, %v2410_v13  ;;  %2425 = vpow2.f32 %v1632_v35  ;;  %v1531_v37 = vmin.f32 %v3879_v34, 0.0  ;;  %v3895_v33 = vadd.f32 %v2230_v31, %v2825_v61 }
 0x169   :  { %v1904_v38 = vsel %vm1404_vm6, %v3759_v57, %v2185_v62  ;;  %v1680_v27 = vmul.f32 1.442695, %v1507_v28  ;;  %v1582_v45 = vmul.f32 1.442695, %v1458_v39  ;;  %v3902_v32 = vadd.f32 %v1246_v16, %v2825_v61 }
 0x16a   :  { %v2412_v23 = vpop.eup %2411  ;;  %2004 = vst [vmem:[%s3986_s3 + $0x230] sm:$0xff] %v1904_v38  ;;  %v1856_v29 = vsel %vm1356_vm7, %v3763_v5, %v2137_v26  ;;  %v1728_v43 = vmul.f32 1.442695, %v1531_v37  ;;  %v3905_v2 = vadd.f32 %v1325_v41, %v2823_v60  ;;  %v1533_v47 = vmin.f32 %v3895_v33, 0.0 }
 0x16b   :  { %v2414_v57 = vpop.eup %2413  ;;  %1956 = vst [vmem:[%s3986_s3 + $0xb0] sm:$0xff] %v1856_v29  ;;  %v2186_v24 = vadd.f32 -1.0, %v2412_v23  ;;  %2427 = vpow2.f32 %v1680_v27  ;;  %vm1405_vm8 = vcmp.gt.f32.partialorder %v3793_v55, 0.0  ;;  %v1532_v5 = vmin.f32 %v3902_v32, 0.0 }
 0x16c   :  { %v2138_v40 = vadd.f32 -1.0, %v2414_v57  ;;  %2429 = vpow2.f32 %v1582_v45  ;;  %vm1357_vm9 = vcmp.gt.f32.partialorder %v3796_v1, 0.0  ;;  %v1732_v60 = vmul.f32 1.442695, %v1533_v47 }
 0x16d   :  { %v2416_v61 = vpop.eup %2415  ;;  %v1905_v22 = vsel %vm1405_vm8, %v3793_v55, %v2186_v24  ;;  %2431 = vpow2.f32 %v1728_v43  ;;  %v1730_v58 = vmul.f32 1.442695, %v1532_v5  ;;  %v1508_v56 = vmin.f32 %v3905_v2, 0.0 }
 0x16e   :  { %v2418_v20 = vpop.eup %2417  ;;  %2005 = vst [vmem:[%s3986_s3 + $0x238] sm:$0xff] %v1905_v22  ;;  %v1857_v30 = vsel %vm1357_vm9, %v3796_v1, %v2138_v40  ;;  %v2210_v46 = vadd.f32 -1.0, %v2416_v61  ;;  %vm1429_vm10 = vcmp.gt.f32.partialorder %v3803_v36, 0.0  ;;  %vm1381_vm11 = vcmp.gt.f32.partialorder %v3810_v54, 0.0 }
 0x16f   :  { %v2420_v17 = vpop.eup %2419  ;;  %1957 = vst [vmem:[%s3986_s3 + $0xb8] sm:$0xff] %v1857_v30  ;;  %v2162_v55 = vadd.f32 -1.0, %v2418_v20  ;;  %2433 = vpow2.f32 %v1732_v60  ;;  %v1682_v1 = vmul.f32 1.442695, %v1508_v56  ;;  %vm1430_vm12 = vcmp.gt.f32.partialorder %v3814_v63, 0.0 }
 0x170   :  { %v1929_v14 = vsel %vm1429_vm10, %v3803_v36, %v2210_v46  ;;  %v2211_v51 = vadd.f32 -1.0, %v2420_v17  ;;  %2435 = vpow2.f32 %v1730_v58  ;;  %vm1382_vm13 = vcmp.gt.f32.partialorder %v3839_v52, 0.0 }
 0x171   :  { %2029 = vst [vmem:[%s3986_s3 + $0x2f8] sm:$0xff] %v1929_v14  ;;  %v1881_v11 = vsel %vm1381_vm11, %v3810_v54, %v2162_v55  ;;  %2437 = vpow2.f32 %v1682_v1  ;;  %vm1406_vm14 = vcmp.gt.f32.partialorder %v3842_v59, 0.0  ;;  %vm1383_vm15 = vcmp.gt.f32.partialorder %v3845_v44, 0.0 }
 0x172   :  { %v2422_v7 = vpop.eup %2421  ;;  %1981 = vst [vmem:[%s3986_s3 + $0x178] sm:$0xff] %v1881_v11  ;;  %v1930_v8 = vsel %vm1430_vm12, %v3814_v63, %v2211_v51  ;;  %vm1407_vm0 = vcmp.gt.f32.partialorder %v3870_v3, 0.0  ;;  %vm1358_vm1 = vcmp.gt.f32.partialorder %v3876_v53, 0.0  ;;  %vm1431_vm2 = vcmp.gt.f32.partialorder %v3879_v34, 0.0 }
 0x173   :  { %v2424_v36 = vpop.eup %2423  ;;  %2030 = vst [vmem:[%s3986_s3 + $0x300] sm:$0xff] %v1930_v8  ;;  %v2163_v9 = vadd.f32 -1.0, %v2422_v7  ;;  %vm1433_vm3 = vcmp.gt.f32.partialorder %v3895_v33, 0.0  ;;  %vm1432_vm4 = vcmp.gt.f32.partialorder %v3902_v32, 0.0  ;;  %vm1408_vm5 = vcmp.gt.f32.partialorder %v3905_v2, 0.0 }
 0x174   :  { %v2187_v12 = vadd.f32 -1.0, %v2424_v36 }
 0x175   :  { %v2426_v54 = vpop.eup %2425  ;;  %v1882_v10 = vsel %vm1382_vm13, %v3839_v52, %v2163_v9 }
 0x176   :  { %1982 = vst [vmem:[%s3986_s3 + $0x180] sm:$0xff] %v1882_v10  ;;  %v1906_v63 = vsel %vm1406_vm14, %v3842_v59, %v2187_v12  ;;  %v2164_v0 = vadd.f32 -1.0, %v2426_v54 }
 0x177   :  { %2006 = vst [vmem:[%s3986_s3 + $0x240] sm:$0xff] %v1906_v63 }
 0x178   :  { %v2428_v21 = vpop.eup %2427  ;;  %v1883_v25 = vsel %vm1383_vm15, %v3845_v44, %v2164_v0 }
 0x179   :  { %v2430_v15 = vpop.eup %2429  ;;  %1983 = vst [vmem:[%s3986_s3 + $0x188] sm:$0xff] %v1883_v25  ;;  %v2188_v52 = vadd.f32 -1.0, %v2428_v21 }
 0x17a   :  { %v2432_v6 = vpop.eup %2431  ;;  %v2139_v59 = vadd.f32 -1.0, %v2430_v15 }
 0x17b   :  { %v1907_v48 = vsel %vm1407_vm0, %v3870_v3, %v2188_v52  ;;  %v2212_v31 = vadd.f32 -1.0, %v2432_v6 }
 0x17c   :  { %v2434_v19 = vpop.eup %2433  ;;  %2007 = vst [vmem:[%s3986_s3 + $0x248] sm:$0xff] %v1907_v48  ;;  %v1858_v44 = vsel %vm1358_vm1, %v3876_v53, %v2139_v59 }
 0x17d   :  { %v2436_v42 = vpop.eup %2435  ;;  %1958 = vst [vmem:[%s3986_s3 + $0xc0] sm:$0xff] %v1858_v44  ;;  %v1931_v18 = vsel %vm1431_vm2, %v3879_v34, %v2212_v31  ;;  %v2214_v3 = vadd.f32 -1.0, %v2434_v19 }
 0x17e   :  { %2031 = vst [vmem:[%s3986_s3 + $0x308] sm:$0xff] %v1931_v18  ;;  %v2213_v4 = vadd.f32 -1.0, %v2436_v42  ;;  %v2438_v50 = vpop.eup %2437 }
 0x17f   :  { %v1933_v53 = vsel %vm1433_vm3, %v3895_v33, %v2214_v3  ;;  %v2189_v34 = vadd.f32 -1.0, %v2438_v50 }
 0x180   :  { %2033 = vst [vmem:[%s3986_s3 + $0x318] sm:$0xff] %v1933_v53  ;;  %v1932_v49 = vsel %vm1432_vm4, %v3902_v32, %v2213_v4 }
 0x181   :  { %2032 = vst [vmem:[%s3986_s3 + $0x310] sm:$0xff] %v1932_v49  ;;  %v1908_v35 = vsel %vm1408_vm5, %v3905_v2, %v2189_v34 }
 0x182   :  { %2008 = vst [vmem:[%s3986_s3 + $0x250] sm:$0xff] %v1908_v35 }

// kernel: nn_policy_forward_pallas.6
= control target key start
LH: loop header
LB: loop body
LE: loop exit
PB: predicated region body
PF: predicated region fallthrough
CT: control target
= control target key end

     0   :  { %v1390_v3 = vmov 0.0   ;;  %vm302_vm0 = vcmask 261120   ;;  %s2590_s1 = inlined_call_operand.vmem [shape: f32[288,800], index: 1, kind: input, shape index: {}]   ;;  %s2591_s0 = inlined_call_operand.vmem [shape: f32[32,288], index: 0, kind: input, shape index: {}]   ;;  %s2592_s2 = inlined_call_operand.vmem [shape: f32[32,1], index: 2, kind: input, shape index: {}]   ;;  %s2593_s3 = inlined_call_operand.vmem [shape: f32[32,800], index: 3, kind: output, shape index: {}]  }
   0x1   :  { %v132_v0 = vld [vmem:[%s2590_s1 + $0x350] sm:$0xff]  ;;  %v131_v2 = vld [vmem:[%s2590_s1 + $0x348] sm:$0xff]  ;;  %468 = vmatprep.mubr.f32.mxu1 %v1390_v3  ;;  %v125_v5 = vld [vmem:[%s2590_s1 + $0x318] sm:$0xff] }
   0x2   :  { %v272_v1 = vld [vmem:[%s2590_s1 + $0x7b0] sm:$0xff]  ;;  %315 = vmatprep.subr.mxu0 %v132_v0  ;;  %v271_v4 = vld [vmem:[%s2590_s1 + $0x7a8] sm:$0xff]  ;;  %v265_v6 = vld [vmem:[%s2590_s1 + $0x778] sm:$0xff] }
   0x3   :  { %428 = vmatprep.subr.mxu1 %v272_v1  ;;  %316 = vmatpush1.msra.mxu0 %v131_v2  ;;  %v124_v7 = vld [vmem:[%s2590_s1 + $0x310] sm:$0xff]  ;;  %v118_v9 = vld [vmem:[%s2590_s1 + $0x2e0] sm:$0xff]  ;;  %v117_v11 = vld [vmem:[%s2590_s1 + $0x2d8] sm:$0xff] }
   0x4   :  { %429 = vmatpush1.msra.mxu1 %v271_v4  ;;  %v264_v8 = vld [vmem:[%s2590_s1 + $0x770] sm:$0xff]  ;;  %317 = vmatprep.subr.mxu0 %v125_v5  ;;  %v258_v10 = vld [vmem:[%s2590_s1 + $0x740] sm:$0xff]  ;;  %v257_v12 = vld [vmem:[%s2590_s1 + $0x738] sm:$0xff] }
   0x5   :  { %430 = vmatprep.subr.mxu1 %v265_v6  ;;  %318 = vmatpush1.msra.mxu0 %v124_v7  ;;  %v111_v13 = vld [vmem:[%s2590_s1 + $0x2a8] sm:$0xff]  ;;  %v110_v15 = vld [vmem:[%s2590_s1 + $0x2a0] sm:$0xff]  ;;  %v104_v17 = vld [vmem:[%s2590_s1 + $0x270] sm:$0xff] }
   0x6   :  { %431 = vmatpush1.msra.mxu1 %v264_v8  ;;  %v251_v14 = vld [vmem:[%s2590_s1 + $0x708] sm:$0xff]  ;;  %319 = vmatprep.subr.mxu0 %v118_v9  ;;  %v250_v16 = vld [vmem:[%s2590_s1 + $0x700] sm:$0xff]  ;;  %v1467_v18 = vld [vmem:[%s2591_s0 + $0x10] sm:$0xff] }
   0x7   :  { %432 = vmatprep.subr.mxu1 %v258_v10  ;;  %320 = vmatpush1.msra.mxu0 %v117_v11  ;;  %v134_v19 = vld [vmem:[%s2590_s1 + $0x360] sm:$0xff]  ;;  %v103_v20 = vld [vmem:[%s2590_s1 + $0x268] sm:$0xff]  ;;  %v133_v21 = vld [vmem:[%s2590_s1 + $0x358] sm:$0xff] }
   0x8   :  { %433 = vmatpush1.msra.mxu1 %v257_v12  ;;  %321 = vmatprep.subr.mxu0 %v111_v13  ;;  %v97_v22 = vld [vmem:[%s2590_s1 + $0x238] sm:$0xff]  ;;  %v127_v23 = vld [vmem:[%s2590_s1 + $0x328] sm:$0xff]  ;;  %v96_v24 = vld [vmem:[%s2590_s1 + $0x230] sm:$0xff] }
   0x9   :  { %434 = vmatprep.subr.mxu1 %v251_v14  ;;  %322 = vmatpush1.msra.mxu0 %v110_v15  ;;  %v126_v25 = vld [vmem:[%s2590_s1 + $0x320] sm:$0xff]  ;;  %v120_v27 = vld [vmem:[%s2590_s1 + $0x2f0] sm:$0xff]  ;;  %v89_v28 = vld [vmem:[%s2590_s1 + $0x1f8] sm:$0xff] }
   0xa   :  { %435 = vmatpush1.msra.mxu1 %v250_v16  ;;  %323 = vmatprep.subr.mxu0 %v104_v17  ;;  %v90_v26 = vld [vmem:[%s2590_s1 + $0x200] sm:$0xff]  ;;  %v119_v29 = vld [vmem:[%s2590_s1 + $0x2e8] sm:$0xff]  ;;  %v113_v31 = vld [vmem:[%s2590_s1 + $0x2b8] sm:$0xff] }
   0xb   :  { %1219 = vmatmul.mubr.msk.f32.vlgmr.msra.gmra.mxu1 %vm302_vm0, %v1467_v18  ;;  %493 = vmatprep.subr.mxu1 %v134_v19  ;;  %v83_v30 = vld [vmem:[%s2590_s1 + $0x1c8] sm:$0xff]  ;;  %v82_v32 = vld [vmem:[%s2590_s1 + $0x1c0] sm:$0xff]  ;;  %v112_v33 = vld [vmem:[%s2590_s1 + $0x2b0] sm:$0xff] }
   0xc   :  { %324 = vmatpush1.msra.mxu0 %v103_v20  ;;  %494 = vmatpush1.msra.mxu1 %v133_v21  ;;  %v76_v34 = vld [vmem:[%s2590_s1 + $0x190] sm:$0xff]  ;;  %v106_v35 = vld [vmem:[%s2590_s1 + $0x280] sm:$0xff]  ;;  %v75_v36 = vld [vmem:[%s2590_s1 + $0x188] sm:$0xff] }
   0xd   :  { %325 = vmatprep.subr.mxu0 %v97_v22  ;;  %495 = vmatprep.subr.mxu1 %v127_v23  ;;  %v105_v37 = vld [vmem:[%s2590_s1 + $0x278] sm:$0xff]  ;;  %v99_v39 = vld [vmem:[%s2590_s1 + $0x248] sm:$0xff]  ;;  %v68_v40 = vld [vmem:[%s2590_s1 + $0x150] sm:$0xff] }
   0xe   :  { %326 = vmatpush1.msra.mxu0 %v96_v24  ;;  %496 = vmatpush1.msra.mxu1 %v126_v25  ;;  %v69_v38 = vld [vmem:[%s2590_s1 + $0x158] sm:$0xff]  ;;  %v98_v41 = vld [vmem:[%s2590_s1 + $0x240] sm:$0xff]  ;;  %v92_v43 = vld [vmem:[%s2590_s1 + $0x210] sm:$0xff] }
   0xf   :  { %327 = vmatprep.subr.mxu0 %v90_v26  ;;  %497 = vmatprep.subr.mxu1 %v120_v27  ;;  %v62_v42 = vld [vmem:[%s2590_s1 + $0x120] sm:$0xff]  ;;  %v61_v44 = vld [vmem:[%s2590_s1 + $0x118] sm:$0xff]  ;;  %v91_v45 = vld [vmem:[%s2590_s1 + $0x208] sm:$0xff] }
  0x10   :  { %328 = vmatpush1.msra.mxu0 %v89_v28  ;;  %498 = vmatpush1.msra.mxu1 %v119_v29  ;;  %v55_v46 = vld [vmem:[%s2590_s1 + $0xe8] sm:$0xff]  ;;  %v85_v47 = vld [vmem:[%s2590_s1 + $0x1d8] sm:$0xff]  ;;  %v54_v48 = vld [vmem:[%s2590_s1 + $0xe0] sm:$0xff] }
  0x11   :  { %329 = vmatprep.subr.mxu0 %v83_v30  ;;  %499 = vmatprep.subr.mxu1 %v113_v31  ;;  %v84_v49 = vld [vmem:[%s2590_s1 + $0x1d0] sm:$0xff]  ;;  %v78_v51 = vld [vmem:[%s2590_s1 + $0x1a0] sm:$0xff]  ;;  %v47_v52 = vld [vmem:[%s2590_s1 + $0xa8] sm:$0xff] }
  0x12   :  { %330 = vmatpush1.msra.mxu0 %v82_v32  ;;  %500 = vmatpush1.msra.mxu1 %v112_v33  ;;  %v48_v50 = vld [vmem:[%s2590_s1 + $0xb0] sm:$0xff]  ;;  %v77_v53 = vld [vmem:[%s2590_s1 + $0x198] sm:$0xff]  ;;  %v71_v55 = vld [vmem:[%s2590_s1 + $0x168] sm:$0xff] }
  0x13   :  { %331 = vmatprep.subr.mxu0 %v76_v34  ;;  %501 = vmatprep.subr.mxu1 %v106_v35  ;;  %v41_v54 = vld [vmem:[%s2590_s1 + $0x78] sm:$0xff]  ;;  %v40_v56 = vld [vmem:[%s2590_s1 + $0x70] sm:$0xff]  ;;  %v70_v57 = vld [vmem:[%s2590_s1 + $0x160] sm:$0xff] }
  0x14   :  { %332 = vmatpush1.msra.mxu0 %v75_v36  ;;  %502 = vmatpush1.msra.mxu1 %v105_v37  ;;  %v34_v58 = vld [vmem:[%s2590_s1 + $0x40] sm:$0xff]  ;;  %v64_v59 = vld [vmem:[%s2590_s1 + $0x130] sm:$0xff]  ;;  %v33_v60 = vld [vmem:[%s2590_s1 + $0x38] sm:$0xff] }
  0x15   :  { %333 = vmatprep.subr.mxu0 %v69_v38  ;;  %503 = vmatprep.subr.mxu1 %v99_v39  ;;  %v63_v61 = vld [vmem:[%s2590_s1 + $0x128] sm:$0xff]  ;;  %v57_v63 = vld [vmem:[%s2590_s1 + $0xf8] sm:$0xff]  ;;  %v26_v0 = vld [vmem:[%s2590_s1] sm:$0xff] }
  0x16   :  { %334 = vmatpush1.msra.mxu0 %v68_v40  ;;  %504 = vmatpush1.msra.mxu1 %v98_v41  ;;  %v27_v62 = vld [vmem:[%s2590_s1 + $0x8] sm:$0xff]  ;;  %v56_v1 = vld [vmem:[%s2590_s1 + $0xf0] sm:$0xff]  ;;  %v50_v4 = vld [vmem:[%s2590_s1 + $0xc0] sm:$0xff] }
  0x17   :  { %335 = vmatprep.subr.mxu0 %v62_v42  ;;  %505 = vmatprep.subr.mxu1 %v92_v43  ;;  %v244_v2 = vld [vmem:[%s2590_s1 + $0x6d0] sm:$0xff]  ;;  %v243_v5 = vld [vmem:[%s2590_s1 + $0x6c8] sm:$0xff]  ;;  %v49_v6 = vld [vmem:[%s2590_s1 + $0xb8] sm:$0xff] }
  0x18   :  { %336 = vmatpush1.msra.mxu0 %v61_v44  ;;  %506 = vmatpush1.msra.mxu1 %v91_v45  ;;  %v237_v7 = vld [vmem:[%s2590_s1 + $0x698] sm:$0xff]  ;;  %v43_v8 = vld [vmem:[%s2590_s1 + $0x88] sm:$0xff]  ;;  %v236_v9 = vld [vmem:[%s2590_s1 + $0x690] sm:$0xff] }
  0x19   :  { %337 = vmatprep.subr.mxu0 %v55_v46  ;;  %507 = vmatprep.subr.mxu1 %v85_v47  ;;  %v42_v10 = vld [vmem:[%s2590_s1 + $0x80] sm:$0xff]  ;;  %v36_v12 = vld [vmem:[%s2590_s1 + $0x50] sm:$0xff]  ;;  %v229_v13 = vld [vmem:[%s2590_s1 + $0x658] sm:$0xff] }
  0x1a   :  { %338 = vmatpush1.msra.mxu0 %v54_v48  ;;  %508 = vmatpush1.msra.mxu1 %v84_v49  ;;  %v230_v11 = vld [vmem:[%s2590_s1 + $0x660] sm:$0xff]  ;;  %v35_v14 = vld [vmem:[%s2590_s1 + $0x48] sm:$0xff]  ;;  %v29_v16 = vld [vmem:[%s2590_s1 + $0x18] sm:$0xff] }
  0x1b   :  { %339 = vmatprep.subr.mxu0 %v48_v50  ;;  %509 = vmatprep.subr.mxu1 %v78_v51  ;;  %v223_v15 = vld [vmem:[%s2590_s1 + $0x628] sm:$0xff]  ;;  %v222_v17 = vld [vmem:[%s2590_s1 + $0x620] sm:$0xff]  ;;  %v28_v19 = vld [vmem:[%s2590_s1 + $0x10] sm:$0xff] }
  0x1c   :  { %340 = vmatpush1.msra.mxu0 %v47_v52  ;;  %510 = vmatpush1.msra.mxu1 %v77_v53  ;;  %v216_v20 = vld [vmem:[%s2590_s1 + $0x5f0] sm:$0xff]  ;;  %v246_v21 = vld [vmem:[%s2590_s1 + $0x6e0] sm:$0xff]  ;;  %v215_v22 = vld [vmem:[%s2590_s1 + $0x5e8] sm:$0xff] }
  0x1d   :  { %341 = vmatprep.subr.mxu0 %v41_v54  ;;  %511 = vmatprep.subr.mxu1 %v71_v55  ;;  %v245_v23 = vld [vmem:[%s2590_s1 + $0x6d8] sm:$0xff]  ;;  %v239_v25 = vld [vmem:[%s2590_s1 + $0x6a8] sm:$0xff]  ;;  %v208_v26 = vld [vmem:[%s2590_s1 + $0x5b0] sm:$0xff] }
  0x1e   :  { %342 = vmatpush1.msra.mxu0 %v40_v56  ;;  %512 = vmatpush1.msra.mxu1 %v70_v57  ;;  %v209_v24 = vld [vmem:[%s2590_s1 + $0x5b8] sm:$0xff]  ;;  %v238_v27 = vld [vmem:[%s2590_s1 + $0x6a0] sm:$0xff]  ;;  %v232_v29 = vld [vmem:[%s2590_s1 + $0x670] sm:$0xff] }
  0x1f   :  { %343 = vmatprep.subr.mxu0 %v34_v58  ;;  %513 = vmatprep.subr.mxu1 %v64_v59  ;;  %v202_v28 = vld [vmem:[%s2590_s1 + $0x580] sm:$0xff]  ;;  %v201_v30 = vld [vmem:[%s2590_s1 + $0x578] sm:$0xff]  ;;  %v231_v31 = vld [vmem:[%s2590_s1 + $0x668] sm:$0xff] }
  0x20   :  { %344 = vmatpush1.msra.mxu0 %v33_v60  ;;  %514 = vmatpush1.msra.mxu1 %v63_v61  ;;  %v195_v32 = vld [vmem:[%s2590_s1 + $0x548] sm:$0xff]  ;;  %v225_v33 = vld [vmem:[%s2590_s1 + $0x638] sm:$0xff]  ;;  %v194_v34 = vld [vmem:[%s2590_s1 + $0x540] sm:$0xff] }
  0x21   :  { %345 = vmatprep.subr.mxu0 %v27_v62  ;;  %515 = vmatprep.subr.mxu1 %v57_v63  ;;  %v224_v35 = vld [vmem:[%s2590_s1 + $0x630] sm:$0xff]  ;;  %v218_v37 = vld [vmem:[%s2590_s1 + $0x600] sm:$0xff]  ;;  %v187_v38 = vld [vmem:[%s2590_s1 + $0x508] sm:$0xff] }
  0x22   :  { %346 = vmatpush1.msra.mxu0 %v26_v0  ;;  %516 = vmatpush1.msra.mxu1 %v56_v1  ;;  %v188_v36 = vld [vmem:[%s2590_s1 + $0x510] sm:$0xff]  ;;  %v217_v39 = vld [vmem:[%s2590_s1 + $0x5f8] sm:$0xff]  ;;  %v211_v41 = vld [vmem:[%s2590_s1 + $0x5c8] sm:$0xff] }
  0x23   :  { %347 = vmatprep.subr.mxu0 %v244_v2  ;;  %517 = vmatprep.subr.mxu1 %v50_v4  ;;  %v181_v40 = vld [vmem:[%s2590_s1 + $0x4d8] sm:$0xff]  ;;  %v180_v42 = vld [vmem:[%s2590_s1 + $0x4d0] sm:$0xff]  ;;  %v210_v43 = vld [vmem:[%s2590_s1 + $0x5c0] sm:$0xff] }
  0x24   :  { %348 = vmatpush2.msra.mxu0 %v243_v5  ;;  %518 = vmatpush1.msra.mxu1 %v49_v6  ;;  %v174_v44 = vld [vmem:[%s2590_s1 + $0x4a0] sm:$0xff]  ;;  %v204_v45 = vld [vmem:[%s2590_s1 + $0x590] sm:$0xff]  ;;  %v173_v46 = vld [vmem:[%s2590_s1 + $0x498] sm:$0xff] }
  0x25   :  { %349 = vmatprep.subr.mxu0 %v237_v7  ;;  %519 = vmatprep.subr.mxu1 %v43_v8  ;;  %v203_v47 = vld [vmem:[%s2590_s1 + $0x588] sm:$0xff]  ;;  %v197_v49 = vld [vmem:[%s2590_s1 + $0x558] sm:$0xff]  ;;  %v166_v50 = vld [vmem:[%s2590_s1 + $0x460] sm:$0xff] }
  0x26   :  { %350 = vmatpush2.msra.mxu0 %v236_v9  ;;  %520 = vmatpush1.msra.mxu1 %v42_v10  ;;  %v167_v48 = vld [vmem:[%s2590_s1 + $0x468] sm:$0xff]  ;;  %v196_v51 = vld [vmem:[%s2590_s1 + $0x550] sm:$0xff]  ;;  %v190_v53 = vld [vmem:[%s2590_s1 + $0x520] sm:$0xff] }
  0x27   :  { %351 = vmatprep.subr.mxu0 %v230_v11  ;;  %521 = vmatprep.subr.mxu1 %v36_v12  ;;  %v160_v52 = vld [vmem:[%s2590_s1 + $0x430] sm:$0xff]  ;;  %v159_v54 = vld [vmem:[%s2590_s1 + $0x428] sm:$0xff]  ;;  %v189_v55 = vld [vmem:[%s2590_s1 + $0x518] sm:$0xff] }
  0x28   :  { %352 = vmatpush2.msra.mxu0 %v229_v13  ;;  %522 = vmatpush1.msra.mxu1 %v35_v14  ;;  %v153_v56 = vld [vmem:[%s2590_s1 + $0x3f8] sm:$0xff]  ;;  %v183_v57 = vld [vmem:[%s2590_s1 + $0x4e8] sm:$0xff]  ;;  %v152_v58 = vld [vmem:[%s2590_s1 + $0x3f0] sm:$0xff] }
  0x29   :  { %353 = vmatprep.subr.mxu0 %v223_v15  ;;  %523 = vmatprep.subr.mxu1 %v29_v16  ;;  %v1780_v59 = vld [vmem:[%s2591_s0 + $0x28] sm:$0xff]  ;;  %v182_v60 = vld [vmem:[%s2590_s1 + $0x4e0] sm:$0xff]  ;;  %v176_v62 = vld [vmem:[%s2590_s1 + $0x4b0] sm:$0xff] }
  0x2a   :  { %354 = vmatpush2.msra.mxu0 %v222_v17  ;;  %524 = vmatpush1.msra.mxu1 %v28_v19  ;;  %v146_v61 = vld [vmem:[%s2590_s1 + $0x3c0] sm:$0xff]  ;;  %v145_v63 = vld [vmem:[%s2590_s1 + $0x3b8] sm:$0xff]  ;;  %v175_v0 = vld [vmem:[%s2590_s1 + $0x4a8] sm:$0xff] }
  0x2b   :  { %355 = vmatprep.subr.mxu0 %v216_v20  ;;  %525 = vmatprep.subr.mxu1 %v246_v21  ;;  %v139_v1 = vld [vmem:[%s2590_s1 + $0x388] sm:$0xff]  ;;  %v169_v2 = vld [vmem:[%s2590_s1 + $0x478] sm:$0xff]  ;;  %v138_v4 = vld [vmem:[%s2590_s1 + $0x380] sm:$0xff] }
  0x2c   :  { %356 = vmatpush2.msra.mxu0 %v215_v22  ;;  %526 = vmatpush2.msra.mxu1 %v245_v23  ;;  %v1812_v5 = vld [vmem:[%s2591_s0 + $0x8] sm:$0xff]  ;;  %v1817_v6 = vld [vmem:[%s2591_s0 + $0x40] sm:$0xff]  ;;  %v168_v8 = vld [vmem:[%s2590_s1 + $0x470] sm:$0xff] }
  0x2d   :  { %357 = vmatprep.subr.mxu0 %v209_v24  ;;  %527 = vmatprep.subr.mxu1 %v239_v25  ;;  %v1822_v7 = vld [vmem:[%s2591_s0] sm:$0xff]  ;;  %v161_v11 = vld [vmem:[%s2590_s1 + $0x438] sm:$0xff]  ;;  %v155_v13 = vld [vmem:[%s2590_s1 + $0x408] sm:$0xff] }
  0x2e   :  { %358 = vmatpush2.msra.mxu0 %v208_v26  ;;  %528 = vmatpush2.msra.mxu1 %v238_v27  ;;  %v162_v9 = vld [vmem:[%s2590_s1 + $0x440] sm:$0xff]  ;;  %v1853_v14 = vld [vmem:[%s2591_s0 + $0x58] sm:$0xff]  ;;  %v148_v19 = vld [vmem:[%s2590_s1 + $0x3d0] sm:$0xff] }
  0x2f   :  { %359 = vmatprep.subr.mxu0 %v202_v28  ;;  %529 = vmatprep.subr.mxu1 %v232_v29  ;;  %v274_v10 = vld [vmem:[%s2590_s1 + $0x7c0] sm:$0xff]  ;;  %v273_v16 = vld [vmem:[%s2590_s1 + $0x7b8] sm:$0xff]  ;;  %v147_v20 = vld [vmem:[%s2590_s1 + $0x3c8] sm:$0xff] }
  0x30   :  { %360 = vmatpush2.msra.mxu0 %v201_v30  ;;  %530 = vmatpush2.msra.mxu1 %v231_v31  ;;  %v1844_v12 = vld [vmem:[%s2591_s0 + $0x20] sm:$0xff]  ;;  %v1865_v17 = vld [vmem:[%s2591_s0 + $0x18] sm:$0xff]  ;;  %v267_v21 = vld [vmem:[%s2590_s1 + $0x788] sm:$0xff] }
  0x31   :  { %361 = vmatprep.subr.mxu0 %v195_v32  ;;  %531 = vmatprep.subr.mxu1 %v225_v33  ;;  %v154_v15 = vld [vmem:[%s2590_s1 + $0x400] sm:$0xff]  ;;  %v141_v22 = vld [vmem:[%s2590_s1 + $0x398] sm:$0xff]  ;;  %v140_v24 = vld [vmem:[%s2590_s1 + $0x390] sm:$0xff] }
  0x32   :  { %362 = vmatpush2.msra.mxu0 %v194_v34  ;;  %532 = vmatpush2.msra.mxu1 %v224_v35  ;;  %v1884_v23 = vld [vmem:[%s2591_s0 + $0x38] sm:$0xff]  ;;  %v266_v25 = vld [vmem:[%s2590_s1 + $0x780] sm:$0xff]  ;;  %v1897_v26 = vld [vmem:[%s2591_s0 + $0x30] sm:$0xff] }
  0x33   :  { %363 = vmatprep.subr.mxu0 %v188_v36  ;;  %533 = vmatprep.subr.mxu1 %v218_v37  ;;  %v136_v27 = vld [vmem:[%s2590_s1 + $0x370] sm:$0xff]  ;;  %v135_v28 = vld [vmem:[%s2590_s1 + $0x368] sm:$0xff]  ;;  %v129_v30 = vld [vmem:[%s2590_s1 + $0x338] sm:$0xff] }
  0x34   :  { %364 = vmatpush2.msra.mxu0 %v187_v38  ;;  %534 = vmatpush2.msra.mxu1 %v217_v39  ;;  %v260_v29 = vld [vmem:[%s2590_s1 + $0x750] sm:$0xff]  ;;  %v259_v32 = vld [vmem:[%s2590_s1 + $0x748] sm:$0xff]  ;;  %v122_v35 = vld [vmem:[%s2590_s1 + $0x300] sm:$0xff] }
  0x35   :  { %365 = vmatprep.subr.mxu0 %v181_v40  ;;  %535 = vmatprep.subr.mxu1 %v211_v41  ;;  %v1916_v31 = vld [vmem:[%s2591_s0 + $0x50] sm:$0xff]  ;;  %v1928_v34 = vld [vmem:[%s2591_s0 + $0x48] sm:$0xff]  ;;  %v121_v36 = vld [vmem:[%s2590_s1 + $0x2f8] sm:$0xff] }
  0x36   :  { %366 = vmatpush2.msra.mxu0 %v180_v42  ;;  %536 = vmatpush2.msra.mxu1 %v210_v43  ;;  %v128_v33 = vld [vmem:[%s2590_s1 + $0x330] sm:$0xff]  ;;  %v253_v37 = vld [vmem:[%s2590_s1 + $0x718] sm:$0xff]  ;;  %v115_v38 = vld [vmem:[%s2590_s1 + $0x2c8] sm:$0xff] }
  0x37   :  { %367 = vmatprep.subr.mxu0 %v174_v44  ;;  %537 = vmatprep.subr.mxu1 %v204_v45  ;;  %v252_v39 = vld [vmem:[%s2590_s1 + $0x710] sm:$0xff]  ;;  %v114_v40 = vld [vmem:[%s2590_s1 + $0x2c0] sm:$0xff]  ;;  %v107_v42 = vld [vmem:[%s2590_s1 + $0x288] sm:$0xff] }
  0x38   :  { %368 = vmatpush2.msra.mxu0 %v173_v46  ;;  %538 = vmatpush2.msra.mxu1 %v203_v47  ;;  %v108_v41 = vld [vmem:[%s2590_s1 + $0x290] sm:$0xff]  ;;  %v101_v43 = vld [vmem:[%s2590_s1 + $0x258] sm:$0xff]  ;;  %v275_v46 = vld [vmem:[%s2590_s1 + $0x7c8] sm:$0xff] }
  0x39   :  { %369 = vmatprep.subr.mxu0 %v167_v48  ;;  %539 = vmatprep.subr.mxu1 %v197_v49  ;;  %v276_v44 = vld [vmem:[%s2590_s1 + $0x7d0] sm:$0xff]  ;;  %v94_v47 = vld [vmem:[%s2590_s1 + $0x220] sm:$0xff]  ;;  %v93_v48 = vld [vmem:[%s2590_s1 + $0x218] sm:$0xff] }
  0x3a   :  { %370 = vmatpush2.msra.mxu0 %v166_v50  ;;  %540 = vmatpush2.msra.mxu1 %v196_v51  ;;  %v100_v45 = vld [vmem:[%s2590_s1 + $0x250] sm:$0xff]  ;;  %v87_v49 = vld [vmem:[%s2590_s1 + $0x1e8] sm:$0xff]  ;;  %v269_v50 = vld [vmem:[%s2590_s1 + $0x798] sm:$0xff] }
  0x3b   :  { %371 = vmatprep.subr.mxu0 %v160_v52  ;;  %541 = vmatprep.subr.mxu1 %v190_v53  ;;  %v86_v51 = vld [vmem:[%s2590_s1 + $0x1e0] sm:$0xff]  ;;  %v268_v52 = vld [vmem:[%s2590_s1 + $0x790] sm:$0xff] }
  0x3c   :  { %372 = vmatpush2.msra.mxu0 %v159_v54  ;;  %542 = vmatpush2.msra.mxu1 %v189_v55  ;;  %v80_v53 = vld [vmem:[%s2590_s1 + $0x1b0] sm:$0xff]  ;;  %v79_v54 = vld [vmem:[%s2590_s1 + $0x1a8] sm:$0xff]  ;;  %v73_v55 = vld [vmem:[%s2590_s1 + $0x178] sm:$0xff] }
  0x3d   :  { %373 = vmatprep.subr.mxu0 %v153_v56  ;;  %474 = vmatprep.mubr.f32.mxu1 %v1390_v3  ;;  %v262_v56 = vld [vmem:[%s2590_s1 + $0x760] sm:$0xff] }
  0x3e   :  { %543 = vmatprep.subr.mxu1 %v183_v57  ;;  %374 = vmatpush2.msra.mxu0 %v152_v58  ;;  %v72_v57 = vld [vmem:[%s2590_s1 + $0x170] sm:$0xff]  ;;  %v261_v58 = vld [vmem:[%s2590_s1 + $0x758] sm:$0xff] }
  0x3f   :  { %1220 = vmatmul.mubr.msk.f32.gmra.mxu1 %vm302_vm0, %v1780_v59  ;;  %375 = vmatprep.subr.mxu0 %v146_v61  ;;  %v65_v61 = vld [vmem:[%s2590_s1 + $0x138] sm:$0xff] }
  0x40   :  { %544 = vmatpush2.msra.mxu1 %v182_v60  ;;  %376 = vmatpush2.msra.mxu0 %v145_v63  ;;  %v66_v60 = vld [vmem:[%s2590_s1 + $0x140] sm:$0xff]  ;;  %v59_v63 = vld [vmem:[%s2590_s1 + $0x108] sm:$0xff] }
  0x41   :  { %545 = vmatprep.subr.mxu1 %v176_v62  ;;  %377 = vmatprep.subr.mxu0 %v139_v1  ;;  %v255_v62 = vld [vmem:[%s2590_s1 + $0x728] sm:$0xff]  ;;  %v58_v1 = vld [vmem:[%s2590_s1 + $0x100] sm:$0xff] }
  0x42   :  { %546 = vmatpush2.msra.mxu1 %v175_v0  ;;  %480 = vmatprep.mubr.f32.mxu1 %v1390_v3  ;;  %v254_v0 = vld [vmem:[%s2590_s1 + $0x720] sm:$0xff] }
  0x43   :  { %547 = vmatprep.subr.mxu1 %v169_v2  ;;  %378 = vmatpush2.msra.mxu0 %v138_v4  ;;  %v249_v2 = vld [vmem:[%s2590_s1 + $0x6f8] sm:$0xff]  ;;  %v52_v4 = vld [vmem:[%s2590_s1 + $0xd0] sm:$0xff] }
  0x44   :  { %379 = vmatprep.mubr.f32.mxu0 %v1812_v5  ;;  %1221 = vmatmul.mubr.msk.f32.gmra.mxu1 %vm302_vm0, %v1817_v6 }
  0x45   :  { %380 = vmatmul.mubr.f32.vlgmr.msra.gmra.mxu0 %v1822_v7  ;;  %548 = vmatpush2.msra.mxu1 %v168_v8  ;;  %v51_v8 = vld [vmem:[%s2590_s1 + $0xc8] sm:$0xff] }
  0x46   :  { %486 = vmatprep.mubr.f32.mxu1 %v1390_v3  ;;  %549 = vmatprep.subr.mxu1 %v162_v9  ;;  %v137_v9 = vld [vmem:[%s2590_s1 + $0x378] sm:$0xff] }
  0x47   :  { %606 = vmatprep.subr.mxu0 %v274_v10  ;;  %550 = vmatpush2.msra.mxu1 %v161_v11  ;;  %v45_v10 = vld [vmem:[%s2590_s1 + $0x98] sm:$0xff]  ;;  %v242_v11 = vld [vmem:[%s2590_s1 + $0x6c0] sm:$0xff] }
  0x48   :  { %385 = vmatprep.mubr.f32.mxu0 %v1844_v12  ;;  %551 = vmatprep.subr.mxu1 %v155_v13  ;;  %v44_v13 = vld [vmem:[%s2590_s1 + $0x90] sm:$0xff] }
  0x49   :  { %1222 = vmatmul.mubr.msk.f32.gmra.mxu1 %vm302_vm0, %v1853_v14  ;;  %607 = vmatpush1.msra.mxu0 %v273_v16  ;;  %v38_v16 = vld [vmem:[%s2590_s1 + $0x60] sm:$0xff] }
  0x4a   :  { %552 = vmatpush2.msra.mxu1 %v154_v15  ;;  %386 = vmatmul.mubr.f32.gmra.mxu0 %v1865_v17  ;;  %v130_v15 = vld [vmem:[%s2590_s1 + $0x340] sm:$0xff] }
  0x4b   :  { %553 = vmatprep.subr.mxu1 %v148_v19  ;;  %608 = vmatprep.subr.mxu0 %v267_v21  ;;  %v235_v19 = vld [vmem:[%s2590_s1 + $0x688] sm:$0xff] }
  0x4c   :  { %554 = vmatpush2.msra.mxu1 %v147_v20  ;;  %391 = vmatprep.mubr.f32.mxu0 %v1884_v23  ;;  %v37_v20 = vld [vmem:[%s2590_s1 + $0x58] sm:$0xff]  ;;  %v31_v21 = vld [vmem:[%s2590_s1 + $0x28] sm:$0xff] }
  0x4d   :  { %555 = vmatprep.subr.mxu1 %v141_v22  ;;  %557 = vmatprep.mubr.f32.mxu1 %v1812_v5  ;;  %v228_v22 = vld [vmem:[%s2590_s1 + $0x650] sm:$0xff] }
  0x4e   :  { %556 = vmatpush2.msra.mxu1 %v140_v24  ;;  %609 = vmatpush1.msra.mxu0 %v266_v25  ;;  %v30_v24 = vld [vmem:[%s2590_s1 + $0x20] sm:$0xff]  ;;  %v116_v25 = vld [vmem:[%s2590_s1 + $0x2d0] sm:$0xff] }
  0x4f   :  { %558 = vmatmul.mubr.f32.vlgmr.msra.gmra.mxu1 %v1822_v7  ;;  %392 = vmatmul.mubr.f32.gmra.mxu0 %v1897_v26 }
  0x50   :  { %671 = vmatprep.subr.mxu1 %v136_v27  ;;  %610 = vmatprep.subr.mxu0 %v260_v29  ;;  %v248_v27 = vld [vmem:[%s2590_s1 + $0x6f0] sm:$0xff]  ;;  %v247_v29 = vld [vmem:[%s2590_s1 + $0x6e8] sm:$0xff] }
  0x51   :  { %672 = vmatpush1.msra.mxu1 %v135_v28  ;;  %397 = vmatprep.mubr.f32.mxu0 %v1916_v31  ;;  %v221_v28 = vld [vmem:[%s2590_s1 + $0x618] sm:$0xff] }
  0x52   :  { %673 = vmatprep.subr.mxu1 %v129_v30  ;;  %611 = vmatpush1.msra.mxu0 %v259_v32  ;;  %v109_v30 = vld [vmem:[%s2590_s1 + $0x298] sm:$0xff] }
  0x53   :  { %674 = vmatpush1.msra.mxu1 %v128_v33  ;;  %398 = vmatmul.mubr.f32.gmra.mxu0 %v1928_v34  ;;  %v241_v32 = vld [vmem:[%s2590_s1 + $0x6b8] sm:$0xff]  ;;  %v214_v33 = vld [vmem:[%s2590_s1 + $0x5e0] sm:$0xff] }
  0x54   :  { %675 = vmatprep.subr.mxu1 %v122_v35  ;;  %612 = vmatprep.subr.mxu0 %v253_v37  ;;  %v240_v35 = vld [vmem:[%s2590_s1 + $0x6b0] sm:$0xff]  ;;  %v234_v37 = vld [vmem:[%s2590_s1 + $0x680] sm:$0xff] }
  0x55   :  { %676 = vmatpush1.msra.mxu1 %v121_v36  ;;  %613 = vmatpush1.msra.mxu0 %v252_v39  ;;  %v102_v36 = vld [vmem:[%s2590_s1 + $0x260] sm:$0xff]  ;;  %v233_v39 = vld [vmem:[%s2590_s1 + $0x678] sm:$0xff] }
  0x56   :  { %677 = vmatprep.subr.mxu1 %v115_v38  ;;  %646 = vmatprep.mubr.f32.mxu0 %v1390_v3  ;;  %v207_v38 = vld [vmem:[%s2590_s1 + $0x5a8] sm:$0xff] }
  0x57   :  { %678 = vmatpush1.msra.mxu1 %v114_v40  ;;  %1223 = vmatmul.mubr.msk.f32.vlgmr.msra.gmra.mxu0 %vm302_vm0, %v1467_v18  ;;  %v95_v40 = vld [vmem:[%s2590_s1 + $0x228] sm:$0xff] }
  0x58   :  { %679 = vmatprep.subr.mxu1 %v108_v41  ;;  %563 = vmatprep.mubr.f32.mxu1 %v1844_v12  ;;  %v227_v41 = vld [vmem:[%s2590_s1 + $0x648] sm:$0xff] }
  0x59   :  { %680 = vmatpush1.msra.mxu1 %v107_v42  ;;  %784 = vmatprep.subr.mxu0 %v276_v44  ;;  %v200_v42 = vld [vmem:[%s2590_s1 + $0x570] sm:$0xff] }
  0x5a   :  { %564 = vmatmul.mubr.f32.gmra.mxu1 %v1865_v17  ;;  %681 = vmatprep.subr.mxu1 %v101_v43  ;;  %v226_v43 = vld [vmem:[%s2590_s1 + $0x640] sm:$0xff]  ;;  %v88_v44 = vld [vmem:[%s2590_s1 + $0x1f0] sm:$0xff] }
  0x5b   :  { %652 = vmatprep.mubr.f32.mxu0 %v1390_v3  ;;  %682 = vmatpush1.msra.mxu1 %v100_v45  ;;  %v220_v45 = vld [vmem:[%s2590_s1 + $0x610] sm:$0xff] }
  0x5c   :  { %785 = vmatpush1.msra.mxu0 %v275_v46  ;;  %683 = vmatprep.subr.mxu1 %v94_v47  ;;  %v193_v46 = vld [vmem:[%s2590_s1 + $0x538] sm:$0xff]  ;;  %v219_v47 = vld [vmem:[%s2590_s1 + $0x608] sm:$0xff] }
  0x5d   :  { %1224 = vmatmul.mubr.msk.f32.gmra.mxu0 %vm302_vm0, %v1780_v59  ;;  %569 = vmatprep.mubr.f32.mxu1 %v1884_v23 }
  0x5e   :  { %684 = vmatpush1.msra.mxu1 %v93_v48  ;;  %786 = vmatprep.subr.mxu0 %v269_v50  ;;  %v81_v48 = vld [vmem:[%s2590_s1 + $0x1b8] sm:$0xff]  ;;  %v186_v50 = vld [vmem:[%s2590_s1 + $0x500] sm:$0xff] }
  0x5f   :  { %570 = vmatmul.mubr.f32.gmra.mxu1 %v1897_v26  ;;  %685 = vmatprep.subr.mxu1 %v87_v49  ;;  %v213_v49 = vld [vmem:[%s2590_s1 + $0x5d8] sm:$0xff] }
  0x60   :  { %658 = vmatprep.mubr.f32.mxu0 %v1390_v3  ;;  %686 = vmatpush1.msra.mxu1 %v86_v51  ;;  %v74_v51 = vld [vmem:[%s2590_s1 + $0x180] sm:$0xff] }
  0x61   :  { %787 = vmatpush1.msra.mxu0 %v268_v52  ;;  %687 = vmatprep.subr.mxu1 %v80_v53  ;;  %v212_v52 = vld [vmem:[%s2590_s1 + $0x5d0] sm:$0xff]  ;;  %v179_v53 = vld [vmem:[%s2590_s1 + $0x4c8] sm:$0xff] }
  0x62   :  { %1225 = vmatmul.mubr.msk.f32.gmra.mxu0 %vm302_vm0, %v1817_v6  ;;  %575 = vmatprep.mubr.f32.mxu1 %v1916_v31 }
  0x63   :  { %688 = vmatpush1.msra.mxu1 %v79_v54  ;;  %788 = vmatprep.subr.mxu0 %v262_v56  ;;  %v206_v54 = vld [vmem:[%s2590_s1 + $0x5a0] sm:$0xff]  ;;  %v205_v56 = vld [vmem:[%s2590_s1 + $0x598] sm:$0xff] }
  0x64   :  { %576 = vmatmul.mubr.f32.gmra.mxu1 %v1928_v34  ;;  %689 = vmatprep.subr.mxu1 %v73_v55  ;;  %v67_v55 = vld [vmem:[%s2590_s1 + $0x148] sm:$0xff] }
  0x65   :  { %664 = vmatprep.mubr.f32.mxu0 %v1390_v3  ;;  %690 = vmatpush1.msra.mxu1 %v72_v57  ;;  %v172_v57 = vld [vmem:[%s2590_s1 + $0x490] sm:$0xff] }
  0x66   :  { %789 = vmatpush1.msra.mxu0 %v261_v58  ;;  %691 = vmatprep.subr.mxu1 %v66_v60  ;;  %v199_v58 = vld [vmem:[%s2590_s1 + $0x568] sm:$0xff]  ;;  %v60_v60 = vld [vmem:[%s2590_s1 + $0x110] sm:$0xff] }
  0x67   :  { %1226 = vmatmul.mubr.msk.f32.gmra.mxu0 %vm302_vm0, %v1853_v14  ;;  %692 = vmatpush1.msra.mxu1 %v65_v61  ;;  %v198_v61 = vld [vmem:[%s2590_s1 + $0x560] sm:$0xff] }
  0x68   :  { %790 = vmatprep.subr.mxu0 %v255_v62  ;;  %693 = vmatprep.subr.mxu1 %v59_v63  ;;  %v165_v62 = vld [vmem:[%s2590_s1 + $0x458] sm:$0xff]  ;;  %v192_v63 = vld [vmem:[%s2590_s1 + $0x530] sm:$0xff] }
  0x69   :  { %791 = vmatpush1.msra.mxu0 %v254_v0  ;;  %694 = vmatpush1.msra.mxu1 %v58_v1  ;;  %v53_v0 = vld [vmem:[%s2590_s1 + $0xd8] sm:$0xff]  ;;  %v191_v1 = vld [vmem:[%s2590_s1 + $0x528] sm:$0xff] }
  0x6a   :  { %824 = vmatprep.mubr.f32.mxu0 %v1390_v3  ;;  %1263 = vmatprep.subr.mxu0 %v249_v2  ;;  %v158_v2 = vld [vmem:[%s2590_s1 + $0x420] sm:$0xff] }
  0x6b   :  { %695 = vmatprep.subr.mxu1 %v52_v4  ;;  %1227 = vmatmul.mubr.msk.f32.vlgmr.msra.gmra.mxu0 %vm302_vm0, %v1467_v18  ;;  %v123_v18 = vld [vmem:[%s2590_s1 + $0x308] sm:$0xff]  ;;  %v185_v4 = vld [vmem:[%s2590_s1 + $0x4f8] sm:$0xff] }
  0x6c   :  { %696 = vmatpush1.msra.mxu1 %v51_v8  ;;  %1264 = vmatpush3.msra.mxu0 %v137_v9  ;;  %v46_v8 = vld [vmem:[%s2590_s1 + $0xa0] sm:$0xff]  ;;  %v184_v9 = vld [vmem:[%s2590_s1 + $0x4f0] sm:$0xff] }
  0x6d   :  { %697 = vmatprep.subr.mxu1 %v45_v10  ;;  %1265 = vmatprep.subr.mxu0 %v242_v11  ;;  %v151_v10 = vld [vmem:[%s2590_s1 + $0x3e8] sm:$0xff]  ;;  %v178_v11 = vld [vmem:[%s2590_s1 + $0x4c0] sm:$0xff] }
  0x6e   :  { %698 = vmatpush1.msra.mxu1 %v44_v13  ;;  %1266 = vmatpush3.msra.mxu0 %v130_v15  ;;  %v39_v13 = vld [vmem:[%s2590_s1 + $0x68] sm:$0xff]  ;;  %v177_v15 = vld [vmem:[%s2590_s1 + $0x4b8] sm:$0xff] }
  0x6f   :  { %699 = vmatprep.subr.mxu1 %v38_v16  ;;  %1267 = vmatprep.subr.mxu0 %v235_v19  ;;  %v144_v16 = vld [vmem:[%s2590_s1 + $0x3b0] sm:$0xff] }
  0x70   :  { %700 = vmatpush1.msra.mxu1 %v37_v20  ;;  %1268 = vmatpush3.msra.mxu0 %v123_v18  ;;  %v32_v19 = vld [vmem:[%s2590_s1 + $0x30] sm:$0xff]  ;;  %v170_v20 = vld [vmem:[%s2590_s1 + $0x480] sm:$0xff] }
  0x71   :  { %701 = vmatprep.subr.mxu1 %v31_v21  ;;  %1269 = vmatprep.subr.mxu0 %v228_v22  ;;  %v164_v18 = vld [vmem:[%s2590_s1 + $0x450] sm:$0xff]  ;;  %v163_v21 = vld [vmem:[%s2590_s1 + $0x448] sm:$0xff]  ;;  %v277_v22 = vld [vmem:[%s2590_s1 + $0x7d8] sm:$0xff] }
  0x72   :  { %702 = vmatpush1.msra.mxu1 %v30_v24  ;;  %1270 = vmatpush3.msra.mxu0 %v116_v25  ;;  %v157_v24 = vld [vmem:[%s2590_s1 + $0x418] sm:$0xff]  ;;  %v156_v25 = vld [vmem:[%s2590_s1 + $0x410] sm:$0xff] }
  0x73   :  { %703 = vmatprep.subr.mxu1 %v248_v27  ;;  %1271 = vmatprep.subr.mxu0 %v221_v28  ;;  %v150_v27 = vld [vmem:[%s2590_s1 + $0x3e0] sm:$0xff] }
  0x74   :  { %704 = vmatpush2.msra.mxu1 %v247_v29  ;;  %1272 = vmatpush3.msra.mxu0 %v109_v30  ;;  %v278_v28 = vld [vmem:[%s2592_s2] sm:$0xff]  ;;  %v149_v29 = vld [vmem:[%s2590_s1 + $0x3d8] sm:$0xff] }
  0x75   :  { %705 = vmatprep.subr.mxu1 %v241_v32  ;;  %1273 = vmatprep.subr.mxu0 %v214_v33  ;;  %v270_v30 = vld [vmem:[%s2590_s1 + $0x7a0] sm:$0xff]  ;;  %v1391_v32 = vmov 0   ;;  %v143_v33 = vld [vmem:[%s2590_s1 + $0x3a8] sm:$0xff] }
  0x76   :  { %706 = vmatpush2.msra.mxu1 %v240_v35  ;;  %1274 = vmatpush3.msra.mxu0 %v102_v36  ;;  %v142_v35 = vld [vmem:[%s2590_s1 + $0x3a0] sm:$0xff]  ;;  %v279_v36 = vld [vmem:[%s2592_s2 + $0x8] sm:$0xff] }
  0x77   :  { %707 = vmatprep.subr.mxu1 %v234_v37  ;;  %1275 = vmatprep.subr.mxu0 %v207_v38  ;;  %v263_v37 = vld [vmem:[%s2590_s1 + $0x768] sm:$0xff]  ;;  %v280_v38 = vld [vmem:[%s2592_s2 + $0x10] sm:$0xff] }
  0x78   :  { %708 = vmatpush2.msra.mxu1 %v233_v39  ;;  %1276 = vmatpush3.msra.mxu0 %v95_v40  ;;  %v256_v39 = vld [vmem:[%s2590_s1 + $0x730] sm:$0xff] }
  0x79   :  { %709 = vmatprep.subr.mxu1 %v227_v41  ;;  %1277 = vmatprep.subr.mxu0 %v200_v42 }
  0x7a   :  { %710 = vmatpush2.msra.mxu1 %v226_v43  ;;  %1278 = vmatpush3.msra.mxu0 %v88_v44 }
  0x7b   :  { %711 = vmatprep.subr.mxu1 %v220_v45  ;;  %1279 = vmatprep.subr.mxu0 %v193_v46 }
  0x7c   :  { %712 = vmatpush2.msra.mxu1 %v219_v47  ;;  %1280 = vmatpush3.msra.mxu0 %v81_v48 }
  0x7d   :  { %713 = vmatprep.subr.mxu1 %v213_v49  ;;  %1281 = vmatprep.subr.mxu0 %v186_v50 }
  0x7e   :  { %830 = vmatprep.mubr.f32.mxu0 %v1390_v3  ;;  %1282 = vmatpush3.msra.mxu0 %v74_v51 }
  0x7f   :  { %714 = vmatpush2.msra.mxu1 %v212_v52  ;;  %1228 = vmatmul.mubr.msk.f32.gmra.mxu0 %vm302_vm0, %v1780_v59 }
  0x80   :  { %1283 = vmatprep.subr.mxu0 %v179_v53  ;;  %715 = vmatprep.subr.mxu1 %v206_v54 }
  0x81   :  { %1284 = vmatpush3.msra.mxu0 %v67_v55  ;;  %716 = vmatpush2.msra.mxu1 %v205_v56 }
  0x82   :  { %1285 = vmatprep.subr.mxu0 %v172_v57  ;;  %717 = vmatprep.subr.mxu1 %v199_v58 }
  0x83   :  { %836 = vmatprep.mubr.f32.mxu0 %v1390_v3  ;;  %1286 = vmatpush3.msra.mxu0 %v60_v60 }
  0x84   :  { %718 = vmatpush2.msra.mxu1 %v198_v61  ;;  %1229 = vmatmul.mubr.msk.f32.gmra.mxu0 %vm302_vm0, %v1817_v6 }
  0x85   :  { %1287 = vmatprep.subr.mxu0 %v165_v62  ;;  %719 = vmatprep.subr.mxu1 %v192_v63 }
  0x86   :  { %1288 = vmatpush3.msra.mxu0 %v53_v0  ;;  %720 = vmatpush2.msra.mxu1 %v191_v1 }
  0x87   :  { %1289 = vmatprep.subr.mxu0 %v158_v2  ;;  %721 = vmatprep.subr.mxu1 %v185_v4 }
  0x88   :  { %842 = vmatprep.mubr.f32.mxu0 %v1390_v3  ;;  %1290 = vmatpush3.msra.mxu0 %v46_v8  ;;  %v171_v3 = vld [vmem:[%s2590_s1 + $0x488] sm:$0xff] }
  0x89   :  { %722 = vmatpush2.msra.mxu1 %v184_v9  ;;  %1230 = vmatmul.mubr.msk.f32.gmra.mxu0 %vm302_vm0, %v1853_v14 }
  0x8a   :  { %1291 = vmatprep.subr.mxu0 %v151_v10  ;;  %723 = vmatprep.subr.mxu1 %v178_v11 }
  0x8b   :  { %1292 = vmatpush3.msra.mxu0 %v39_v13  ;;  %724 = vmatpush2.msra.mxu1 %v177_v15 }
  0x8c   :  { %1293 = vmatprep.subr.mxu0 %v144_v16  ;;  %725 = vmatprep.subr.mxu1 %v171_v3 }
  0x8d   :  { %1294 = vmatpush3.msra.mxu0 %v32_v19  ;;  %913 = vmatprep.mubr.f32.mxu0 %v1812_v5 }
  0x8e   :  { %726 = vmatpush2.msra.mxu1 %v170_v20  ;;  %914 = vmatmul.mubr.f32.vlgmr.msra.gmra.mxu0 %v1822_v7 }
  0x8f   :  { %727 = vmatprep.subr.mxu1 %v164_v18  ;;  %1315 = vmatprep.subr.mxu0 %v277_v22 }
  0x90   :  { %728 = vmatpush2.msra.mxu1 %v163_v21  ;;  %918 = vmatprep.mubr.f32.mxu0 %v1844_v12 }
  0x91   :  { %729 = vmatprep.subr.mxu1 %v157_v24  ;;  %1316 = vmatpush3.msra.mxu0 %v277_v22 }
  0x92   :  { %730 = vmatpush2.msra.mxu1 %v156_v25  ;;  %919 = vmatmul.mubr.f32.gmra.mxu0 %v1865_v17 }
  0x93   :  { %1331 = vset.pattern.permute.xlu0 %v1391_v32  ;;  %731 = vmatprep.subr.mxu1 %v150_v27 }
  0x94   :  { %284 = vperm.xlu0 %1331, %v278_v28   ;;  %732 = vmatpush2.msra.mxu1 %v149_v29 }
  0x95   :  { %1317 = vmatprep.subr.mxu0 %v270_v30  ;;  %733 = vmatprep.subr.mxu1 %v143_v33 }
  0x96   :  { %923 = vmatprep.mubr.f32.mxu0 %v1884_v23  ;;  %1318 = vmatpush3.msra.mxu0 %v270_v30 }
  0x97   :  { %734 = vmatpush2.msra.mxu1 %v142_v35  ;;  %735 = vmatprep.mubr.f32.mxu1 %v1812_v5  ;;  %v1389_v5 = vld [vmem:[%s2591_s0 + $0x10] sm:$0xff] }
  0x98   :  { %924 = vmatmul.mubr.f32.gmra.mxu0 %v1897_v26  ;;  %736 = vmatmul.mubr.f32.vlgmr.msra.gmra.mxu1 %v1822_v7  ;;  %v281_v7 = vld [vmem:[%s2592_s2 + $0x18] sm:$0xff] }
  0x99   :  { %289 = vperm.xlu0 %1331, %v279_v36   ;;  %1319 = vmatprep.subr.mxu0 %v263_v37 }
  0x9a   :  { %928 = vmatprep.mubr.f32.mxu0 %v1916_v31  ;;  %1320 = vmatpush3.msra.mxu0 %v263_v37 }
  0x9b   :  { %741 = vmatprep.mubr.f32.mxu1 %v1844_v12  ;;  %1332 = vset.pattern.permute.xlu1 %v1391_v32 }
  0x9c   :  { %929 = vmatmul.mubr.f32.gmra.mxu0 %v1928_v34  ;;  %742 = vmatmul.mubr.f32.gmra.mxu1 %v1865_v17 }
  0x9d   :  { %294 = vperm.xlu1 %1332, %v280_v38   ;;  %1321 = vmatprep.subr.mxu0 %v256_v39 }
  0x9e   :  { %1323 = vmatprep.mubr.msk.f32.mxu0 %vm302_vm0, %v1389_v5  ;;  %1322 = vmatpush3.msra.mxu0 %v256_v39 }
  0x9f   :  { %747 = vmatprep.mubr.f32.mxu1 %v1884_v23 }
  0xa0   :  { %1324 = vmatmul.mubr.msk.f32.vlgmr.msra.gmra.mxu0 %vm302_vm0, %v1780_v59  ;;  %748 = vmatmul.mubr.f32.gmra.mxu1 %v1897_v26 }
  0xa1   :  { %299 = vperm.xlu1 %1332, %v281_v7   ;;  %1326 = vmatprep.mubr.msk.f32.mxu0 %vm302_vm0, %v1817_v6 }
  0xa2   :  { %753 = vmatprep.mubr.f32.mxu1 %v1916_v31 }
  0xa4   :  { %1327 = vmatmul.mubr.msk.f32.gmra.mxu0 %vm302_vm0, %v1853_v14  ;;  %754 = vmatmul.mubr.f32.gmra.mxu1 %v1928_v34 }
  0xcb   :  { %v470_v12 = vpop.f32.mrf.mxu1 }
  0xcd   :  { %v472_v17 = vpop.f32.mrf.mxu1 }
  0xff   :  { %v476_v40 = vpop.f32.mrf.mxu1 }
 0x101   :  { %v478_v23 = vpop.f32.mrf.mxu1 }
 0x104   :  { %v482_v41 = vpop.f32.mrf.mxu1 }
 0x105   :  { %v381_v42 = vpop.f32.mrf.mxu0 }
 0x106   :  { %v484_v59 = vpop.f32.mrf.mxu1 }
 0x107   :  { %v383_v43 = vpop.f32.mrf.mxu0 }
 0x109   :  { %v488_v26 = vpop.f32.mrf.mxu1 }
 0x10a   :  { %v387_v44 = vpop.f32.mrf.mxu0 }
 0x10b   :  { %v490_v46 = vpop.f32.mrf.mxu1 }
 0x10c   :  { %v389_v45 = vpop.f32.mrf.mxu0 }
 0x10f   :  { %v2318_v6 = vpop.permute.xlu0 %284  ;;  %v393_v47 = vpop.f32.mrf.mxu0 }
 0x110   :  { %v382_v31 = vadd.f32 %v381_v42, %v2318_v6  ;;  %v384_v14 = vadd.f32 %v383_v43, %v2318_v6  ;;  %v559_v49 = vpop.f32.mrf.mxu1 }
 0x111   :  { %v395_v50 = vpop.f32.mrf.mxu0  ;;  %v560_v1 = vadd.f32 %v559_v49, %v2318_v6 }
 0x112   :  { %v2322_v34 = vadd.f32 %v470_v12, %v382_v31  ;;  %v2324_v48 = vadd.f32 %v472_v17, %v384_v14  ;;  %v561_v60 = vpop.f32.mrf.mxu1 }
 0x113   :  { %v399_v54 = vpop.f32.mrf.mxu0  ;;  %v562_v8 = vadd.f32 %v561_v60, %v2318_v6 }
 0x114   :  { %v1047_v51 = vmin.f32 %v2322_v34, 0.0  ;;  %v1048_v52 = vmin.f32 %v2324_v48, 0.0  ;;  %v2328_v53 = vpop.permute.xlu0 %289  ;;  %vm1019_vm1 = vcmp.gt.f32.partialorder %v2322_v34, 0.0  ;;  %vm1020_vm2 = vcmp.gt.f32.partialorder %v2324_v48, 0.0 }
 0x115   :  { %v388_v55 = vadd.f32 %v387_v44, %v2328_v53  ;;  %v390_v56 = vadd.f32 %v389_v45, %v2328_v53  ;;  %v401_v61 = vpop.f32.mrf.mxu0 }
 0x116   :  { %v1075_v57 = vmul.f32 1.442695, %v1047_v51  ;;  %v1077_v58 = vmul.f32 1.442695, %v1048_v52 }
 0x117   :  { %v2332_v62 = vadd.f32 %v476_v40, %v388_v55  ;;  %v2334_v63 = vadd.f32 %v478_v23, %v390_v56  ;;  %v648_v2 = vpop.f32.mrf.mxu0 }
 0x118   :  { %1333 = vpow2.f32 %v1075_v57  ;;  %v2336_v0 = vpop.permute.xlu1 %294  ;;  %v2344_v13 = vadd.f32 %v648_v2, %v560_v1 }
 0x119   :  { %1335 = vpow2.f32 %v1077_v58  ;;  %v1054_v4 = vmin.f32 %v2332_v62, 0.0  ;;  %v1055_v9 = vmin.f32 %v2334_v63, 0.0  ;;  %v394_v10 = vadd.f32 %v393_v47, %v2336_v0  ;;  %v650_v16 = vpop.f32.mrf.mxu0 }
 0x11a   :  { %v396_v11 = vadd.f32 %v395_v50, %v2336_v0  ;;  %v565_v15 = vpop.f32.mrf.mxu1  ;;  %v2352_v22 = vadd.f32 %v650_v16, %v562_v8  ;;  %v1049_v28 = vmin.f32 %v2344_v13, 0.0  ;;  %vm1026_vm3 = vcmp.gt.f32.partialorder %v2332_v62, 0.0 }
 0x11b   :  { %v1089_v3 = vmul.f32 1.442695, %v1054_v4  ;;  %v1091_v19 = vmul.f32 1.442695, %v1055_v9  ;;  %v2346_v20 = vadd.f32 %v482_v41, %v394_v10  ;;  %v566_v32 = vadd.f32 %v565_v15, %v2328_v53 }
 0x11c   :  { %v2348_v18 = vadd.f32 %v484_v59, %v396_v11  ;;  %v2350_v21 = vpop.permute.xlu1 %299  ;;  %v567_v24 = vpop.f32.mrf.mxu1  ;;  %v1079_v5 = vmul.f32 1.442695, %v1049_v28  ;;  %v1050_v7 = vmin.f32 %v2352_v22, 0.0  ;;  %vm1027_vm4 = vcmp.gt.f32.partialorder %v2334_v63, 0.0 }
 0x11d   :  { %1337 = vpow2.f32 %v1089_v3  ;;  %v400_v25 = vadd.f32 %v399_v54, %v2350_v21  ;;  %v402_v27 = vadd.f32 %v401_v61, %v2350_v21  ;;  %v654_v29 = vpop.f32.mrf.mxu0  ;;  %v1061_v30 = vmin.f32 %v2346_v20, 0.0 }
 0x11e   :  { %1339 = vpow2.f32 %v1091_v19  ;;  %v1062_v33 = vmin.f32 %v2348_v18, 0.0  ;;  %v568_v12 = vadd.f32 %v567_v24, %v2328_v53  ;;  %v1081_v42 = vmul.f32 1.442695, %v1050_v7 }
 0x11f   :  { %v2360_v35 = vadd.f32 %v488_v26, %v400_v25  ;;  %v2362_v36 = vadd.f32 %v490_v46, %v402_v27  ;;  %v571_v37 = vpop.f32.mrf.mxu1  ;;  %v656_v38 = vpop.f32.mrf.mxu0  ;;  %v1103_v39 = vmul.f32 1.442695, %v1061_v30  ;;  %v2368_v59 = vadd.f32 %v654_v29, %v566_v32 }
 0x120   :  { %v1105_v17 = vmul.f32 1.442695, %v1062_v33  ;;  %v572_v44 = vadd.f32 %v571_v37, %v2336_v0  ;;  %v2371_v45 = vadd.f32 %v656_v38, %v568_v12  ;;  %vm1033_vm5 = vcmp.gt.f32.partialorder %v2346_v20, 0.0 }
 0x121   :  { %v1068_v40 = vmin.f32 %v2360_v35, 0.0  ;;  %v573_v23 = vpop.f32.mrf.mxu1  ;;  %1341 = vpow2.f32 %v1103_v39  ;;  %v1069_v41 = vmin.f32 %v2362_v36, 0.0  ;;  %v1056_v31 = vmin.f32 %v2368_v59, 0.0 }
 0x122   :  { %v660_v43 = vpop.f32.mrf.mxu0  ;;  %1343 = vpow2.f32 %v1105_v17  ;;  %v1057_v50 = vmin.f32 %v2371_v45, 0.0  ;;  %v574_v51 = vadd.f32 %v573_v23, %v2336_v0  ;;  %vm1034_vm6 = vcmp.gt.f32.partialorder %v2348_v18, 0.0 }
 0x123   :  { %v1117_v26 = vmul.f32 1.442695, %v1068_v40  ;;  %v1119_v46 = vmul.f32 1.442695, %v1069_v41  ;;  %1345 = vpow2.f32 %v1079_v5  ;;  %v1093_v55 = vmul.f32 1.442695, %v1056_v31 }
 0x124   :  { %v577_v14 = vpop.f32.mrf.mxu1  ;;  %v662_v47 = vpop.f32.mrf.mxu0  ;;  %v2377_v56 = vadd.f32 %v660_v43, %v572_v44  ;;  %v1095_v60 = vmul.f32 1.442695, %v1057_v50  ;;  %vm1021_vm7 = vcmp.gt.f32.partialorder %v2344_v13, 0.0  ;;  %vm1040_vm8 = vcmp.gt.f32.partialorder %v2360_v35, 0.0 }
 0x125   :  { %v1334_v49 = vpop.eup %1333  ;;  %1347 = vpow2.f32 %v1117_v26  ;;  %v578_v61 = vadd.f32 %v577_v14, %v2350_v21  ;;  %v2389_v9 = vadd.f32 %v662_v47, %v574_v51  ;;  %vm1041_vm9 = vcmp.gt.f32.partialorder %v2362_v36, 0.0 }
 0x126   :  { %v1336_v52 = vpop.eup %1335  ;;  %v1235_v54 = vadd.f32 -1.0, %v1334_v49  ;;  %1349 = vpow2.f32 %v1119_v46  ;;  %v579_v57 = vpop.f32.mrf.mxu1  ;;  %v1063_v4 = vmin.f32 %v2377_v56, 0.0  ;;  %vm1022_vm10 = vcmp.gt.f32.partialorder %v2352_v22, 0.0 }
 0x127   :  { %v1236_v58 = vadd.f32 -1.0, %v1336_v52  ;;  %1351 = vpow2.f32 %v1081_v42  ;;  %v666_v1 = vpop.f32.mrf.mxu0  ;;  %v580_v10 = vadd.f32 %v579_v57, %v2350_v21  ;;  %v1064_v24 = vmin.f32 %v2389_v9, 0.0 }
 0x128   :  { %v1159_v2 = vsel %vm1019_vm1, %v2322_v34, %v1235_v54  ;;  %1353 = vpow2.f32 %v1093_v55  ;;  %v1107_v34 = vmul.f32 1.442695, %v1063_v4  ;;  %v2395_v16 = vadd.f32 %v666_v1, %v578_v61 }
 0x129   :  { %1187 = vst [vmem:[%s2593_s3] sm:$0xff] %v1159_v2  ;;  %v1160_v8 = vsel %vm1020_vm2, %v2324_v48, %v1236_v58  ;;  %1355 = vpow2.f32 %v1095_v60  ;;  %v668_v11 = vpop.f32.mrf.mxu0  ;;  %v1109_v29 = vmul.f32 1.442695, %v1064_v24  ;;  %vm1028_vm11 = vcmp.gt.f32.partialorder %v2368_v59, 0.0 }
 0x12a   :  { %v1338_v15 = vpop.eup %1337  ;;  %1188 = vst [vmem:[%s2593_s3 + $0x8] sm:$0xff] %v1160_v8  ;;  %v2398_v25 = vadd.f32 %v668_v11, %v580_v10  ;;  %1357 = vpow2.f32 %v1107_v34  ;;  %v1070_v27 = vmin.f32 %v2395_v16, 0.0  ;;  %vm1029_vm12 = vcmp.gt.f32.partialorder %v2371_v45, 0.0 }
 0x12b   :  { %v1340_v3 = vpop.eup %1339  ;;  %v1242_v19 = vadd.f32 -1.0, %v1338_v15  ;;  %1359 = vpow2.f32 %v1109_v29  ;;  %v826_v50 = vpop.f32.mrf.mxu0  ;;  %vm1035_vm13 = vcmp.gt.f32.partialorder %v2377_v56, 0.0  ;;  %vm1036_vm14 = vcmp.gt.f32.partialorder %v2389_v9, 0.0 }
 0x12c   :  { %v1243_v48 = vadd.f32 -1.0, %v1340_v3  ;;  %v1071_v30 = vmin.f32 %v2398_v25, 0.0  ;;  %v1121_v33 = vmul.f32 1.442695, %v1070_v27  ;;  %vm1042_vm15 = vcmp.gt.f32.partialorder %v2395_v16, 0.0 }
 0x12d   :  { %v1166_v28 = vsel %vm1026_vm3, %v2332_v62, %v1242_v19  ;;  %v828_v57 = vpop.f32.mrf.mxu0  ;;  %vm1043_vm1 = vcmp.gt.f32.partialorder %v2398_v25, 0.0 }
 0x12e   :  { %1194 = vst [vmem:[%s2593_s3 + $0x38] sm:$0xff] %v1166_v28  ;;  %v1167_v32 = vsel %vm1027_vm4, %v2334_v63, %v1243_v48  ;;  %v1342_v37 = vpop.eup %1341  ;;  %v1123_v38 = vmul.f32 1.442695, %v1071_v30  ;;  %1361 = vpow2.f32 %v1121_v33 }
 0x12f   :  { %1195 = vst [vmem:[%s2593_s3 + $0x40] sm:$0xff] %v1167_v32  ;;  %v1344_v62 = vpop.eup %1343  ;;  %v1249_v39 = vadd.f32 -1.0, %v1342_v37 }
 0x130   :  { %v1346_v5 = vpop.eup %1345  ;;  %v1250_v7 = vadd.f32 -1.0, %v1344_v62  ;;  %1363 = vpow2.f32 %v1123_v38 }
 0x131   :  { %v1173_v17 = vsel %vm1033_vm5, %v2346_v20, %v1249_v39  ;;  %v1237_v63 = vadd.f32 -1.0, %v1346_v5 }
 0x132   :  { %v1348_v12 = vpop.eup %1347  ;;  %1201 = vst [vmem:[%s2593_s3 + $0x70] sm:$0xff] %v1173_v17  ;;  %v1174_v23 = vsel %vm1034_vm6, %v2348_v18, %v1250_v7 }
 0x133   :  { %v1350_v40 = vpop.eup %1349  ;;  %v1256_v41 = vadd.f32 -1.0, %v1348_v12  ;;  %1202 = vst [vmem:[%s2593_s3 + $0x78] sm:$0xff] %v1174_v23  ;;  %v1161_v43 = vsel %vm1021_vm7, %v2344_v13, %v1237_v63 }
 0x134   :  { %v1352_v42 = vpop.eup %1351  ;;  %v1257_v20 = vadd.f32 -1.0, %v1350_v40  ;;  %1189 = vst [vmem:[%s2593_s3 + $0x10] sm:$0xff] %v1161_v43 }
 0x135   :  { %v1354_v26 = vpop.eup %1353  ;;  %v1180_v44 = vsel %vm1040_vm8, %v2360_v35, %v1256_v41  ;;  %v1238_v18 = vadd.f32 -1.0, %v1352_v42 }
 0x136   :  { %v1356_v46 = vpop.eup %1355  ;;  %1208 = vst [vmem:[%s2593_s3 + $0xa8] sm:$0xff] %v1180_v44  ;;  %v1181_v31 = vsel %vm1041_vm9, %v2362_v36, %v1257_v20  ;;  %v1244_v13 = vadd.f32 -1.0, %v1354_v26 }
 0x137   :  { %1209 = vst [vmem:[%s2593_s3 + $0xb0] sm:$0xff] %v1181_v31  ;;  %v1162_v35 = vsel %vm1022_vm10, %v2352_v22, %v1238_v18  ;;  %v1245_v14 = vadd.f32 -1.0, %v1356_v46  ;;  %v1358_v36 = vpop.eup %1357 }
 0x138   :  { %1190 = vst [vmem:[%s2593_s3 + $0x18] sm:$0xff] %v1162_v35  ;;  %v1168_v47 = vsel %vm1028_vm11, %v2368_v59, %v1244_v13  ;;  %v1251_v22 = vadd.f32 -1.0, %v1358_v36  ;;  %v1360_v51 = vpop.eup %1359 }
 0x139   :  { %1196 = vst [vmem:[%s2593_s3 + $0x48] sm:$0xff] %v1168_v47  ;;  %v1169_v49 = vsel %vm1029_vm12, %v2371_v45, %v1245_v14  ;;  %v1252_v54 = vadd.f32 -1.0, %v1360_v51 }
 0x13a   :  { %1197 = vst [vmem:[%s2593_s3 + $0x50] sm:$0xff] %v1169_v49  ;;  %v1175_v59 = vsel %vm1035_vm13, %v2377_v56, %v1251_v22 }
 0x13b   :  { %v1362_v52 = vpop.eup %1361  ;;  %1203 = vst [vmem:[%s2593_s3 + $0x80] sm:$0xff] %v1175_v59  ;;  %v1176_v58 = vsel %vm1036_vm14, %v2389_v9, %v1252_v54 }
 0x13c   :  { %v1258_v45 = vadd.f32 -1.0, %v1362_v52  ;;  %1204 = vst [vmem:[%s2593_s3 + $0x88] sm:$0xff] %v1176_v58 }
 0x13d   :  { %v1364_v55 = vpop.eup %1363 }
 0x13e   :  { %v1259_v60 = vadd.f32 -1.0, %v1364_v55  ;;  %v1182_v56 = vsel %vm1042_vm15, %v2395_v16, %v1258_v45 }
 0x13f   :  { %v832_v61 = vpop.f32.mrf.mxu0  ;;  %1210 = vst [vmem:[%s2593_s3 + $0xb8] sm:$0xff] %v1182_v56 }
 0x140   :  { %v1183_v1 = vsel %vm1043_vm1, %v2398_v25, %v1259_v60 }
 0x141   :  { %1211 = vst [vmem:[%s2593_s3 + $0xc0] sm:$0xff] %v1183_v1  ;;  %v834_v2 = vpop.f32.mrf.mxu0 }
 0x144   :  { %v838_v4 = vpop.f32.mrf.mxu0 }
 0x146   :  { %v840_v8 = vpop.f32.mrf.mxu0 }
 0x149   :  { %v2472_v9 = vpop.f32.mrf.mxu0 }
 0x14b   :  { %v2474_v10 = vpop.f32.mrf.mxu0 }
 0x14e   :  { %v1295_v11 = vpop.f32.mrf.mxu0 }
 0x150   :  { %v1296_v15 = vpop.f32.mrf.mxu0 }
 0x151   :  { %v1297_v32 = vadd.f32 %v1296_v15, %v1295_v11 }
 0x152   :  { %v1298_v34 = vpop.f32.mrf.mxu0 }
 0x153   :  { %v916_v43 = vadd.f32 %v1297_v32, %v2318_v6 }
 0x154   :  { %v1299_v16 = vpop.f32.mrf.mxu0 }
 0x155   :  { %v1300_v48 = vadd.f32 %v1299_v16, %v1298_v34 }
 0x157   :  { %v921_v12 = vadd.f32 %v1300_v48, %v2328_v53 }
 0x158   :  { %v1301_v3 = vpop.f32.mrf.mxu0  ;;  %v737_v19 = vpop.f32.mrf.mxu1 }
 0x159   :  { %v738_v24 = vadd.f32 %v737_v19, %v2318_v6 }
 0x15a   :  { %v1302_v25 = vpop.f32.mrf.mxu0  ;;  %v739_v27 = vpop.f32.mrf.mxu1 }
 0x15b   :  { %v2477_v28 = vadd.f32 %v826_v50, %v738_v24  ;;  %v740_v29 = vadd.f32 %v739_v27, %v2318_v6  ;;  %v1303_v26 = vadd.f32 %v1302_v25, %v1301_v3 }
 0x15c   :  { %v1304_v30 = vpop.f32.mrf.mxu0  ;;  %v743_v33 = vpop.f32.mrf.mxu1 }
 0x15d   :  { %v1051_v37 = vmin.f32 %v2477_v28, 0.0  ;;  %v2481_v38 = vadd.f32 %v828_v57, %v740_v29  ;;  %v744_v62 = vadd.f32 %v743_v33, %v2328_v53  ;;  %v926_v58 = vadd.f32 %v1303_v26, %v2336_v0 }
 0x15e   :  { %v1305_v39 = vpop.f32.mrf.mxu0  ;;  %v745_v7 = vpop.f32.mrf.mxu1  ;;  %vm1023_vm2 = vcmp.gt.f32.partialorder %v2477_v28, 0.0 }
 0x15f   :  { %v1306_v5 = vadd.f32 %v1305_v39, %v1304_v30  ;;  %v1083_v17 = vmul.f32 1.442695, %v1051_v37  ;;  %v1052_v63 = vmin.f32 %v2481_v38, 0.0  ;;  %v2486_v40 = vadd.f32 %v832_v61, %v744_v62 }
 0x160   :  { %v1325_v23 = vpop.f32.mrf.mxu0  ;;  %v746_v41 = vadd.f32 %v745_v7, %v2328_v53  ;;  %v749_v20 = vpop.f32.mrf.mxu1  ;;  %vm1024_vm3 = vcmp.gt.f32.partialorder %v2481_v38, 0.0 }
 0x161   :  { %v2489_v42 = vadd.f32 %v1325_v23, %v921_v12  ;;  %1365 = vpow2.f32 %v1083_v17  ;;  %v1085_v44 = vmul.f32 1.442695, %v1052_v63  ;;  %v1058_v18 = vmin.f32 %v2486_v40, 0.0 }
 0x162   :  { %v1000_v46 = vpop.f32.mrf.mxu0  ;;  %v2493_v31 = vadd.f32 %v834_v2, %v746_v41  ;;  %v750_v35 = vadd.f32 %v749_v20, %v2336_v0  ;;  %v751_v14 = vpop.f32.mrf.mxu1  ;;  %v931_v53 = vadd.f32 %v1306_v5, %v2350_v21  ;;  %vm1030_vm4 = vcmp.gt.f32.partialorder %v2486_v40, 0.0 }
 0x163   :  { %v1060_v13 = vmin.f32 %v2489_v42, 0.0  ;;  %1367 = vpow2.f32 %v1085_v44  ;;  %v1097_v47 = vmul.f32 1.442695, %v1058_v18  ;;  %v2498_v36 = vadd.f32 %v1000_v46, %v916_v43 }
 0x164   :  { %v752_v6 = vadd.f32 %v751_v14, %v2336_v0  ;;  %v1328_v49 = vpop.f32.mrf.mxu0  ;;  %v1059_v22 = vmin.f32 %v2493_v31, 0.0  ;;  %v2502_v51 = vadd.f32 %v838_v4, %v750_v35  ;;  %v755_v59 = vpop.f32.mrf.mxu1  ;;  %vm1032_vm5 = vcmp.gt.f32.partialorder %v2489_v42, 0.0 }
 0x165   :  { %v1101_v50 = vmul.f32 1.442695, %v1060_v13  ;;  %1369 = vpow2.f32 %v1097_v47  ;;  %v1053_v52 = vmin.f32 %v2498_v36, 0.0  ;;  %v2510_v61 = vadd.f32 %v1328_v49, %v931_v53 }
 0x166   :  { %v2505_v54 = vadd.f32 %v840_v8, %v752_v6  ;;  %v1010_v55 = vpop.f32.mrf.mxu0  ;;  %v1099_v45 = vmul.f32 1.442695, %v1059_v22  ;;  %v1065_v57 = vmin.f32 %v2502_v51, 0.0  ;;  %v756_v2 = vadd.f32 %v755_v59, %v2350_v21  ;;  %v757_v8 = vpop.f32.mrf.mxu1 }
 0x167   :  { %1371 = vpow2.f32 %v1101_v50  ;;  %v1087_v60 = vmul.f32 1.442695, %v1053_v52  ;;  %v2513_v4 = vadd.f32 %v1010_v55, %v926_v58  ;;  %v1074_v15 = vmin.f32 %v2510_v61, 0.0 }
 0x168   :  { %v1066_v56 = vmin.f32 %v2505_v54, 0.0  ;;  %1373 = vpow2.f32 %v1099_v45  ;;  %v1111_v1 = vmul.f32 1.442695, %v1065_v57  ;;  %v2517_v34 = vadd.f32 %v2472_v9, %v756_v2 }
 0x169   :  { %1375 = vpow2.f32 %v1087_v60  ;;  %v1067_v0 = vmin.f32 %v2513_v4, 0.0  ;;  %v1129_v16 = vmul.f32 1.442695, %v1074_v15  ;;  %v758_v3 = vadd.f32 %v757_v8, %v2350_v21 }
 0x16a   :  { %v1113_v11 = vmul.f32 1.442695, %v1066_v56  ;;  %1377 = vpow2.f32 %v1111_v1  ;;  %v1072_v19 = vmin.f32 %v2517_v34, 0.0  ;;  %vm1031_vm6 = vcmp.gt.f32.partialorder %v2493_v31, 0.0 }
 0x16b   :  { %v1115_v24 = vmul.f32 1.442695, %v1067_v0  ;;  %v2523_v25 = vadd.f32 %v2474_v10, %v758_v3  ;;  %vm1025_vm7 = vcmp.gt.f32.partialorder %v2498_v36, 0.0  ;;  %vm1037_vm8 = vcmp.gt.f32.partialorder %v2502_v51, 0.0 }
 0x16c   :  { %1379 = vpow2.f32 %v1113_v11  ;;  %v1125_v27 = vmul.f32 1.442695, %v1072_v19  ;;  %vm1038_vm9 = vcmp.gt.f32.partialorder %v2505_v54, 0.0  ;;  %vm1046_vm10 = vcmp.gt.f32.partialorder %v2510_v61, 0.0 }
 0x16d   :  { %1381 = vpow2.f32 %v1129_v16  ;;  %v1073_v9 = vmin.f32 %v2523_v25, 0.0  ;;  %vm1039_vm11 = vcmp.gt.f32.partialorder %v2513_v4, 0.0  ;;  %vm1044_vm12 = vcmp.gt.f32.partialorder %v2517_v34, 0.0 }
 0x16e   :  { %v1366_v48 = vpop.eup %1365  ;;  %1383 = vpow2.f32 %v1115_v24  ;;  %vm1045_vm13 = vcmp.gt.f32.partialorder %v2523_v25, 0.0 }
 0x16f   :  { %v1239_v29 = vadd.f32 -1.0, %v1366_v48  ;;  %1385 = vpow2.f32 %v1125_v27  ;;  %v1127_v33 = vmul.f32 1.442695, %v1073_v9 }
 0x170   :  { %v1368_v30 = vpop.eup %1367 }
 0x171   :  { %v1163_v32 = vsel %vm1023_vm2, %v2477_v28, %v1239_v29  ;;  %v1240_v21 = vadd.f32 -1.0, %v1368_v30  ;;  %1387 = vpow2.f32 %v1127_v33 }
 0x172   :  { %v1370_v37 = vpop.eup %1369  ;;  %1191 = vst [vmem:[%s2593_s3 + $0x20] sm:$0xff] %v1163_v32 }
 0x173   :  { %v1164_v62 = vsel %vm1024_vm3, %v2481_v38, %v1240_v21  ;;  %v1246_v39 = vadd.f32 -1.0, %v1370_v37 }
 0x174   :  { %v1372_v10 = vpop.eup %1371  ;;  %1192 = vst [vmem:[%s2593_s3 + $0x28] sm:$0xff] %v1164_v62 }
 0x175   :  { %v1248_v28 = vadd.f32 -1.0, %v1372_v10  ;;  %v1374_v5 = vpop.eup %1373  ;;  %v1170_v7 = vsel %vm1030_vm4, %v2486_v40, %v1246_v39 }
 0x176   :  { %v1376_v12 = vpop.eup %1375  ;;  %1198 = vst [vmem:[%s2593_s3 + $0x58] sm:$0xff] %v1170_v7  ;;  %v1247_v38 = vadd.f32 -1.0, %v1374_v5 }
 0x177   :  { %v1172_v17 = vsel %vm1032_vm5, %v2489_v42, %v1248_v28  ;;  %v1378_v63 = vpop.eup %1377  ;;  %v1241_v23 = vadd.f32 -1.0, %v1376_v12 }
 0x178   :  { %1200 = vst.msk [vmem:[%s2593_s3 + $0x68] sm:$0xff] %vm302_vm0, %v1172_v17  ;;  %v1171_v41 = vsel %vm1031_vm6, %v2493_v31, %v1247_v38  ;;  %v1253_v20 = vadd.f32 -1.0, %v1378_v63 }
 0x179   :  { %v1380_v40 = vpop.eup %1379  ;;  %1199 = vst [vmem:[%s2593_s3 + $0x60] sm:$0xff] %v1171_v41  ;;  %v1165_v42 = vsel %vm1025_vm7, %v2498_v36, %v1241_v23 }
 0x17a   :  { %v1254_v43 = vadd.f32 -1.0, %v1380_v40  ;;  %v1382_v26 = vpop.eup %1381  ;;  %v1177_v44 = vsel %vm1037_vm8, %v2502_v51, %v1253_v20  ;;  %1193 = vst.msk [vmem:[%s2593_s3 + $0x30] sm:$0xff] %vm302_vm0, %v1165_v42 }
 0x17b   :  { %v1384_v18 = vpop.eup %1383  ;;  %1205 = vst [vmem:[%s2593_s3 + $0x90] sm:$0xff] %v1177_v44  ;;  %v1262_v31 = vadd.f32 -1.0, %v1382_v26 }
 0x17c   :  { %v1178_v46 = vsel %vm1038_vm9, %v2505_v54, %v1254_v43  ;;  %v1255_v13 = vadd.f32 -1.0, %v1384_v18  ;;  %v1386_v35 = vpop.eup %1385 }
 0x17d   :  { %1206 = vst [vmem:[%s2593_s3 + $0x98] sm:$0xff] %v1178_v46  ;;  %v1186_v14 = vsel %vm1046_vm10, %v2510_v61, %v1262_v31  ;;  %v1260_v53 = vadd.f32 -1.0, %v1386_v35 }
 0x17e   :  { %1214 = vst.msk [vmem:[%s2593_s3 + $0xd8] sm:$0xff] %vm302_vm0, %v1186_v14  ;;  %v1179_v47 = vsel %vm1039_vm11, %v2513_v4, %v1255_v13  ;;  %v1388_v36 = vpop.eup %1387 }
 0x17f   :  { %1207 = vst.msk [vmem:[%s2593_s3 + $0xa0] sm:$0xff] %vm302_vm0, %v1179_v47  ;;  %v1184_v6 = vsel %vm1044_vm12, %v2517_v34, %v1260_v53  ;;  %v1261_v49 = vadd.f32 -1.0, %v1388_v36 }
 0x180   :  { %1212 = vst [vmem:[%s2593_s3 + $0xc8] sm:$0xff] %v1184_v6 }
 0x181   :  { %v1185_v22 = vsel %vm1045_vm13, %v2523_v25, %v1261_v49 }
 0x182   :  { %1213 = vst [vmem:[%s2593_s3 + $0xd0] sm:$0xff] %v1185_v22 }

// kernel: nn_policy_forward_pallas.7
= control target key start
LH: loop header
LB: loop body
LE: loop exit
PB: predicated region body
PF: predicated region fallthrough
CT: control target
= control target key end

     0   :  { %v406_v3 = vmov 0.0   ;;  %v407_v4 = vmov 0   ;;  %vm122_vm0 = vcmask 261120   ;;  %vm362_vm2 = vcmask 588800   ;;  %s728_s1 = inlined_call_operand.vmem [shape: f32[288,200], index: 1, kind: input, shape index: {}]   ;;  %s729_s0 = inlined_call_operand.vmem [shape: f32[32,288], index: 0, kind: input, shape index: {}]   ;;  %s730_s2 = inlined_call_operand.vmem [shape: f32[32,1], index: 2, kind: input, shape index: {}]   ;;  %s731_s3 = inlined_call_operand.vmem [shape: f32[32,200], index: 3, kind: output, shape index: {}]  }
   0x1   :  { %v57_v0 = vld [vmem:[%s728_s1 + $0xf8] sm:$0xff]  ;;  %v56_v1 = vld [vmem:[%s728_s1 + $0xf0] sm:$0xff]  ;;  %v55_v2 = vld [vmem:[%s728_s1 + $0xe8] sm:$0xff]  ;;  %288 = vmatprep.mubr.f32.mxu1 %v406_v3  ;;  %388 = vset.pattern.permute.xlu0 %v407_v4 }
   0x2   :  { %135 = vmatprep.subr.mxu0 %v57_v0  ;;  %v54_v5 = vld [vmem:[%s728_s1 + $0xe0] sm:$0xff]  ;;  %389 = vset.pattern.permute.xlu1 %v407_v4  ;;  %v53_v6 = vld [vmem:[%s728_s1 + $0xd8] sm:$0xff]  ;;  %v52_v7 = vld [vmem:[%s728_s1 + $0xd0] sm:$0xff] }
   0x3   :  { %136 = vmatpush1.msra.mxu0 %v56_v1  ;;  %v51_v8 = vld [vmem:[%s728_s1 + $0xc8] sm:$0xff]  ;;  %v50_v9 = vld [vmem:[%s728_s1 + $0xc0] sm:$0xff]  ;;  %v49_v10 = vld [vmem:[%s728_s1 + $0xb8] sm:$0xff] }
   0x4   :  { %137 = vmatprep.subr.mxu0 %v55_v2  ;;  %v48_v11 = vld [vmem:[%s728_s1 + $0xb0] sm:$0xff]  ;;  %v47_v12 = vld [vmem:[%s728_s1 + $0xa8] sm:$0xff]  ;;  %v46_v13 = vld [vmem:[%s728_s1 + $0xa0] sm:$0xff] }
   0x5   :  { %138 = vmatpush1.msra.mxu0 %v54_v5  ;;  %v45_v14 = vld [vmem:[%s728_s1 + $0x98] sm:$0xff]  ;;  %v44_v15 = vld [vmem:[%s728_s1 + $0x90] sm:$0xff]  ;;  %v43_v16 = vld [vmem:[%s728_s1 + $0x88] sm:$0xff] }
   0x6   :  { %139 = vmatprep.subr.mxu0 %v53_v6  ;;  %v42_v17 = vld [vmem:[%s728_s1 + $0x80] sm:$0xff]  ;;  %v41_v18 = vld [vmem:[%s728_s1 + $0x78] sm:$0xff]  ;;  %v40_v19 = vld [vmem:[%s728_s1 + $0x70] sm:$0xff] }
   0x7   :  { %140 = vmatpush1.msra.mxu0 %v52_v7  ;;  %v39_v20 = vld [vmem:[%s728_s1 + $0x68] sm:$0xff]  ;;  %v38_v21 = vld [vmem:[%s728_s1 + $0x60] sm:$0xff]  ;;  %v37_v22 = vld [vmem:[%s728_s1 + $0x58] sm:$0xff] }
   0x8   :  { %141 = vmatprep.subr.mxu0 %v51_v8  ;;  %v36_v23 = vld [vmem:[%s728_s1 + $0x50] sm:$0xff]  ;;  %v97_v24 = vld [vmem:[%s728_s1 + $0x238] sm:$0xff]  ;;  %v35_v26 = vld [vmem:[%s728_s1 + $0x48] sm:$0xff] }
   0x9   :  { %142 = vmatpush1.msra.mxu0 %v50_v9  ;;  %v96_v25 = vld [vmem:[%s728_s1 + $0x230] sm:$0xff]  ;;  %248 = vmatprep.subr.mxu1 %v97_v24  ;;  %v95_v27 = vld [vmem:[%s728_s1 + $0x228] sm:$0xff]  ;;  %v34_v28 = vld [vmem:[%s728_s1 + $0x40] sm:$0xff] }
   0xa   :  { %143 = vmatprep.subr.mxu0 %v49_v10  ;;  %249 = vmatpush1.msra.mxu1 %v96_v25  ;;  %v94_v29 = vld [vmem:[%s728_s1 + $0x220] sm:$0xff]  ;;  %v93_v30 = vld [vmem:[%s728_s1 + $0x218] sm:$0xff]  ;;  %v92_v32 = vld [vmem:[%s728_s1 + $0x210] sm:$0xff] }
   0xb   :  { %144 = vmatpush1.msra.mxu0 %v48_v11  ;;  %v33_v31 = vld [vmem:[%s728_s1 + $0x38] sm:$0xff]  ;;  %250 = vmatprep.subr.mxu1 %v95_v27  ;;  %v32_v33 = vld [vmem:[%s728_s1 + $0x30] sm:$0xff]  ;;  %v91_v34 = vld [vmem:[%s728_s1 + $0x208] sm:$0xff] }
   0xc   :  { %145 = vmatprep.subr.mxu0 %v47_v12  ;;  %251 = vmatpush1.msra.mxu1 %v94_v29  ;;  %v31_v35 = vld [vmem:[%s728_s1 + $0x28] sm:$0xff]  ;;  %v30_v37 = vld [vmem:[%s728_s1 + $0x20] sm:$0xff]  ;;  %v29_v39 = vld [vmem:[%s728_s1 + $0x18] sm:$0xff] }
   0xd   :  { %146 = vmatpush1.msra.mxu0 %v46_v13  ;;  %252 = vmatprep.subr.mxu1 %v93_v30  ;;  %v15_v36 = vld [vmem:[%s729_s0 + $0x8] sm:$0xff]  ;;  %v90_v38 = vld [vmem:[%s728_s1 + $0x200] sm:$0xff]  ;;  %v16_v40 = vld [vmem:[%s729_s0 + $0x10] sm:$0xff] }
   0xe   :  { %147 = vmatprep.subr.mxu0 %v45_v14  ;;  %253 = vmatpush1.msra.mxu1 %v92_v32  ;;  %v28_v41 = vld [vmem:[%s728_s1 + $0x10] sm:$0xff]  ;;  %v27_v42 = vld [vmem:[%s728_s1 + $0x8] sm:$0xff]  ;;  %v98_v43 = vld [vmem:[%s730_s2] sm:$0xff] }
   0xf   :  { %148 = vmatpush1.msra.mxu0 %v44_v15  ;;  %254 = vmatprep.subr.mxu1 %v91_v34  ;;  %v26_v44 = vld [vmem:[%s728_s1] sm:$0xff]  ;;  %v100_v45 = vld [vmem:[%s730_s2 + $0x10] sm:$0xff]  ;;  %v89_v46 = vld [vmem:[%s728_s1 + $0x1f8] sm:$0xff] }
  0x10   :  { %149 = vmatprep.subr.mxu0 %v43_v16  ;;  %199 = vmatprep.mubr.f32.mxu0 %v15_v36  ;;  %v19_v47 = vld [vmem:[%s729_s0 + $0x28] sm:$0xff]  ;;  %v88_v48 = vld [vmem:[%s728_s1 + $0x1f0] sm:$0xff]  ;;  %v86_v51 = vld [vmem:[%s728_s1 + $0x1e0] sm:$0xff] }
  0x11   :  { %150 = vmatpush1.msra.mxu0 %v42_v17  ;;  %255 = vmatpush1.msra.mxu1 %v90_v38  ;;  %v87_v49 = vld [vmem:[%s728_s1 + $0x1e8] sm:$0xff]  ;;  %v101_v52 = vld [vmem:[%s730_s2 + $0x18] sm:$0xff]  ;;  %v22_v54 = vld [vmem:[%s729_s0 + $0x40] sm:$0xff] }
  0x12   :  { %151 = vmatprep.subr.mxu0 %v41_v18  ;;  %374 = vmatmul.mubr.msk.f32.vlgmr.msra.gmra.mxu1 %vm122_vm0, %v16_v40  ;;  %v99_v50 = vld [vmem:[%s730_s2 + $0x8] sm:$0xff]  ;;  %v85_v53 = vld [vmem:[%s728_s1 + $0x1d8] sm:$0xff]  ;;  %v84_v55 = vld [vmem:[%s728_s1 + $0x1d0] sm:$0xff] }
  0x13   :  { %152 = vmatpush1.msra.mxu0 %v40_v19  ;;  %294 = vmatprep.mubr.f32.mxu1 %v406_v3  ;;  %v83_v56 = vld [vmem:[%s728_s1 + $0x1c8] sm:$0xff]  ;;  %v82_v57 = vld [vmem:[%s728_s1 + $0x1c0] sm:$0xff]  ;;  %v81_v58 = vld [vmem:[%s728_s1 + $0x1b8] sm:$0xff] }
  0x14   :  { %153 = vmatprep.subr.mxu0 %v39_v20  ;;  %104 = vperm.xlu0 %388, %v98_v43   ;;  %v25_v59 = vld [vmem:[%s729_s0 + $0x58] sm:$0xff]  ;;  %v80_v60 = vld [vmem:[%s728_s1 + $0x1b0] sm:$0xff]  ;;  %v79_v61 = vld [vmem:[%s728_s1 + $0x1a8] sm:$0xff] }
  0x15   :  { %154 = vmatpush1.msra.mxu0 %v38_v21  ;;  %114 = vperm.xlu1 %389, %v100_v45   ;;  %v78_v62 = vld [vmem:[%s728_s1 + $0x1a0] sm:$0xff]  ;;  %v77_v63 = vld [vmem:[%s728_s1 + $0x198] sm:$0xff]  ;;  %v76_v0 = vld [vmem:[%s728_s1 + $0x190] sm:$0xff] }
  0x16   :  { %155 = vmatprep.subr.mxu0 %v37_v22  ;;  %375 = vmatmul.mubr.msk.f32.gmra.mxu1 %vm122_vm0, %v19_v47  ;;  %v75_v1 = vld [vmem:[%s728_s1 + $0x188] sm:$0xff]  ;;  %v74_v2 = vld [vmem:[%s728_s1 + $0x180] sm:$0xff]  ;;  %v72_v4 = vld [vmem:[%s728_s1 + $0x170] sm:$0xff] }
  0x17   :  { %156 = vmatpush1.msra.mxu0 %v36_v23  ;;  %300 = vmatprep.mubr.f32.mxu1 %v406_v3  ;;  %v71_v5 = vld [vmem:[%s728_s1 + $0x168] sm:$0xff]  ;;  %v70_v6 = vld [vmem:[%s728_s1 + $0x160] sm:$0xff]  ;;  %v69_v7 = vld [vmem:[%s728_s1 + $0x158] sm:$0xff] }
  0x18   :  { %157 = vmatprep.subr.mxu0 %v35_v26  ;;  %109 = vperm.xlu0 %388, %v99_v50   ;;  %v68_v8 = vld [vmem:[%s728_s1 + $0x150] sm:$0xff]  ;;  %v67_v9 = vld [vmem:[%s728_s1 + $0x148] sm:$0xff]  ;;  %v66_v10 = vld [vmem:[%s728_s1 + $0x140] sm:$0xff] }
  0x19   :  { %158 = vmatpush1.msra.mxu0 %v34_v28  ;;  %119 = vperm.xlu1 %389, %v101_v52   ;;  %v65_v11 = vld [vmem:[%s728_s1 + $0x138] sm:$0xff]  ;;  %v64_v12 = vld [vmem:[%s728_s1 + $0x130] sm:$0xff]  ;;  %v63_v13 = vld [vmem:[%s728_s1 + $0x128] sm:$0xff] }
  0x1a   :  { %159 = vmatprep.subr.mxu0 %v33_v31  ;;  %376 = vmatmul.mubr.msk.f32.gmra.mxu1 %vm122_vm0, %v22_v54  ;;  %v62_v14 = vld [vmem:[%s728_s1 + $0x120] sm:$0xff]  ;;  %v61_v15 = vld [vmem:[%s728_s1 + $0x118] sm:$0xff]  ;;  %v60_v16 = vld [vmem:[%s728_s1 + $0x110] sm:$0xff] }
  0x1b   :  { %160 = vmatpush1.msra.mxu0 %v32_v33  ;;  %306 = vmatprep.mubr.f32.mxu1 %v406_v3  ;;  %v73_v3 = vld [vmem:[%s728_s1 + $0x178] sm:$0xff]  ;;  %v59_v17 = vld [vmem:[%s728_s1 + $0x108] sm:$0xff]  ;;  %v58_v18 = vld [vmem:[%s728_s1 + $0x100] sm:$0xff] }
  0x1c   :  { %161 = vmatprep.subr.mxu0 %v31_v35  ;;  %v14_v19 = vld [vmem:[%s729_s0] sm:$0xff]  ;;  %v17_v21 = vld [vmem:[%s729_s0 + $0x18] sm:$0xff]  ;;  %v20_v23 = vld [vmem:[%s729_s0 + $0x30] sm:$0xff] }
  0x1d   :  { %162 = vmatpush1.msra.mxu0 %v30_v37  ;;  %v18_v20 = vld [vmem:[%s729_s0 + $0x20] sm:$0xff]  ;;  %v21_v22 = vld [vmem:[%s729_s0 + $0x38] sm:$0xff]  ;;  %v24_v24 = vld [vmem:[%s729_s0 + $0x50] sm:$0xff] }
  0x1e   :  { %163 = vmatprep.subr.mxu0 %v29_v39  ;;  %377 = vmatmul.mubr.msk.f32.gmra.mxu1 %vm122_vm0, %v25_v59  ;;  %v23_v25 = vld [vmem:[%s729_s0 + $0x48] sm:$0xff] }
  0x1f   :  { %164 = vmatpush1.msra.mxu0 %v28_v41 }
  0x20   :  { %165 = vmatprep.subr.mxu0 %v27_v42 }
  0x21   :  { %166 = vmatpush1.msra.mxu0 %v26_v44 }
  0x22   :  { %167 = vmatprep.subr.mxu0 %v89_v46 }
  0x23   :  { %168 = vmatpush2.msra.mxu0 %v88_v48 }
  0x24   :  { %169 = vmatprep.subr.mxu0 %v87_v49 }
  0x25   :  { %170 = vmatpush2.msra.mxu0 %v86_v51 }
  0x26   :  { %171 = vmatprep.subr.mxu0 %v85_v53 }
  0x27   :  { %172 = vmatpush2.msra.mxu0 %v84_v55 }
  0x28   :  { %173 = vmatprep.subr.mxu0 %v83_v56 }
  0x29   :  { %174 = vmatpush2.msra.mxu0 %v82_v57 }
  0x2a   :  { %175 = vmatprep.subr.mxu0 %v81_v58 }
  0x2b   :  { %176 = vmatpush2.msra.mxu0 %v80_v60 }
  0x2c   :  { %177 = vmatprep.subr.mxu0 %v79_v61 }
  0x2d   :  { %178 = vmatpush2.msra.mxu0 %v78_v62 }
  0x2e   :  { %179 = vmatprep.subr.mxu0 %v77_v63 }
  0x2f   :  { %180 = vmatpush2.msra.mxu0 %v76_v0 }
  0x30   :  { %181 = vmatprep.subr.mxu0 %v75_v1 }
  0x31   :  { %182 = vmatpush2.msra.mxu0 %v74_v2 }
  0x32   :  { %183 = vmatprep.subr.mxu0 %v73_v3 }
  0x33   :  { %184 = vmatpush2.msra.mxu0 %v72_v4 }
  0x34   :  { %185 = vmatprep.subr.mxu0 %v71_v5 }
  0x35   :  { %186 = vmatpush2.msra.mxu0 %v70_v6 }
  0x36   :  { %187 = vmatprep.subr.mxu0 %v69_v7 }
  0x37   :  { %188 = vmatpush2.msra.mxu0 %v68_v8 }
  0x38   :  { %189 = vmatprep.subr.mxu0 %v67_v9 }
  0x39   :  { %190 = vmatpush2.msra.mxu0 %v66_v10 }
  0x3a   :  { %191 = vmatprep.subr.mxu0 %v65_v11 }
  0x3b   :  { %192 = vmatpush2.msra.mxu0 %v64_v12 }
  0x3c   :  { %193 = vmatprep.subr.mxu0 %v63_v13 }
  0x3d   :  { %194 = vmatpush2.msra.mxu0 %v62_v14 }
  0x3e   :  { %195 = vmatprep.subr.mxu0 %v61_v15 }
  0x3f   :  { %196 = vmatpush2.msra.mxu0 %v60_v16 }
  0x40   :  { %197 = vmatprep.subr.mxu0 %v59_v17 }
  0x41   :  { %198 = vmatpush2.msra.mxu0 %v58_v18 }
  0x42   :  { %200 = vmatmul.mubr.f32.vlgmr.msra.gmra.mxu0 %v14_v19 }
  0x43   :  { %205 = vmatprep.mubr.f32.mxu0 %v18_v20 }
  0x46   :  { %206 = vmatmul.mubr.f32.gmra.mxu0 %v17_v21 }
  0x47   :  { %211 = vmatprep.mubr.f32.mxu0 %v21_v22 }
  0x4a   :  { %212 = vmatmul.mubr.f32.gmra.mxu0 %v20_v23 }
  0x4b   :  { %217 = vmatprep.mubr.f32.mxu0 %v24_v24 }
  0x4e   :  { %218 = vmatmul.mubr.f32.gmra.mxu0 %v23_v25 }
  0x8f   :  { %v105_v28 = vpop.permute.xlu0 %104 }
  0x90   :  { %v115_v42 = vpop.permute.xlu1 %114 }
  0x93   :  { %v110_v34 = vpop.permute.xlu0 %109 }
  0x94   :  { %v120_v56 = vpop.permute.xlu1 %119 }
  0xd2   :  { %v290_v26 = vpop.f32.mrf.mxu1 }
  0xd4   :  { %v292_v27 = vpop.f32.mrf.mxu1 }
  0xd6   :  { %v296_v29 = vpop.f32.mrf.mxu1 }
  0xd8   :  { %v298_v31 = vpop.f32.mrf.mxu1 }
  0xda   :  { %v302_v38 = vpop.f32.mrf.mxu1 }
  0xdc   :  { %v304_v49 = vpop.f32.mrf.mxu1 }
  0xde   :  { %v308_v61 = vpop.f32.mrf.mxu1 }
  0xe0   :  { %v310_v7 = vpop.f32.mrf.mxu1 }
 0x102   :  { %v201_v30 = vpop.f32.mrf.mxu0 }
 0x103   :  { %v202_v32 = vadd.f32 %v201_v30, %v105_v28 }
 0x104   :  { %v203_v33 = vpop.f32.mrf.mxu0 }
 0x105   :  { %v291_v35 = vadd.f32 %v290_v26, %v202_v32  ;;  %v204_v36 = vadd.f32 %v203_v33, %v105_v28 }
 0x106   :  { %v207_v37 = vpop.f32.mrf.mxu0 }
 0x107   :  { %v321_v39 = vmin.f32 %v291_v35, 0.0  ;;  %v293_v40 = vadd.f32 %v292_v27, %v204_v36  ;;  %v208_v41 = vadd.f32 %v207_v37, %v110_v34  ;;  %vm313_vm1 = vcmp.gt.f32.partialorder %v291_v35, 0.0 }
 0x108   :  { %v209_v43 = vpop.f32.mrf.mxu0 }
 0x109   :  { %v329_v44 = vmul.f32 1.442695, %v321_v39  ;;  %v322_v45 = vmin.f32 %v293_v40, 0.0  ;;  %v297_v46 = vadd.f32 %v296_v29, %v208_v41  ;;  %v210_v47 = vadd.f32 %v209_v43, %v110_v34 }
 0x10a   :  { %v213_v48 = vpop.f32.mrf.mxu0  ;;  %vm314_vm3 = vcmp.gt.f32.partialorder %v293_v40, 0.0 }
 0x10b   :  { %390 = vpow2.f32 %v329_v44  ;;  %v331_v50 = vmul.f32 1.442695, %v322_v45  ;;  %v323_v51 = vmin.f32 %v297_v46, 0.0  ;;  %v299_v52 = vadd.f32 %v298_v31, %v210_v47 }
 0x10c   :  { %v214_v53 = vadd.f32 %v213_v48, %v115_v42  ;;  %v215_v54 = vpop.f32.mrf.mxu0  ;;  %vm315_vm4 = vcmp.gt.f32.partialorder %v297_v46, 0.0 }
 0x10d   :  { %392 = vpow2.f32 %v331_v50  ;;  %v333_v55 = vmul.f32 1.442695, %v323_v51  ;;  %v216_v57 = vadd.f32 %v215_v54, %v115_v42  ;;  %v324_v58 = vmin.f32 %v299_v52, 0.0 }
 0x10e   :  { %v303_v59 = vadd.f32 %v302_v38, %v214_v53  ;;  %v219_v60 = vpop.f32.mrf.mxu0  ;;  %vm316_vm5 = vcmp.gt.f32.partialorder %v299_v52, 0.0 }
 0x10f   :  { %394 = vpow2.f32 %v333_v55  ;;  %v305_v62 = vadd.f32 %v304_v49, %v216_v57  ;;  %v220_v63 = vadd.f32 %v219_v60, %v120_v56  ;;  %v335_v0 = vmul.f32 1.442695, %v324_v58 }
 0x110   :  { %v325_v1 = vmin.f32 %v303_v59, 0.0  ;;  %v221_v2 = vpop.f32.mrf.mxu0  ;;  %vm317_vm6 = vcmp.gt.f32.partialorder %v303_v59, 0.0 }
 0x111   :  { %v326_v3 = vmin.f32 %v305_v62, 0.0  ;;  %v309_v4 = vadd.f32 %v308_v61, %v220_v63  ;;  %v222_v5 = vadd.f32 %v221_v2, %v120_v56  ;;  %396 = vpow2.f32 %v335_v0 }
 0x112   :  { %v337_v6 = vmul.f32 1.442695, %v325_v1  ;;  %vm318_vm7 = vcmp.gt.f32.partialorder %v305_v62, 0.0 }
 0x113   :  { %v339_v8 = vmul.f32 1.442695, %v326_v3  ;;  %v327_v9 = vmin.f32 %v309_v4, 0.0  ;;  %v311_v10 = vadd.f32 %v310_v7, %v222_v5  ;;  %vm319_vm8 = vcmp.gt.f32.partialorder %v309_v4, 0.0 }
 0x114   :  { %398 = vpow2.f32 %v337_v6 }
 0x115   :  { %400 = vpow2.f32 %v339_v8  ;;  %v341_v11 = vmul.f32 1.442695, %v327_v9  ;;  %v328_v12 = vmin.f32 %v311_v10, 0.0  ;;  %vm320_vm9 = vcmp.gt.f32.partialorder %v311_v10, 0.0 }
 0x117   :  { %402 = vpow2.f32 %v341_v11  ;;  %v343_v13 = vmul.f32 1.442695, %v328_v12 }
 0x118   :  { %v391_v14 = vpop.eup %390 }
 0x119   :  { %v378_v15 = vadd.f32 -1.0, %v391_v14  ;;  %404 = vpow2.f32 %v343_v13 }
 0x11a   :  { %v393_v16 = vpop.eup %392 }
 0x11b   :  { %v353_v17 = vsel %vm313_vm1, %v291_v35, %v378_v15  ;;  %v379_v18 = vadd.f32 -1.0, %v393_v16 }
 0x11c   :  { %v395_v19 = vpop.eup %394  ;;  %361 = vst [vmem:[%s731_s3] sm:$0xff] %v353_v17 }
 0x11d   :  { %v354_v20 = vsel %vm314_vm3, %v293_v40, %v379_v18  ;;  %v380_v21 = vadd.f32 -1.0, %v395_v19 }
 0x11e   :  { %363 = vst.msk [vmem:[%s731_s3 + $0x8] sm:$0xff] %vm362_vm2, %v354_v20  ;;  %v397_v22 = vpop.eup %396 }
 0x11f   :  { %v355_v23 = vsel %vm315_vm4, %v297_v46, %v380_v21  ;;  %v381_v24 = vadd.f32 -1.0, %v397_v22 }
 0x120   :  { %364 = vst [vmem:[%s731_s3 + $0x10] sm:$0xff] %v355_v23 }
 0x121   :  { %v399_v25 = vpop.eup %398  ;;  %v356_v27 = vsel %vm316_vm5, %v299_v52, %v381_v24 }
 0x122   :  { %v401_v26 = vpop.eup %400  ;;  %v382_v28 = vadd.f32 -1.0, %v399_v25  ;;  %365 = vst.msk [vmem:[%s731_s3 + $0x18] sm:$0xff] %vm362_vm2, %v356_v27 }
 0x123   :  { %v383_v29 = vadd.f32 -1.0, %v401_v26 }
 0x124   :  { %v403_v30 = vpop.eup %402  ;;  %v357_v31 = vsel %vm317_vm6, %v303_v59, %v382_v28 }
 0x125   :  { %366 = vst [vmem:[%s731_s3 + $0x20] sm:$0xff] %v357_v31  ;;  %v358_v32 = vsel %vm318_vm7, %v305_v62, %v383_v29  ;;  %v384_v33 = vadd.f32 -1.0, %v403_v30 }
 0x126   :  { %v405_v34 = vpop.eup %404  ;;  %367 = vst.msk [vmem:[%s731_s3 + $0x28] sm:$0xff] %vm362_vm2, %v358_v32 }
 0x127   :  { %v359_v35 = vsel %vm319_vm8, %v309_v4, %v384_v33  ;;  %v385_v36 = vadd.f32 -1.0, %v405_v34 }
 0x128   :  { %368 = vst [vmem:[%s731_s3 + $0x30] sm:$0xff] %v359_v35 }
 0x129   :  { %v360_v37 = vsel %vm320_vm9, %v311_v10, %v385_v36 }
 0x12a   :  { %369 = vst.msk [vmem:[%s731_s3 + $0x38] sm:$0xff] %vm362_vm2, %v360_v37 }

// kernel: nn_policy_forward_pallas.8
= control target key start
LH: loop header
LB: loop body
LE: loop exit
PB: predicated region body
PF: predicated region fallthrough
CT: control target
= control target key end

     0   :  { %v387_v3 = vmov 0   ;;  %vm86_vm0 = vcmask 261120   ;;  %vm293_vm1 = vcmask 408576   ;;  %s584_s1 = inlined_call_operand.vmem [shape: f32[288,50], index: 1, kind: input, shape index: {}]   ;;  %s585_s0 = inlined_call_operand.vmem [shape: f32[32,288], index: 0, kind: input, shape index: {}]   ;;  %s586_s2 = inlined_call_operand.vmem [shape: f32[32,1], index: 2, kind: input, shape index: {}]   ;;  %s587_s3 = inlined_call_operand.vmem [shape: f32[32,50], index: 3, kind: output, shape index: {}]  }
   0x1   :  { %v57_v0 = vld [vmem:[%s584_s1 + $0xf8] sm:$0xff]  ;;  %v56_v2 = vld [vmem:[%s584_s1 + $0xf0] sm:$0xff]  ;;  %377 = vset.pattern.permute.xlu0 %v387_v3  ;;  %378 = vset.pattern.permute.xlu1 %v387_v3  ;;  %v55_v5 = vld [vmem:[%s584_s1 + $0xe8] sm:$0xff] }
   0x2   :  { %v41_v1 = vld [vmem:[%s584_s1 + $0x78] sm:$0xff]  ;;  %310 = vmatprep.subr.mxu0 %v57_v0  ;;  %v40_v4 = vld [vmem:[%s584_s1 + $0x70] sm:$0xff]  ;;  %v39_v6 = vld [vmem:[%s584_s1 + $0x68] sm:$0xff] }
   0x3   :  { %311 = vmatpush3.msra.mxu0 %v41_v1  ;;  %v54_v7 = vld [vmem:[%s584_s1 + $0xe0] sm:$0xff]  ;;  %v53_v9 = vld [vmem:[%s584_s1 + $0xd8] sm:$0xff]  ;;  %v52_v11 = vld [vmem:[%s584_s1 + $0xd0] sm:$0xff] }
   0x4   :  { %312 = vmatprep.subr.mxu0 %v56_v2  ;;  %v38_v8 = vld [vmem:[%s584_s1 + $0x60] sm:$0xff]  ;;  %v37_v10 = vld [vmem:[%s584_s1 + $0x58] sm:$0xff]  ;;  %v36_v12 = vld [vmem:[%s584_s1 + $0x50] sm:$0xff] }
   0x5   :  { %313 = vmatpush3.msra.mxu0 %v40_v4  ;;  %v61_v13 = vld [vmem:[%s584_s1 + $0x118] sm:$0xff]  ;;  %v51_v14 = vld [vmem:[%s584_s1 + $0xc8] sm:$0xff]  ;;  %v60_v15 = vld [vmem:[%s584_s1 + $0x110] sm:$0xff] }
   0x6   :  { %314 = vmatprep.subr.mxu0 %v55_v5  ;;  %362 = vmatprep.subr.mxu1 %v61_v13  ;;  %v35_v16 = vld [vmem:[%s584_s1 + $0x48] sm:$0xff]  ;;  %v50_v18 = vld [vmem:[%s584_s1 + $0xc0] sm:$0xff]  ;;  %v49_v21 = vld [vmem:[%s584_s1 + $0xb8] sm:$0xff] }
   0x7   :  { %315 = vmatpush3.msra.mxu0 %v39_v6  ;;  %363 = vmatpush3.msra.mxu1 %v61_v13  ;;  %v15_v17 = vld [vmem:[%s585_s0 + $0x8] sm:$0xff]  ;;  %v34_v20 = vld [vmem:[%s584_s1 + $0x40] sm:$0xff]  ;;  %v33_v23 = vld [vmem:[%s584_s1 + $0x38] sm:$0xff] }
   0x8   :  { %316 = vmatprep.subr.mxu0 %v54_v7  ;;  %364 = vmatprep.subr.mxu1 %v60_v15  ;;  %v59_v19 = vld [vmem:[%s584_s1 + $0x108] sm:$0xff]  ;;  %v58_v22 = vld [vmem:[%s584_s1 + $0x100] sm:$0xff]  ;;  %v48_v24 = vld [vmem:[%s584_s1 + $0xb0] sm:$0xff] }
   0x9   :  { %317 = vmatpush3.msra.mxu0 %v38_v8  ;;  %163 = vmatprep.mubr.f32.mxu0 %v15_v17  ;;  %v16_v25 = vld [vmem:[%s585_s0 + $0x10] sm:$0xff]  ;;  %v19_v27 = vld [vmem:[%s585_s0 + $0x28] sm:$0xff]  ;;  %v22_v29 = vld [vmem:[%s585_s0 + $0x40] sm:$0xff] }
   0xa   :  { %318 = vmatprep.subr.mxu0 %v53_v9  ;;  %365 = vmatpush3.msra.mxu1 %v60_v15  ;;  %v32_v26 = vld [vmem:[%s584_s1 + $0x30] sm:$0xff]  ;;  %v47_v28 = vld [vmem:[%s584_s1 + $0xa8] sm:$0xff]  ;;  %v62_v31 = vld [vmem:[%s586_s2] sm:$0xff] }
   0xb   :  { %319 = vmatpush3.msra.mxu0 %v37_v10  ;;  %366 = vmatprep.subr.mxu1 %v59_v19  ;;  %v31_v30 = vld [vmem:[%s584_s1 + $0x28] sm:$0xff]  ;;  %v46_v32 = vld [vmem:[%s584_s1 + $0xa0] sm:$0xff]  ;;  %v64_v33 = vld [vmem:[%s586_s2 + $0x10] sm:$0xff] }
   0xc   :  { %320 = vmatprep.subr.mxu0 %v52_v11  ;;  %367 = vmatpush3.msra.mxu1 %v59_v19  ;;  %v30_v34 = vld [vmem:[%s584_s1 + $0x20] sm:$0xff]  ;;  %v25_v35 = vld [vmem:[%s585_s0 + $0x58] sm:$0xff]  ;;  %v63_v38 = vld [vmem:[%s586_s2 + $0x8] sm:$0xff] }
   0xd   :  { %321 = vmatpush3.msra.mxu0 %v36_v12  ;;  %368 = vmatprep.subr.mxu1 %v58_v22  ;;  %v45_v36 = vld [vmem:[%s584_s1 + $0x98] sm:$0xff]  ;;  %v44_v39 = vld [vmem:[%s584_s1 + $0x90] sm:$0xff]  ;;  %v43_v42 = vld [vmem:[%s584_s1 + $0x88] sm:$0xff] }
   0xe   :  { %322 = vmatprep.subr.mxu0 %v51_v14  ;;  %369 = vmatpush3.msra.mxu1 %v58_v22  ;;  %v29_v37 = vld [vmem:[%s584_s1 + $0x18] sm:$0xff]  ;;  %v28_v41 = vld [vmem:[%s584_s1 + $0x10] sm:$0xff]  ;;  %v27_v43 = vld [vmem:[%s584_s1 + $0x8] sm:$0xff] }
   0xf   :  { %323 = vmatpush3.msra.mxu0 %v35_v16  ;;  %370 = vmatprep.mubr.msk.f32.mxu1 %vm86_vm0, %v16_v25  ;;  %v65_v40 = vld [vmem:[%s586_s2 + $0x18] sm:$0xff]  ;;  %v42_v44 = vld [vmem:[%s584_s1 + $0x80] sm:$0xff]  ;;  %v20_v50 = vld [vmem:[%s585_s0 + $0x30] sm:$0xff] }
  0x10   :  { %324 = vmatprep.subr.mxu0 %v50_v18  ;;  %371 = vmatmul.mubr.msk.f32.vlgmr.msra.gmra.mxu1 %vm86_vm0, %v19_v27  ;;  %v26_v45 = vld [vmem:[%s584_s1] sm:$0xff]  ;;  %v17_v48 = vld [vmem:[%s585_s0 + $0x18] sm:$0xff]  ;;  %v24_v51 = vld [vmem:[%s585_s0 + $0x50] sm:$0xff] }
  0x11   :  { %325 = vmatpush3.msra.mxu0 %v34_v20  ;;  %373 = vmatprep.mubr.msk.f32.mxu1 %vm86_vm0, %v22_v29  ;;  %v14_v46 = vld [vmem:[%s585_s0] sm:$0xff]  ;;  %v21_v49 = vld [vmem:[%s585_s0 + $0x38] sm:$0xff]  ;;  %v23_v52 = vld [vmem:[%s585_s0 + $0x48] sm:$0xff] }
  0x12   :  { %326 = vmatprep.subr.mxu0 %v49_v21  ;;  %68 = vperm.xlu0 %377, %v62_v31   ;;  %v18_v47 = vld [vmem:[%s585_s0 + $0x20] sm:$0xff] }
  0x13   :  { %327 = vmatpush3.msra.mxu0 %v33_v23  ;;  %78 = vperm.xlu1 %378, %v64_v33  }
  0x14   :  { %328 = vmatprep.subr.mxu0 %v48_v24  ;;  %374 = vmatmul.mubr.msk.f32.gmra.mxu1 %vm86_vm0, %v25_v35 }
  0x15   :  { %329 = vmatpush3.msra.mxu0 %v32_v26 }
  0x16   :  { %330 = vmatprep.subr.mxu0 %v47_v28  ;;  %73 = vperm.xlu0 %377, %v63_v38  }
  0x17   :  { %331 = vmatpush3.msra.mxu0 %v31_v30  ;;  %83 = vperm.xlu1 %378, %v65_v40  }
  0x18   :  { %332 = vmatprep.subr.mxu0 %v46_v32 }
  0x19   :  { %333 = vmatpush3.msra.mxu0 %v30_v34 }
  0x1a   :  { %334 = vmatprep.subr.mxu0 %v45_v36 }
  0x1b   :  { %335 = vmatpush3.msra.mxu0 %v29_v37 }
  0x1c   :  { %336 = vmatprep.subr.mxu0 %v44_v39 }
  0x1d   :  { %337 = vmatpush3.msra.mxu0 %v28_v41 }
  0x1e   :  { %338 = vmatprep.subr.mxu0 %v43_v42 }
  0x1f   :  { %339 = vmatpush3.msra.mxu0 %v27_v43 }
  0x20   :  { %340 = vmatprep.subr.mxu0 %v42_v44 }
  0x21   :  { %341 = vmatpush3.msra.mxu0 %v26_v45 }
  0x22   :  { %164 = vmatmul.mubr.f32.vlgmr.msra.gmra.mxu0 %v14_v46 }
  0x23   :  { %168 = vmatprep.mubr.f32.mxu0 %v18_v47 }
  0x26   :  { %169 = vmatmul.mubr.f32.gmra.mxu0 %v17_v48 }
  0x27   :  { %173 = vmatprep.mubr.f32.mxu0 %v21_v49 }
  0x2a   :  { %174 = vmatmul.mubr.f32.gmra.mxu0 %v20_v50 }
  0x2b   :  { %178 = vmatprep.mubr.f32.mxu0 %v24_v51 }
  0x2e   :  { %179 = vmatmul.mubr.f32.gmra.mxu0 %v23_v52 }
  0x8d   :  { %v69_v53 = vpop.permute.xlu0 %68 }
  0x8e   :  { %v79_v5 = vpop.permute.xlu1 %78 }
  0x91   :  { %v74_v62 = vpop.permute.xlu0 %73 }
  0x92   :  { %v84_v18 = vpop.permute.xlu1 %83 }
  0xd0   :  { %v372_v55 = vpop.f32.mrf.mxu1 }
  0xd2   :  { %v250_v59 = vpop.f32.mrf.mxu1 }
  0xd4   :  { %v375_v2 = vpop.f32.mrf.mxu1 }
  0xd6   :  { %v260_v11 = vpop.f32.mrf.mxu1 }
  0xe2   :  { %v342_v54 = vpop.f32.mrf.mxu0 }
  0xe4   :  { %v343_v56 = vpop.f32.mrf.mxu0 }
  0xe5   :  { %v344_v57 = vadd.f32 %v343_v56, %v342_v54 }
  0xe6   :  { %v345_v58 = vpop.f32.mrf.mxu0 }
  0xe7   :  { %v166_v60 = vadd.f32 %v344_v57, %v69_v53 }
  0xe8   :  { %v346_v61 = vpop.f32.mrf.mxu0 }
  0xe9   :  { %v347_v63 = vadd.f32 %v346_v61, %v345_v58  ;;  %v251_v0 = vadd.f32 %v250_v59, %v166_v60 }
  0xea   :  { %v348_v1 = vpop.f32.mrf.mxu0 }
  0xeb   :  { %v273_v3 = vmin.f32 %v251_v0, 0.0  ;;  %v171_v4 = vadd.f32 %v347_v63, %v74_v62  ;;  %vm269_vm2 = vcmp.gt.f32.partialorder %v251_v0, 0.0 }
  0xec   :  { %v349_v6 = vpop.f32.mrf.mxu0 }
  0xed   :  { %v277_v7 = vmul.f32 1.442695, %v273_v3  ;;  %v256_v8 = vadd.f32 %v372_v55, %v171_v4  ;;  %v350_v9 = vadd.f32 %v349_v6, %v348_v1 }
  0xee   :  { %v351_v10 = vpop.f32.mrf.mxu0 }
  0xef   :  { %379 = vpow2.f32 %v277_v7  ;;  %v274_v12 = vmin.f32 %v256_v8, 0.0  ;;  %v176_v13 = vadd.f32 %v350_v9, %v79_v5  ;;  %vm270_vm3 = vcmp.gt.f32.partialorder %v256_v8, 0.0 }
  0xf0   :  { %v352_v14 = vpop.f32.mrf.mxu0 }
  0xf1   :  { %v279_v15 = vmul.f32 1.442695, %v274_v12  ;;  %v353_v16 = vadd.f32 %v352_v14, %v351_v10  ;;  %v261_v17 = vadd.f32 %v260_v11, %v176_v13 }
  0xf3   :  { %381 = vpow2.f32 %v279_v15  ;;  %v181_v19 = vadd.f32 %v353_v16, %v84_v18  ;;  %v275_v20 = vmin.f32 %v261_v17, 0.0  ;;  %vm271_vm4 = vcmp.gt.f32.partialorder %v261_v17, 0.0 }
  0xf5   :  { %v266_v21 = vadd.f32 %v375_v2, %v181_v19  ;;  %v281_v22 = vmul.f32 1.442695, %v275_v20 }
  0xf7   :  { %v276_v23 = vmin.f32 %v266_v21, 0.0  ;;  %383 = vpow2.f32 %v281_v22  ;;  %vm272_vm5 = vcmp.gt.f32.partialorder %v266_v21, 0.0 }
  0xf9   :  { %v283_v24 = vmul.f32 1.442695, %v276_v23 }
  0xfb   :  { %385 = vpow2.f32 %v283_v24 }
  0xfc   :  { %v380_v25 = vpop.eup %379 }
  0xfd   :  { %v306_v26 = vadd.f32 -1.0, %v380_v25 }
  0xff   :  { %v289_v27 = vsel %vm269_vm2, %v251_v0, %v306_v26 }
 0x100   :  { %v382_v28 = vpop.eup %381  ;;  %294 = vst.msk [vmem:[%s587_s3] sm:$0xff] %vm293_vm1, %v289_v27 }
 0x101   :  { %v307_v29 = vadd.f32 -1.0, %v382_v28 }
 0x103   :  { %v290_v30 = vsel %vm270_vm3, %v256_v8, %v307_v29 }
 0x104   :  { %v384_v31 = vpop.eup %383  ;;  %295 = vst.msk [vmem:[%s587_s3 + $0x8] sm:$0xff] %vm293_vm1, %v290_v30 }
 0x105   :  { %v308_v32 = vadd.f32 -1.0, %v384_v31 }
 0x107   :  { %v291_v33 = vsel %vm271_vm4, %v261_v17, %v308_v32 }
 0x108   :  { %v386_v34 = vpop.eup %385  ;;  %296 = vst.msk [vmem:[%s587_s3 + $0x10] sm:$0xff] %vm293_vm1, %v291_v33 }
 0x109   :  { %v309_v35 = vadd.f32 -1.0, %v386_v34 }
 0x10b   :  { %v292_v36 = vsel %vm272_vm5, %v266_v21, %v309_v35 }
 0x10c   :  { %297 = vst.msk [vmem:[%s587_s3 + $0x18] sm:$0xff] %vm293_vm1, %v292_v36 }

// kernel: nn_policy_forward_pallas.9
= control target key start
LH: loop header
LB: loop body
LE: loop exit
PB: predicated region body
PF: predicated region fallthrough
CT: control target
= control target key end

     0   :  { %16 = vsyncpa [#allocation3], 0  ;;  %vm1429_vm0 = vcmask 261120   ;;  %s6434_s0 = inlined_call_operand.vmem [shape: f32[2,800], index: 0, kind: input, shape index: {}]   ;;  %s6435_s1 = inlined_call_operand.vmem [shape: f32[2,256], index: 1, kind: input, shape index: {}]   ;;  %s6436_s2 = inlined_call_operand.vmem [shape: f32[2,256], index: 2, kind: input, shape index: {}]   ;;  %s6437_s3 = inlined_call_operand.vmem [shape: f32[800,1024], index: 3, kind: input, shape index: {}]   ;;  %s6438_s4 = inlined_call_operand.vmem [shape: f32[256,1024], index: 4, kind: input, shape index: {}]   ;;  %s6439_s5 = inlined_call_operand.vmem [shape: f32[1,1024], index: 5, kind: input, shape index: {}]   ;;  %s6440_s6 = inlined_call_operand.vmem [shape: f32[256,128], index: 6, kind: input, shape index: {}]   ;;  %s6441_s7 = inlined_call_operand.vmem [shape: f32[1,128], index: 7, kind: input, shape index: {}]   ;;  %s6442_s8 = inlined_call_operand.hbm [shape: f32[2,256], index: 8, kind: output, shape index: {0}]   ;;  %s6443_s9 = inlined_call_operand.hbm [shape: f32[2,256], index: 9, kind: output, shape index: {1}]   ;;  %s6444_s10 = inlined_call_operand.vmem [shape: f32[2,128], index: 10, kind: output, shape index: {2}]  }
   0x1   :  { %v958_v0 = vld [vmem:[%s6438_s4 + $0x3c8] sm:$0xff]  ;;  %v960_v1 = vld [vmem:[%s6438_s4 + $0x3d8] sm:$0xff]  ;;  %v957_v2 = vld [vmem:[%s6438_s4 + $0x3c0] sm:$0xff] }
   0x2   :  { %1104 = vmatprep.subr.mxu0 %v958_v0  ;;  %1175 = vmatprep.subr.mxu1 %v960_v1  ;;  %v959_v3 = vld [vmem:[%s6438_s4 + $0x3d0] sm:$0xff]  ;;  %v950_v4 = vld [vmem:[%s6438_s4 + $0x388] sm:$0xff]  ;;  %v952_v5 = vld [vmem:[%s6438_s4 + $0x398] sm:$0xff] }
   0x3   :  { %1105 = vmatpush1.msra.mxu0 %v957_v2  ;;  %1176 = vmatpush1.msra.mxu1 %v959_v3  ;;  %v949_v6 = vld [vmem:[%s6438_s4 + $0x380] sm:$0xff]  ;;  %v951_v7 = vld [vmem:[%s6438_s4 + $0x390] sm:$0xff]  ;;  %v942_v8 = vld [vmem:[%s6438_s4 + $0x348] sm:$0xff] }
   0x4   :  { %1106 = vmatprep.subr.mxu0 %v950_v4  ;;  %1177 = vmatprep.subr.mxu1 %v952_v5  ;;  %v944_v9 = vld [vmem:[%s6438_s4 + $0x358] sm:$0xff]  ;;  %v941_v10 = vld [vmem:[%s6438_s4 + $0x340] sm:$0xff]  ;;  %v943_v11 = vld [vmem:[%s6438_s4 + $0x350] sm:$0xff] }
   0x5   :  { %1107 = vmatpush1.msra.mxu0 %v949_v6  ;;  %1178 = vmatpush1.msra.mxu1 %v951_v7  ;;  %v934_v12 = vld [vmem:[%s6438_s4 + $0x308] sm:$0xff]  ;;  %v936_v13 = vld [vmem:[%s6438_s4 + $0x318] sm:$0xff]  ;;  %v933_v14 = vld [vmem:[%s6438_s4 + $0x300] sm:$0xff] }
   0x6   :  { %1108 = vmatprep.subr.mxu0 %v942_v8  ;;  %1179 = vmatprep.subr.mxu1 %v944_v9  ;;  %v935_v15 = vld [vmem:[%s6438_s4 + $0x310] sm:$0xff]  ;;  %v926_v16 = vld [vmem:[%s6438_s4 + $0x2c8] sm:$0xff]  ;;  %v928_v17 = vld [vmem:[%s6438_s4 + $0x2d8] sm:$0xff] }
   0x7   :  { %1109 = vmatpush1.msra.mxu0 %v941_v10  ;;  %1180 = vmatpush1.msra.mxu1 %v943_v11  ;;  %v925_v18 = vld [vmem:[%s6438_s4 + $0x2c0] sm:$0xff]  ;;  %v927_v19 = vld [vmem:[%s6438_s4 + $0x2d0] sm:$0xff]  ;;  %v918_v20 = vld [vmem:[%s6438_s4 + $0x288] sm:$0xff] }
   0x8   :  { %1110 = vmatprep.subr.mxu0 %v934_v12  ;;  %1181 = vmatprep.subr.mxu1 %v936_v13  ;;  %v920_v21 = vld [vmem:[%s6438_s4 + $0x298] sm:$0xff]  ;;  %v917_v22 = vld [vmem:[%s6438_s4 + $0x280] sm:$0xff]  ;;  %v919_v23 = vld [vmem:[%s6438_s4 + $0x290] sm:$0xff] }
   0x9   :  { %1111 = vmatpush1.msra.mxu0 %v933_v14  ;;  %1182 = vmatpush1.msra.mxu1 %v935_v15  ;;  %v910_v24 = vld [vmem:[%s6438_s4 + $0x248] sm:$0xff]  ;;  %v912_v25 = vld [vmem:[%s6438_s4 + $0x258] sm:$0xff]  ;;  %v909_v26 = vld [vmem:[%s6438_s4 + $0x240] sm:$0xff] }
   0xa   :  { %1112 = vmatprep.subr.mxu0 %v926_v16  ;;  %1183 = vmatprep.subr.mxu1 %v928_v17  ;;  %v911_v27 = vld [vmem:[%s6438_s4 + $0x250] sm:$0xff]  ;;  %v902_v28 = vld [vmem:[%s6438_s4 + $0x208] sm:$0xff]  ;;  %v904_v29 = vld [vmem:[%s6438_s4 + $0x218] sm:$0xff] }
   0xb   :  { %1113 = vmatpush1.msra.mxu0 %v925_v18  ;;  %1184 = vmatpush1.msra.mxu1 %v927_v19  ;;  %v901_v30 = vld [vmem:[%s6438_s4 + $0x200] sm:$0xff]  ;;  %v903_v31 = vld [vmem:[%s6438_s4 + $0x210] sm:$0xff]  ;;  %v894_v32 = vld [vmem:[%s6438_s4 + $0x1c8] sm:$0xff] }
   0xc   :  { %1114 = vmatprep.subr.mxu0 %v918_v20  ;;  %1185 = vmatprep.subr.mxu1 %v920_v21  ;;  %v896_v33 = vld [vmem:[%s6438_s4 + $0x1d8] sm:$0xff]  ;;  %v893_v34 = vld [vmem:[%s6438_s4 + $0x1c0] sm:$0xff]  ;;  %v895_v35 = vld [vmem:[%s6438_s4 + $0x1d0] sm:$0xff] }
   0xd   :  { %1115 = vmatpush1.msra.mxu0 %v917_v22  ;;  %1186 = vmatpush1.msra.mxu1 %v919_v23  ;;  %v886_v36 = vld [vmem:[%s6438_s4 + $0x188] sm:$0xff]  ;;  %v888_v37 = vld [vmem:[%s6438_s4 + $0x198] sm:$0xff]  ;;  %v885_v38 = vld [vmem:[%s6438_s4 + $0x180] sm:$0xff] }
   0xe   :  { %1116 = vmatprep.subr.mxu0 %v910_v24  ;;  %1187 = vmatprep.subr.mxu1 %v912_v25  ;;  %v887_v39 = vld [vmem:[%s6438_s4 + $0x190] sm:$0xff]  ;;  %v878_v40 = vld [vmem:[%s6438_s4 + $0x148] sm:$0xff]  ;;  %v880_v41 = vld [vmem:[%s6438_s4 + $0x158] sm:$0xff] }
   0xf   :  { %1117 = vmatpush1.msra.mxu0 %v909_v26  ;;  %1188 = vmatpush1.msra.mxu1 %v911_v27  ;;  %v877_v42 = vld [vmem:[%s6438_s4 + $0x140] sm:$0xff]  ;;  %v879_v43 = vld [vmem:[%s6438_s4 + $0x150] sm:$0xff]  ;;  %v870_v44 = vld [vmem:[%s6438_s4 + $0x108] sm:$0xff] }
  0x10   :  { %1118 = vmatprep.subr.mxu0 %v902_v28  ;;  %1189 = vmatprep.subr.mxu1 %v904_v29  ;;  %v872_v45 = vld [vmem:[%s6438_s4 + $0x118] sm:$0xff]  ;;  %v869_v46 = vld [vmem:[%s6438_s4 + $0x100] sm:$0xff]  ;;  %v871_v47 = vld [vmem:[%s6438_s4 + $0x110] sm:$0xff] }
  0x11   :  { %1119 = vmatpush1.msra.mxu0 %v901_v30  ;;  %1190 = vmatpush1.msra.mxu1 %v903_v31  ;;  %v862_v48 = vld [vmem:[%s6438_s4 + $0xc8] sm:$0xff]  ;;  %v864_v49 = vld [vmem:[%s6438_s4 + $0xd8] sm:$0xff]  ;;  %v861_v50 = vld [vmem:[%s6438_s4 + $0xc0] sm:$0xff] }
  0x12   :  { %1120 = vmatprep.subr.mxu0 %v894_v32  ;;  %1191 = vmatprep.subr.mxu1 %v896_v33  ;;  %v863_v51 = vld [vmem:[%s6438_s4 + $0xd0] sm:$0xff]  ;;  %v854_v52 = vld [vmem:[%s6438_s4 + $0x88] sm:$0xff]  ;;  %v856_v53 = vld [vmem:[%s6438_s4 + $0x98] sm:$0xff] }
  0x13   :  { %1121 = vmatpush1.msra.mxu0 %v893_v34  ;;  %1192 = vmatpush1.msra.mxu1 %v895_v35  ;;  %v853_v54 = vld [vmem:[%s6438_s4 + $0x80] sm:$0xff]  ;;  %v855_v55 = vld [vmem:[%s6438_s4 + $0x90] sm:$0xff]  ;;  %v846_v56 = vld [vmem:[%s6438_s4 + $0x48] sm:$0xff] }
  0x14   :  { %1122 = vmatprep.subr.mxu0 %v886_v36  ;;  %1193 = vmatprep.subr.mxu1 %v888_v37  ;;  %v848_v57 = vld [vmem:[%s6438_s4 + $0x58] sm:$0xff]  ;;  %v845_v58 = vld [vmem:[%s6438_s4 + $0x40] sm:$0xff]  ;;  %v847_v59 = vld [vmem:[%s6438_s4 + $0x50] sm:$0xff] }
  0x15   :  { %1123 = vmatpush1.msra.mxu0 %v885_v38  ;;  %1194 = vmatpush1.msra.mxu1 %v887_v39  ;;  %v838_v60 = vld [vmem:[%s6438_s4 + $0x8] sm:$0xff]  ;;  %v840_v61 = vld [vmem:[%s6438_s4 + $0x18] sm:$0xff]  ;;  %v837_v62 = vld [vmem:[%s6438_s4] sm:$0xff] }
  0x16   :  { %1124 = vmatprep.subr.mxu0 %v878_v40  ;;  %1195 = vmatprep.subr.mxu1 %v880_v41  ;;  %v839_v63 = vld [vmem:[%s6438_s4 + $0x10] sm:$0xff]  ;;  %v1086_v0 = vld [vmem:[%s6438_s4 + $0x7c8] sm:$0xff]  ;;  %v1088_v1 = vld [vmem:[%s6438_s4 + $0x7d8] sm:$0xff] }
  0x17   :  { %1125 = vmatpush1.msra.mxu0 %v877_v42  ;;  %1196 = vmatpush1.msra.mxu1 %v879_v43  ;;  %v1085_v2 = vld [vmem:[%s6438_s4 + $0x7c0] sm:$0xff]  ;;  %v1087_v3 = vld [vmem:[%s6438_s4 + $0x7d0] sm:$0xff]  ;;  %v1078_v4 = vld [vmem:[%s6438_s4 + $0x788] sm:$0xff] }
  0x18   :  { %1126 = vmatprep.subr.mxu0 %v870_v44  ;;  %1197 = vmatprep.subr.mxu1 %v872_v45  ;;  %v1080_v5 = vld [vmem:[%s6438_s4 + $0x798] sm:$0xff]  ;;  %v1077_v6 = vld [vmem:[%s6438_s4 + $0x780] sm:$0xff]  ;;  %v1079_v7 = vld [vmem:[%s6438_s4 + $0x790] sm:$0xff] }
  0x19   :  { %1127 = vmatpush1.msra.mxu0 %v869_v46  ;;  %1198 = vmatpush1.msra.mxu1 %v871_v47  ;;  %v1070_v8 = vld [vmem:[%s6438_s4 + $0x748] sm:$0xff]  ;;  %v1072_v9 = vld [vmem:[%s6438_s4 + $0x758] sm:$0xff]  ;;  %v1069_v10 = vld [vmem:[%s6438_s4 + $0x740] sm:$0xff] }
  0x1a   :  { %1128 = vmatprep.subr.mxu0 %v862_v48  ;;  %1199 = vmatprep.subr.mxu1 %v864_v49  ;;  %v1071_v11 = vld [vmem:[%s6438_s4 + $0x750] sm:$0xff]  ;;  %v1062_v12 = vld [vmem:[%s6438_s4 + $0x708] sm:$0xff]  ;;  %v1064_v13 = vld [vmem:[%s6438_s4 + $0x718] sm:$0xff] }
  0x1b   :  { %1129 = vmatpush1.msra.mxu0 %v861_v50  ;;  %1200 = vmatpush1.msra.mxu1 %v863_v51  ;;  %v1061_v14 = vld [vmem:[%s6438_s4 + $0x700] sm:$0xff]  ;;  %v1063_v15 = vld [vmem:[%s6438_s4 + $0x710] sm:$0xff]  ;;  %v1054_v16 = vld [vmem:[%s6438_s4 + $0x6c8] sm:$0xff] }
  0x1c   :  { %1130 = vmatprep.subr.mxu0 %v854_v52  ;;  %1201 = vmatprep.subr.mxu1 %v856_v53  ;;  %v1056_v17 = vld [vmem:[%s6438_s4 + $0x6d8] sm:$0xff]  ;;  %v1053_v18 = vld [vmem:[%s6438_s4 + $0x6c0] sm:$0xff]  ;;  %v1055_v19 = vld [vmem:[%s6438_s4 + $0x6d0] sm:$0xff] }
  0x1d   :  { %1131 = vmatpush1.msra.mxu0 %v853_v54  ;;  %1202 = vmatpush1.msra.mxu1 %v855_v55  ;;  %v1046_v20 = vld [vmem:[%s6438_s4 + $0x688] sm:$0xff]  ;;  %v1048_v21 = vld [vmem:[%s6438_s4 + $0x698] sm:$0xff]  ;;  %v1045_v22 = vld [vmem:[%s6438_s4 + $0x680] sm:$0xff] }
  0x1e   :  { %1132 = vmatprep.subr.mxu0 %v846_v56  ;;  %1203 = vmatprep.subr.mxu1 %v848_v57  ;;  %v1047_v23 = vld [vmem:[%s6438_s4 + $0x690] sm:$0xff]  ;;  %v1038_v24 = vld [vmem:[%s6438_s4 + $0x648] sm:$0xff]  ;;  %v1040_v25 = vld [vmem:[%s6438_s4 + $0x658] sm:$0xff] }
  0x1f   :  { %1133 = vmatpush1.msra.mxu0 %v845_v58  ;;  %1204 = vmatpush1.msra.mxu1 %v847_v59  ;;  %v1037_v26 = vld [vmem:[%s6438_s4 + $0x640] sm:$0xff]  ;;  %v1039_v27 = vld [vmem:[%s6438_s4 + $0x650] sm:$0xff]  ;;  %v1030_v28 = vld [vmem:[%s6438_s4 + $0x608] sm:$0xff] }
  0x20   :  { %1134 = vmatprep.subr.mxu0 %v838_v60  ;;  %1205 = vmatprep.subr.mxu1 %v840_v61  ;;  %v1032_v29 = vld [vmem:[%s6438_s4 + $0x618] sm:$0xff]  ;;  %v1029_v30 = vld [vmem:[%s6438_s4 + $0x600] sm:$0xff]  ;;  %v1031_v31 = vld [vmem:[%s6438_s4 + $0x610] sm:$0xff] }
  0x21   :  { %1135 = vmatpush1.msra.mxu0 %v837_v62  ;;  %1206 = vmatpush1.msra.mxu1 %v839_v63  ;;  %v1022_v32 = vld [vmem:[%s6438_s4 + $0x5c8] sm:$0xff]  ;;  %v1024_v33 = vld [vmem:[%s6438_s4 + $0x5d8] sm:$0xff]  ;;  %v1021_v34 = vld [vmem:[%s6438_s4 + $0x5c0] sm:$0xff] }
  0x22   :  { %1136 = vmatprep.subr.mxu0 %v1086_v0  ;;  %1207 = vmatprep.subr.mxu1 %v1088_v1  ;;  %v1023_v35 = vld [vmem:[%s6438_s4 + $0x5d0] sm:$0xff]  ;;  %v1014_v36 = vld [vmem:[%s6438_s4 + $0x588] sm:$0xff]  ;;  %v1016_v37 = vld [vmem:[%s6438_s4 + $0x598] sm:$0xff] }
  0x23   :  { %1137 = vmatpush2.msra.mxu0 %v1085_v2  ;;  %1208 = vmatpush2.msra.mxu1 %v1087_v3  ;;  %v1013_v38 = vld [vmem:[%s6438_s4 + $0x580] sm:$0xff]  ;;  %v1015_v39 = vld [vmem:[%s6438_s4 + $0x590] sm:$0xff]  ;;  %v1006_v40 = vld [vmem:[%s6438_s4 + $0x548] sm:$0xff] }
  0x24   :  { %1138 = vmatprep.subr.mxu0 %v1078_v4  ;;  %1209 = vmatprep.subr.mxu1 %v1080_v5  ;;  %v1008_v41 = vld [vmem:[%s6438_s4 + $0x558] sm:$0xff]  ;;  %v1005_v42 = vld [vmem:[%s6438_s4 + $0x540] sm:$0xff]  ;;  %v1007_v43 = vld [vmem:[%s6438_s4 + $0x550] sm:$0xff] }
  0x25   :  { %1139 = vmatpush2.msra.mxu0 %v1077_v6  ;;  %1210 = vmatpush2.msra.mxu1 %v1079_v7  ;;  %v998_v44 = vld [vmem:[%s6438_s4 + $0x508] sm:$0xff]  ;;  %v1000_v45 = vld [vmem:[%s6438_s4 + $0x518] sm:$0xff]  ;;  %v997_v46 = vld [vmem:[%s6438_s4 + $0x500] sm:$0xff] }
  0x26   :  { %1140 = vmatprep.subr.mxu0 %v1070_v8  ;;  %1211 = vmatprep.subr.mxu1 %v1072_v9  ;;  %v999_v47 = vld [vmem:[%s6438_s4 + $0x510] sm:$0xff]  ;;  %v990_v48 = vld [vmem:[%s6438_s4 + $0x4c8] sm:$0xff]  ;;  %v992_v49 = vld [vmem:[%s6438_s4 + $0x4d8] sm:$0xff] }
  0x27   :  { %1141 = vmatpush2.msra.mxu0 %v1069_v10  ;;  %1212 = vmatpush2.msra.mxu1 %v1071_v11  ;;  %v989_v50 = vld [vmem:[%s6438_s4 + $0x4c0] sm:$0xff]  ;;  %v991_v51 = vld [vmem:[%s6438_s4 + $0x4d0] sm:$0xff]  ;;  %v982_v52 = vld [vmem:[%s6438_s4 + $0x488] sm:$0xff] }
  0x28   :  { %1142 = vmatprep.subr.mxu0 %v1062_v12  ;;  %1213 = vmatprep.subr.mxu1 %v1064_v13  ;;  %v984_v53 = vld [vmem:[%s6438_s4 + $0x498] sm:$0xff]  ;;  %v981_v54 = vld [vmem:[%s6438_s4 + $0x480] sm:$0xff]  ;;  %v983_v55 = vld [vmem:[%s6438_s4 + $0x490] sm:$0xff] }
  0x29   :  { %1143 = vmatpush2.msra.mxu0 %v1061_v14  ;;  %1214 = vmatpush2.msra.mxu1 %v1063_v15  ;;  %v974_v56 = vld [vmem:[%s6438_s4 + $0x448] sm:$0xff]  ;;  %v976_v57 = vld [vmem:[%s6438_s4 + $0x458] sm:$0xff]  ;;  %v3398_v58 = vld.sshfl [vmem:[%s6435_s1] sm:$0x33 pattern:$0x76325410] }
  0x2a   :  { %1144 = vmatprep.subr.mxu0 %v1054_v16  ;;  %1215 = vmatprep.subr.mxu1 %v1056_v17  ;;  %v973_v59 = vld [vmem:[%s6438_s4 + $0x440] sm:$0xff]  ;;  %v975_v60 = vld [vmem:[%s6438_s4 + $0x450] sm:$0xff]  ;;  %v966_v61 = vld [vmem:[%s6438_s4 + $0x408] sm:$0xff]  ;;  %v3420_v1 = vcombine.high %v3398_v58, %v3398_v58 }
  0x2b   :  { %1145 = vmatpush2.msra.mxu0 %v1053_v18  ;;  %1216 = vmatpush2.msra.mxu1 %v1055_v19  ;;  %v968_v62 = vld [vmem:[%s6438_s4 + $0x418] sm:$0xff]  ;;  %v965_v63 = vld [vmem:[%s6438_s4 + $0x400] sm:$0xff]  ;;  %v967_v0 = vld [vmem:[%s6438_s4 + $0x410] sm:$0xff] }
  0x2c   :  { %1146 = vmatprep.subr.mxu0 %v1046_v20  ;;  %1217 = vmatprep.subr.mxu1 %v1048_v21  ;;  %v962_v2 = vld [vmem:[%s6438_s4 + $0x3e8] sm:$0xff]  ;;  %v964_v3 = vld [vmem:[%s6438_s4 + $0x3f8] sm:$0xff]  ;;  %v961_v4 = vld [vmem:[%s6438_s4 + $0x3e0] sm:$0xff] }
  0x2d   :  { %1147 = vmatpush2.msra.mxu0 %v1045_v22  ;;  %1218 = vmatpush2.msra.mxu1 %v1047_v23  ;;  %v963_v5 = vld [vmem:[%s6438_s4 + $0x3f0] sm:$0xff]  ;;  %v954_v6 = vld [vmem:[%s6438_s4 + $0x3a8] sm:$0xff]  ;;  %v956_v7 = vld [vmem:[%s6438_s4 + $0x3b8] sm:$0xff] }
  0x2e   :  { %1148 = vmatprep.subr.mxu0 %v1038_v24  ;;  %1219 = vmatprep.subr.mxu1 %v1040_v25  ;;  %v953_v8 = vld [vmem:[%s6438_s4 + $0x3a0] sm:$0xff]  ;;  %v955_v9 = vld [vmem:[%s6438_s4 + $0x3b0] sm:$0xff]  ;;  %v946_v10 = vld [vmem:[%s6438_s4 + $0x368] sm:$0xff] }
  0x2f   :  { %1149 = vmatpush2.msra.mxu0 %v1037_v26  ;;  %1220 = vmatpush2.msra.mxu1 %v1039_v27  ;;  %v948_v11 = vld [vmem:[%s6438_s4 + $0x378] sm:$0xff]  ;;  %v945_v12 = vld [vmem:[%s6438_s4 + $0x360] sm:$0xff]  ;;  %v947_v13 = vld [vmem:[%s6438_s4 + $0x370] sm:$0xff] }
  0x30   :  { %1150 = vmatprep.subr.mxu0 %v1030_v28  ;;  %1221 = vmatprep.subr.mxu1 %v1032_v29  ;;  %v938_v14 = vld [vmem:[%s6438_s4 + $0x328] sm:$0xff]  ;;  %v940_v15 = vld [vmem:[%s6438_s4 + $0x338] sm:$0xff]  ;;  %v937_v16 = vld [vmem:[%s6438_s4 + $0x320] sm:$0xff] }
  0x31   :  { %1151 = vmatpush2.msra.mxu0 %v1029_v30  ;;  %1222 = vmatpush2.msra.mxu1 %v1031_v31  ;;  %v939_v17 = vld [vmem:[%s6438_s4 + $0x330] sm:$0xff]  ;;  %v930_v18 = vld [vmem:[%s6438_s4 + $0x2e8] sm:$0xff]  ;;  %v932_v19 = vld [vmem:[%s6438_s4 + $0x2f8] sm:$0xff] }
  0x32   :  { %1152 = vmatprep.subr.mxu0 %v1022_v32  ;;  %1223 = vmatprep.subr.mxu1 %v1024_v33  ;;  %v929_v20 = vld [vmem:[%s6438_s4 + $0x2e0] sm:$0xff]  ;;  %v931_v21 = vld [vmem:[%s6438_s4 + $0x2f0] sm:$0xff]  ;;  %v922_v22 = vld [vmem:[%s6438_s4 + $0x2a8] sm:$0xff] }
  0x33   :  { %1153 = vmatpush2.msra.mxu0 %v1021_v34  ;;  %1224 = vmatpush2.msra.mxu1 %v1023_v35  ;;  %v924_v23 = vld [vmem:[%s6438_s4 + $0x2b8] sm:$0xff]  ;;  %v921_v24 = vld [vmem:[%s6438_s4 + $0x2a0] sm:$0xff]  ;;  %v923_v25 = vld [vmem:[%s6438_s4 + $0x2b0] sm:$0xff] }
  0x34   :  { %1154 = vmatprep.subr.mxu0 %v1014_v36  ;;  %1225 = vmatprep.subr.mxu1 %v1016_v37  ;;  %v914_v26 = vld [vmem:[%s6438_s4 + $0x268] sm:$0xff]  ;;  %v916_v27 = vld [vmem:[%s6438_s4 + $0x278] sm:$0xff]  ;;  %v913_v28 = vld [vmem:[%s6438_s4 + $0x260] sm:$0xff] }
  0x35   :  { %1155 = vmatpush2.msra.mxu0 %v1013_v38  ;;  %1226 = vmatpush2.msra.mxu1 %v1015_v39  ;;  %v915_v29 = vld [vmem:[%s6438_s4 + $0x270] sm:$0xff]  ;;  %v906_v30 = vld [vmem:[%s6438_s4 + $0x228] sm:$0xff]  ;;  %v908_v31 = vld [vmem:[%s6438_s4 + $0x238] sm:$0xff] }
  0x36   :  { %1156 = vmatprep.subr.mxu0 %v1006_v40  ;;  %1227 = vmatprep.subr.mxu1 %v1008_v41  ;;  %v905_v32 = vld [vmem:[%s6438_s4 + $0x220] sm:$0xff]  ;;  %v907_v33 = vld [vmem:[%s6438_s4 + $0x230] sm:$0xff]  ;;  %v898_v34 = vld [vmem:[%s6438_s4 + $0x1e8] sm:$0xff] }
  0x37   :  { %1157 = vmatpush2.msra.mxu0 %v1005_v42  ;;  %1228 = vmatpush2.msra.mxu1 %v1007_v43  ;;  %v900_v35 = vld [vmem:[%s6438_s4 + $0x1f8] sm:$0xff]  ;;  %v897_v36 = vld [vmem:[%s6438_s4 + $0x1e0] sm:$0xff]  ;;  %v899_v37 = vld [vmem:[%s6438_s4 + $0x1f0] sm:$0xff] }
  0x38   :  { %1158 = vmatprep.subr.mxu0 %v998_v44  ;;  %1229 = vmatprep.subr.mxu1 %v1000_v45  ;;  %v890_v38 = vld [vmem:[%s6438_s4 + $0x1a8] sm:$0xff]  ;;  %v892_v39 = vld [vmem:[%s6438_s4 + $0x1b8] sm:$0xff]  ;;  %v889_v40 = vld [vmem:[%s6438_s4 + $0x1a0] sm:$0xff] }
  0x39   :  { %1159 = vmatpush2.msra.mxu0 %v997_v46  ;;  %1230 = vmatpush2.msra.mxu1 %v999_v47  ;;  %v891_v41 = vld [vmem:[%s6438_s4 + $0x1b0] sm:$0xff]  ;;  %v882_v42 = vld [vmem:[%s6438_s4 + $0x168] sm:$0xff]  ;;  %v884_v43 = vld [vmem:[%s6438_s4 + $0x178] sm:$0xff] }
  0x3a   :  { %1160 = vmatprep.subr.mxu0 %v990_v48  ;;  %1231 = vmatprep.subr.mxu1 %v992_v49  ;;  %v881_v44 = vld [vmem:[%s6438_s4 + $0x160] sm:$0xff]  ;;  %v883_v45 = vld [vmem:[%s6438_s4 + $0x170] sm:$0xff]  ;;  %v874_v46 = vld [vmem:[%s6438_s4 + $0x128] sm:$0xff] }
  0x3b   :  { %1161 = vmatpush2.msra.mxu0 %v989_v50  ;;  %1232 = vmatpush2.msra.mxu1 %v991_v51  ;;  %v876_v47 = vld [vmem:[%s6438_s4 + $0x138] sm:$0xff]  ;;  %v873_v48 = vld [vmem:[%s6438_s4 + $0x120] sm:$0xff]  ;;  %v875_v49 = vld [vmem:[%s6438_s4 + $0x130] sm:$0xff] }
  0x3c   :  { %1162 = vmatprep.subr.mxu0 %v982_v52  ;;  %1233 = vmatprep.subr.mxu1 %v984_v53  ;;  %v866_v50 = vld [vmem:[%s6438_s4 + $0xe8] sm:$0xff]  ;;  %v868_v51 = vld [vmem:[%s6438_s4 + $0xf8] sm:$0xff]  ;;  %v865_v52 = vld [vmem:[%s6438_s4 + $0xe0] sm:$0xff] }
  0x3d   :  { %1163 = vmatpush2.msra.mxu0 %v981_v54  ;;  %1234 = vmatpush2.msra.mxu1 %v983_v55  ;;  %v867_v53 = vld [vmem:[%s6438_s4 + $0xf0] sm:$0xff]  ;;  %v858_v54 = vld [vmem:[%s6438_s4 + $0xa8] sm:$0xff]  ;;  %v860_v55 = vld [vmem:[%s6438_s4 + $0xb8] sm:$0xff] }
  0x3e   :  { %1164 = vmatprep.subr.mxu0 %v974_v56  ;;  %1235 = vmatprep.subr.mxu1 %v976_v57  ;;  %v857_v56 = vld [vmem:[%s6438_s4 + $0xa0] sm:$0xff]  ;;  %v859_v57 = vld [vmem:[%s6438_s4 + $0xb0] sm:$0xff] }
  0x3f   :  { %1165 = vmatpush2.msra.mxu0 %v973_v59  ;;  %1236 = vmatpush2.msra.mxu1 %v975_v60  ;;  %v850_v59 = vld [vmem:[%s6438_s4 + $0x68] sm:$0xff]  ;;  %v852_v60 = vld [vmem:[%s6438_s4 + $0x78] sm:$0xff] }
  0x40   :  { %1166 = vmatprep.subr.mxu0 %v966_v61  ;;  %1237 = vmatprep.subr.mxu1 %v968_v62  ;;  %v849_v61 = vld [vmem:[%s6438_s4 + $0x60] sm:$0xff]  ;;  %v851_v62 = vld [vmem:[%s6438_s4 + $0x70] sm:$0xff] }
  0x41   :  { %1167 = vmatpush2.msra.mxu0 %v965_v63  ;;  %1238 = vmatpush2.msra.mxu1 %v967_v0  ;;  %v842_v63 = vld [vmem:[%s6438_s4 + $0x28] sm:$0xff]  ;;  %v844_v0 = vld [vmem:[%s6438_s4 + $0x38] sm:$0xff] }
  0x42   :  { %1239 = vmatprep.mubr.f32.mxu1 %v3420_v1  ;;  %1168 = vmatprep.mubr.f32.mxu0 %v3420_v1 }
  0x43   :  { %1240 = vmatmul.mubr.f32.vlgmr.msra.gmra.mxu1 %v3398_v58  ;;  %1246 = vmatprep.subr.mxu0 %v962_v2  ;;  %v841_v2 = vld [vmem:[%s6438_s4 + $0x20] sm:$0xff] }
  0x44   :  { %1317 = vmatprep.subr.mxu1 %v964_v3  ;;  %1169 = vmatmul.mubr.f32.vlgmr.msra.gmra.mxu0 %v3398_v58  ;;  %v843_v3 = vld [vmem:[%s6438_s4 + $0x30] sm:$0xff] }
  0x45   :  { %1247 = vmatpush1.msra.mxu0 %v961_v4  ;;  %1318 = vmatpush1.msra.mxu1 %v963_v5  ;;  %v1090_v4 = vld [vmem:[%s6438_s4 + $0x7e8] sm:$0xff]  ;;  %v1092_v5 = vld [vmem:[%s6438_s4 + $0x7f8] sm:$0xff] }
  0x46   :  { %1248 = vmatprep.subr.mxu0 %v954_v6  ;;  %1319 = vmatprep.subr.mxu1 %v956_v7  ;;  %v1089_v6 = vld [vmem:[%s6438_s4 + $0x7e0] sm:$0xff]  ;;  %v1091_v7 = vld [vmem:[%s6438_s4 + $0x7f0] sm:$0xff] }
  0x47   :  { %1249 = vmatpush1.msra.mxu0 %v953_v8  ;;  %1320 = vmatpush1.msra.mxu1 %v955_v9  ;;  %v1082_v8 = vld [vmem:[%s6438_s4 + $0x7a8] sm:$0xff]  ;;  %v1084_v9 = vld [vmem:[%s6438_s4 + $0x7b8] sm:$0xff] }
  0x48   :  { %1250 = vmatprep.subr.mxu0 %v946_v10  ;;  %1321 = vmatprep.subr.mxu1 %v948_v11  ;;  %v1081_v10 = vld [vmem:[%s6438_s4 + $0x7a0] sm:$0xff]  ;;  %v1083_v11 = vld [vmem:[%s6438_s4 + $0x7b0] sm:$0xff] }
  0x49   :  { %1251 = vmatpush1.msra.mxu0 %v945_v12  ;;  %1322 = vmatpush1.msra.mxu1 %v947_v13  ;;  %v1074_v12 = vld [vmem:[%s6438_s4 + $0x768] sm:$0xff]  ;;  %v1076_v13 = vld [vmem:[%s6438_s4 + $0x778] sm:$0xff] }
  0x4a   :  { %1252 = vmatprep.subr.mxu0 %v938_v14  ;;  %1323 = vmatprep.subr.mxu1 %v940_v15  ;;  %v1073_v14 = vld [vmem:[%s6438_s4 + $0x760] sm:$0xff]  ;;  %v1075_v15 = vld [vmem:[%s6438_s4 + $0x770] sm:$0xff] }
  0x4b   :  { %1253 = vmatpush1.msra.mxu0 %v937_v16  ;;  %1324 = vmatpush1.msra.mxu1 %v939_v17  ;;  %v1066_v16 = vld [vmem:[%s6438_s4 + $0x728] sm:$0xff]  ;;  %v1068_v17 = vld [vmem:[%s6438_s4 + $0x738] sm:$0xff] }
  0x4c   :  { %1254 = vmatprep.subr.mxu0 %v930_v18  ;;  %1325 = vmatprep.subr.mxu1 %v932_v19  ;;  %v1065_v18 = vld [vmem:[%s6438_s4 + $0x720] sm:$0xff]  ;;  %v1067_v19 = vld [vmem:[%s6438_s4 + $0x730] sm:$0xff] }
  0x4d   :  { %1255 = vmatpush1.msra.mxu0 %v929_v20  ;;  %1326 = vmatpush1.msra.mxu1 %v931_v21  ;;  %v1058_v20 = vld [vmem:[%s6438_s4 + $0x6e8] sm:$0xff]  ;;  %v1060_v21 = vld [vmem:[%s6438_s4 + $0x6f8] sm:$0xff] }
  0x4e   :  { %1256 = vmatprep.subr.mxu0 %v922_v22  ;;  %1327 = vmatprep.subr.mxu1 %v924_v23  ;;  %v1057_v22 = vld [vmem:[%s6438_s4 + $0x6e0] sm:$0xff]  ;;  %v1059_v23 = vld [vmem:[%s6438_s4 + $0x6f0] sm:$0xff] }
  0x4f   :  { %1257 = vmatpush1.msra.mxu0 %v921_v24  ;;  %1328 = vmatpush1.msra.mxu1 %v923_v25  ;;  %v1050_v24 = vld [vmem:[%s6438_s4 + $0x6a8] sm:$0xff]  ;;  %v1052_v25 = vld [vmem:[%s6438_s4 + $0x6b8] sm:$0xff] }
  0x50   :  { %1258 = vmatprep.subr.mxu0 %v914_v26  ;;  %1329 = vmatprep.subr.mxu1 %v916_v27  ;;  %v1049_v26 = vld [vmem:[%s6438_s4 + $0x6a0] sm:$0xff]  ;;  %v1051_v27 = vld [vmem:[%s6438_s4 + $0x6b0] sm:$0xff] }
  0x51   :  { %1259 = vmatpush1.msra.mxu0 %v913_v28  ;;  %1330 = vmatpush1.msra.mxu1 %v915_v29  ;;  %v1042_v28 = vld [vmem:[%s6438_s4 + $0x668] sm:$0xff]  ;;  %v1044_v29 = vld [vmem:[%s6438_s4 + $0x678] sm:$0xff] }
  0x52   :  { %1260 = vmatprep.subr.mxu0 %v906_v30  ;;  %1331 = vmatprep.subr.mxu1 %v908_v31  ;;  %v1041_v30 = vld [vmem:[%s6438_s4 + $0x660] sm:$0xff]  ;;  %v1043_v31 = vld [vmem:[%s6438_s4 + $0x670] sm:$0xff] }
  0x53   :  { %1261 = vmatpush1.msra.mxu0 %v905_v32  ;;  %1332 = vmatpush1.msra.mxu1 %v907_v33  ;;  %v1034_v32 = vld [vmem:[%s6438_s4 + $0x628] sm:$0xff]  ;;  %v1036_v33 = vld [vmem:[%s6438_s4 + $0x638] sm:$0xff] }
  0x54   :  { %1262 = vmatprep.subr.mxu0 %v898_v34  ;;  %1333 = vmatprep.subr.mxu1 %v900_v35  ;;  %v1033_v34 = vld [vmem:[%s6438_s4 + $0x620] sm:$0xff]  ;;  %v1035_v35 = vld [vmem:[%s6438_s4 + $0x630] sm:$0xff] }
  0x55   :  { %1263 = vmatpush1.msra.mxu0 %v897_v36  ;;  %1334 = vmatpush1.msra.mxu1 %v899_v37  ;;  %v1026_v36 = vld [vmem:[%s6438_s4 + $0x5e8] sm:$0xff]  ;;  %v1028_v37 = vld [vmem:[%s6438_s4 + $0x5f8] sm:$0xff] }
  0x56   :  { %1264 = vmatprep.subr.mxu0 %v890_v38  ;;  %1335 = vmatprep.subr.mxu1 %v892_v39  ;;  %v1025_v38 = vld [vmem:[%s6438_s4 + $0x5e0] sm:$0xff]  ;;  %v1027_v39 = vld [vmem:[%s6438_s4 + $0x5f0] sm:$0xff] }
  0x57   :  { %1265 = vmatpush1.msra.mxu0 %v889_v40  ;;  %1336 = vmatpush1.msra.mxu1 %v891_v41  ;;  %v1018_v40 = vld [vmem:[%s6438_s4 + $0x5a8] sm:$0xff]  ;;  %v1020_v41 = vld [vmem:[%s6438_s4 + $0x5b8] sm:$0xff] }
  0x58   :  { %1266 = vmatprep.subr.mxu0 %v882_v42  ;;  %1337 = vmatprep.subr.mxu1 %v884_v43  ;;  %v1017_v42 = vld [vmem:[%s6438_s4 + $0x5a0] sm:$0xff]  ;;  %v1019_v43 = vld [vmem:[%s6438_s4 + $0x5b0] sm:$0xff] }
  0x59   :  { %1267 = vmatpush1.msra.mxu0 %v881_v44  ;;  %1338 = vmatpush1.msra.mxu1 %v883_v45  ;;  %v1010_v44 = vld [vmem:[%s6438_s4 + $0x568] sm:$0xff]  ;;  %v1012_v45 = vld [vmem:[%s6438_s4 + $0x578] sm:$0xff] }
  0x5a   :  { %1268 = vmatprep.subr.mxu0 %v874_v46  ;;  %1339 = vmatprep.subr.mxu1 %v876_v47  ;;  %v1009_v46 = vld [vmem:[%s6438_s4 + $0x560] sm:$0xff]  ;;  %v1011_v47 = vld [vmem:[%s6438_s4 + $0x570] sm:$0xff] }
  0x5b   :  { %1269 = vmatpush1.msra.mxu0 %v873_v48  ;;  %1340 = vmatpush1.msra.mxu1 %v875_v49  ;;  %v1002_v48 = vld [vmem:[%s6438_s4 + $0x528] sm:$0xff]  ;;  %v1004_v49 = vld [vmem:[%s6438_s4 + $0x538] sm:$0xff] }
  0x5c   :  { %1270 = vmatprep.subr.mxu0 %v866_v50  ;;  %1341 = vmatprep.subr.mxu1 %v868_v51  ;;  %v1001_v50 = vld [vmem:[%s6438_s4 + $0x520] sm:$0xff]  ;;  %v1003_v51 = vld [vmem:[%s6438_s4 + $0x530] sm:$0xff] }
  0x5d   :  { %1271 = vmatpush1.msra.mxu0 %v865_v52  ;;  %1342 = vmatpush1.msra.mxu1 %v867_v53  ;;  %v994_v52 = vld [vmem:[%s6438_s4 + $0x4e8] sm:$0xff]  ;;  %v996_v53 = vld [vmem:[%s6438_s4 + $0x4f8] sm:$0xff] }
  0x5e   :  { %1272 = vmatprep.subr.mxu0 %v858_v54  ;;  %1343 = vmatprep.subr.mxu1 %v860_v55  ;;  %v993_v54 = vld [vmem:[%s6438_s4 + $0x4e0] sm:$0xff]  ;;  %v995_v55 = vld [vmem:[%s6438_s4 + $0x4f0] sm:$0xff] }
  0x5f   :  { %1273 = vmatpush1.msra.mxu0 %v857_v56  ;;  %1344 = vmatpush1.msra.mxu1 %v859_v57  ;;  %v986_v56 = vld [vmem:[%s6438_s4 + $0x4a8] sm:$0xff]  ;;  %v988_v57 = vld [vmem:[%s6438_s4 + $0x4b8] sm:$0xff] }
  0x60   :  { %1274 = vmatprep.subr.mxu0 %v850_v59  ;;  %1345 = vmatprep.subr.mxu1 %v852_v60  ;;  %v985_v59 = vld [vmem:[%s6438_s4 + $0x4a0] sm:$0xff]  ;;  %v987_v60 = vld [vmem:[%s6438_s4 + $0x4b0] sm:$0xff] }
  0x61   :  { %1275 = vmatpush1.msra.mxu0 %v849_v61  ;;  %1346 = vmatpush1.msra.mxu1 %v851_v62  ;;  %v978_v61 = vld [vmem:[%s6438_s4 + $0x468] sm:$0xff]  ;;  %v980_v62 = vld [vmem:[%s6438_s4 + $0x478] sm:$0xff] }
  0x62   :  { %1276 = vmatprep.subr.mxu0 %v842_v63  ;;  %1347 = vmatprep.subr.mxu1 %v844_v0  ;;  %v977_v63 = vld [vmem:[%s6438_s4 + $0x460] sm:$0xff]  ;;  %v979_v0 = vld [vmem:[%s6438_s4 + $0x470] sm:$0xff] }
  0x63   :  { %1277 = vmatpush1.msra.mxu0 %v841_v2  ;;  %1348 = vmatpush1.msra.mxu1 %v843_v3  ;;  %v970_v2 = vld [vmem:[%s6438_s4 + $0x428] sm:$0xff]  ;;  %v972_v3 = vld [vmem:[%s6438_s4 + $0x438] sm:$0xff] }
  0x64   :  { %1278 = vmatprep.subr.mxu0 %v1090_v4  ;;  %1349 = vmatprep.subr.mxu1 %v1092_v5  ;;  %v969_v4 = vld [vmem:[%s6438_s4 + $0x420] sm:$0xff]  ;;  %v971_v5 = vld [vmem:[%s6438_s4 + $0x430] sm:$0xff] }
  0x65   :  { %1279 = vmatpush2.msra.mxu0 %v1089_v6  ;;  %1350 = vmatpush2.msra.mxu1 %v1091_v7  ;;  %v157_v6 = vld [vmem:[%s6437_s3 + $0x3c8] sm:$0xff] }
  0x66   :  { %1280 = vmatprep.subr.mxu0 %v1082_v8  ;;  %1351 = vmatprep.subr.mxu1 %v1084_v9  ;;  %v413_v7 = vld [vmem:[%s6437_s3 + $0xbc8] sm:$0xff]  ;;  %v156_v8 = vld [vmem:[%s6437_s3 + $0x3c0] sm:$0xff] }
  0x67   :  { %1281 = vmatpush2.msra.mxu0 %v1081_v10  ;;  %1352 = vmatpush2.msra.mxu1 %v1083_v11  ;;  %v412_v9 = vld [vmem:[%s6437_s3 + $0xbc0] sm:$0xff]  ;;  %v149_v10 = vld [vmem:[%s6437_s3 + $0x388] sm:$0xff] }
  0x68   :  { %1282 = vmatprep.subr.mxu0 %v1074_v12  ;;  %1353 = vmatprep.subr.mxu1 %v1076_v13  ;;  %v405_v11 = vld [vmem:[%s6437_s3 + $0xb88] sm:$0xff]  ;;  %v404_v12 = vld [vmem:[%s6437_s3 + $0xb80] sm:$0xff] }
  0x69   :  { %1283 = vmatpush2.msra.mxu0 %v1073_v14  ;;  %1354 = vmatpush2.msra.mxu1 %v1075_v15  ;;  %v141_v13 = vld [vmem:[%s6437_s3 + $0x348] sm:$0xff]  ;;  %v396_v15 = vld [vmem:[%s6437_s3 + $0xb40] sm:$0xff] }
  0x6a   :  { %1284 = vmatprep.subr.mxu0 %v1066_v16  ;;  %1355 = vmatprep.subr.mxu1 %v1068_v17  ;;  %v397_v14 = vld [vmem:[%s6437_s3 + $0xb48] sm:$0xff] }
  0x6b   :  { %1285 = vmatpush2.msra.mxu0 %v1065_v18  ;;  %1356 = vmatpush2.msra.mxu1 %v1067_v19  ;;  %v133_v16 = vld [vmem:[%s6437_s3 + $0x308] sm:$0xff]  ;;  %v132_v18 = vld [vmem:[%s6437_s3 + $0x300] sm:$0xff] }
  0x6c   :  { %1286 = vmatprep.subr.mxu0 %v1058_v20  ;;  %1357 = vmatprep.subr.mxu1 %v1060_v21  ;;  %v389_v17 = vld [vmem:[%s6437_s3 + $0xb08] sm:$0xff]  ;;  %v388_v19 = vld [vmem:[%s6437_s3 + $0xb00] sm:$0xff] }
  0x6d   :  { %1287 = vmatpush2.msra.mxu0 %v1057_v22  ;;  %1358 = vmatpush2.msra.mxu1 %v1059_v23  ;;  %v125_v20 = vld [vmem:[%s6437_s3 + $0x2c8] sm:$0xff]  ;;  %v124_v22 = vld [vmem:[%s6437_s3 + $0x2c0] sm:$0xff] }
  0x6e   :  { %1288 = vmatprep.subr.mxu0 %v1050_v24  ;;  %1359 = vmatprep.subr.mxu1 %v1052_v25  ;;  %v381_v21 = vld [vmem:[%s6437_s3 + $0xac8] sm:$0xff]  ;;  %v380_v23 = vld [vmem:[%s6437_s3 + $0xac0] sm:$0xff] }
  0x6f   :  { %1289 = vmatpush2.msra.mxu0 %v1049_v26  ;;  %1360 = vmatpush2.msra.mxu1 %v1051_v27  ;;  %v117_v24 = vld [vmem:[%s6437_s3 + $0x288] sm:$0xff]  ;;  %v116_v26 = vld [vmem:[%s6437_s3 + $0x280] sm:$0xff] }
  0x70   :  { %1290 = vmatprep.subr.mxu0 %v1042_v28  ;;  %1361 = vmatprep.subr.mxu1 %v1044_v29  ;;  %v373_v25 = vld [vmem:[%s6437_s3 + $0xa88] sm:$0xff]  ;;  %v372_v27 = vld [vmem:[%s6437_s3 + $0xa80] sm:$0xff] }
  0x71   :  { %1291 = vmatpush2.msra.mxu0 %v1041_v30  ;;  %1362 = vmatpush2.msra.mxu1 %v1043_v31  ;;  %v109_v28 = vld [vmem:[%s6437_s3 + $0x248] sm:$0xff]  ;;  %v108_v30 = vld [vmem:[%s6437_s3 + $0x240] sm:$0xff] }
  0x72   :  { %1292 = vmatprep.subr.mxu0 %v1034_v32  ;;  %1363 = vmatprep.subr.mxu1 %v1036_v33  ;;  %v365_v29 = vld [vmem:[%s6437_s3 + $0xa48] sm:$0xff]  ;;  %v364_v31 = vld [vmem:[%s6437_s3 + $0xa40] sm:$0xff] }
  0x73   :  { %1293 = vmatpush2.msra.mxu0 %v1033_v34  ;;  %1364 = vmatpush2.msra.mxu1 %v1035_v35  ;;  %v101_v32 = vld [vmem:[%s6437_s3 + $0x208] sm:$0xff]  ;;  %v100_v34 = vld [vmem:[%s6437_s3 + $0x200] sm:$0xff] }
  0x74   :  { %1294 = vmatprep.subr.mxu0 %v1026_v36  ;;  %1365 = vmatprep.subr.mxu1 %v1028_v37  ;;  %v357_v33 = vld [vmem:[%s6437_s3 + $0xa08] sm:$0xff]  ;;  %v356_v35 = vld [vmem:[%s6437_s3 + $0xa00] sm:$0xff] }
  0x75   :  { %1295 = vmatpush2.msra.mxu0 %v1025_v38  ;;  %1366 = vmatpush2.msra.mxu1 %v1027_v39  ;;  %v93_v36 = vld [vmem:[%s6437_s3 + $0x1c8] sm:$0xff]  ;;  %v92_v38 = vld [vmem:[%s6437_s3 + $0x1c0] sm:$0xff] }
  0x76   :  { %1296 = vmatprep.subr.mxu0 %v1018_v40  ;;  %1367 = vmatprep.subr.mxu1 %v1020_v41  ;;  %v349_v37 = vld [vmem:[%s6437_s3 + $0x9c8] sm:$0xff]  ;;  %v348_v39 = vld [vmem:[%s6437_s3 + $0x9c0] sm:$0xff] }
  0x77   :  { %1297 = vmatpush2.msra.mxu0 %v1017_v42  ;;  %1368 = vmatpush2.msra.mxu1 %v1019_v43  ;;  %v85_v40 = vld [vmem:[%s6437_s3 + $0x188] sm:$0xff]  ;;  %v84_v42 = vld [vmem:[%s6437_s3 + $0x180] sm:$0xff] }
  0x78   :  { %1298 = vmatprep.subr.mxu0 %v1010_v44  ;;  %1369 = vmatprep.subr.mxu1 %v1012_v45  ;;  %v341_v41 = vld [vmem:[%s6437_s3 + $0x988] sm:$0xff]  ;;  %v340_v43 = vld [vmem:[%s6437_s3 + $0x980] sm:$0xff] }
  0x79   :  { %1299 = vmatpush2.msra.mxu0 %v1009_v46  ;;  %1370 = vmatpush2.msra.mxu1 %v1011_v47  ;;  %v77_v44 = vld [vmem:[%s6437_s3 + $0x148] sm:$0xff]  ;;  %v76_v46 = vld [vmem:[%s6437_s3 + $0x140] sm:$0xff] }
  0x7a   :  { %1300 = vmatprep.subr.mxu0 %v1002_v48  ;;  %1371 = vmatprep.subr.mxu1 %v1004_v49  ;;  %v333_v45 = vld [vmem:[%s6437_s3 + $0x948] sm:$0xff]  ;;  %v332_v47 = vld [vmem:[%s6437_s3 + $0x940] sm:$0xff] }
  0x7b   :  { %1301 = vmatpush2.msra.mxu0 %v1001_v50  ;;  %1372 = vmatpush2.msra.mxu1 %v1003_v51  ;;  %v69_v48 = vld [vmem:[%s6437_s3 + $0x108] sm:$0xff]  ;;  %v68_v50 = vld [vmem:[%s6437_s3 + $0x100] sm:$0xff] }
  0x7c   :  { %1302 = vmatprep.subr.mxu0 %v994_v52  ;;  %1373 = vmatprep.subr.mxu1 %v996_v53  ;;  %v325_v49 = vld [vmem:[%s6437_s3 + $0x908] sm:$0xff]  ;;  %v324_v51 = vld [vmem:[%s6437_s3 + $0x900] sm:$0xff] }
  0x7d   :  { %1303 = vmatpush2.msra.mxu0 %v993_v54  ;;  %1374 = vmatpush2.msra.mxu1 %v995_v55  ;;  %v61_v52 = vld [vmem:[%s6437_s3 + $0xc8] sm:$0xff]  ;;  %v60_v54 = vld [vmem:[%s6437_s3 + $0xc0] sm:$0xff] }
  0x7e   :  { %1304 = vmatprep.subr.mxu0 %v986_v56  ;;  %1375 = vmatprep.subr.mxu1 %v988_v57  ;;  %v317_v53 = vld [vmem:[%s6437_s3 + $0x8c8] sm:$0xff]  ;;  %v316_v55 = vld [vmem:[%s6437_s3 + $0x8c0] sm:$0xff] }
  0x7f   :  { %1305 = vmatpush2.msra.mxu0 %v985_v59  ;;  %1376 = vmatpush2.msra.mxu1 %v987_v60  ;;  %v53_v56 = vld [vmem:[%s6437_s3 + $0x88] sm:$0xff]  ;;  %v52_v59 = vld [vmem:[%s6437_s3 + $0x80] sm:$0xff] }
  0x80   :  { %1306 = vmatprep.subr.mxu0 %v978_v61  ;;  %1377 = vmatprep.subr.mxu1 %v980_v62  ;;  %v309_v57 = vld [vmem:[%s6437_s3 + $0x888] sm:$0xff]  ;;  %v308_v60 = vld [vmem:[%s6437_s3 + $0x880] sm:$0xff] }
  0x81   :  { %1307 = vmatpush2.msra.mxu0 %v977_v63  ;;  %1378 = vmatpush2.msra.mxu1 %v979_v0  ;;  %v45_v61 = vld [vmem:[%s6437_s3 + $0x48] sm:$0xff]  ;;  %v44_v63 = vld [vmem:[%s6437_s3 + $0x40] sm:$0xff] }
  0x82   :  { %1308 = vmatprep.subr.mxu0 %v970_v2  ;;  %1379 = vmatprep.subr.mxu1 %v972_v3  ;;  %v301_v62 = vld [vmem:[%s6437_s3 + $0x848] sm:$0xff]  ;;  %v300_v0 = vld [vmem:[%s6437_s3 + $0x840] sm:$0xff] }
  0x83   :  { %1309 = vmatpush2.msra.mxu0 %v969_v4  ;;  %1380 = vmatpush2.msra.mxu1 %v971_v5  ;;  %v37_v2 = vld [vmem:[%s6437_s3 + $0x8] sm:$0xff]  ;;  %v36_v4 = vld [vmem:[%s6437_s3] sm:$0xff] }
  0x84   :  { %1381 = vmatprep.mubr.f32.mxu1 %v3420_v1  ;;  %1310 = vmatprep.mubr.f32.mxu0 %v3420_v1  ;;  %v148_v1 = vld [vmem:[%s6437_s3 + $0x380] sm:$0xff]  ;;  %v293_v3 = vld [vmem:[%s6437_s3 + $0x808] sm:$0xff] }
  0x85   :  { %1382 = vmatmul.mubr.f32.vlgmr.msra.gmra.mxu1 %v3398_v58  ;;  %1432 = vmatprep.subr.mxu0 %v157_v6  ;;  %v292_v5 = vld [vmem:[%s6437_s3 + $0x800] sm:$0xff]  ;;  %v285_v6 = vld [vmem:[%s6437_s3 + $0x7c8] sm:$0xff] }
  0x86   :  { %1503 = vmatprep.subr.mxu1 %v413_v7  ;;  %1311 = vmatmul.mubr.f32.vlgmr.msra.gmra.mxu0 %v3398_v58  ;;  %v140_v58 = vld [vmem:[%s6437_s3 + $0x340] sm:$0xff]  ;;  %v541_v7 = vld [vmem:[%s6437_s3 + $0xfc8] sm:$0xff] }
  0x87   :  { %1433 = vmatpush1.msra.mxu0 %v156_v8  ;;  %1504 = vmatpush1.msra.mxu1 %v412_v9  ;;  %v284_v8 = vld [vmem:[%s6437_s3 + $0x7c0] sm:$0xff] }
  0x88   :  { %1434 = vmatprep.subr.mxu0 %v149_v10  ;;  %1505 = vmatprep.subr.mxu1 %v405_v11  ;;  %v540_v9 = vld [vmem:[%s6437_s3 + $0xfc0] sm:$0xff]  ;;  %v277_v10 = vld [vmem:[%s6437_s3 + $0x788] sm:$0xff] }
  0x89   :  { %1435 = vmatpush1.msra.mxu0 %v148_v1  ;;  %1506 = vmatpush1.msra.mxu1 %v404_v12  ;;  %v533_v11 = vld [vmem:[%s6437_s3 + $0xf88] sm:$0xff]  ;;  %v276_v1 = vld [vmem:[%s6437_s3 + $0x780] sm:$0xff] }
  0x8a   :  { %1436 = vmatprep.subr.mxu0 %v141_v13  ;;  %1507 = vmatprep.subr.mxu1 %v397_v14  ;;  %v532_v12 = vld [vmem:[%s6437_s3 + $0xf80] sm:$0xff]  ;;  %v269_v13 = vld [vmem:[%s6437_s3 + $0x748] sm:$0xff] }
  0x8b   :  { %1437 = vmatpush1.msra.mxu0 %v140_v58  ;;  %1508 = vmatpush1.msra.mxu1 %v396_v15  ;;  %v525_v14 = vld [vmem:[%s6437_s3 + $0xf48] sm:$0xff]  ;;  %v268_v58 = vld [vmem:[%s6437_s3 + $0x740] sm:$0xff] }
  0x8c   :  { %1438 = vmatprep.subr.mxu0 %v133_v16  ;;  %1509 = vmatprep.subr.mxu1 %v389_v17  ;;  %v524_v15 = vld [vmem:[%s6437_s3 + $0xf40] sm:$0xff]  ;;  %v261_v16 = vld [vmem:[%s6437_s3 + $0x708] sm:$0xff] }
  0x8d   :  { %1439 = vmatpush1.msra.mxu0 %v132_v18  ;;  %1510 = vmatpush1.msra.mxu1 %v388_v19  ;;  %v517_v17 = vld [vmem:[%s6437_s3 + $0xf08] sm:$0xff]  ;;  %v260_v18 = vld [vmem:[%s6437_s3 + $0x700] sm:$0xff] }
  0x8e   :  { %1440 = vmatprep.subr.mxu0 %v125_v20  ;;  %1511 = vmatprep.subr.mxu1 %v381_v21  ;;  %v516_v19 = vld [vmem:[%s6437_s3 + $0xf00] sm:$0xff]  ;;  %v253_v20 = vld [vmem:[%s6437_s3 + $0x6c8] sm:$0xff] }
  0x8f   :  { %1441 = vmatpush1.msra.mxu0 %v124_v22  ;;  %1512 = vmatpush1.msra.mxu1 %v380_v23  ;;  %v509_v21 = vld [vmem:[%s6437_s3 + $0xec8] sm:$0xff]  ;;  %v252_v22 = vld [vmem:[%s6437_s3 + $0x6c0] sm:$0xff] }
  0x90   :  { %1442 = vmatprep.subr.mxu0 %v117_v24  ;;  %1513 = vmatprep.subr.mxu1 %v373_v25  ;;  %v508_v23 = vld [vmem:[%s6437_s3 + $0xec0] sm:$0xff]  ;;  %v245_v24 = vld [vmem:[%s6437_s3 + $0x688] sm:$0xff] }
  0x91   :  { %1443 = vmatpush1.msra.mxu0 %v116_v26  ;;  %1514 = vmatpush1.msra.mxu1 %v372_v27  ;;  %v501_v25 = vld [vmem:[%s6437_s3 + $0xe88] sm:$0xff]  ;;  %v244_v26 = vld [vmem:[%s6437_s3 + $0x680] sm:$0xff] }
  0x92   :  { %1444 = vmatprep.subr.mxu0 %v109_v28  ;;  %1515 = vmatprep.subr.mxu1 %v365_v29  ;;  %v500_v27 = vld [vmem:[%s6437_s3 + $0xe80] sm:$0xff]  ;;  %v237_v28 = vld [vmem:[%s6437_s3 + $0x648] sm:$0xff] }
  0x93   :  { %1445 = vmatpush1.msra.mxu0 %v108_v30  ;;  %1516 = vmatpush1.msra.mxu1 %v364_v31  ;;  %v493_v29 = vld [vmem:[%s6437_s3 + $0xe48] sm:$0xff]  ;;  %v236_v30 = vld [vmem:[%s6437_s3 + $0x640] sm:$0xff] }
  0x94   :  { %1446 = vmatprep.subr.mxu0 %v101_v32  ;;  %1517 = vmatprep.subr.mxu1 %v357_v33  ;;  %v492_v31 = vld [vmem:[%s6437_s3 + $0xe40] sm:$0xff]  ;;  %v229_v32 = vld [vmem:[%s6437_s3 + $0x608] sm:$0xff] }
  0x95   :  { %1447 = vmatpush1.msra.mxu0 %v100_v34  ;;  %1518 = vmatpush1.msra.mxu1 %v356_v35  ;;  %v485_v33 = vld [vmem:[%s6437_s3 + $0xe08] sm:$0xff]  ;;  %v2970_v34 = vmov 1983009808  }
  0x96   :  { %1448 = vmatprep.subr.mxu0 %v93_v36  ;;  %1519 = vmatprep.subr.mxu1 %v349_v37  ;;  %v1392_v35 = vunpack.c.l.s4 %v2970_v34  ;;  %v1394_v36 = vlaneseq  ;;  %v228_v37 = vld [vmem:[%s6437_s3 + $0x600] sm:$0xff]  ;;  %v637_v34 = vld [vmem:[%s6437_s3 + $0x12c8] sm:$0xff] }
  0x97   :  { %1449 = vmatpush1.msra.mxu0 %v92_v38  ;;  %1520 = vmatpush1.msra.mxu1 %v348_v39  ;;  %v484_v38 = vld [vmem:[%s6437_s3 + $0xe00] sm:$0xff]  ;;  %v221_v39 = vld [vmem:[%s6437_s3 + $0x5c8] sm:$0xff] }
  0x98   :  { %1450 = vmatprep.subr.mxu0 %v85_v40  ;;  %1521 = vmatprep.subr.mxu1 %v341_v41  ;;  %v477_v40 = vld [vmem:[%s6437_s3 + $0xdc8] sm:$0xff]  ;;  %v220_v41 = vld [vmem:[%s6437_s3 + $0x5c0] sm:$0xff] }
  0x99   :  { %1451 = vmatpush1.msra.mxu0 %v84_v42  ;;  %1522 = vmatpush1.msra.mxu1 %v340_v43  ;;  %v476_v42 = vld [vmem:[%s6437_s3 + $0xdc0] sm:$0xff]  ;;  %v213_v43 = vld [vmem:[%s6437_s3 + $0x588] sm:$0xff] }
  0x9a   :  { %1452 = vmatprep.subr.mxu0 %v77_v44  ;;  %1523 = vmatprep.subr.mxu1 %v333_v45  ;;  %v469_v44 = vld [vmem:[%s6437_s3 + $0xd88] sm:$0xff]  ;;  %v1393_v45 = vunpack.c.0.s8 %v1392_v35 }
  0x9b   :  { %1453 = vmatpush1.msra.mxu0 %v76_v46  ;;  %1524 = vmatpush1.msra.mxu1 %v332_v47  ;;  %v4120_v46 = vshrl.u32 %v1394_v36, 7  ;;  %v212_v47 = vld [vmem:[%s6437_s3 + $0x580] sm:$0xff]  ;;  %v159_v36 = vld [vmem:[%s6437_s3 + $0x3d8] sm:$0xff] }
  0x9c   :  { %1454 = vmatprep.subr.mxu0 %v69_v48  ;;  %1525 = vmatprep.subr.mxu1 %v325_v49  ;;  %v468_v48 = vld [vmem:[%s6437_s3 + $0xd80] sm:$0xff]  ;;  %v205_v49 = vld [vmem:[%s6437_s3 + $0x548] sm:$0xff] }
  0x9d   :  { %1455 = vmatpush1.msra.mxu0 %v68_v50  ;;  %1526 = vmatpush1.msra.mxu1 %v324_v51  ;;  %v461_v50 = vld [vmem:[%s6437_s3 + $0xd48] sm:$0xff]  ;;  %v34_v51 = vld [vmem:[%s6434_s0] sm:$0xff] }
  0x9e   :  { %1456 = vmatprep.subr.mxu0 %v61_v52  ;;  %1527 = vmatprep.subr.mxu1 %v317_v53  ;;  %v204_v52 = vld [vmem:[%s6437_s3 + $0x540] sm:$0xff] }
  0x9f   :  { %1457 = vmatpush1.msra.mxu0 %v60_v54  ;;  %1528 = vmatpush1.msra.mxu1 %v316_v55  ;;  %v460_v53 = vld [vmem:[%s6437_s3 + $0xd40] sm:$0xff]  ;;  %v197_v54 = vld [vmem:[%s6437_s3 + $0x508] sm:$0xff] }
  0xa0   :  { %1458 = vmatprep.subr.mxu0 %v53_v56  ;;  %1529 = vmatprep.subr.mxu1 %v309_v57  ;;  %v453_v55 = vld [vmem:[%s6437_s3 + $0xd08] sm:$0xff]  ;;  %v4150_v56 = vsub.s32 %v1393_v45, %v4120_v46  ;;  %v196_v57 = vld [vmem:[%s6437_s3 + $0x500] sm:$0xff]  ;;  %v143_v45 = vld [vmem:[%s6437_s3 + $0x358] sm:$0xff] }
  0xa1   :  { %1459 = vmatpush1.msra.mxu0 %v52_v59  ;;  %1530 = vmatpush1.msra.mxu1 %v308_v60  ;;  %v452_v59 = vld [vmem:[%s6437_s3 + $0xd00] sm:$0xff]  ;;  %v1390_v60 = vcombine.high %v34_v51, %v34_v51 }
  0xa2   :  { %1460 = vmatprep.subr.mxu0 %v45_v61  ;;  %1531 = vmatprep.subr.mxu1 %v301_v62  ;;  %v189_v61 = vld [vmem:[%s6437_s3 + $0x4c8] sm:$0xff] }
  0xa3   :  { %1461 = vmatpush1.msra.mxu0 %v44_v63  ;;  %1532 = vmatpush1.msra.mxu1 %v300_v0  ;;  %v445_v62 = vld [vmem:[%s6437_s3 + $0xcc8] sm:$0xff]  ;;  %v188_v63 = vld [vmem:[%s6437_s3 + $0x4c0] sm:$0xff] }
  0xa4   :  { %1462 = vmatprep.subr.mxu0 %v37_v2  ;;  %1533 = vmatprep.subr.mxu1 %v293_v3  ;;  %v444_v0 = vld [vmem:[%s6437_s3 + $0xcc0] sm:$0xff]  ;;  %v181_v2 = vld [vmem:[%s6437_s3 + $0x488] sm:$0xff] }
  0xa5   :  { %1463 = vmatpush1.msra.mxu0 %v36_v4  ;;  %1534 = vmatpush1.msra.mxu1 %v292_v5  ;;  %v437_v3 = vld [vmem:[%s6437_s3 + $0xc88] sm:$0xff]  ;;  %v4177_v4 = vrot.slane %v34_v51, %v4150_v56  ;;  %v180_v5 = vld [vmem:[%s6437_s3 + $0x480] sm:$0xff] }
  0xa6   :  { %1464 = vmatprep.subr.mxu0 %v285_v6  ;;  %1535 = vmatprep.subr.mxu1 %v541_v7  ;;  %v436_v6 = vld [vmem:[%s6437_s3 + $0xc80] sm:$0xff]  ;;  %v4186_v7 = vrot.slane %v1390_v60, %v4150_v56  ;;  %v119_v60 = vld [vmem:[%s6437_s3 + $0x298] sm:$0xff] }
  0xa7   :  { %1465 = vmatpush2.msra.mxu0 %v284_v8  ;;  %1536 = vmatpush2.msra.mxu1 %v540_v9  ;;  %v173_v8 = vld [vmem:[%s6437_s3 + $0x448] sm:$0xff]  ;;  %v612_v51 = vld [vmem:[%s6437_s3 + $0x1200] sm:$0xff] }
  0xa8   :  { %1466 = vmatprep.subr.mxu0 %v277_v10  ;;  %1537 = vmatprep.subr.mxu1 %v533_v11  ;;  %v429_v9 = vld [vmem:[%s6437_s3 + $0xc48] sm:$0xff]  ;;  %v172_v10 = vld [vmem:[%s6437_s3 + $0x440] sm:$0xff] }
  0xa9   :  { %1467 = vmatpush2.msra.mxu0 %v276_v1  ;;  %1538 = vmatpush2.msra.mxu1 %v532_v12  ;;  %v428_v11 = vld [vmem:[%s6437_s3 + $0xc40] sm:$0xff]  ;;  %v165_v1 = vld [vmem:[%s6437_s3 + $0x408] sm:$0xff] }
  0xaa   :  { %1468 = vmatprep.subr.mxu0 %v269_v13  ;;  %1539 = vmatprep.subr.mxu1 %v525_v14  ;;  %v421_v12 = vld [vmem:[%s6437_s3 + $0xc08] sm:$0xff]  ;;  %v4208_v13 = vcombine.high %v4177_v4, %v4177_v4  ;;  %v164_v14 = vld [vmem:[%s6437_s3 + $0x400] sm:$0xff] }
  0xab   :  { %1469 = vmatpush2.msra.mxu0 %v268_v58  ;;  %1540 = vmatpush2.msra.mxu1 %v524_v15  ;;  %v4215_v58 = vcombine.high %v4186_v7, %v4186_v7  ;;  %v420_v15 = vld [vmem:[%s6437_s3 + $0xc00] sm:$0xff] }
  0xac   :  { %1470 = vmatprep.subr.mxu0 %v261_v16  ;;  %1541 = vmatprep.subr.mxu1 %v517_v17  ;;  %v669_v16 = vld [vmem:[%s6437_s3 + $0x13c8] sm:$0xff] }
  0xad   :  { %1471 = vmatpush2.msra.mxu0 %v260_v18  ;;  %1542 = vmatpush2.msra.mxu1 %v516_v19  ;;  %v829_v17 = vld [vmem:[%s6437_s3 + $0x18c8] sm:$0xff]  ;;  %v668_v18 = vld [vmem:[%s6437_s3 + $0x13c0] sm:$0xff] }
  0xae   :  { %1472 = vmatprep.subr.mxu0 %v253_v20  ;;  %1543 = vmatprep.subr.mxu1 %v509_v21  ;;  %v828_v19 = vld [vmem:[%s6437_s3 + $0x18c0] sm:$0xff]  ;;  %v4237_v20 = vld [vmem:[%s6434_s0 + $0x8] sm:$0x3f] }
  0xaf   :  { %1473 = vmatpush2.msra.mxu0 %v252_v22  ;;  %1544 = vmatpush2.msra.mxu1 %v508_v23  ;;  %v661_v21 = vld [vmem:[%s6437_s3 + $0x1388] sm:$0xff]  ;;  %v660_v23 = vld [vmem:[%s6437_s3 + $0x1380] sm:$0xff] }
  0xb0   :  { %1474 = vmatprep.subr.mxu0 %v245_v24  ;;  %1545 = vmatprep.subr.mxu1 %v501_v25  ;;  %v821_v22 = vld [vmem:[%s6437_s3 + $0x1888] sm:$0xff]  ;;  %v820_v24 = vld [vmem:[%s6437_s3 + $0x1880] sm:$0xff] }
  0xb1   :  { %1475 = vmatpush2.msra.mxu0 %v244_v26  ;;  %1546 = vmatpush2.msra.mxu1 %v500_v27  ;;  %v653_v25 = vld [vmem:[%s6437_s3 + $0x1348] sm:$0xff]  ;;  %v1407_v27 = vcombine.high %v4237_v20, %v4237_v20 }
  0xb2   :  { %1476 = vmatprep.subr.mxu0 %v237_v28  ;;  %1547 = vmatprep.subr.mxu1 %v493_v29  ;;  %v813_v26 = vld [vmem:[%s6437_s3 + $0x1848] sm:$0xff]  ;;  %v652_v28 = vld [vmem:[%s6437_s3 + $0x1340] sm:$0xff] }
  0xb3   :  { %1477 = vmatpush2.msra.mxu0 %v236_v30  ;;  %1548 = vmatpush2.msra.mxu1 %v492_v31  ;;  %v812_v29 = vld [vmem:[%s6437_s3 + $0x1840] sm:$0xff]  ;;  %v645_v30 = vld [vmem:[%s6437_s3 + $0x1308] sm:$0xff]  ;;  %v4283_v35 = vrot.slane %v1407_v27, %v4150_v56 }
  0xb4   :  { %1478 = vmatprep.subr.mxu0 %v229_v32  ;;  %1549 = vmatprep.subr.mxu1 %v485_v33  ;;  %v805_v31 = vld [vmem:[%s6437_s3 + $0x1808] sm:$0xff]  ;;  %v644_v32 = vld [vmem:[%s6437_s3 + $0x1300] sm:$0xff] }
  0xb5   :  { %1479 = vmatpush2.msra.mxu0 %v228_v37  ;;  %1550 = vmatpush2.msra.mxu1 %v484_v38  ;;  %v804_v33 = vld [vmem:[%s6437_s3 + $0x1800] sm:$0xff]  ;;  %v158_v38 = vld [vmem:[%s6437_s3 + $0x3d0] sm:$0xff]  ;;  %v797_v27 = vld [vmem:[%s6437_s3 + $0x17c8] sm:$0xff] }
  0xb6   :  { %1480 = vmatprep.subr.mxu0 %v221_v39  ;;  %1551 = vmatprep.subr.mxu1 %v477_v40  ;;  %v636_v37 = vld [vmem:[%s6437_s3 + $0x12c0] sm:$0xff]  ;;  %v2971_v39 = vmov 0.0   ;;  %v629_v40 = vld [vmem:[%s6437_s3 + $0x1288] sm:$0xff] }
  0xb7   :  { %1481 = vmatpush2.msra.mxu0 %v220_v41  ;;  %1552 = vmatpush2.msra.mxu1 %v476_v42  ;;  %v151_v41 = vld [vmem:[%s6437_s3 + $0x398] sm:$0xff]  ;;  %v628_v42 = vld [vmem:[%s6437_s3 + $0x1280] sm:$0xff] }
  0xb8   :  { %1482 = vmatprep.subr.mxu0 %v213_v43  ;;  %1553 = vmatprep.subr.mxu1 %v469_v44  ;;  %v150_v43 = vld [vmem:[%s6437_s3 + $0x390] sm:$0xff]  ;;  %v621_v44 = vld [vmem:[%s6437_s3 + $0x1248] sm:$0xff] }
  0xb9   :  { %1483 = vmatpush2.msra.mxu0 %v212_v47  ;;  %1554 = vmatpush2.msra.mxu1 %v468_v48  ;;  %v620_v47 = vld [vmem:[%s6437_s3 + $0x1240] sm:$0xff]  ;;  %v142_v48 = vld [vmem:[%s6437_s3 + $0x350] sm:$0xff] }
  0xba   :  { %1484 = vmatprep.subr.mxu0 %v205_v49  ;;  %1555 = vmatprep.subr.mxu1 %v461_v50  ;;  %v613_v49 = vld [vmem:[%s6437_s3 + $0x1208] sm:$0xff]  ;;  %v135_v50 = vld [vmem:[%s6437_s3 + $0x318] sm:$0xff] }
  0xbb   :  { %1485 = vmatpush2.msra.mxu0 %v204_v52  ;;  %1556 = vmatpush2.msra.mxu1 %v460_v53  ;;  %v134_v52 = vld [vmem:[%s6437_s3 + $0x310] sm:$0xff]  ;;  %v605_v53 = vld [vmem:[%s6437_s3 + $0x11c8] sm:$0xff] }
  0xbc   :  { %1486 = vmatprep.subr.mxu0 %v197_v54  ;;  %1557 = vmatprep.subr.mxu1 %v453_v55  ;;  %v127_v54 = vld [vmem:[%s6437_s3 + $0x2d8] sm:$0xff]  ;;  %v604_v55 = vld [vmem:[%s6437_s3 + $0x11c0] sm:$0xff] }
  0xbd   :  { %1487 = vmatpush2.msra.mxu0 %v196_v57  ;;  %1558 = vmatpush2.msra.mxu1 %v452_v59  ;;  %v126_v57 = vld [vmem:[%s6437_s3 + $0x2d0] sm:$0xff]  ;;  %v597_v59 = vld [vmem:[%s6437_s3 + $0x1188] sm:$0xff] }
  0xbe   :  { %1488 = vmatprep.subr.mxu0 %v189_v61  ;;  %1559 = vmatprep.subr.mxu1 %v445_v62  ;;  %v596_v61 = vld [vmem:[%s6437_s3 + $0x1180] sm:$0xff]  ;;  %v118_v62 = vld [vmem:[%s6437_s3 + $0x290] sm:$0xff] }
  0xbf   :  { %1489 = vmatpush2.msra.mxu0 %v188_v63  ;;  %1560 = vmatpush2.msra.mxu1 %v444_v0  ;;  %v589_v63 = vld [vmem:[%s6437_s3 + $0x1148] sm:$0xff]  ;;  %v111_v0 = vld [vmem:[%s6437_s3 + $0x258] sm:$0xff] }
  0xc0   :  { %1490 = vmatprep.subr.mxu0 %v181_v2  ;;  %1561 = vmatprep.subr.mxu1 %v437_v3  ;;  %v588_v2 = vld [vmem:[%s6437_s3 + $0x1140] sm:$0xff]  ;;  %v110_v3 = vld [vmem:[%s6437_s3 + $0x250] sm:$0xff] }
  0xc1   :  { %1491 = vmatpush2.msra.mxu0 %v180_v5  ;;  %1562 = vmatpush2.msra.mxu1 %v436_v6  ;;  %v581_v5 = vld [vmem:[%s6437_s3 + $0x1108] sm:$0xff]  ;;  %v103_v6 = vld [vmem:[%s6437_s3 + $0x218] sm:$0xff] }
  0xc2   :  { %1492 = vmatprep.subr.mxu0 %v173_v8  ;;  %1563 = vmatprep.subr.mxu1 %v429_v9  ;;  %v580_v8 = vld [vmem:[%s6437_s3 + $0x1100] sm:$0xff]  ;;  %v102_v9 = vld [vmem:[%s6437_s3 + $0x210] sm:$0xff] }
  0xc3   :  { %1493 = vmatpush2.msra.mxu0 %v172_v10  ;;  %1564 = vmatpush2.msra.mxu1 %v428_v11  ;;  %v573_v10 = vld [vmem:[%s6437_s3 + $0x10c8] sm:$0xff]  ;;  %v95_v11 = vld [vmem:[%s6437_s3 + $0x1d8] sm:$0xff] }
  0xc4   :  { %1494 = vmatprep.subr.mxu0 %v165_v1  ;;  %1565 = vmatprep.subr.mxu1 %v421_v12  ;;  %v572_v1 = vld [vmem:[%s6437_s3 + $0x10c0] sm:$0xff]  ;;  %v94_v12 = vld [vmem:[%s6437_s3 + $0x1d0] sm:$0xff] }
  0xc5   :  { %1495 = vmatpush2.msra.mxu0 %v164_v14  ;;  %1496 = vmatprep.mubr.f32.mxu0 %v4208_v13  ;;  %v565_v14 = vld [vmem:[%s6437_s3 + $0x1088] sm:$0xff] }
  0xc6   :  { %1566 = vmatpush2.msra.mxu1 %v420_v15  ;;  %1567 = vmatprep.mubr.f32.mxu1 %v4215_v58  ;;  %v87_v15 = vld [vmem:[%s6437_s3 + $0x198] sm:$0xff] }
  0xc7   :  { %1497 = vmatmul.mubr.f32.vlgmr.msra.gmra.mxu0 %v4177_v4  ;;  %1568 = vmatmul.mubr.f32.vlgmr.msra.gmra.mxu1 %v4186_v7 }
  0xc8   :  { %1574 = vmatprep.subr.mxu0 %v669_v16  ;;  %1669 = vmatprep.subr.mxu1 %v829_v17  ;;  %v564_v16 = vld [vmem:[%s6437_s3 + $0x1080] sm:$0xff]  ;;  %v86_v17 = vld [vmem:[%s6437_s3 + $0x190] sm:$0xff] }
  0xc9   :  { %1575 = vmatpush1.msra.mxu0 %v668_v18  ;;  %1670 = vmatpush1.msra.mxu1 %v828_v19  ;;  %v557_v18 = vld [vmem:[%s6437_s3 + $0x1048] sm:$0xff]  ;;  %v79_v19 = vld [vmem:[%s6437_s3 + $0x158] sm:$0xff] }
  0xca   :  { %1576 = vmatprep.subr.mxu0 %v661_v21  ;;  %1671 = vmatprep.subr.mxu1 %v821_v22  ;;  %v556_v21 = vld [vmem:[%s6437_s3 + $0x1040] sm:$0xff]  ;;  %v78_v22 = vld [vmem:[%s6437_s3 + $0x150] sm:$0xff] }
  0xcb   :  { %1577 = vmatpush1.msra.mxu0 %v660_v23  ;;  %1672 = vmatpush1.msra.mxu1 %v820_v24  ;;  %v549_v23 = vld [vmem:[%s6437_s3 + $0x1008] sm:$0xff]  ;;  %v71_v24 = vld [vmem:[%s6437_s3 + $0x118] sm:$0xff] }
  0xcc   :  { %1578 = vmatprep.subr.mxu0 %v653_v25  ;;  %1673 = vmatprep.subr.mxu1 %v813_v26  ;;  %v548_v25 = vld [vmem:[%s6437_s3 + $0x1000] sm:$0xff]  ;;  %v70_v26 = vld [vmem:[%s6437_s3 + $0x110] sm:$0xff] }
  0xcd   :  { %1579 = vmatpush1.msra.mxu0 %v652_v28  ;;  %1674 = vmatpush1.msra.mxu1 %v812_v29  ;;  %v63_v28 = vld [vmem:[%s6437_s3 + $0xd8] sm:$0xff]  ;;  %v796_v29 = vld [vmem:[%s6437_s3 + $0x17c0] sm:$0xff] }
  0xce   :  { %1580 = vmatprep.subr.mxu0 %v645_v30  ;;  %1675 = vmatprep.subr.mxu1 %v805_v31  ;;  %v62_v30 = vld [vmem:[%s6437_s3 + $0xd0] sm:$0xff]  ;;  %v789_v31 = vld [vmem:[%s6437_s3 + $0x1788] sm:$0xff] }
  0xcf   :  { %1581 = vmatpush1.msra.mxu0 %v644_v32  ;;  %1676 = vmatpush1.msra.mxu1 %v804_v33  ;;  %v55_v32 = vld [vmem:[%s6437_s3 + $0x98] sm:$0xff]  ;;  %v788_v33 = vld [vmem:[%s6437_s3 + $0x1780] sm:$0xff] }
  0xd0   :  { %1709 = vmatprep.mubr.f32.mxu1 %v2971_v39  ;;  %1582 = vmatprep.subr.mxu0 %v637_v34  ;;  %v54_v34 = vld [vmem:[%s6437_s3 + $0x90] sm:$0xff] }
  0xd1   :  { %2845 = vmatmul.mubr.msk.f32.vlgmr.msra.gmra.mxu1 %vm1429_vm0, %v4283_v35  ;;  %1716 = vmatprep.subr.mxu1 %v159_v36  ;;  %v781_v36 = vld [vmem:[%s6437_s3 + $0x1748] sm:$0xff] }
  0xd2   :  { %1583 = vmatpush1.msra.mxu0 %v636_v37  ;;  %1717 = vmatpush1.msra.mxu1 %v158_v38  ;;  %v47_v37 = vld [vmem:[%s6437_s3 + $0x58] sm:$0xff]  ;;  %v780_v38 = vld [vmem:[%s6437_s3 + $0x1740] sm:$0xff] }
  0xd3   :  { %1584 = vmatprep.subr.mxu0 %v629_v40  ;;  %1718 = vmatprep.subr.mxu1 %v151_v41  ;;  %v46_v40 = vld [vmem:[%s6437_s3 + $0x50] sm:$0xff]  ;;  %v773_v41 = vld [vmem:[%s6437_s3 + $0x1708] sm:$0xff] }
  0xd4   :  { %1585 = vmatpush1.msra.mxu0 %v628_v42  ;;  %1719 = vmatpush1.msra.mxu1 %v150_v43  ;;  %v39_v42 = vld [vmem:[%s6437_s3 + $0x18] sm:$0xff] }
  0xd5   :  { %1586 = vmatprep.subr.mxu0 %v621_v44  ;;  %1720 = vmatprep.subr.mxu1 %v143_v45 }
  0xd6   :  { %1587 = vmatpush1.msra.mxu0 %v620_v47  ;;  %1721 = vmatpush1.msra.mxu1 %v142_v48 }
  0xd7   :  { %1588 = vmatprep.subr.mxu0 %v613_v49  ;;  %1722 = vmatprep.subr.mxu1 %v135_v50 }
  0xd8   :  { %1589 = vmatpush1.msra.mxu0 %v612_v51  ;;  %1723 = vmatpush1.msra.mxu1 %v134_v52 }
  0xd9   :  { %1590 = vmatprep.subr.mxu0 %v605_v53  ;;  %1724 = vmatprep.subr.mxu1 %v127_v54 }
  0xda   :  { %1591 = vmatpush1.msra.mxu0 %v604_v55  ;;  %1725 = vmatpush1.msra.mxu1 %v126_v57 }
  0xdb   :  { %1592 = vmatprep.subr.mxu0 %v597_v59  ;;  %1726 = vmatprep.subr.mxu1 %v119_v60 }
  0xdc   :  { %1593 = vmatpush1.msra.mxu0 %v596_v61  ;;  %1727 = vmatpush1.msra.mxu1 %v118_v62 }
  0xdd   :  { %1594 = vmatprep.subr.mxu0 %v589_v63  ;;  %1728 = vmatprep.subr.mxu1 %v111_v0 }
  0xde   :  { %1595 = vmatpush1.msra.mxu0 %v588_v2  ;;  %1729 = vmatpush1.msra.mxu1 %v110_v3 }
  0xdf   :  { %1596 = vmatprep.subr.mxu0 %v581_v5  ;;  %1730 = vmatprep.subr.mxu1 %v103_v6 }
  0xe0   :  { %1597 = vmatpush1.msra.mxu0 %v580_v8  ;;  %1731 = vmatpush1.msra.mxu1 %v102_v9 }
  0xe1   :  { %1598 = vmatprep.subr.mxu0 %v573_v10  ;;  %1732 = vmatprep.subr.mxu1 %v95_v11 }
  0xe2   :  { %1599 = vmatpush1.msra.mxu0 %v572_v1  ;;  %1733 = vmatpush1.msra.mxu1 %v94_v12 }
  0xe3   :  { %1600 = vmatprep.subr.mxu0 %v565_v14  ;;  %1734 = vmatprep.subr.mxu1 %v87_v15 }
  0xe4   :  { %1601 = vmatpush1.msra.mxu0 %v564_v16  ;;  %1735 = vmatpush1.msra.mxu1 %v86_v17 }
  0xe5   :  { %1602 = vmatprep.subr.mxu0 %v557_v18  ;;  %1736 = vmatprep.subr.mxu1 %v79_v19 }
  0xe6   :  { %1603 = vmatpush1.msra.mxu0 %v556_v21  ;;  %1737 = vmatpush1.msra.mxu1 %v78_v22 }
  0xe7   :  { %1604 = vmatprep.subr.mxu0 %v549_v23  ;;  %1738 = vmatprep.subr.mxu1 %v71_v24 }
  0xe8   :  { %1605 = vmatpush1.msra.mxu0 %v548_v25  ;;  %1739 = vmatpush1.msra.mxu1 %v70_v26 }
  0xe9   :  { %1606 = vmatprep.subr.mxu0 %v797_v27  ;;  %1740 = vmatprep.subr.mxu1 %v63_v28 }
  0xea   :  { %1607 = vmatpush2.msra.mxu0 %v796_v29  ;;  %1741 = vmatpush1.msra.mxu1 %v62_v30 }
  0xeb   :  { %1608 = vmatprep.subr.mxu0 %v789_v31  ;;  %1742 = vmatprep.subr.mxu1 %v55_v32 }
  0xec   :  { %1609 = vmatpush2.msra.mxu0 %v788_v33  ;;  %1743 = vmatpush1.msra.mxu1 %v54_v34 }
  0xed   :  { %17 = vsyncpa [#allocation5], 0  ;;  %1610 = vmatprep.subr.mxu0 %v781_v36  ;;  %1744 = vmatprep.subr.mxu1 %v47_v37  ;;  %v772_v43 = vld [vmem:[%s6437_s3 + $0x1700] sm:$0xff]  ;;  %v38_v44 = vld [vmem:[%s6437_s3 + $0x10] sm:$0xff]  ;;  %v4587_v24 = vrot.slane %v4237_v20, %v4150_v56  ;;  %s2973_s13 = smov [#allocation4]  }
  0xee   :  { %1611 = vmatpush2.msra.mxu0 %v780_v38  ;;  %1745 = vmatpush1.msra.mxu1 %v46_v40  ;;  %v765_v45 = vld [vmem:[%s6437_s3 + $0x16c8] sm:$0xff]  ;;  %v287_v47 = vld [vmem:[%s6437_s3 + $0x7d8] sm:$0xff]  ;;  %v764_v48 = vld [vmem:[%s6437_s3 + $0x16c0] sm:$0xff]  ;;  %s2828_s14 = sshll.u32 %s2973_s13, 4  ;;  %s2829_s14 = int_to_ptr.vmem [resolvable:$true] %s2828_s14 }
  0xef   :  { %1612 = vmatprep.subr.mxu0 %v773_v41  ;;  %1746 = vmatprep.subr.mxu1 %v39_v42  ;;  %v286_v49 = vld [vmem:[%s6437_s3 + $0x7d0] sm:$0xff]  ;;  %v757_v50 = vld [vmem:[%s6437_s3 + $0x1688] sm:$0xff]  ;;  %v279_v51 = vld [vmem:[%s6437_s3 + $0x798] sm:$0xff]  ;;  %v4621_v33 = vcombine.high %v4587_v24, %v4587_v24 }
  0xf0   :  { %1613 = vmatpush2.msra.mxu0 %v772_v43  ;;  %1747 = vmatpush1.msra.mxu1 %v38_v44  ;;  %v756_v52 = vld [vmem:[%s6437_s3 + $0x1680] sm:$0xff]  ;;  %v278_v53 = vld [vmem:[%s6437_s3 + $0x790] sm:$0xff]  ;;  %v749_v54 = vld [vmem:[%s6437_s3 + $0x1648] sm:$0xff] }
  0xf1   :  { %1614 = vmatprep.subr.mxu0 %v765_v45  ;;  %1748 = vmatprep.subr.mxu1 %v287_v47  ;;  %v271_v55 = vld [vmem:[%s6437_s3 + $0x758] sm:$0xff]  ;;  %v748_v57 = vld [vmem:[%s6437_s3 + $0x1640] sm:$0xff]  ;;  %v270_v59 = vld [vmem:[%s6437_s3 + $0x750] sm:$0xff] }
  0xf2   :  { %1615 = vmatpush2.msra.mxu0 %v764_v48  ;;  %1749 = vmatpush2.msra.mxu1 %v286_v49  ;;  %v741_v60 = vld [vmem:[%s6437_s3 + $0x1608] sm:$0xff]  ;;  %v263_v61 = vld [vmem:[%s6437_s3 + $0x718] sm:$0xff]  ;;  %v740_v62 = vld [vmem:[%s6437_s3 + $0x1600] sm:$0xff] }
  0xf3   :  { %1616 = vmatprep.subr.mxu0 %v757_v50  ;;  %1750 = vmatprep.subr.mxu1 %v279_v51  ;;  %v262_v63 = vld [vmem:[%s6437_s3 + $0x710] sm:$0xff]  ;;  %v733_v0 = vld [vmem:[%s6437_s3 + $0x15c8] sm:$0xff]  ;;  %v255_v2 = vld [vmem:[%s6437_s3 + $0x6d8] sm:$0xff] }
  0xf4   :  { %1617 = vmatpush2.msra.mxu0 %v756_v52  ;;  %1751 = vmatpush2.msra.mxu1 %v278_v53  ;;  %v732_v3 = vld [vmem:[%s6437_s3 + $0x15c0] sm:$0xff]  ;;  %v254_v5 = vld [vmem:[%s6437_s3 + $0x6d0] sm:$0xff]  ;;  %v725_v6 = vld [vmem:[%s6437_s3 + $0x1588] sm:$0xff] }
  0xf5   :  { %1618 = vmatprep.subr.mxu0 %v749_v54  ;;  %1752 = vmatprep.subr.mxu1 %v271_v55  ;;  %v247_v8 = vld [vmem:[%s6437_s3 + $0x698] sm:$0xff]  ;;  %v724_v9 = vld [vmem:[%s6437_s3 + $0x1580] sm:$0xff]  ;;  %v246_v10 = vld [vmem:[%s6437_s3 + $0x690] sm:$0xff] }
  0xf6   :  { %1619 = vmatpush2.msra.mxu0 %v748_v57  ;;  %1753 = vmatpush2.msra.mxu1 %v270_v59  ;;  %v717_v11 = vld [vmem:[%s6437_s3 + $0x1548] sm:$0xff]  ;;  %v239_v1 = vld [vmem:[%s6437_s3 + $0x658] sm:$0xff]  ;;  %v716_v12 = vld [vmem:[%s6437_s3 + $0x1540] sm:$0xff] }
  0xf7   :  { %1620 = vmatprep.subr.mxu0 %v741_v60  ;;  %1754 = vmatprep.subr.mxu1 %v263_v61  ;;  %v238_v14 = vld [vmem:[%s6437_s3 + $0x650] sm:$0xff]  ;;  %v709_v15 = vld [vmem:[%s6437_s3 + $0x1508] sm:$0xff]  ;;  %v231_v16 = vld [vmem:[%s6437_s3 + $0x618] sm:$0xff] }
  0xf8   :  { %1621 = vmatpush2.msra.mxu0 %v740_v62  ;;  %1755 = vmatpush2.msra.mxu1 %v262_v63  ;;  %v708_v17 = vld [vmem:[%s6437_s3 + $0x1500] sm:$0xff]  ;;  %v230_v18 = vld [vmem:[%s6437_s3 + $0x610] sm:$0xff]  ;;  %v701_v19 = vld [vmem:[%s6437_s3 + $0x14c8] sm:$0xff] }
  0xf9   :  { %1622 = vmatprep.subr.mxu0 %v733_v0  ;;  %1756 = vmatprep.subr.mxu1 %v255_v2  ;;  %v223_v21 = vld [vmem:[%s6437_s3 + $0x5d8] sm:$0xff]  ;;  %v700_v22 = vld [vmem:[%s6437_s3 + $0x14c0] sm:$0xff]  ;;  %v222_v23 = vld [vmem:[%s6437_s3 + $0x5d0] sm:$0xff] }
  0xfa   :  { %1623 = vmatpush2.msra.mxu0 %v732_v3  ;;  %1757 = vmatpush2.msra.mxu1 %v254_v5  ;;  %v693_v25 = vld [vmem:[%s6437_s3 + $0x1488] sm:$0xff]  ;;  %v215_v26 = vld [vmem:[%s6437_s3 + $0x598] sm:$0xff]  ;;  %v692_v27 = vld [vmem:[%s6437_s3 + $0x1480] sm:$0xff] }
  0xfb   :  { %1624 = vmatprep.subr.mxu0 %v725_v6  ;;  %1758 = vmatprep.subr.mxu1 %v247_v8  ;;  %v214_v56 = vld [vmem:[%s6437_s3 + $0x590] sm:$0xff]  ;;  %v685_v20 = vld [vmem:[%s6437_s3 + $0x1448] sm:$0xff]  ;;  %v207_v28 = vld [vmem:[%s6437_s3 + $0x558] sm:$0xff] }
  0xfc   :  { %1625 = vmatpush2.msra.mxu0 %v724_v9  ;;  %1759 = vmatpush2.msra.mxu1 %v246_v10  ;;  %v684_v29 = vld [vmem:[%s6437_s3 + $0x1440] sm:$0xff]  ;;  %v206_v30 = vld [vmem:[%s6437_s3 + $0x550] sm:$0xff]  ;;  %v677_v31 = vld [vmem:[%s6437_s3 + $0x1408] sm:$0xff] }
  0xfd   :  { %1626 = vmatprep.subr.mxu0 %v717_v11  ;;  %1760 = vmatprep.subr.mxu1 %v239_v1  ;;  %v199_v32 = vld [vmem:[%s6437_s3 + $0x518] sm:$0xff]  ;;  %v676_v34 = vld [vmem:[%s6437_s3 + $0x1400] sm:$0xff]  ;;  %v198_v36 = vld [vmem:[%s6437_s3 + $0x510] sm:$0xff] }
  0xfe   :  { %1627 = vmatpush2.msra.mxu0 %v716_v12  ;;  %1761 = vmatpush2.msra.mxu1 %v238_v14  ;;  %v191_v37 = vld [vmem:[%s6437_s3 + $0x4d8] sm:$0xff]  ;;  %v190_v40 = vld [vmem:[%s6437_s3 + $0x4d0] sm:$0xff] }
  0xff   :  { %1628 = vmatprep.subr.mxu0 %v709_v15  ;;  %1762 = vmatprep.subr.mxu1 %v231_v16  ;;  %v415_v38 = vld [vmem:[%s6437_s3 + $0xbd8] sm:$0xff]  ;;  %v414_v41 = vld [vmem:[%s6437_s3 + $0xbd0] sm:$0xff] }
 0x100   :  { %1629 = vmatpush2.msra.mxu0 %v708_v17  ;;  %1763 = vmatpush2.msra.mxu1 %v230_v18  ;;  %v183_v42 = vld [vmem:[%s6437_s3 + $0x498] sm:$0xff]  ;;  %v182_v44 = vld [vmem:[%s6437_s3 + $0x490] sm:$0xff] }
 0x101   :  { %1630 = vmatprep.subr.mxu0 %v701_v19  ;;  %1764 = vmatprep.subr.mxu1 %v223_v21  ;;  %v407_v43 = vld [vmem:[%s6437_s3 + $0xb98] sm:$0xff]  ;;  %v406_v45 = vld [vmem:[%s6437_s3 + $0xb90] sm:$0xff] }
 0x102   :  { %1631 = vmatpush2.msra.mxu0 %v700_v22  ;;  %1765 = vmatpush2.msra.mxu1 %v222_v23  ;;  %v175_v47 = vld [vmem:[%s6437_s3 + $0x458] sm:$0xff]  ;;  %v174_v49 = vld [vmem:[%s6437_s3 + $0x450] sm:$0xff] }
 0x103   :  { %1632 = vmatprep.subr.mxu0 %v693_v25  ;;  %1766 = vmatprep.subr.mxu1 %v215_v26  ;;  %v399_v48 = vld [vmem:[%s6437_s3 + $0xb58] sm:$0xff]  ;;  %v398_v50 = vld [vmem:[%s6437_s3 + $0xb50] sm:$0xff] }
 0x104   :  { %1633 = vmatpush2.msra.mxu0 %v692_v27  ;;  %1767 = vmatpush2.msra.mxu1 %v214_v56  ;;  %v167_v51 = vld [vmem:[%s6437_s3 + $0x418] sm:$0xff]  ;;  %v166_v53 = vld [vmem:[%s6437_s3 + $0x410] sm:$0xff] }
 0x105   :  { %1634 = vmatprep.subr.mxu0 %v685_v20  ;;  %1768 = vmatprep.subr.mxu1 %v207_v28  ;;  %v391_v52 = vld [vmem:[%s6437_s3 + $0xb18] sm:$0xff]  ;;  %v390_v54 = vld [vmem:[%s6437_s3 + $0xb10] sm:$0xff] }
 0x106   :  { %1635 = vmatpush2.msra.mxu0 %v684_v29  ;;  %1769 = vmatpush2.msra.mxu1 %v206_v30  ;;  %v383_v55 = vld [vmem:[%s6437_s3 + $0xad8] sm:$0xff]  ;;  %v382_v59 = vld [vmem:[%s6437_s3 + $0xad0] sm:$0xff] }
 0x107   :  { %1636 = vmatprep.subr.mxu0 %v677_v31  ;;  %1770 = vmatprep.subr.mxu1 %v199_v32  ;;  %v671_v57 = vld [vmem:[%s6437_s3 + $0x13d8] sm:$0xff]  ;;  %v670_v60 = vld [vmem:[%s6437_s3 + $0x13d0] sm:$0xff] }
 0x108   :  { %1637 = vmatpush2.msra.mxu0 %v676_v34  ;;  %1638 = vmatprep.mubr.f32.mxu0 %v4621_v33  ;;  %v375_v61 = vld [vmem:[%s6437_s3 + $0xa98] sm:$0xff]  ;;  %v374_v63 = vld [vmem:[%s6437_s3 + $0xa90] sm:$0xff] }
 0x109   :  { %1771 = vmatpush2.msra.mxu1 %v198_v36  ;;  %1639 = vmatmul.mubr.f32.vlgmr.msra.gmra.mxu0 %v4587_v24  ;;  %v663_v62 = vld [vmem:[%s6437_s3 + $0x1398] sm:$0xff]  ;;  %v662_v0 = vld [vmem:[%s6437_s3 + $0x1390] sm:$0xff] }
 0x10a   :  { %1772 = vmatprep.subr.mxu1 %v191_v37  ;;  %1787 = vmatprep.subr.mxu0 %v415_v38  ;;  %v367_v2 = vld [vmem:[%s6437_s3 + $0xa58] sm:$0xff]  ;;  %v366_v5 = vld [vmem:[%s6437_s3 + $0xa50] sm:$0xff] }
 0x10b   :  { %1773 = vmatpush2.msra.mxu1 %v190_v40  ;;  %1788 = vmatpush1.msra.mxu0 %v414_v41  ;;  %v655_v3 = vld [vmem:[%s6437_s3 + $0x1358] sm:$0xff]  ;;  %v654_v6 = vld [vmem:[%s6437_s3 + $0x1350] sm:$0xff] }
 0x10c   :  { %1774 = vmatprep.subr.mxu1 %v183_v42  ;;  %1789 = vmatprep.subr.mxu0 %v407_v43  ;;  %v359_v8 = vld [vmem:[%s6437_s3 + $0xa18] sm:$0xff]  ;;  %v358_v10 = vld [vmem:[%s6437_s3 + $0xa10] sm:$0xff] }
 0x10d   :  { %1775 = vmatpush2.msra.mxu1 %v182_v44  ;;  %1790 = vmatpush1.msra.mxu0 %v406_v45  ;;  %v647_v9 = vld [vmem:[%s6437_s3 + $0x1318] sm:$0xff]  ;;  %v646_v11 = vld [vmem:[%s6437_s3 + $0x1310] sm:$0xff] }
 0x10e   :  { %1776 = vmatprep.subr.mxu1 %v175_v47  ;;  %1791 = vmatprep.subr.mxu0 %v399_v48  ;;  %v351_v1 = vld [vmem:[%s6437_s3 + $0x9d8] sm:$0xff]  ;;  %v350_v14 = vld [vmem:[%s6437_s3 + $0x9d0] sm:$0xff] }
 0x10f   :  { %1777 = vmatpush2.msra.mxu1 %v174_v49  ;;  %1792 = vmatpush1.msra.mxu0 %v398_v50  ;;  %v639_v12 = vld [vmem:[%s6437_s3 + $0x12d8] sm:$0xff]  ;;  %v638_v15 = vld [vmem:[%s6437_s3 + $0x12d0] sm:$0xff] }
 0x110   :  { %1778 = vmatprep.subr.mxu1 %v167_v51  ;;  %1793 = vmatprep.subr.mxu0 %v391_v52  ;;  %v343_v16 = vld [vmem:[%s6437_s3 + $0x998] sm:$0xff]  ;;  %v342_v18 = vld [vmem:[%s6437_s3 + $0x990] sm:$0xff] }
 0x111   :  { %1779 = vmatpush2.msra.mxu1 %v166_v53  ;;  %1780 = vmatprep.mubr.f32.mxu1 %v4208_v13  ;;  %v631_v17 = vld [vmem:[%s6437_s3 + $0x1298] sm:$0xff]  ;;  %v630_v19 = vld [vmem:[%s6437_s3 + $0x1290] sm:$0xff] }
 0x112   :  { %1794 = vmatpush1.msra.mxu0 %v390_v54  ;;  %1781 = vmatmul.mubr.f32.vlgmr.msra.gmra.mxu1 %v4177_v4  ;;  %v335_v21 = vld [vmem:[%s6437_s3 + $0x958] sm:$0xff]  ;;  %v334_v23 = vld [vmem:[%s6437_s3 + $0x950] sm:$0xff] }
 0x113   :  { %1795 = vmatprep.subr.mxu0 %v383_v55  ;;  %1858 = vmatprep.subr.mxu1 %v671_v57  ;;  %v623_v22 = vld [vmem:[%s6437_s3 + $0x1258] sm:$0xff]  ;;  %v622_v25 = vld [vmem:[%s6437_s3 + $0x1250] sm:$0xff] }
 0x114   :  { %1796 = vmatpush1.msra.mxu0 %v382_v59  ;;  %1859 = vmatpush1.msra.mxu1 %v670_v60  ;;  %v327_v26 = vld [vmem:[%s6437_s3 + $0x918] sm:$0xff]  ;;  %v326_v56 = vld [vmem:[%s6437_s3 + $0x910] sm:$0xff] }
 0x115   :  { %1797 = vmatprep.subr.mxu0 %v375_v61  ;;  %1860 = vmatprep.subr.mxu1 %v663_v62  ;;  %v615_v27 = vld [vmem:[%s6437_s3 + $0x1218] sm:$0xff]  ;;  %v614_v20 = vld [vmem:[%s6437_s3 + $0x1210] sm:$0xff] }
 0x116   :  { %1798 = vmatpush1.msra.mxu0 %v374_v63  ;;  %1861 = vmatpush1.msra.mxu1 %v662_v0  ;;  %v319_v28 = vld [vmem:[%s6437_s3 + $0x8d8] sm:$0xff]  ;;  %v318_v30 = vld [vmem:[%s6437_s3 + $0x8d0] sm:$0xff] }
 0x117   :  { %1799 = vmatprep.subr.mxu0 %v367_v2  ;;  %1862 = vmatprep.subr.mxu1 %v655_v3  ;;  %v607_v29 = vld [vmem:[%s6437_s3 + $0x11d8] sm:$0xff]  ;;  %v606_v31 = vld [vmem:[%s6437_s3 + $0x11d0] sm:$0xff] }
 0x118   :  { %1800 = vmatpush1.msra.mxu0 %v366_v5  ;;  %1863 = vmatpush1.msra.mxu1 %v654_v6  ;;  %v311_v32 = vld [vmem:[%s6437_s3 + $0x898] sm:$0xff]  ;;  %v310_v36 = vld [vmem:[%s6437_s3 + $0x890] sm:$0xff] }
 0x119   :  { %1801 = vmatprep.subr.mxu0 %v359_v8  ;;  %1864 = vmatprep.subr.mxu1 %v647_v9  ;;  %v599_v34 = vld [vmem:[%s6437_s3 + $0x1198] sm:$0xff]  ;;  %v598_v37 = vld [vmem:[%s6437_s3 + $0x1190] sm:$0xff] }
 0x11a   :  { %1802 = vmatpush1.msra.mxu0 %v358_v10  ;;  %1865 = vmatpush1.msra.mxu1 %v646_v11  ;;  %v303_v38 = vld [vmem:[%s6437_s3 + $0x858] sm:$0xff]  ;;  %v302_v41 = vld [vmem:[%s6437_s3 + $0x850] sm:$0xff] }
 0x11b   :  { %1803 = vmatprep.subr.mxu0 %v351_v1  ;;  %1866 = vmatprep.subr.mxu1 %v639_v12  ;;  %v591_v40 = vld [vmem:[%s6437_s3 + $0x1158] sm:$0xff]  ;;  %v590_v42 = vld [vmem:[%s6437_s3 + $0x1150] sm:$0xff] }
 0x11c   :  { %1804 = vmatpush1.msra.mxu0 %v350_v14  ;;  %1867 = vmatpush1.msra.mxu1 %v638_v15  ;;  %v295_v43 = vld [vmem:[%s6437_s3 + $0x818] sm:$0xff]  ;;  %v294_v45 = vld [vmem:[%s6437_s3 + $0x810] sm:$0xff] }
 0x11d   :  { %1805 = vmatprep.subr.mxu0 %v343_v16  ;;  %1868 = vmatprep.subr.mxu1 %v631_v17  ;;  %v583_v44 = vld [vmem:[%s6437_s3 + $0x1118] sm:$0xff]  ;;  %v582_v47 = vld [vmem:[%s6437_s3 + $0x1110] sm:$0xff] }
 0x11e   :  { %1806 = vmatpush1.msra.mxu0 %v342_v18  ;;  %1869 = vmatpush1.msra.mxu1 %v630_v19  ;;  %v543_v48 = vld [vmem:[%s6437_s3 + $0xfd8] sm:$0xff]  ;;  %v542_v50 = vld [vmem:[%s6437_s3 + $0xfd0] sm:$0xff] }
 0x11f   :  { %1807 = vmatprep.subr.mxu0 %v335_v21  ;;  %1870 = vmatprep.subr.mxu1 %v623_v22  ;;  %v575_v49 = vld [vmem:[%s6437_s3 + $0x10d8] sm:$0xff]  ;;  %v574_v51 = vld [vmem:[%s6437_s3 + $0x10d0] sm:$0xff] }
 0x120   :  { %1808 = vmatpush1.msra.mxu0 %v334_v23  ;;  %1871 = vmatpush1.msra.mxu1 %v622_v25  ;;  %v535_v52 = vld [vmem:[%s6437_s3 + $0xf98] sm:$0xff]  ;;  %v534_v54 = vld [vmem:[%s6437_s3 + $0xf90] sm:$0xff] }
 0x121   :  { %1809 = vmatprep.subr.mxu0 %v327_v26  ;;  %1872 = vmatprep.subr.mxu1 %v615_v27  ;;  %v567_v53 = vld [vmem:[%s6437_s3 + $0x1098] sm:$0xff]  ;;  %v566_v55 = vld [vmem:[%s6437_s3 + $0x1090] sm:$0xff] }
 0x122   :  { %1810 = vmatpush1.msra.mxu0 %v326_v56  ;;  %1873 = vmatpush1.msra.mxu1 %v614_v20  ;;  %v527_v57 = vld [vmem:[%s6437_s3 + $0xf58] sm:$0xff]  ;;  %v526_v60 = vld [vmem:[%s6437_s3 + $0xf50] sm:$0xff] }
 0x123   :  { %1811 = vmatprep.subr.mxu0 %v319_v28  ;;  %1874 = vmatprep.subr.mxu1 %v607_v29  ;;  %v559_v59 = vld [vmem:[%s6437_s3 + $0x1058] sm:$0xff]  ;;  %v558_v61 = vld [vmem:[%s6437_s3 + $0x1050] sm:$0xff] }
 0x124   :  { %1812 = vmatpush1.msra.mxu0 %v318_v30  ;;  %1875 = vmatpush1.msra.mxu1 %v606_v31  ;;  %v519_v62 = vld [vmem:[%s6437_s3 + $0xf18] sm:$0xff]  ;;  %v518_v0 = vld [vmem:[%s6437_s3 + $0xf10] sm:$0xff] }
 0x125   :  { %1813 = vmatprep.subr.mxu0 %v311_v32  ;;  %1876 = vmatprep.subr.mxu1 %v599_v34  ;;  %v551_v63 = vld [vmem:[%s6437_s3 + $0x1018] sm:$0xff]  ;;  %v550_v2 = vld [vmem:[%s6437_s3 + $0x1010] sm:$0xff] }
 0x126   :  { %1814 = vmatpush1.msra.mxu0 %v310_v36  ;;  %1877 = vmatpush1.msra.mxu1 %v598_v37  ;;  %v511_v3 = vld [vmem:[%s6437_s3 + $0xed8] sm:$0xff]  ;;  %v510_v6 = vld [vmem:[%s6437_s3 + $0xed0] sm:$0xff] }
 0x127   :  { %1815 = vmatprep.subr.mxu0 %v303_v38  ;;  %1878 = vmatprep.subr.mxu1 %v591_v40  ;;  %v799_v5 = vld [vmem:[%s6437_s3 + $0x17d8] sm:$0xff]  ;;  %v798_v8 = vld [vmem:[%s6437_s3 + $0x17d0] sm:$0xff] }
 0x128   :  { %1816 = vmatpush1.msra.mxu0 %v302_v41  ;;  %1879 = vmatpush1.msra.mxu1 %v590_v42  ;;  %v503_v9 = vld [vmem:[%s6437_s3 + $0xe98] sm:$0xff]  ;;  %v502_v11 = vld [vmem:[%s6437_s3 + $0xe90] sm:$0xff] }
 0x129   :  { %1817 = vmatprep.subr.mxu0 %v295_v43  ;;  %1880 = vmatprep.subr.mxu1 %v583_v44  ;;  %v791_v10 = vld [vmem:[%s6437_s3 + $0x1798] sm:$0xff]  ;;  %v790_v1 = vld [vmem:[%s6437_s3 + $0x1790] sm:$0xff] }
 0x12a   :  { %1818 = vmatpush1.msra.mxu0 %v294_v45  ;;  %1881 = vmatpush1.msra.mxu1 %v582_v47  ;;  %v495_v12 = vld [vmem:[%s6437_s3 + $0xe58] sm:$0xff]  ;;  %v494_v15 = vld [vmem:[%s6437_s3 + $0xe50] sm:$0xff] }
 0x12b   :  { %1819 = vmatprep.subr.mxu0 %v543_v48  ;;  %1882 = vmatprep.subr.mxu1 %v575_v49  ;;  %v783_v14 = vld [vmem:[%s6437_s3 + $0x1758] sm:$0xff]  ;;  %v782_v16 = vld [vmem:[%s6437_s3 + $0x1750] sm:$0xff] }
 0x12c   :  { %1820 = vmatpush2.msra.mxu0 %v542_v50  ;;  %1883 = vmatpush1.msra.mxu1 %v574_v51  ;;  %v487_v17 = vld [vmem:[%s6437_s3 + $0xe18] sm:$0xff]  ;;  %v486_v19 = vld [vmem:[%s6437_s3 + $0xe10] sm:$0xff] }
 0x12d   :  { %1821 = vmatprep.subr.mxu0 %v535_v52  ;;  %1884 = vmatprep.subr.mxu1 %v567_v53  ;;  %v775_v18 = vld [vmem:[%s6437_s3 + $0x1718] sm:$0xff]  ;;  %v774_v21 = vld [vmem:[%s6437_s3 + $0x1710] sm:$0xff] }
 0x12e   :  { %1822 = vmatpush2.msra.mxu0 %v534_v54  ;;  %1885 = vmatpush1.msra.mxu1 %v566_v55  ;;  %v479_v22 = vld [vmem:[%s6437_s3 + $0xdd8] sm:$0xff]  ;;  %v478_v25 = vld [vmem:[%s6437_s3 + $0xdd0] sm:$0xff] }
 0x12f   :  { %1823 = vmatprep.subr.mxu0 %v527_v57  ;;  %1886 = vmatprep.subr.mxu1 %v559_v59  ;;  %v767_v23 = vld [vmem:[%s6437_s3 + $0x16d8] sm:$0xff]  ;;  %v766_v26 = vld [vmem:[%s6437_s3 + $0x16d0] sm:$0xff] }
 0x130   :  { %1824 = vmatpush2.msra.mxu0 %v526_v60  ;;  %1887 = vmatpush1.msra.mxu1 %v558_v61  ;;  %v471_v27 = vld [vmem:[%s6437_s3 + $0xd98] sm:$0xff]  ;;  %v470_v20 = vld [vmem:[%s6437_s3 + $0xd90] sm:$0xff]  ;;  %v161_v60 = vld [vmem:[%s6437_s3 + $0x3e8] sm:$0xff] }
 0x131   :  { %1825 = vmatprep.subr.mxu0 %v519_v62  ;;  %1888 = vmatprep.subr.mxu1 %v551_v63  ;;  %v759_v56 = vld [vmem:[%s6437_s3 + $0x1698] sm:$0xff]  ;;  %v758_v28 = vld [vmem:[%s6437_s3 + $0x1690] sm:$0xff]  ;;  %v160_v62 = vld [vmem:[%s6437_s3 + $0x3e0] sm:$0xff] }
 0x132   :  { %1826 = vmatpush2.msra.mxu0 %v518_v0  ;;  %1889 = vmatpush1.msra.mxu1 %v550_v2  ;;  %v463_v29 = vld [vmem:[%s6437_s3 + $0xd58] sm:$0xff]  ;;  %v462_v31 = vld [vmem:[%s6437_s3 + $0xd50] sm:$0xff]  ;;  %v153_v0 = vld [vmem:[%s6437_s3 + $0x3a8] sm:$0xff] }
 0x133   :  { %1827 = vmatprep.subr.mxu0 %v511_v3  ;;  %1890 = vmatprep.subr.mxu1 %v799_v5  ;;  %v751_v30 = vld [vmem:[%s6437_s3 + $0x1658] sm:$0xff]  ;;  %v750_v32 = vld [vmem:[%s6437_s3 + $0x1650] sm:$0xff]  ;;  %v152_v3 = vld [vmem:[%s6437_s3 + $0x3a0] sm:$0xff] }
 0x134   :  { %1828 = vmatpush2.msra.mxu0 %v510_v6  ;;  %1891 = vmatpush2.msra.mxu1 %v798_v8  ;;  %v455_v34 = vld [vmem:[%s6437_s3 + $0xd18] sm:$0xff]  ;;  %v454_v37 = vld [vmem:[%s6437_s3 + $0xd10] sm:$0xff]  ;;  %v145_v6 = vld [vmem:[%s6437_s3 + $0x368] sm:$0xff] }
 0x135   :  { %1829 = vmatprep.subr.mxu0 %v503_v9  ;;  %1892 = vmatprep.subr.mxu1 %v791_v10  ;;  %v743_v36 = vld [vmem:[%s6437_s3 + $0x1618] sm:$0xff]  ;;  %v742_v38 = vld [vmem:[%s6437_s3 + $0x1610] sm:$0xff]  ;;  %v144_v9 = vld [vmem:[%s6437_s3 + $0x360] sm:$0xff] }
 0x136   :  { %1830 = vmatpush2.msra.mxu0 %v502_v11  ;;  %1893 = vmatpush2.msra.mxu1 %v790_v1  ;;  %v447_v40 = vld [vmem:[%s6437_s3 + $0xcd8] sm:$0xff]  ;;  %v446_v42 = vld [vmem:[%s6437_s3 + $0xcd0] sm:$0xff]  ;;  %v137_v11 = vld [vmem:[%s6437_s3 + $0x328] sm:$0xff] }
 0x137   :  { %1831 = vmatprep.subr.mxu0 %v495_v12  ;;  %1894 = vmatprep.subr.mxu1 %v783_v14  ;;  %v735_v41 = vld [vmem:[%s6437_s3 + $0x15d8] sm:$0xff]  ;;  %v734_v43 = vld [vmem:[%s6437_s3 + $0x15d0] sm:$0xff]  ;;  %v136_v12 = vld [vmem:[%s6437_s3 + $0x320] sm:$0xff] }
 0x138   :  { %1832 = vmatpush2.msra.mxu0 %v494_v15  ;;  %1895 = vmatpush2.msra.mxu1 %v782_v16  ;;  %v439_v44 = vld [vmem:[%s6437_s3 + $0xc98] sm:$0xff]  ;;  %v438_v47 = vld [vmem:[%s6437_s3 + $0xc90] sm:$0xff]  ;;  %v129_v15 = vld [vmem:[%s6437_s3 + $0x2e8] sm:$0xff] }
 0x139   :  { %1833 = vmatprep.subr.mxu0 %v487_v17  ;;  %1896 = vmatprep.subr.mxu1 %v775_v18  ;;  %v727_v45 = vld [vmem:[%s6437_s3 + $0x1598] sm:$0xff]  ;;  %v726_v48 = vld [vmem:[%s6437_s3 + $0x1590] sm:$0xff]  ;;  %v128_v17 = vld [vmem:[%s6437_s3 + $0x2e0] sm:$0xff] }
 0x13a   :  { %1834 = vmatpush2.msra.mxu0 %v486_v19  ;;  %1897 = vmatpush2.msra.mxu1 %v774_v21  ;;  %v431_v49 = vld [vmem:[%s6437_s3 + $0xc58] sm:$0xff]  ;;  %v430_v51 = vld [vmem:[%s6437_s3 + $0xc50] sm:$0xff]  ;;  %v121_v19 = vld [vmem:[%s6437_s3 + $0x2a8] sm:$0xff] }
 0x13b   :  { %1835 = vmatprep.subr.mxu0 %v479_v22  ;;  %1898 = vmatprep.subr.mxu1 %v767_v23  ;;  %v719_v50 = vld [vmem:[%s6437_s3 + $0x1558] sm:$0xff]  ;;  %v718_v52 = vld [vmem:[%s6437_s3 + $0x1550] sm:$0xff]  ;;  %v120_v22 = vld [vmem:[%s6437_s3 + $0x2a0] sm:$0xff] }
 0x13c   :  { %1836 = vmatpush2.msra.mxu0 %v478_v25  ;;  %1899 = vmatpush2.msra.mxu1 %v766_v26  ;;  %v423_v53 = vld [vmem:[%s6437_s3 + $0xc18] sm:$0xff]  ;;  %v422_v55 = vld [vmem:[%s6437_s3 + $0xc10] sm:$0xff]  ;;  %v113_v25 = vld [vmem:[%s6437_s3 + $0x268] sm:$0xff] }
 0x13d   :  { %1837 = vmatprep.subr.mxu0 %v471_v27  ;;  %1900 = vmatprep.subr.mxu1 %v759_v56  ;;  %v711_v54 = vld [vmem:[%s6437_s3 + $0x1518] sm:$0xff]  ;;  %v710_v57 = vld [vmem:[%s6437_s3 + $0x1510] sm:$0xff]  ;;  %v112_v27 = vld [vmem:[%s6437_s3 + $0x260] sm:$0xff] }
 0x13e   :  { %1838 = vmatpush2.msra.mxu0 %v470_v20  ;;  %1901 = vmatpush2.msra.mxu1 %v758_v28  ;;  %v703_v59 = vld [vmem:[%s6437_s3 + $0x14d8] sm:$0xff]  ;;  %v702_v61 = vld [vmem:[%s6437_s3 + $0x14d0] sm:$0xff]  ;;  %v105_v20 = vld [vmem:[%s6437_s3 + $0x228] sm:$0xff] }
 0x13f   :  { %1839 = vmatprep.subr.mxu0 %v463_v29  ;;  %1902 = vmatprep.subr.mxu1 %v751_v30  ;;  %v695_v63 = vld [vmem:[%s6437_s3 + $0x1498] sm:$0xff]  ;;  %v694_v2 = vld [vmem:[%s6437_s3 + $0x1490] sm:$0xff]  ;;  %v104_v29 = vld [vmem:[%s6437_s3 + $0x220] sm:$0xff] }
 0x140   :  { %1840 = vmatpush2.msra.mxu0 %v462_v31  ;;  %1903 = vmatpush2.msra.mxu1 %v750_v32  ;;  %v687_v5 = vld [vmem:[%s6437_s3 + $0x1458] sm:$0xff]  ;;  %v686_v8 = vld [vmem:[%s6437_s3 + $0x1450] sm:$0xff]  ;;  %v97_v30 = vld [vmem:[%s6437_s3 + $0x1e8] sm:$0xff] }
 0x141   :  { %1841 = vmatprep.subr.mxu0 %v455_v34  ;;  %1904 = vmatprep.subr.mxu1 %v743_v36  ;;  %v679_v10 = vld [vmem:[%s6437_s3 + $0x1418] sm:$0xff]  ;;  %v678_v1 = vld [vmem:[%s6437_s3 + $0x1410] sm:$0xff]  ;;  %v417_v31 = vld [vmem:[%s6437_s3 + $0xbe8] sm:$0xff] }
 0x142   :  { %1842 = vmatpush2.msra.mxu0 %v454_v37  ;;  %1905 = vmatpush2.msra.mxu1 %v742_v38  ;;  %v831_v14 = vld [vmem:[%s6437_s3 + $0x18d8] sm:$0xff]  ;;  %v830_v16 = vld [vmem:[%s6437_s3 + $0x18d0] sm:$0xff]  ;;  %v96_v32 = vld [vmem:[%s6437_s3 + $0x1e0] sm:$0xff] }
 0x143   :  { %1843 = vmatprep.subr.mxu0 %v447_v40  ;;  %1906 = vmatprep.subr.mxu1 %v735_v41  ;;  %v823_v18 = vld [vmem:[%s6437_s3 + $0x1898] sm:$0xff]  ;;  %v822_v21 = vld [vmem:[%s6437_s3 + $0x1890] sm:$0xff]  ;;  %v416_v34 = vld [vmem:[%s6437_s3 + $0xbe0] sm:$0xff] }
 0x144   :  { %1844 = vmatpush2.msra.mxu0 %v446_v42  ;;  %1907 = vmatpush2.msra.mxu1 %v734_v43  ;;  %v815_v23 = vld [vmem:[%s6437_s3 + $0x1858] sm:$0xff]  ;;  %v814_v26 = vld [vmem:[%s6437_s3 + $0x1850] sm:$0xff]  ;;  %v89_v36 = vld [vmem:[%s6437_s3 + $0x1a8] sm:$0xff] }
 0x145   :  { %1845 = vmatprep.subr.mxu0 %v439_v44  ;;  %1908 = vmatprep.subr.mxu1 %v727_v45  ;;  %v807_v56 = vld [vmem:[%s6437_s3 + $0x1818] sm:$0xff]  ;;  %v806_v28 = vld [vmem:[%s6437_s3 + $0x1810] sm:$0xff]  ;;  %v409_v37 = vld [vmem:[%s6437_s3 + $0xba8] sm:$0xff] }
 0x146   :  { %1846 = vmatpush2.msra.mxu0 %v438_v47  ;;  %1909 = vmatpush2.msra.mxu1 %v726_v48  ;;  %v88_v38 = vld [vmem:[%s6437_s3 + $0x1a0] sm:$0xff]  ;;  %v81_v41 = vld [vmem:[%s6437_s3 + $0x168] sm:$0xff] }
 0x147   :  { %1847 = vmatprep.subr.mxu0 %v431_v49  ;;  %1910 = vmatprep.subr.mxu1 %v719_v50  ;;  %v408_v40 = vld [vmem:[%s6437_s3 + $0xba0] sm:$0xff]  ;;  %v401_v42 = vld [vmem:[%s6437_s3 + $0xb68] sm:$0xff] }
 0x148   :  { %1848 = vmatpush2.msra.mxu0 %v430_v51  ;;  %1911 = vmatpush2.msra.mxu1 %v718_v52  ;;  %v80_v43 = vld [vmem:[%s6437_s3 + $0x160] sm:$0xff]  ;;  %v73_v45 = vld [vmem:[%s6437_s3 + $0x128] sm:$0xff] }
 0x149   :  { %1849 = vmatprep.subr.mxu0 %v423_v53  ;;  %1912 = vmatprep.subr.mxu1 %v711_v54  ;;  %v400_v44 = vld [vmem:[%s6437_s3 + $0xb60] sm:$0xff]  ;;  %v393_v47 = vld [vmem:[%s6437_s3 + $0xb28] sm:$0xff] }
 0x14a   :  { %1850 = vmatpush2.msra.mxu0 %v422_v55  ;;  %1851 = vmatprep.mubr.f32.mxu0 %v4215_v58  ;;  %v72_v48 = vld [vmem:[%s6437_s3 + $0x120] sm:$0xff]  ;;  %v65_v50 = vld [vmem:[%s6437_s3 + $0xe8] sm:$0xff] }
 0x14b   :  { %1913 = vmatpush2.msra.mxu1 %v710_v57  ;;  %1852 = vmatmul.mubr.f32.vlgmr.msra.gmra.mxu0 %v4186_v7  ;;  %v392_v49 = vld [vmem:[%s6437_s3 + $0xb20] sm:$0xff]  ;;  %v385_v51 = vld [vmem:[%s6437_s3 + $0xae8] sm:$0xff] }
 0x14c   :  { %1914 = vmatprep.subr.mxu1 %v703_v59  ;;  %2000 = vmatprep.subr.mxu0 %v161_v60  ;;  %v64_v52 = vld [vmem:[%s6437_s3 + $0xe0] sm:$0xff]  ;;  %v57_v54 = vld [vmem:[%s6437_s3 + $0xa8] sm:$0xff] }
 0x14d   :  { %1915 = vmatpush2.msra.mxu1 %v702_v61  ;;  %2001 = vmatpush1.msra.mxu0 %v160_v62  ;;  %v384_v53 = vld [vmem:[%s6437_s3 + $0xae0] sm:$0xff]  ;;  %v377_v55 = vld [vmem:[%s6437_s3 + $0xaa8] sm:$0xff] }
 0x14e   :  { %1916 = vmatprep.subr.mxu1 %v695_v63  ;;  %2002 = vmatprep.subr.mxu0 %v153_v0  ;;  %v56_v57 = vld [vmem:[%s6437_s3 + $0xa0] sm:$0xff]  ;;  %v49_v60 = vld [vmem:[%s6437_s3 + $0x68] sm:$0xff] }
 0x14f   :  { %1917 = vmatpush2.msra.mxu1 %v694_v2  ;;  %2003 = vmatpush1.msra.mxu0 %v152_v3  ;;  %v376_v59 = vld [vmem:[%s6437_s3 + $0xaa0] sm:$0xff]  ;;  %v369_v61 = vld [vmem:[%s6437_s3 + $0xa68] sm:$0xff] }
 0x150   :  { %1918 = vmatprep.subr.mxu1 %v687_v5  ;;  %2004 = vmatprep.subr.mxu0 %v145_v6  ;;  %v48_v62 = vld [vmem:[%s6437_s3 + $0x60] sm:$0xff]  ;;  %v41_v0 = vld [vmem:[%s6437_s3 + $0x28] sm:$0xff] }
 0x151   :  { %1919 = vmatpush2.msra.mxu1 %v686_v8  ;;  %2005 = vmatpush1.msra.mxu0 %v144_v9  ;;  %v368_v63 = vld [vmem:[%s6437_s3 + $0xa60] sm:$0xff]  ;;  %v361_v2 = vld [vmem:[%s6437_s3 + $0xa28] sm:$0xff] }
 0x152   :  { %1920 = vmatprep.subr.mxu1 %v679_v10  ;;  %2006 = vmatprep.subr.mxu0 %v137_v11  ;;  %v40_v3 = vld [vmem:[%s6437_s3 + $0x20] sm:$0xff]  ;;  %v289_v6 = vld [vmem:[%s6437_s3 + $0x7e8] sm:$0xff] }
 0x153   :  { %1921 = vmatpush2.msra.mxu1 %v678_v1  ;;  %1922 = vmatprep.mubr.f32.mxu1 %v4621_v33  ;;  %v360_v5 = vld [vmem:[%s6437_s3 + $0xa20] sm:$0xff]  ;;  %v353_v8 = vld [vmem:[%s6437_s3 + $0x9e8] sm:$0xff] }
 0x154   :  { %2007 = vmatpush1.msra.mxu0 %v136_v12  ;;  %1923 = vmatmul.mubr.f32.vlgmr.msra.gmra.mxu1 %v4587_v24  ;;  %v288_v9 = vld [vmem:[%s6437_s3 + $0x7e0] sm:$0xff]  ;;  %v281_v11 = vld [vmem:[%s6437_s3 + $0x7a8] sm:$0xff] }
 0x155   :  { %1953 = vmatprep.subr.mxu1 %v831_v14  ;;  %2008 = vmatprep.subr.mxu0 %v129_v15  ;;  %v352_v10 = vld [vmem:[%s6437_s3 + $0x9e0] sm:$0xff]  ;;  %v345_v1 = vld [vmem:[%s6437_s3 + $0x9a8] sm:$0xff] }
 0x156   :  { %1954 = vmatpush1.msra.mxu1 %v830_v16  ;;  %2009 = vmatpush1.msra.mxu0 %v128_v17  ;;  %v280_v12 = vld [vmem:[%s6437_s3 + $0x7a0] sm:$0xff]  ;;  %v273_v15 = vld [vmem:[%s6437_s3 + $0x768] sm:$0xff] }
 0x157   :  { %1955 = vmatprep.subr.mxu1 %v823_v18  ;;  %2010 = vmatprep.subr.mxu0 %v121_v19  ;;  %v344_v14 = vld [vmem:[%s6437_s3 + $0x9a0] sm:$0xff]  ;;  %v337_v16 = vld [vmem:[%s6437_s3 + $0x968] sm:$0xff] }
 0x158   :  { %1956 = vmatpush1.msra.mxu1 %v822_v21  ;;  %2011 = vmatpush1.msra.mxu0 %v120_v22  ;;  %v272_v17 = vld [vmem:[%s6437_s3 + $0x760] sm:$0xff]  ;;  %v265_v19 = vld [vmem:[%s6437_s3 + $0x728] sm:$0xff] }
 0x159   :  { %1957 = vmatprep.subr.mxu1 %v815_v23  ;;  %2012 = vmatprep.subr.mxu0 %v113_v25  ;;  %v336_v18 = vld [vmem:[%s6437_s3 + $0x960] sm:$0xff]  ;;  %v329_v21 = vld [vmem:[%s6437_s3 + $0x928] sm:$0xff] }
 0x15a   :  { %1958 = vmatpush1.msra.mxu1 %v814_v26  ;;  %2013 = vmatpush1.msra.mxu0 %v112_v27  ;;  %v264_v22 = vld [vmem:[%s6437_s3 + $0x720] sm:$0xff]  ;;  %v257_v25 = vld [vmem:[%s6437_s3 + $0x6e8] sm:$0xff] }
 0x15b   :  { %1959 = vmatprep.subr.mxu1 %v807_v56  ;;  %2014 = vmatprep.subr.mxu0 %v105_v20  ;;  %v328_v23 = vld [vmem:[%s6437_s3 + $0x920] sm:$0xff]  ;;  %v321_v26 = vld [vmem:[%s6437_s3 + $0x8e8] sm:$0xff] }
 0x15c   :  { %1960 = vmatpush1.msra.mxu1 %v806_v28  ;;  %1993 = vmatprep.mubr.f32.mxu1 %v2971_v39  ;;  %v256_v27 = vld [vmem:[%s6437_s3 + $0x6e0] sm:$0xff]  ;;  %v249_v20 = vld [vmem:[%s6437_s3 + $0x6a8] sm:$0xff] }
 0x15d   :  { %2015 = vmatpush1.msra.mxu0 %v104_v29  ;;  %2846 = vmatmul.mubr.msk.f32.vlgmr.msra.gmra.mxu1 %vm1429_vm0, %v4283_v35  ;;  %v320_v56 = vld [vmem:[%s6437_s3 + $0x8e0] sm:$0xff]  ;;  %v313_v28 = vld [vmem:[%s6437_s3 + $0x8a8] sm:$0xff] }
 0x15e   :  { %2016 = vmatprep.subr.mxu0 %v97_v30  ;;  %2071 = vmatprep.subr.mxu1 %v417_v31  ;;  %v248_v29 = vld [vmem:[%s6437_s3 + $0x6a0] sm:$0xff]  ;;  %v241_v31 = vld [vmem:[%s6437_s3 + $0x668] sm:$0xff] }
 0x15f   :  { %2017 = vmatpush1.msra.mxu0 %v96_v32  ;;  %2072 = vmatpush1.msra.mxu1 %v416_v34  ;;  %v312_v30 = vld [vmem:[%s6437_s3 + $0x8a0] sm:$0xff]  ;;  %v305_v32 = vld [vmem:[%s6437_s3 + $0x868] sm:$0xff] }
 0x160   :  { %2018 = vmatprep.subr.mxu0 %v89_v36  ;;  %2073 = vmatprep.subr.mxu1 %v409_v37  ;;  %v240_v34 = vld [vmem:[%s6437_s3 + $0x660] sm:$0xff]  ;;  %v233_v37 = vld [vmem:[%s6437_s3 + $0x628] sm:$0xff] }
 0x161   :  { %2019 = vmatpush1.msra.mxu0 %v88_v38  ;;  %2074 = vmatpush1.msra.mxu1 %v408_v40  ;;  %v304_v36 = vld [vmem:[%s6437_s3 + $0x860] sm:$0xff]  ;;  %v297_v38 = vld [vmem:[%s6437_s3 + $0x828] sm:$0xff] }
 0x162   :  { %2020 = vmatprep.subr.mxu0 %v81_v41  ;;  %2075 = vmatprep.subr.mxu1 %v401_v42  ;;  %v232_v40 = vld [vmem:[%s6437_s3 + $0x620] sm:$0xff]  ;;  %v225_v42 = vld [vmem:[%s6437_s3 + $0x5e8] sm:$0xff] }
 0x163   :  { %2021 = vmatpush1.msra.mxu0 %v80_v43  ;;  %2076 = vmatpush1.msra.mxu1 %v400_v44  ;;  %v296_v41 = vld [vmem:[%s6437_s3 + $0x820] sm:$0xff]  ;;  %v545_v43 = vld [vmem:[%s6437_s3 + $0xfe8] sm:$0xff] }
 0x164   :  { %2022 = vmatprep.subr.mxu0 %v73_v45  ;;  %2077 = vmatprep.subr.mxu1 %v393_v47  ;;  %v224_v44 = vld [vmem:[%s6437_s3 + $0x5e0] sm:$0xff]  ;;  %v217_v47 = vld [vmem:[%s6437_s3 + $0x5a8] sm:$0xff] }
 0x165   :  { %2023 = vmatpush1.msra.mxu0 %v72_v48  ;;  %2078 = vmatpush1.msra.mxu1 %v392_v49  ;;  %v544_v45 = vld [vmem:[%s6437_s3 + $0xfe0] sm:$0xff]  ;;  %v537_v48 = vld [vmem:[%s6437_s3 + $0xfa8] sm:$0xff] }
 0x166   :  { %2024 = vmatprep.subr.mxu0 %v65_v50  ;;  %2079 = vmatprep.subr.mxu1 %v385_v51  ;;  %v216_v49 = vld [vmem:[%s6437_s3 + $0x5a0] sm:$0xff]  ;;  %v209_v51 = vld [vmem:[%s6437_s3 + $0x568] sm:$0xff] }
 0x167   :  { %2025 = vmatpush1.msra.mxu0 %v64_v52  ;;  %2080 = vmatpush1.msra.mxu1 %v384_v53  ;;  %v536_v50 = vld [vmem:[%s6437_s3 + $0xfa0] sm:$0xff]  ;;  %v529_v52 = vld [vmem:[%s6437_s3 + $0xf68] sm:$0xff] }
 0x168   :  { %2026 = vmatprep.subr.mxu0 %v57_v54  ;;  %2081 = vmatprep.subr.mxu1 %v377_v55  ;;  %v208_v53 = vld [vmem:[%s6437_s3 + $0x560] sm:$0xff]  ;;  %v201_v55 = vld [vmem:[%s6437_s3 + $0x528] sm:$0xff] }
 0x169   :  { %2027 = vmatpush1.msra.mxu0 %v56_v57  ;;  %2082 = vmatpush1.msra.mxu1 %v376_v59  ;;  %v528_v54 = vld [vmem:[%s6437_s3 + $0xf60] sm:$0xff]  ;;  %v521_v57 = vld [vmem:[%s6437_s3 + $0xf28] sm:$0xff] }
 0x16a   :  { %2028 = vmatprep.subr.mxu0 %v49_v60  ;;  %2083 = vmatprep.subr.mxu1 %v369_v61  ;;  %v200_v59 = vld [vmem:[%s6437_s3 + $0x520] sm:$0xff]  ;;  %v193_v61 = vld [vmem:[%s6437_s3 + $0x4e8] sm:$0xff] }
 0x16b   :  { %2029 = vmatpush1.msra.mxu0 %v48_v62  ;;  %2084 = vmatpush1.msra.mxu1 %v368_v63  ;;  %v520_v60 = vld [vmem:[%s6437_s3 + $0xf20] sm:$0xff]  ;;  %v513_v62 = vld [vmem:[%s6437_s3 + $0xee8] sm:$0xff] }
 0x16c   :  { %2030 = vmatprep.subr.mxu0 %v41_v0  ;;  %2085 = vmatprep.subr.mxu1 %v361_v2  ;;  %v192_v63 = vld [vmem:[%s6437_s3 + $0x4e0] sm:$0xff]  ;;  %v185_v2 = vld [vmem:[%s6437_s3 + $0x4a8] sm:$0xff] }
 0x16d   :  { %2031 = vmatpush1.msra.mxu0 %v40_v3  ;;  %2086 = vmatpush1.msra.mxu1 %v360_v5  ;;  %v512_v0 = vld [vmem:[%s6437_s3 + $0xee0] sm:$0xff]  ;;  %v505_v3 = vld [vmem:[%s6437_s3 + $0xea8] sm:$0xff] }
 0x16e   :  { %2032 = vmatprep.subr.mxu0 %v289_v6  ;;  %2087 = vmatprep.subr.mxu1 %v353_v8  ;;  %v184_v5 = vld [vmem:[%s6437_s3 + $0x4a0] sm:$0xff]  ;;  %v177_v8 = vld [vmem:[%s6437_s3 + $0x468] sm:$0xff] }
 0x16f   :  { %2033 = vmatpush2.msra.mxu0 %v288_v9  ;;  %2088 = vmatpush1.msra.mxu1 %v352_v10  ;;  %v504_v6 = vld [vmem:[%s6437_s3 + $0xea0] sm:$0xff]  ;;  %v497_v9 = vld [vmem:[%s6437_s3 + $0xe68] sm:$0xff] }
 0x170   :  { %2034 = vmatprep.subr.mxu0 %v281_v11  ;;  %2089 = vmatprep.subr.mxu1 %v345_v1  ;;  %v176_v10 = vld [vmem:[%s6437_s3 + $0x460] sm:$0xff]  ;;  %v169_v1 = vld [vmem:[%s6437_s3 + $0x428] sm:$0xff] }
 0x171   :  { %2035 = vmatpush2.msra.mxu0 %v280_v12  ;;  %2090 = vmatpush1.msra.mxu1 %v344_v14  ;;  %v496_v11 = vld [vmem:[%s6437_s3 + $0xe60] sm:$0xff]  ;;  %v489_v12 = vld [vmem:[%s6437_s3 + $0xe28] sm:$0xff] }
 0x172   :  { %2036 = vmatprep.subr.mxu0 %v273_v15  ;;  %2091 = vmatprep.subr.mxu1 %v337_v16  ;;  %v168_v14 = vld [vmem:[%s6437_s3 + $0x420] sm:$0xff]  ;;  %v481_v16 = vld [vmem:[%s6437_s3 + $0xde8] sm:$0xff] }
 0x173   :  { %2037 = vmatpush2.msra.mxu0 %v272_v17  ;;  %2092 = vmatpush1.msra.mxu1 %v336_v18  ;;  %v488_v15 = vld [vmem:[%s6437_s3 + $0xe20] sm:$0xff]  ;;  %v673_v17 = vld [vmem:[%s6437_s3 + $0x13e8] sm:$0xff] }
 0x174   :  { %2038 = vmatprep.subr.mxu0 %v265_v19  ;;  %2093 = vmatprep.subr.mxu1 %v329_v21  ;;  %v480_v18 = vld [vmem:[%s6437_s3 + $0xde0] sm:$0xff]  ;;  %v473_v21 = vld [vmem:[%s6437_s3 + $0xda8] sm:$0xff] }
 0x175   :  { %2039 = vmatpush2.msra.mxu0 %v264_v22  ;;  %2094 = vmatpush1.msra.mxu1 %v328_v23  ;;  %v672_v19 = vld [vmem:[%s6437_s3 + $0x13e0] sm:$0xff]  ;;  %v665_v22 = vld [vmem:[%s6437_s3 + $0x13a8] sm:$0xff] }
 0x176   :  { %2040 = vmatprep.subr.mxu0 %v257_v25  ;;  %2095 = vmatprep.subr.mxu1 %v321_v26  ;;  %v472_v23 = vld [vmem:[%s6437_s3 + $0xda0] sm:$0xff]  ;;  %v465_v26 = vld [vmem:[%s6437_s3 + $0xd68] sm:$0xff] }
 0x177   :  { %2041 = vmatpush2.msra.mxu0 %v256_v27  ;;  %2096 = vmatpush1.msra.mxu1 %v320_v56  ;;  %v664_v25 = vld [vmem:[%s6437_s3 + $0x13a0] sm:$0xff]  ;;  %v657_v27 = vld [vmem:[%s6437_s3 + $0x1368] sm:$0xff] }
 0x178   :  { %2042 = vmatprep.subr.mxu0 %v249_v20  ;;  %2097 = vmatprep.subr.mxu1 %v313_v28  ;;  %v464_v56 = vld [vmem:[%s6437_s3 + $0xd60] sm:$0xff]  ;;  %v457_v28 = vld [vmem:[%s6437_s3 + $0xd28] sm:$0xff] }
 0x179   :  { %2043 = vmatpush2.msra.mxu0 %v248_v29  ;;  %2098 = vmatpush1.msra.mxu1 %v312_v30  ;;  %v656_v20 = vld [vmem:[%s6437_s3 + $0x1360] sm:$0xff]  ;;  %v649_v29 = vld [vmem:[%s6437_s3 + $0x1328] sm:$0xff] }
 0x17a   :  { %2044 = vmatprep.subr.mxu0 %v241_v31  ;;  %2099 = vmatprep.subr.mxu1 %v305_v32  ;;  %v456_v30 = vld [vmem:[%s6437_s3 + $0xd20] sm:$0xff]  ;;  %v449_v32 = vld [vmem:[%s6437_s3 + $0xce8] sm:$0xff] }
 0x17b   :  { %2045 = vmatpush2.msra.mxu0 %v240_v34  ;;  %2100 = vmatpush1.msra.mxu1 %v304_v36  ;;  %v648_v31 = vld [vmem:[%s6437_s3 + $0x1320] sm:$0xff]  ;;  %v641_v34 = vld [vmem:[%s6437_s3 + $0x12e8] sm:$0xff] }
 0x17c   :  { %2046 = vmatprep.subr.mxu0 %v233_v37  ;;  %2101 = vmatprep.subr.mxu1 %v297_v38  ;;  %v448_v36 = vld [vmem:[%s6437_s3 + $0xce0] sm:$0xff]  ;;  %v441_v38 = vld [vmem:[%s6437_s3 + $0xca8] sm:$0xff] }
 0x17d   :  { %2047 = vmatpush2.msra.mxu0 %v232_v40  ;;  %2102 = vmatpush1.msra.mxu1 %v296_v41  ;;  %v640_v37 = vld [vmem:[%s6437_s3 + $0x12e0] sm:$0xff]  ;;  %v633_v40 = vld [vmem:[%s6437_s3 + $0x12a8] sm:$0xff] }
 0x17e   :  { %2048 = vmatprep.subr.mxu0 %v225_v42  ;;  %2103 = vmatprep.subr.mxu1 %v545_v43  ;;  %v440_v41 = vld [vmem:[%s6437_s3 + $0xca0] sm:$0xff]  ;;  %v433_v43 = vld [vmem:[%s6437_s3 + $0xc68] sm:$0xff] }
 0x17f   :  { %2049 = vmatpush2.msra.mxu0 %v224_v44  ;;  %2104 = vmatpush2.msra.mxu1 %v544_v45  ;;  %v632_v42 = vld [vmem:[%s6437_s3 + $0x12a0] sm:$0xff]  ;;  %v625_v44 = vld [vmem:[%s6437_s3 + $0x1268] sm:$0xff] }
 0x180   :  { %2050 = vmatprep.subr.mxu0 %v217_v47  ;;  %2105 = vmatprep.subr.mxu1 %v537_v48  ;;  %v432_v45 = vld [vmem:[%s6437_s3 + $0xc60] sm:$0xff]  ;;  %v425_v48 = vld [vmem:[%s6437_s3 + $0xc28] sm:$0xff] }
 0x181   :  { %2051 = vmatpush2.msra.mxu0 %v216_v49  ;;  %2106 = vmatpush2.msra.mxu1 %v536_v50  ;;  %v624_v47 = vld [vmem:[%s6437_s3 + $0x1260] sm:$0xff]  ;;  %v617_v49 = vld [vmem:[%s6437_s3 + $0x1228] sm:$0xff] }
 0x182   :  { %2052 = vmatprep.subr.mxu0 %v209_v51  ;;  %2107 = vmatprep.subr.mxu1 %v529_v52  ;;  %v424_v50 = vld [vmem:[%s6437_s3 + $0xc20] sm:$0xff]  ;;  %v609_v52 = vld [vmem:[%s6437_s3 + $0x11e8] sm:$0xff] }
 0x183   :  { %2053 = vmatpush2.msra.mxu0 %v208_v53  ;;  %2108 = vmatpush2.msra.mxu1 %v528_v54  ;;  %v616_v51 = vld [vmem:[%s6437_s3 + $0x1220] sm:$0xff]  ;;  %v833_v53 = vld [vmem:[%s6437_s3 + $0x18e8] sm:$0xff] }
 0x184   :  { %2054 = vmatprep.subr.mxu0 %v201_v55  ;;  %2109 = vmatprep.subr.mxu1 %v521_v57  ;;  %v608_v54 = vld [vmem:[%s6437_s3 + $0x11e0] sm:$0xff]  ;;  %v601_v57 = vld [vmem:[%s6437_s3 + $0x11a8] sm:$0xff] }
 0x185   :  { %2055 = vmatpush2.msra.mxu0 %v200_v59  ;;  %2110 = vmatpush2.msra.mxu1 %v520_v60  ;;  %v832_v55 = vld [vmem:[%s6437_s3 + $0x18e0] sm:$0xff]  ;;  %v825_v59 = vld [vmem:[%s6437_s3 + $0x18a8] sm:$0xff] }
 0x186   :  { %2056 = vmatprep.subr.mxu0 %v193_v61  ;;  %2111 = vmatprep.subr.mxu1 %v513_v62  ;;  %v600_v60 = vld [vmem:[%s6437_s3 + $0x11a0] sm:$0xff]  ;;  %v593_v62 = vld [vmem:[%s6437_s3 + $0x1168] sm:$0xff] }
 0x187   :  { %2057 = vmatpush2.msra.mxu0 %v192_v63  ;;  %2112 = vmatpush2.msra.mxu1 %v512_v0  ;;  %v824_v61 = vld [vmem:[%s6437_s3 + $0x18a0] sm:$0xff]  ;;  %v817_v63 = vld [vmem:[%s6437_s3 + $0x1868] sm:$0xff] }
 0x188   :  { %2058 = vmatprep.subr.mxu0 %v185_v2  ;;  %2113 = vmatprep.subr.mxu1 %v505_v3  ;;  %v592_v0 = vld [vmem:[%s6437_s3 + $0x1160] sm:$0xff]  ;;  %v585_v3 = vld [vmem:[%s6437_s3 + $0x1128] sm:$0xff] }
 0x189   :  { %2059 = vmatpush2.msra.mxu0 %v184_v5  ;;  %2114 = vmatpush2.msra.mxu1 %v504_v6  ;;  %v816_v2 = vld [vmem:[%s6437_s3 + $0x1860] sm:$0xff]  ;;  %v809_v5 = vld [vmem:[%s6437_s3 + $0x1828] sm:$0xff] }
 0x18a   :  { %2060 = vmatprep.subr.mxu0 %v177_v8  ;;  %2115 = vmatprep.subr.mxu1 %v497_v9  ;;  %v584_v6 = vld [vmem:[%s6437_s3 + $0x1120] sm:$0xff]  ;;  %v577_v9 = vld [vmem:[%s6437_s3 + $0x10e8] sm:$0xff] }
 0x18b   :  { %2061 = vmatpush2.msra.mxu0 %v176_v10  ;;  %2116 = vmatpush2.msra.mxu1 %v496_v11  ;;  %v808_v8 = vld [vmem:[%s6437_s3 + $0x1820] sm:$0xff]  ;;  %v163_v10 = vld [vmem:[%s6437_s3 + $0x3f8] sm:$0xff] }
 0x18c   :  { %2062 = vmatprep.subr.mxu0 %v169_v1  ;;  %2117 = vmatprep.subr.mxu1 %v489_v12  ;;  %v576_v11 = vld [vmem:[%s6437_s3 + $0x10e0] sm:$0xff]  ;;  %v162_v1 = vld [vmem:[%s6437_s3 + $0x3f0] sm:$0xff]  ;;  %v569_v12 = vld [vmem:[%s6437_s3 + $0x10a8] sm:$0xff] }
 0x18d   :  { %2063 = vmatpush2.msra.mxu0 %v168_v14  ;;  %2064 = vmatprep.mubr.f32.mxu0 %v4208_v13  ;;  %v155_v14 = vld [vmem:[%s6437_s3 + $0x3b8] sm:$0xff] }
 0x18e   :  { %2118 = vmatpush2.msra.mxu1 %v488_v15  ;;  %2065 = vmatmul.mubr.f32.vlgmr.msra.gmra.mxu0 %v4177_v4  ;;  %v568_v15 = vld [vmem:[%s6437_s3 + $0x10a0] sm:$0xff] }
 0x18f   :  { %2119 = vmatprep.subr.mxu1 %v481_v16  ;;  %2142 = vmatprep.subr.mxu0 %v673_v17  ;;  %v154_v16 = vld [vmem:[%s6437_s3 + $0x3b0] sm:$0xff]  ;;  %v561_v17 = vld [vmem:[%s6437_s3 + $0x1068] sm:$0xff] }
 0x190   :  { %2120 = vmatpush2.msra.mxu1 %v480_v18  ;;  %2143 = vmatpush1.msra.mxu0 %v672_v19  ;;  %v147_v18 = vld [vmem:[%s6437_s3 + $0x378] sm:$0xff]  ;;  %v560_v19 = vld [vmem:[%s6437_s3 + $0x1060] sm:$0xff] }
 0x191   :  { %2121 = vmatprep.subr.mxu1 %v473_v21  ;;  %2144 = vmatprep.subr.mxu0 %v665_v22  ;;  %v146_v21 = vld [vmem:[%s6437_s3 + $0x370] sm:$0xff]  ;;  %v553_v22 = vld [vmem:[%s6437_s3 + $0x1028] sm:$0xff] }
 0x192   :  { %2122 = vmatpush2.msra.mxu1 %v472_v23  ;;  %2145 = vmatpush1.msra.mxu0 %v664_v25  ;;  %v139_v23 = vld [vmem:[%s6437_s3 + $0x338] sm:$0xff]  ;;  %v552_v25 = vld [vmem:[%s6437_s3 + $0x1020] sm:$0xff] }
 0x193   :  { %2123 = vmatprep.subr.mxu1 %v465_v26  ;;  %2146 = vmatprep.subr.mxu0 %v657_v27  ;;  %v138_v26 = vld [vmem:[%s6437_s3 + $0x330] sm:$0xff]  ;;  %v801_v27 = vld [vmem:[%s6437_s3 + $0x17e8] sm:$0xff] }
 0x194   :  { %2124 = vmatpush2.msra.mxu1 %v464_v56  ;;  %2147 = vmatpush1.msra.mxu0 %v656_v20  ;;  %v131_v56 = vld [vmem:[%s6437_s3 + $0x2f8] sm:$0xff]  ;;  %v800_v20 = vld [vmem:[%s6437_s3 + $0x17e0] sm:$0xff] }
 0x195   :  { %2125 = vmatprep.subr.mxu1 %v457_v28  ;;  %2148 = vmatprep.subr.mxu0 %v649_v29  ;;  %v130_v28 = vld [vmem:[%s6437_s3 + $0x2f0] sm:$0xff]  ;;  %v793_v29 = vld [vmem:[%s6437_s3 + $0x17a8] sm:$0xff] }
 0x196   :  { %2126 = vmatpush2.msra.mxu1 %v456_v30  ;;  %2149 = vmatpush1.msra.mxu0 %v648_v31  ;;  %v123_v30 = vld [vmem:[%s6437_s3 + $0x2b8] sm:$0xff]  ;;  %v792_v31 = vld [vmem:[%s6437_s3 + $0x17a0] sm:$0xff] }
 0x197   :  { %2127 = vmatprep.subr.mxu1 %v449_v32  ;;  %2150 = vmatprep.subr.mxu0 %v641_v34  ;;  %v122_v32 = vld [vmem:[%s6437_s3 + $0x2b0] sm:$0xff]  ;;  %v785_v34 = vld [vmem:[%s6437_s3 + $0x1768] sm:$0xff] }
 0x198   :  { %2128 = vmatpush2.msra.mxu1 %v448_v36  ;;  %2151 = vmatpush1.msra.mxu0 %v640_v37  ;;  %v115_v36 = vld [vmem:[%s6437_s3 + $0x278] sm:$0xff]  ;;  %v784_v37 = vld [vmem:[%s6437_s3 + $0x1760] sm:$0xff] }
 0x199   :  { %2129 = vmatprep.subr.mxu1 %v441_v38  ;;  %2152 = vmatprep.subr.mxu0 %v633_v40  ;;  %v114_v38 = vld [vmem:[%s6437_s3 + $0x270] sm:$0xff]  ;;  %v777_v40 = vld [vmem:[%s6437_s3 + $0x1728] sm:$0xff] }
 0x19a   :  { %2130 = vmatpush2.msra.mxu1 %v440_v41  ;;  %2153 = vmatpush1.msra.mxu0 %v632_v42  ;;  %v107_v41 = vld [vmem:[%s6437_s3 + $0x238] sm:$0xff]  ;;  %v776_v42 = vld [vmem:[%s6437_s3 + $0x1720] sm:$0xff] }
 0x19b   :  { %2131 = vmatprep.subr.mxu1 %v433_v43  ;;  %2154 = vmatprep.subr.mxu0 %v625_v44  ;;  %v106_v43 = vld [vmem:[%s6437_s3 + $0x230] sm:$0xff]  ;;  %v769_v44 = vld [vmem:[%s6437_s3 + $0x16e8] sm:$0xff] }
 0x19c   :  { %2132 = vmatpush2.msra.mxu1 %v432_v45  ;;  %2155 = vmatpush1.msra.mxu0 %v624_v47  ;;  %v99_v45 = vld [vmem:[%s6437_s3 + $0x1f8] sm:$0xff]  ;;  %v768_v47 = vld [vmem:[%s6437_s3 + $0x16e0] sm:$0xff] }
 0x19d   :  { %2133 = vmatprep.subr.mxu1 %v425_v48  ;;  %2156 = vmatprep.subr.mxu0 %v617_v49  ;;  %v98_v48 = vld [vmem:[%s6437_s3 + $0x1f0] sm:$0xff]  ;;  %v761_v49 = vld [vmem:[%s6437_s3 + $0x16a8] sm:$0xff] }
 0x19e   :  { %2134 = vmatpush2.msra.mxu1 %v424_v50  ;;  %2135 = vmatprep.mubr.f32.mxu1 %v4215_v58  ;;  %v91_v50 = vld [vmem:[%s6437_s3 + $0x1b8] sm:$0xff] }
 0x19f   :  { %2157 = vmatpush1.msra.mxu0 %v616_v51  ;;  %2136 = vmatmul.mubr.f32.vlgmr.msra.gmra.mxu1 %v4186_v7  ;;  %v760_v51 = vld [vmem:[%s6437_s3 + $0x16a0] sm:$0xff] }
 0x1a0   :  { %2158 = vmatprep.subr.mxu0 %v609_v52  ;;  %2237 = vmatprep.subr.mxu1 %v833_v53  ;;  %v90_v52 = vld [vmem:[%s6437_s3 + $0x1b0] sm:$0xff]  ;;  %v753_v53 = vld [vmem:[%s6437_s3 + $0x1668] sm:$0xff] }
 0x1a1   :  { %2159 = vmatpush1.msra.mxu0 %v608_v54  ;;  %2238 = vmatpush1.msra.mxu1 %v832_v55  ;;  %v83_v54 = vld [vmem:[%s6437_s3 + $0x178] sm:$0xff]  ;;  %v752_v55 = vld [vmem:[%s6437_s3 + $0x1660] sm:$0xff] }
 0x1a2   :  { %2160 = vmatprep.subr.mxu0 %v601_v57  ;;  %2239 = vmatprep.subr.mxu1 %v825_v59  ;;  %v82_v57 = vld [vmem:[%s6437_s3 + $0x170] sm:$0xff]  ;;  %v745_v59 = vld [vmem:[%s6437_s3 + $0x1628] sm:$0xff] }
 0x1a3   :  { %2161 = vmatpush1.msra.mxu0 %v600_v60  ;;  %2240 = vmatpush1.msra.mxu1 %v824_v61  ;;  %v75_v60 = vld [vmem:[%s6437_s3 + $0x138] sm:$0xff]  ;;  %v744_v61 = vld [vmem:[%s6437_s3 + $0x1620] sm:$0xff] }
 0x1a4   :  { %2162 = vmatprep.subr.mxu0 %v593_v62  ;;  %2241 = vmatprep.subr.mxu1 %v817_v63  ;;  %v74_v62 = vld [vmem:[%s6437_s3 + $0x130] sm:$0xff]  ;;  %v737_v63 = vld [vmem:[%s6437_s3 + $0x15e8] sm:$0xff] }
 0x1a5   :  { %2163 = vmatpush1.msra.mxu0 %v592_v0  ;;  %2242 = vmatpush1.msra.mxu1 %v816_v2  ;;  %v67_v0 = vld [vmem:[%s6437_s3 + $0xf8] sm:$0xff]  ;;  %v736_v2 = vld [vmem:[%s6437_s3 + $0x15e0] sm:$0xff] }
 0x1a6   :  { %2164 = vmatprep.subr.mxu0 %v585_v3  ;;  %2243 = vmatprep.subr.mxu1 %v809_v5  ;;  %v66_v3 = vld [vmem:[%s6437_s3 + $0xf0] sm:$0xff]  ;;  %v729_v5 = vld [vmem:[%s6437_s3 + $0x15a8] sm:$0xff] }
 0x1a7   :  { %2165 = vmatpush1.msra.mxu0 %v584_v6  ;;  %2244 = vmatpush1.msra.mxu1 %v808_v8  ;;  %v59_v6 = vld [vmem:[%s6437_s3 + $0xb8] sm:$0xff]  ;;  %v728_v8 = vld [vmem:[%s6437_s3 + $0x15a0] sm:$0xff] }
 0x1a8   :  { %2277 = vmatprep.mubr.f32.mxu1 %v2971_v39  ;;  %2166 = vmatprep.subr.mxu0 %v577_v9  ;;  %v58_v9 = vld [vmem:[%s6437_s3 + $0xb0] sm:$0xff] }
 0x1a9   :  { %2847 = vmatmul.mubr.msk.f32.vlgmr.msra.gmra.mxu1 %vm1429_vm0, %v4283_v35  ;;  %2284 = vmatprep.subr.mxu1 %v163_v10  ;;  %v721_v10 = vld [vmem:[%s6437_s3 + $0x1568] sm:$0xff] }
 0x1aa   :  { %2167 = vmatpush1.msra.mxu0 %v576_v11  ;;  %2285 = vmatpush1.msra.mxu1 %v162_v1  ;;  %v51_v11 = vld [vmem:[%s6437_s3 + $0x78] sm:$0xff]  ;;  %v720_v1 = vld [vmem:[%s6437_s3 + $0x1560] sm:$0xff] }
 0x1ab   :  { %2168 = vmatprep.subr.mxu0 %v569_v12  ;;  %2286 = vmatprep.subr.mxu1 %v155_v14  ;;  %v50_v12 = vld [vmem:[%s6437_s3 + $0x70] sm:$0xff]  ;;  %v713_v14 = vld [vmem:[%s6437_s3 + $0x1528] sm:$0xff] }
 0x1ac   :  { %2169 = vmatpush1.msra.mxu0 %v568_v15  ;;  %2287 = vmatpush1.msra.mxu1 %v154_v16  ;;  %v43_v15 = vld [vmem:[%s6437_s3 + $0x38] sm:$0xff]  ;;  %v712_v16 = vld [vmem:[%s6437_s3 + $0x1520] sm:$0xff] }
 0x1ad   :  { %2170 = vmatprep.subr.mxu0 %v561_v17  ;;  %2288 = vmatprep.subr.mxu1 %v147_v18  ;;  %v42_v17 = vld [vmem:[%s6437_s3 + $0x30] sm:$0xff]  ;;  %v705_v18 = vld [vmem:[%s6437_s3 + $0x14e8] sm:$0xff] }
 0x1ae   :  { %2171 = vmatpush1.msra.mxu0 %v560_v19  ;;  %2289 = vmatpush1.msra.mxu1 %v146_v21  ;;  %v291_v19 = vld [vmem:[%s6437_s3 + $0x7f8] sm:$0xff]  ;;  %v704_v21 = vld [vmem:[%s6437_s3 + $0x14e0] sm:$0xff] }
 0x1af   :  { %2172 = vmatprep.subr.mxu0 %v553_v22  ;;  %2290 = vmatprep.subr.mxu1 %v139_v23  ;;  %v290_v22 = vld [vmem:[%s6437_s3 + $0x7f0] sm:$0xff]  ;;  %v697_v23 = vld [vmem:[%s6437_s3 + $0x14a8] sm:$0xff] }
 0x1b0   :  { %2173 = vmatpush1.msra.mxu0 %v552_v25  ;;  %2291 = vmatpush1.msra.mxu1 %v138_v26  ;;  %v283_v25 = vld [vmem:[%s6437_s3 + $0x7b8] sm:$0xff]  ;;  %v696_v26 = vld [vmem:[%s6437_s3 + $0x14a0] sm:$0xff] }
 0x1b1   :  { %2174 = vmatprep.subr.mxu0 %v801_v27  ;;  %2292 = vmatprep.subr.mxu1 %v131_v56  ;;  %v282_v27 = vld [vmem:[%s6437_s3 + $0x7b0] sm:$0xff]  ;;  %v689_v56 = vld [vmem:[%s6437_s3 + $0x1468] sm:$0xff] }
 0x1b2   :  { %2175 = vmatpush2.msra.mxu0 %v800_v20  ;;  %2293 = vmatpush1.msra.mxu1 %v130_v28  ;;  %v275_v20 = vld [vmem:[%s6437_s3 + $0x778] sm:$0xff]  ;;  %v688_v28 = vld [vmem:[%s6437_s3 + $0x1460] sm:$0xff] }
 0x1b3   :  { %2176 = vmatprep.subr.mxu0 %v793_v29  ;;  %2294 = vmatprep.subr.mxu1 %v123_v30  ;;  %v274_v29 = vld [vmem:[%s6437_s3 + $0x770] sm:$0xff]  ;;  %v681_v30 = vld [vmem:[%s6437_s3 + $0x1428] sm:$0xff] }
 0x1b4   :  { %2177 = vmatpush2.msra.mxu0 %v792_v31  ;;  %2295 = vmatpush1.msra.mxu1 %v122_v32  ;;  %v267_v31 = vld [vmem:[%s6437_s3 + $0x738] sm:$0xff]  ;;  %v680_v32 = vld [vmem:[%s6437_s3 + $0x1420] sm:$0xff] }
 0x1b5   :  { %2178 = vmatprep.subr.mxu0 %v785_v34  ;;  %2296 = vmatprep.subr.mxu1 %v115_v36  ;;  %v266_v34 = vld [vmem:[%s6437_s3 + $0x730] sm:$0xff]  ;;  %v259_v36 = vld [vmem:[%s6437_s3 + $0x6f8] sm:$0xff] }
 0x1b6   :  { %2179 = vmatpush2.msra.mxu0 %v784_v37  ;;  %2297 = vmatpush1.msra.mxu1 %v114_v38  ;;  %v419_v37 = vld [vmem:[%s6437_s3 + $0xbf8] sm:$0xff]  ;;  %v258_v38 = vld [vmem:[%s6437_s3 + $0x6f0] sm:$0xff] }
 0x1b7   :  { %2180 = vmatprep.subr.mxu0 %v777_v40  ;;  %2298 = vmatprep.subr.mxu1 %v107_v41  ;;  %v418_v40 = vld [vmem:[%s6437_s3 + $0xbf0] sm:$0xff]  ;;  %v251_v41 = vld [vmem:[%s6437_s3 + $0x6b8] sm:$0xff] }
 0x1b8   :  { %2181 = vmatpush2.msra.mxu0 %v776_v42  ;;  %2299 = vmatpush1.msra.mxu1 %v106_v43  ;;  %v411_v42 = vld [vmem:[%s6437_s3 + $0xbb8] sm:$0xff]  ;;  %v250_v43 = vld [vmem:[%s6437_s3 + $0x6b0] sm:$0xff] }
 0x1b9   :  { %2182 = vmatprep.subr.mxu0 %v769_v44  ;;  %2300 = vmatprep.subr.mxu1 %v99_v45  ;;  %v410_v44 = vld [vmem:[%s6437_s3 + $0xbb0] sm:$0xff]  ;;  %v243_v45 = vld [vmem:[%s6437_s3 + $0x678] sm:$0xff] }
 0x1ba   :  { %2183 = vmatpush2.msra.mxu0 %v768_v47  ;;  %2301 = vmatpush1.msra.mxu1 %v98_v48  ;;  %v403_v47 = vld [vmem:[%s6437_s3 + $0xb78] sm:$0xff]  ;;  %v242_v48 = vld [vmem:[%s6437_s3 + $0x670] sm:$0xff] }
 0x1bb   :  { %2184 = vmatprep.subr.mxu0 %v761_v49  ;;  %2302 = vmatprep.subr.mxu1 %v91_v50  ;;  %v402_v49 = vld [vmem:[%s6437_s3 + $0xb70] sm:$0xff]  ;;  %v235_v50 = vld [vmem:[%s6437_s3 + $0x638] sm:$0xff] }
 0x1bc   :  { %2185 = vmatpush2.msra.mxu0 %v760_v51  ;;  %2303 = vmatpush1.msra.mxu1 %v90_v52  ;;  %v395_v51 = vld [vmem:[%s6437_s3 + $0xb38] sm:$0xff]  ;;  %v234_v52 = vld [vmem:[%s6437_s3 + $0x630] sm:$0xff] }
 0x1bd   :  { %2186 = vmatprep.subr.mxu0 %v753_v53  ;;  %2304 = vmatprep.subr.mxu1 %v83_v54  ;;  %v394_v53 = vld [vmem:[%s6437_s3 + $0xb30] sm:$0xff]  ;;  %v227_v54 = vld [vmem:[%s6437_s3 + $0x5f8] sm:$0xff] }
 0x1be   :  { %2187 = vmatpush2.msra.mxu0 %v752_v55  ;;  %2305 = vmatpush1.msra.mxu1 %v82_v57  ;;  %v387_v55 = vld [vmem:[%s6437_s3 + $0xaf8] sm:$0xff]  ;;  %v226_v57 = vld [vmem:[%s6437_s3 + $0x5f0] sm:$0xff] }
 0x1bf   :  { %2188 = vmatprep.subr.mxu0 %v745_v59  ;;  %2306 = vmatprep.subr.mxu1 %v75_v60  ;;  %v386_v59 = vld [vmem:[%s6437_s3 + $0xaf0] sm:$0xff]  ;;  %v219_v60 = vld [vmem:[%s6437_s3 + $0x5b8] sm:$0xff] }
 0x1c0   :  { %2189 = vmatpush2.msra.mxu0 %v744_v61  ;;  %2307 = vmatpush1.msra.mxu1 %v74_v62  ;;  %v379_v61 = vld [vmem:[%s6437_s3 + $0xab8] sm:$0xff]  ;;  %v218_v62 = vld [vmem:[%s6437_s3 + $0x5b0] sm:$0xff] }
 0x1c1   :  { %2190 = vmatprep.subr.mxu0 %v737_v63  ;;  %2308 = vmatprep.subr.mxu1 %v67_v0  ;;  %v378_v63 = vld [vmem:[%s6437_s3 + $0xab0] sm:$0xff]  ;;  %v211_v0 = vld [vmem:[%s6437_s3 + $0x578] sm:$0xff] }
 0x1c2   :  { %2191 = vmatpush2.msra.mxu0 %v736_v2  ;;  %2309 = vmatpush1.msra.mxu1 %v66_v3  ;;  %v371_v2 = vld [vmem:[%s6437_s3 + $0xa78] sm:$0xff]  ;;  %v210_v3 = vld [vmem:[%s6437_s3 + $0x570] sm:$0xff] }
 0x1c3   :  { %2192 = vmatprep.subr.mxu0 %v729_v5  ;;  %2310 = vmatprep.subr.mxu1 %v59_v6  ;;  %v370_v5 = vld [vmem:[%s6437_s3 + $0xa70] sm:$0xff]  ;;  %v203_v6 = vld [vmem:[%s6437_s3 + $0x538] sm:$0xff] }
 0x1c4   :  { %2193 = vmatpush2.msra.mxu0 %v728_v8  ;;  %2311 = vmatpush1.msra.mxu1 %v58_v9  ;;  %v363_v8 = vld [vmem:[%s6437_s3 + $0xa38] sm:$0xff]  ;;  %v202_v9 = vld [vmem:[%s6437_s3 + $0x530] sm:$0xff] }
 0x1c5   :  { %2194 = vmatprep.subr.mxu0 %v721_v10  ;;  %2312 = vmatprep.subr.mxu1 %v51_v11  ;;  %v362_v10 = vld [vmem:[%s6437_s3 + $0xa30] sm:$0xff]  ;;  %v195_v11 = vld [vmem:[%s6437_s3 + $0x4f8] sm:$0xff] }
 0x1c6   :  { %2195 = vmatpush2.msra.mxu0 %v720_v1  ;;  %2313 = vmatpush1.msra.mxu1 %v50_v12  ;;  %v355_v1 = vld [vmem:[%s6437_s3 + $0x9f8] sm:$0xff]  ;;  %v194_v12 = vld [vmem:[%s6437_s3 + $0x4f0] sm:$0xff] }
 0x1c7   :  { %2196 = vmatprep.subr.mxu0 %v713_v14  ;;  %2314 = vmatprep.subr.mxu1 %v43_v15  ;;  %v354_v14 = vld [vmem:[%s6437_s3 + $0x9f0] sm:$0xff]  ;;  %v187_v15 = vld [vmem:[%s6437_s3 + $0x4b8] sm:$0xff] }
 0x1c8   :  { %2197 = vmatpush2.msra.mxu0 %v712_v16  ;;  %2315 = vmatpush1.msra.mxu1 %v42_v17  ;;  %v347_v16 = vld [vmem:[%s6437_s3 + $0x9b8] sm:$0xff]  ;;  %v186_v17 = vld [vmem:[%s6437_s3 + $0x4b0] sm:$0xff] }
 0x1c9   :  { %2198 = vmatprep.subr.mxu0 %v705_v18  ;;  %2316 = vmatprep.subr.mxu1 %v291_v19  ;;  %v346_v18 = vld [vmem:[%s6437_s3 + $0x9b0] sm:$0xff]  ;;  %v179_v19 = vld [vmem:[%s6437_s3 + $0x478] sm:$0xff] }
 0x1ca   :  { %2199 = vmatpush2.msra.mxu0 %v704_v21  ;;  %2317 = vmatpush2.msra.mxu1 %v290_v22  ;;  %v339_v21 = vld [vmem:[%s6437_s3 + $0x978] sm:$0xff]  ;;  %v178_v22 = vld [vmem:[%s6437_s3 + $0x470] sm:$0xff] }
 0x1cb   :  { %2200 = vmatprep.subr.mxu0 %v697_v23  ;;  %2318 = vmatprep.subr.mxu1 %v283_v25  ;;  %v338_v23 = vld [vmem:[%s6437_s3 + $0x970] sm:$0xff]  ;;  %v171_v25 = vld [vmem:[%s6437_s3 + $0x438] sm:$0xff] }
 0x1cc   :  { %2201 = vmatpush2.msra.mxu0 %v696_v26  ;;  %2319 = vmatpush2.msra.mxu1 %v282_v27  ;;  %v331_v26 = vld [vmem:[%s6437_s3 + $0x938] sm:$0xff]  ;;  %v170_v27 = vld [vmem:[%s6437_s3 + $0x430] sm:$0xff] }
 0x1cd   :  { %2202 = vmatprep.subr.mxu0 %v689_v56  ;;  %2320 = vmatprep.subr.mxu1 %v275_v20  ;;  %v330_v56 = vld [vmem:[%s6437_s3 + $0x930] sm:$0xff]  ;;  %v323_v20 = vld [vmem:[%s6437_s3 + $0x8f8] sm:$0xff] }
 0x1ce   :  { %2203 = vmatpush2.msra.mxu0 %v688_v28  ;;  %2321 = vmatpush2.msra.mxu1 %v274_v29  ;;  %v675_v28 = vld [vmem:[%s6437_s3 + $0x13f8] sm:$0xff]  ;;  %v322_v29 = vld [vmem:[%s6437_s3 + $0x8f0] sm:$0xff] }
 0x1cf   :  { %2204 = vmatprep.subr.mxu0 %v681_v30  ;;  %2322 = vmatprep.subr.mxu1 %v267_v31  ;;  %v674_v30 = vld [vmem:[%s6437_s3 + $0x13f0] sm:$0xff]  ;;  %v315_v31 = vld [vmem:[%s6437_s3 + $0x8b8] sm:$0xff] }
 0x1d0   :  { %2205 = vmatpush2.msra.mxu0 %v680_v32  ;;  %2206 = vmatprep.mubr.f32.mxu0 %v4621_v33  ;;  %v667_v32 = vld [vmem:[%s6437_s3 + $0x13b8] sm:$0xff] }
 0x1d1   :  { %2323 = vmatpush2.msra.mxu1 %v266_v34  ;;  %2207 = vmatmul.mubr.f32.vlgmr.msra.gmra.mxu0 %v4587_v24  ;;  %v666_v34 = vld [vmem:[%s6437_s3 + $0x13b0] sm:$0xff] }
 0x1d2   :  { %2324 = vmatprep.subr.mxu1 %v259_v36  ;;  %2355 = vmatprep.subr.mxu0 %v419_v37  ;;  %v659_v36 = vld [vmem:[%s6437_s3 + $0x1378] sm:$0xff]  ;;  %v306_v37 = vld [vmem:[%s6437_s3 + $0x870] sm:$0xff] }
 0x1d3   :  { %2325 = vmatpush2.msra.mxu1 %v258_v38  ;;  %2356 = vmatpush1.msra.mxu0 %v418_v40  ;;  %v658_v38 = vld [vmem:[%s6437_s3 + $0x1370] sm:$0xff]  ;;  %v299_v40 = vld [vmem:[%s6437_s3 + $0x838] sm:$0xff] }
 0x1d4   :  { %2326 = vmatprep.subr.mxu1 %v251_v41  ;;  %2357 = vmatprep.subr.mxu0 %v411_v42  ;;  %v651_v41 = vld [vmem:[%s6437_s3 + $0x1338] sm:$0xff]  ;;  %v298_v42 = vld [vmem:[%s6437_s3 + $0x830] sm:$0xff] }
 0x1d5   :  { %2327 = vmatpush2.msra.mxu1 %v250_v43  ;;  %2358 = vmatpush1.msra.mxu0 %v410_v44  ;;  %v650_v43 = vld [vmem:[%s6437_s3 + $0x1330] sm:$0xff]  ;;  %v547_v44 = vld [vmem:[%s6437_s3 + $0xff8] sm:$0xff] }
 0x1d6   :  { %2328 = vmatprep.subr.mxu1 %v243_v45  ;;  %2359 = vmatprep.subr.mxu0 %v403_v47  ;;  %v643_v45 = vld [vmem:[%s6437_s3 + $0x12f8] sm:$0xff]  ;;  %v546_v47 = vld [vmem:[%s6437_s3 + $0xff0] sm:$0xff] }
 0x1d7   :  { %2329 = vmatpush2.msra.mxu1 %v242_v48  ;;  %2360 = vmatpush1.msra.mxu0 %v402_v49  ;;  %v642_v48 = vld [vmem:[%s6437_s3 + $0x12f0] sm:$0xff]  ;;  %v539_v49 = vld [vmem:[%s6437_s3 + $0xfb8] sm:$0xff] }
 0x1d8   :  { %2330 = vmatprep.subr.mxu1 %v235_v50  ;;  %2361 = vmatprep.subr.mxu0 %v395_v51  ;;  %v635_v50 = vld [vmem:[%s6437_s3 + $0x12b8] sm:$0xff]  ;;  %v538_v51 = vld [vmem:[%s6437_s3 + $0xfb0] sm:$0xff] }
 0x1d9   :  { %2331 = vmatpush2.msra.mxu1 %v234_v52  ;;  %2362 = vmatpush1.msra.mxu0 %v394_v53  ;;  %v634_v52 = vld [vmem:[%s6437_s3 + $0x12b0] sm:$0xff]  ;;  %v531_v53 = vld [vmem:[%s6437_s3 + $0xf78] sm:$0xff] }
 0x1da   :  { %2332 = vmatprep.subr.mxu1 %v227_v54  ;;  %2363 = vmatprep.subr.mxu0 %v387_v55  ;;  %v627_v54 = vld [vmem:[%s6437_s3 + $0x1278] sm:$0xff]  ;;  %v530_v55 = vld [vmem:[%s6437_s3 + $0xf70] sm:$0xff] }
 0x1db   :  { %2333 = vmatpush2.msra.mxu1 %v226_v57  ;;  %2364 = vmatpush1.msra.mxu0 %v386_v59  ;;  %v626_v57 = vld [vmem:[%s6437_s3 + $0x1270] sm:$0xff]  ;;  %v523_v59 = vld [vmem:[%s6437_s3 + $0xf38] sm:$0xff] }
 0x1dc   :  { %2334 = vmatprep.subr.mxu1 %v219_v60  ;;  %2365 = vmatprep.subr.mxu0 %v379_v61  ;;  %v619_v60 = vld [vmem:[%s6437_s3 + $0x1238] sm:$0xff]  ;;  %v522_v61 = vld [vmem:[%s6437_s3 + $0xf30] sm:$0xff] }
 0x1dd   :  { %2335 = vmatpush2.msra.mxu1 %v218_v62  ;;  %2366 = vmatpush1.msra.mxu0 %v378_v63  ;;  %v618_v62 = vld [vmem:[%s6437_s3 + $0x1230] sm:$0xff]  ;;  %v515_v63 = vld [vmem:[%s6437_s3 + $0xef8] sm:$0xff] }
 0x1de   :  { %2336 = vmatprep.subr.mxu1 %v211_v0  ;;  %2367 = vmatprep.subr.mxu0 %v371_v2  ;;  %v611_v0 = vld [vmem:[%s6437_s3 + $0x11f8] sm:$0xff]  ;;  %v514_v2 = vld [vmem:[%s6437_s3 + $0xef0] sm:$0xff] }
 0x1df   :  { %2337 = vmatpush2.msra.mxu1 %v210_v3  ;;  %2368 = vmatpush1.msra.mxu0 %v370_v5  ;;  %v610_v3 = vld [vmem:[%s6437_s3 + $0x11f0] sm:$0xff]  ;;  %v507_v5 = vld [vmem:[%s6437_s3 + $0xeb8] sm:$0xff] }
 0x1e0   :  { %2338 = vmatprep.subr.mxu1 %v203_v6  ;;  %2369 = vmatprep.subr.mxu0 %v363_v8  ;;  %v603_v6 = vld [vmem:[%s6437_s3 + $0x11b8] sm:$0xff]  ;;  %v506_v8 = vld [vmem:[%s6437_s3 + $0xeb0] sm:$0xff] }
 0x1e1   :  { %2339 = vmatpush2.msra.mxu1 %v202_v9  ;;  %2370 = vmatpush1.msra.mxu0 %v362_v10  ;;  %v602_v9 = vld [vmem:[%s6437_s3 + $0x11b0] sm:$0xff]  ;;  %v499_v10 = vld [vmem:[%s6437_s3 + $0xe78] sm:$0xff] }
 0x1e2   :  { %2340 = vmatprep.subr.mxu1 %v195_v11  ;;  %2371 = vmatprep.subr.mxu0 %v355_v1  ;;  %v595_v11 = vld [vmem:[%s6437_s3 + $0x1178] sm:$0xff]  ;;  %v498_v1 = vld [vmem:[%s6437_s3 + $0xe70] sm:$0xff] }
 0x1e3   :  { %2341 = vmatpush2.msra.mxu1 %v194_v12  ;;  %2372 = vmatpush1.msra.mxu0 %v354_v14  ;;  %v594_v12 = vld [vmem:[%s6437_s3 + $0x1170] sm:$0xff]  ;;  %v491_v14 = vld [vmem:[%s6437_s3 + $0xe38] sm:$0xff] }
 0x1e4   :  { %2342 = vmatprep.subr.mxu1 %v187_v15  ;;  %2373 = vmatprep.subr.mxu0 %v347_v16  ;;  %v587_v15 = vld [vmem:[%s6437_s3 + $0x1138] sm:$0xff]  ;;  %v490_v16 = vld [vmem:[%s6437_s3 + $0xe30] sm:$0xff] }
 0x1e5   :  { %2343 = vmatpush2.msra.mxu1 %v186_v17  ;;  %2374 = vmatpush1.msra.mxu0 %v346_v18  ;;  %v586_v17 = vld [vmem:[%s6437_s3 + $0x1130] sm:$0xff]  ;;  %v483_v18 = vld [vmem:[%s6437_s3 + $0xdf8] sm:$0xff] }
 0x1e6   :  { %2344 = vmatprep.subr.mxu1 %v179_v19  ;;  %2375 = vmatprep.subr.mxu0 %v339_v21  ;;  %v579_v19 = vld [vmem:[%s6437_s3 + $0x10f8] sm:$0xff]  ;;  %v482_v21 = vld [vmem:[%s6437_s3 + $0xdf0] sm:$0xff] }
 0x1e7   :  { %2345 = vmatpush2.msra.mxu1 %v178_v22  ;;  %2376 = vmatpush1.msra.mxu0 %v338_v23  ;;  %v578_v22 = vld [vmem:[%s6437_s3 + $0x10f0] sm:$0xff]  ;;  %v475_v23 = vld [vmem:[%s6437_s3 + $0xdb8] sm:$0xff] }
 0x1e8   :  { %2346 = vmatprep.subr.mxu1 %v171_v25  ;;  %2377 = vmatprep.subr.mxu0 %v331_v26  ;;  %v571_v25 = vld [vmem:[%s6437_s3 + $0x10b8] sm:$0xff]  ;;  %v474_v26 = vld [vmem:[%s6437_s3 + $0xdb0] sm:$0xff] }
 0x1e9   :  { %2347 = vmatpush2.msra.mxu1 %v170_v27  ;;  %2348 = vmatprep.mubr.f32.mxu1 %v4208_v13  ;;  %v314_v13 = vld [vmem:[%s6437_s3 + $0x8b0] sm:$0xff] }
 0x1ea   :  { %2378 = vmatpush1.msra.mxu0 %v330_v56  ;;  %2349 = vmatmul.mubr.f32.vlgmr.msra.gmra.mxu1 %v4177_v4  ;;  %v307_v4 = vld [vmem:[%s6437_s3 + $0x878] sm:$0xff]  ;;  %v570_v27 = vld [vmem:[%s6437_s3 + $0x10b0] sm:$0xff] }
 0x1eb   :  { %2379 = vmatprep.subr.mxu0 %v323_v20  ;;  %2426 = vmatprep.subr.mxu1 %v675_v28  ;;  %v467_v56 = vld [vmem:[%s6437_s3 + $0xd78] sm:$0xff]  ;;  %v466_v28 = vld [vmem:[%s6437_s3 + $0xd70] sm:$0xff] }
 0x1ec   :  { %2380 = vmatpush1.msra.mxu0 %v322_v29  ;;  %2427 = vmatpush1.msra.mxu1 %v674_v30  ;;  %v563_v20 = vld [vmem:[%s6437_s3 + $0x1078] sm:$0xff]  ;;  %v562_v29 = vld [vmem:[%s6437_s3 + $0x1070] sm:$0xff] }
 0x1ed   :  { %2381 = vmatprep.subr.mxu0 %v315_v31  ;;  %2428 = vmatprep.subr.mxu1 %v667_v32  ;;  %v459_v30 = vld [vmem:[%s6437_s3 + $0xd38] sm:$0xff]  ;;  %v458_v32 = vld [vmem:[%s6437_s3 + $0xd30] sm:$0xff] }
 0x1ee   :  { %2382 = vmatpush1.msra.mxu0 %v314_v13  ;;  %2429 = vmatpush1.msra.mxu1 %v666_v34  ;;  %v555_v31 = vld [vmem:[%s6437_s3 + $0x1038] sm:$0xff]  ;;  %v554_v13 = vld [vmem:[%s6437_s3 + $0x1030] sm:$0xff] }
 0x1ef   :  { %2383 = vmatprep.subr.mxu0 %v307_v4  ;;  %2430 = vmatprep.subr.mxu1 %v659_v36  ;;  %v451_v34 = vld [vmem:[%s6437_s3 + $0xcf8] sm:$0xff]  ;;  %v450_v36 = vld [vmem:[%s6437_s3 + $0xcf0] sm:$0xff] }
 0x1f0   :  { %2384 = vmatpush1.msra.mxu0 %v306_v37  ;;  %2431 = vmatpush1.msra.mxu1 %v658_v38  ;;  %v803_v4 = vld [vmem:[%s6437_s3 + $0x17f8] sm:$0xff]  ;;  %v802_v37 = vld [vmem:[%s6437_s3 + $0x17f0] sm:$0xff] }
 0x1f1   :  { %2385 = vmatprep.subr.mxu0 %v299_v40  ;;  %2432 = vmatprep.subr.mxu1 %v651_v41  ;;  %v443_v38 = vld [vmem:[%s6437_s3 + $0xcb8] sm:$0xff]  ;;  %v442_v41 = vld [vmem:[%s6437_s3 + $0xcb0] sm:$0xff] }
 0x1f2   :  { %2386 = vmatpush1.msra.mxu0 %v298_v42  ;;  %2433 = vmatpush1.msra.mxu1 %v650_v43  ;;  %v795_v40 = vld [vmem:[%s6437_s3 + $0x17b8] sm:$0xff]  ;;  %v794_v42 = vld [vmem:[%s6437_s3 + $0x17b0] sm:$0xff] }
 0x1f3   :  { %2387 = vmatprep.subr.mxu0 %v547_v44  ;;  %2434 = vmatprep.subr.mxu1 %v643_v45  ;;  %v435_v43 = vld [vmem:[%s6437_s3 + $0xc78] sm:$0xff]  ;;  %v434_v45 = vld [vmem:[%s6437_s3 + $0xc70] sm:$0xff] }
 0x1f4   :  { %2388 = vmatpush2.msra.mxu0 %v546_v47  ;;  %2435 = vmatpush1.msra.mxu1 %v642_v48  ;;  %v787_v44 = vld [vmem:[%s6437_s3 + $0x1778] sm:$0xff]  ;;  %v786_v47 = vld [vmem:[%s6437_s3 + $0x1770] sm:$0xff] }
 0x1f5   :  { %2389 = vmatprep.subr.mxu0 %v539_v49  ;;  %2436 = vmatprep.subr.mxu1 %v635_v50  ;;  %v427_v48 = vld [vmem:[%s6437_s3 + $0xc38] sm:$0xff]  ;;  %v426_v50 = vld [vmem:[%s6437_s3 + $0xc30] sm:$0xff] }
 0x1f6   :  { %2390 = vmatpush2.msra.mxu0 %v538_v51  ;;  %2437 = vmatpush1.msra.mxu1 %v634_v52  ;;  %v779_v49 = vld [vmem:[%s6437_s3 + $0x1738] sm:$0xff]  ;;  %v778_v51 = vld [vmem:[%s6437_s3 + $0x1730] sm:$0xff] }
 0x1f7   :  { %2391 = vmatprep.subr.mxu0 %v531_v53  ;;  %2438 = vmatprep.subr.mxu1 %v627_v54  ;;  %v771_v52 = vld [vmem:[%s6437_s3 + $0x16f8] sm:$0xff]  ;;  %v770_v53 = vld [vmem:[%s6437_s3 + $0x16f0] sm:$0xff] }
 0x1f8   :  { %2392 = vmatpush2.msra.mxu0 %v530_v55  ;;  %2439 = vmatpush1.msra.mxu1 %v626_v57  ;;  %v763_v54 = vld [vmem:[%s6437_s3 + $0x16b8] sm:$0xff]  ;;  %v762_v55 = vld [vmem:[%s6437_s3 + $0x16b0] sm:$0xff] }
 0x1f9   :  { %2393 = vmatprep.subr.mxu0 %v523_v59  ;;  %2440 = vmatprep.subr.mxu1 %v619_v60  ;;  %v747_v57 = vld [vmem:[%s6437_s3 + $0x1638] sm:$0xff]  ;;  %v738_v60 = vld [vmem:[%s6437_s3 + $0x15f0] sm:$0xff] }
 0x1fa   :  { %2394 = vmatpush2.msra.mxu0 %v522_v61  ;;  %2441 = vmatpush1.msra.mxu1 %v618_v62  ;;  %v739_v59 = vld [vmem:[%s6437_s3 + $0x15f8] sm:$0xff]  ;;  %v730_v62 = vld [vmem:[%s6437_s3 + $0x15b0] sm:$0xff] }
 0x1fb   :  { %2395 = vmatprep.subr.mxu0 %v515_v63  ;;  %2442 = vmatprep.subr.mxu1 %v611_v0  ;;  %v731_v61 = vld [vmem:[%s6437_s3 + $0x15b8] sm:$0xff]  ;;  %v722_v0 = vld [vmem:[%s6437_s3 + $0x1570] sm:$0xff] }
 0x1fc   :  { %2396 = vmatpush2.msra.mxu0 %v514_v2  ;;  %2443 = vmatpush1.msra.mxu1 %v610_v3  ;;  %v723_v63 = vld [vmem:[%s6437_s3 + $0x1578] sm:$0xff]  ;;  %v714_v3 = vld [vmem:[%s6437_s3 + $0x1530] sm:$0xff] }
 0x1fd   :  { %2397 = vmatprep.subr.mxu0 %v507_v5  ;;  %2444 = vmatprep.subr.mxu1 %v603_v6  ;;  %v715_v2 = vld [vmem:[%s6437_s3 + $0x1538] sm:$0xff]  ;;  %v706_v6 = vld [vmem:[%s6437_s3 + $0x14f0] sm:$0xff] }
 0x1fe   :  { %2398 = vmatpush2.msra.mxu0 %v506_v8  ;;  %2445 = vmatpush1.msra.mxu1 %v602_v9  ;;  %v707_v5 = vld [vmem:[%s6437_s3 + $0x14f8] sm:$0xff]  ;;  %v698_v9 = vld [vmem:[%s6437_s3 + $0x14b0] sm:$0xff] }
 0x1ff   :  { %2399 = vmatprep.subr.mxu0 %v499_v10  ;;  %2446 = vmatprep.subr.mxu1 %v595_v11  ;;  %v699_v8 = vld [vmem:[%s6437_s3 + $0x14b8] sm:$0xff]  ;;  %v690_v11 = vld [vmem:[%s6437_s3 + $0x1470] sm:$0xff] }
 0x200   :  { %2400 = vmatpush2.msra.mxu0 %v498_v1  ;;  %2447 = vmatpush1.msra.mxu1 %v594_v12  ;;  %v691_v10 = vld [vmem:[%s6437_s3 + $0x1478] sm:$0xff]  ;;  %v682_v12 = vld [vmem:[%s6437_s3 + $0x1430] sm:$0xff] }
 0x201   :  { %2401 = vmatprep.subr.mxu0 %v491_v14  ;;  %2448 = vmatprep.subr.mxu1 %v587_v15  ;;  %v683_v1 = vld [vmem:[%s6437_s3 + $0x1438] sm:$0xff]  ;;  %v834_v15 = vld [vmem:[%s6437_s3 + $0x18f0] sm:$0xff] }
 0x202   :  { %2402 = vmatpush2.msra.mxu0 %v490_v16  ;;  %2449 = vmatpush1.msra.mxu1 %v586_v17  ;;  %v835_v14 = vld [vmem:[%s6437_s3 + $0x18f8] sm:$0xff]  ;;  %v826_v17 = vld [vmem:[%s6437_s3 + $0x18b0] sm:$0xff] }
 0x203   :  { %2403 = vmatprep.subr.mxu0 %v483_v18  ;;  %2450 = vmatprep.subr.mxu1 %v579_v19  ;;  %v827_v16 = vld [vmem:[%s6437_s3 + $0x18b8] sm:$0xff]  ;;  %v818_v19 = vld [vmem:[%s6437_s3 + $0x1870] sm:$0xff] }
 0x204   :  { %2404 = vmatpush2.msra.mxu0 %v482_v21  ;;  %2451 = vmatpush1.msra.mxu1 %v578_v22  ;;  %v819_v18 = vld [vmem:[%s6437_s3 + $0x1878] sm:$0xff]  ;;  %v810_v21 = vld [vmem:[%s6437_s3 + $0x1830] sm:$0xff] }
 0x205   :  { %2405 = vmatprep.subr.mxu0 %v475_v23  ;;  %2452 = vmatprep.subr.mxu1 %v571_v25  ;;  %v1170_v25 = vpop.f32.mrf.mxu0 }
 0x206   :  { %2406 = vmatpush2.msra.mxu0 %v474_v26  ;;  %2453 = vmatpush1.msra.mxu1 %v570_v27 }
 0x207   :  { %2407 = vmatprep.subr.mxu0 %v467_v56  ;;  %2454 = vmatprep.subr.mxu1 %v563_v20  ;;  %v1172_v27 = vpop.f32.mrf.mxu0 }
 0x208   :  { %2408 = vmatpush2.msra.mxu0 %v466_v28  ;;  %2455 = vmatpush1.msra.mxu1 %v562_v29 }
 0x209   :  { %2409 = vmatprep.subr.mxu0 %v459_v30  ;;  %2456 = vmatprep.subr.mxu1 %v555_v31  ;;  %v6294_v20 = vpop.f32.mrf.mxu0 }
 0x20a   :  { %2410 = vmatpush2.msra.mxu0 %v458_v32  ;;  %2457 = vmatpush1.msra.mxu1 %v554_v13 }
 0x20b   :  { %2411 = vmatprep.subr.mxu0 %v451_v34  ;;  %2458 = vmatprep.subr.mxu1 %v803_v4  ;;  %v6296_v29 = vpop.f32.mrf.mxu0 }
 0x20c   :  { %2412 = vmatpush2.msra.mxu0 %v450_v36  ;;  %2459 = vmatpush2.msra.mxu1 %v802_v37 }
 0x20d   :  { %2413 = vmatprep.subr.mxu0 %v443_v38  ;;  %2460 = vmatprep.subr.mxu1 %v795_v40  ;;  %v1498_v31 = vpop.f32.mrf.mxu0 }
 0x20e   :  { %2414 = vmatpush2.msra.mxu0 %v442_v41  ;;  %2461 = vmatpush2.msra.mxu1 %v794_v42  ;;  %v1499_v38 = vadd.f32 %v1498_v31, %v1170_v25  ;;  %v2731_v25 = vld [vmem:[%s6440_s6 + $0xe8] sm:$0xff]  ;;  %v2713_v31 = vld [vmem:[%s6440_s6 + $0x58] sm:$0xff] }
 0x20f   :  { %2415 = vmatprep.subr.mxu0 %v435_v43  ;;  %2462 = vmatprep.subr.mxu1 %v787_v44  ;;  %v1500_v13 = vpop.f32.mrf.mxu0  ;;  %v2572_v44 = vsub.s32 0, %v4120_v46 }
 0x210   :  { %2416 = vmatpush2.msra.mxu0 %v434_v45  ;;  %2463 = vmatpush2.msra.mxu1 %v786_v47  ;;  %v1501_v43 = vadd.f32 %v1500_v13, %v1172_v27  ;;  %v2715_v27 = vld [vmem:[%s6440_s6 + $0x68] sm:$0xff]  ;;  %v2728_v13 = vld [vmem:[%s6440_s6 + $0xd0] sm:$0xff] }
 0x211   :  { %2417 = vmatprep.subr.mxu0 %v427_v48  ;;  %2464 = vmatprep.subr.mxu1 %v779_v49 }
 0x212   :  { %2418 = vmatpush2.msra.mxu0 %v426_v50  ;;  %2419 = vmatprep.mubr.f32.mxu0 %v4215_v58  ;;  %v755_v58 = vld [vmem:[%s6437_s3 + $0x1678] sm:$0xff]  ;;  %v6302_v50 = vld [vmem:[%s6439_s5] sm:$0xff] }
 0x213   :  { %2465 = vmatpush2.msra.mxu1 %v778_v51  ;;  %2420 = vmatmul.mubr.f32.vlgmr.msra.gmra.mxu0 %v4186_v7  ;;  %v754_v7 = vld [vmem:[%s6437_s3 + $0x1670] sm:$0xff] }
 0x214   :  { %2466 = vmatprep.subr.mxu1 %v771_v52  ;;  %2490 = vmatprep.mubr.f32.mxu1 %v4621_v33  ;;  %v746_v33 = vld [vmem:[%s6437_s3 + $0x1630] sm:$0xff] }
 0x215   :  { %2467 = vmatpush2.msra.mxu1 %v770_v53  ;;  %v2580_v53 = vsub.s32 2, %v4120_v46 }
 0x216   :  { %2468 = vmatprep.subr.mxu1 %v763_v54 }
 0x217   :  { %2469 = vmatpush2.msra.mxu1 %v762_v55 }
 0x218   :  { %2470 = vmatprep.subr.mxu1 %v755_v58  ;;  %v2584_v58 = vsub.s32 3, %v4120_v46 }
 0x219   :  { %2471 = vmatpush2.msra.mxu1 %v754_v7  ;;  %v2573_v7 = vrot.slane %v6302_v50, %v2572_v44 }
 0x21a   :  { %2472 = vmatprep.subr.mxu1 %v747_v57 }
 0x21b   :  { %2473 = vmatpush2.msra.mxu1 %v746_v33 }
 0x21c   :  { %2474 = vmatprep.subr.mxu1 %v739_v59 }
 0x21d   :  { %2475 = vmatpush2.msra.mxu1 %v738_v60 }
 0x21e   :  { %2476 = vmatprep.subr.mxu1 %v731_v61  ;;  %v2576_v61 = vsub.s32 1, %v4120_v46 }
 0x21f   :  { %2477 = vmatpush2.msra.mxu1 %v730_v62 }
 0x220   :  { %2478 = vmatprep.subr.mxu1 %v723_v63 }
 0x221   :  { %2479 = vmatpush2.msra.mxu1 %v722_v0  ;;  %v2581_v0 = vrot.slane %v6302_v50, %v2580_v53  ;;  %v2592_v53 = vsub.s32 5, %v4120_v46 }
 0x222   :  { %2480 = vmatprep.subr.mxu1 %v715_v2 }
 0x223   :  { %2481 = vmatpush2.msra.mxu1 %v714_v3  ;;  %v2585_v3 = vrot.slane %v6302_v50, %v2584_v58 }
 0x224   :  { %2482 = vmatprep.subr.mxu1 %v707_v5 }
 0x225   :  { %2483 = vmatpush2.msra.mxu1 %v706_v6 }
 0x226   :  { %2484 = vmatprep.subr.mxu1 %v699_v8  ;;  %v2577_v8 = vrot.slane %v6302_v50, %v2576_v61 }
 0x227   :  { %2485 = vmatpush2.msra.mxu1 %v698_v9 }
 0x228   :  { %2486 = vmatprep.subr.mxu1 %v691_v10 }
 0x229   :  { %2487 = vmatpush2.msra.mxu1 %v690_v11 }
 0x22a   :  { %2488 = vmatprep.subr.mxu1 %v683_v1 }
 0x22b   :  { %2489 = vmatpush2.msra.mxu1 %v682_v12 }
 0x22c   :  { %2491 = vmatmul.mubr.f32.vlgmr.msra.gmra.mxu1 %v4587_v24  ;;  %2521 = vmatprep.subr.mxu1 %v835_v14  ;;  %v811_v24 = vld [vmem:[%s6437_s3 + $0x1838] sm:$0xff] }
 0x22d   :  { %2522 = vmatpush1.msra.mxu1 %v834_v15  ;;  %2561 = vmatprep.mubr.f32.mxu1 %v2971_v39  ;;  %v1241_v39 = vpop.f32.mrf.mxu1 }
 0x22e   :  { %2523 = vmatprep.subr.mxu1 %v827_v16 }
 0x22f   :  { %2524 = vmatpush1.msra.mxu1 %v826_v17  ;;  %v1243_v22 = vpop.f32.mrf.mxu1 }
 0x230   :  { %2525 = vmatprep.subr.mxu1 %v819_v18 }
 0x231   :  { %2526 = vmatpush1.msra.mxu1 %v818_v19  ;;  %v6290_v23 = vpop.f32.mrf.mxu1  ;;  %v2733_v19 = vld [vmem:[%s6440_s6 + $0xf8] sm:$0xff] }
 0x232   :  { %2527 = vmatprep.subr.mxu1 %v811_v24  ;;  %2853 = vmatprep.subr.mxu0 %v2733_v19  ;;  %v2717_v24 = vld [vmem:[%s6440_s6 + $0x78] sm:$0xff]  ;;  %v2703_v19 = vld [vmem:[%s6440_s6 + $0x8] sm:$0xff] }
 0x233   :  { %2528 = vmatpush1.msra.mxu1 %v810_v21  ;;  %v6292_v26 = vpop.f32.mrf.mxu1  ;;  %2854 = vmatpush3.msra.mxu0 %v2717_v24  ;;  %v2718_v24 = vld [vmem:[%s6440_s6 + $0x80] sm:$0xff] }
 0x234   :  { %2848 = vmatmul.mubr.msk.f32.vlgmr.msra.gmra.mxu1 %vm1429_vm0, %v4283_v35  ;;  %v1640_v35 = vpop.f32.mrf.mxu0 }
 0x235   :  { %v1569_v56 = vpop.f32.mrf.mxu1 }
 0x236   :  { %v1642_v36 = vpop.f32.mrf.mxu0  ;;  %v1570_v42 = vadd.f32 %v1569_v56, %v1499_v38  ;;  %v2730_v56 = vld [vmem:[%s6440_s6 + $0xe0] sm:$0xff] }
 0x237   :  { %v1571_v28 = vpop.f32.mrf.mxu1  ;;  %v2726_v38 = vld [vmem:[%s6440_s6 + $0xc0] sm:$0xff] }
 0x238   :  { %v1853_v40 = vpop.f32.mrf.mxu0  ;;  %v1641_v49 = vadd.f32 %v1640_v35, %v1570_v42  ;;  %v1572_v54 = vadd.f32 %v1571_v28, %v1501_v43  ;;  %v2714_v28 = vld [vmem:[%s6440_s6 + $0x60] sm:$0xff]  ;;  %v2588_v42 = vsub.s32 4, %v4120_v46 }
 0x239   :  { %v1711_v30 = vpop.f32.mrf.mxu1  ;;  %v2710_v43 = vld [vmem:[%s6440_s6 + $0x40] sm:$0xff] }
 0x23a   :  { %v1855_v47 = vpop.f32.mrf.mxu0  ;;  %v1712_v59 = vadd.f32 %v1711_v30, %v1641_v49  ;;  %v1643_v60 = vadd.f32 %v1642_v36, %v1572_v54  ;;  %v2729_v30 = vld [vmem:[%s6440_s6 + $0xd8] sm:$0xff]  ;;  %v2711_v36 = vld [vmem:[%s6440_s6 + $0x48] sm:$0xff]  ;;  %v2708_v54 = vld [vmem:[%s6440_s6 + $0x30] sm:$0xff]  ;;  %v2589_v61 = vrot.slane %v6302_v50, %v2588_v42 }
 0x23b   :  { %v1713_v32 = vpop.f32.mrf.mxu1 }
 0x23c   :  { %v2610_v5 = vadd.f32 %v2573_v7, %v1712_v59  ;;  %v1714_v6 = vadd.f32 %v1713_v32, %v1643_v60 }
 0x23d   :  { %v1782_v34 = vpop.f32.mrf.mxu1 }
 0x23e   :  { %v1783_v45 = vadd.f32 %v1782_v34, %v1241_v39  ;;  %v2618_v11 = vsub.f32 0.0, %v2610_v5  ;;  %v2611_v1 = vadd.f32 %v2577_v8, %v1714_v6  ;;  %v2732_v39 = vld [vmem:[%s6440_s6 + $0xf0] sm:$0xff]  ;;  %v2593_v6 = vrot.slane %v6302_v50, %v2592_v53  ;;  %v2706_v8 = vld [vmem:[%s6440_s6 + $0x20] sm:$0xff] }
 0x23f   :  { %v1784_v4 = vpop.f32.mrf.mxu1  ;;  %2855 = vmatprep.subr.mxu0 %v2732_v39  ;;  %v2712_v34 = vld [vmem:[%s6440_s6 + $0x50] sm:$0xff]  ;;  %v2849_v39 = vld.sshfl [vmem:[%s6436_s2] sm:$0x33 pattern:$0x76325410]  ;;  %s2972_s2 = smov [#allocation2]  }
 0x240   :  { %v1785_v51 = vadd.f32 %v1784_v4, %v1243_v22  ;;  %v1854_v52 = vadd.f32 %v1853_v40, %v1783_v45  ;;  %v2620_v15 = vmul.f32 1.442695, %v2618_v11  ;;  %v2619_v16 = vsub.f32 0.0, %v2611_v1  ;;  %v2716_v22 = vld [vmem:[%s6440_s6 + $0x70] sm:$0xff]  ;;  %v2727_v4 = vld [vmem:[%s6440_s6 + $0xc8] sm:$0xff]  ;;  %v2721_v11 = vld [vmem:[%s6440_s6 + $0x98] sm:$0xff] }
 0x241   :  { %v1924_v37 = vpop.f32.mrf.mxu1  ;;  %2856 = vmatpush3.msra.mxu0 %v2716_v22 }
 0x242   :  { %v1856_v55 = vadd.f32 %v1855_v47, %v1785_v51  ;;  %v1925_v57 = vadd.f32 %v1924_v37, %v1854_v52  ;;  %2894 = vpow2.f32 %v2620_v15  ;;  %v2622_v21 = vmul.f32 1.442695, %v2619_v16  ;;  %2857 = vmatprep.subr.mxu0 %v2731_v25  ;;  %v2725_v47 = vld [vmem:[%s6440_s6 + $0xb8] sm:$0xff]  ;;  %v2720_v15 = vld [vmem:[%s6440_s6 + $0x90] sm:$0xff] }
 0x243   :  { %v1926_v41 = vpop.f32.mrf.mxu1  ;;  %2858 = vmatpush3.msra.mxu0 %v2715_v27 }
 0x244   :  { %v1927_v62 = vadd.f32 %v1926_v41, %v1856_v55  ;;  %2859 = vmatprep.subr.mxu0 %v2730_v56  ;;  %v2665_v56 = vcombine.high %v2849_v39, %v2849_v39 }
 0x245   :  { %v1995_v48 = vpop.f32.mrf.mxu1  ;;  %2860 = vmatpush3.msra.mxu0 %v2714_v28 }
 0x246   :  { %v1996_v63 = vadd.f32 %v1995_v48, %v1925_v57  ;;  %2861 = vmatprep.subr.mxu0 %v2729_v30  ;;  %v2709_v48 = vld [vmem:[%s6440_s6 + $0x38] sm:$0xff]  ;;  %v2723_v57 = vld [vmem:[%s6440_s6 + $0xa8] sm:$0xff] }
 0x247   :  { %v1997_v33 = vpop.f32.mrf.mxu1  ;;  %2862 = vmatpush3.msra.mxu0 %v2713_v31 }
 0x248   :  { %v1998_v2 = vadd.f32 %v1997_v33, %v1927_v62  ;;  %v2612_v9 = vadd.f32 %v2581_v0, %v1996_v63  ;;  %2863 = vmatprep.subr.mxu0 %v2728_v13  ;;  %v2707_v62 = vld [vmem:[%s6440_s6 + $0x28] sm:$0xff] }
 0x249   :  { %2864 = vmatpush3.msra.mxu0 %v2712_v34 }
 0x24a   :  { %v2613_v10 = vadd.f32 %v2585_v3, %v1998_v2  ;;  %v2630_v12 = vsub.f32 0.0, %v2612_v9  ;;  %2865 = vmatprep.subr.mxu0 %v2727_v4  ;;  %v2722_v2 = vld [vmem:[%s6440_s6 + $0xa0] sm:$0xff] }
 0x24b   :  { %2866 = vmatpush3.msra.mxu0 %v2711_v36 }
 0x24c   :  { %v2631_v14 = vsub.f32 0.0, %v2613_v10  ;;  %v2632_v17 = vmul.f32 1.442695, %v2630_v12  ;;  %2867 = vmatprep.subr.mxu0 %v2726_v38 }
 0x24d   :  { %2868 = vmatpush3.msra.mxu0 %v2710_v43 }
 0x24e   :  { %v2634_v18 = vmul.f32 1.442695, %v2631_v14  ;;  %2896 = vpow2.f32 %v2632_v17  ;;  %v2066_v32 = vpop.f32.mrf.mxu0  ;;  %2869 = vmatprep.subr.mxu0 %v2725_v47  ;;  %v2705_v14 = vld [vmem:[%s6440_s6 + $0x18] sm:$0xff]  ;;  %v2704_v17 = vld [vmem:[%s6440_s6 + $0x10] sm:$0xff] }
 0x24f   :  { %v2895_v40 = vpop.eup %2894  ;;  %v2067_v41 = vadd.f32 %v2066_v32, %v6294_v20  ;;  %v2724_v20 = vld [vmem:[%s6440_s6 + $0xb0] sm:$0xff]  ;;  %2870 = vmatpush3.msra.mxu0 %v2709_v48 }
 0x250   :  { %2898 = vpow2.f32 %v2634_v18  ;;  %v2068_v37 = vpop.f32.mrf.mxu0  ;;  %v2624_v55 = vadd.f32 1.0, %v2895_v40  ;;  %2871 = vmatprep.subr.mxu0 %v2724_v20  ;;  %v2719_v18 = vld [vmem:[%s6440_s6 + $0x88] sm:$0xff]  ;;  %v2600_v20 = vsub.s32 7, %v4120_v46 }
 0x251   :  { %2900 = vpow2.f32 %v2622_v21  ;;  %v2069_v51 = vadd.f32 %v2068_v37, %v6296_v29  ;;  %2872 = vmatpush3.msra.mxu0 %v2708_v54  ;;  %v2702_v21 = vld [vmem:[%s6440_s6] sm:$0xff]  ;;  %s2818_s6 = sshll.u32 %s2972_s2, 4  ;;  %s2819_s6 = int_to_ptr.vmem [resolvable:$true] %s2818_s6 }
 0x252   :  { %2873 = vmatprep.subr.mxu0 %v2723_v57  ;;  %2902 = vrcp.f32 %v2624_v55  ;;  %s2926_s15 = scalar_lea.vmem %s2819_s6, 64  ;;  %p2931_p1 = scmp.lt.s32.totalorder %s2819_s6, %s2819_s6 }
 0x253   :  { %2874 = vmatpush3.msra.mxu0 %v2707_v62  ;;  %p2927_p0 = scmp.ne.s32.totalorder %s2819_s6, %s2926_s15  ;;  %p2932_p2 = scmp.lt.s32.totalorder %s2926_s15, %s2926_s15 }
 0x254   :  { %2875 = vmatprep.subr.mxu0 %v2722_v2 }
 0x255   :  { %2876 = vmatpush3.msra.mxu0 %v2706_v8  ;;  %p2933_p3 = por %p2932_p2, %p2931_p1 }
 0x256   :  { %2877 = vmatprep.subr.mxu0 %v2721_v11 }
 0x257   :  { %2878 = vmatpush3.msra.mxu0 %v2705_v14  ;;  %p2934_p4 = pnand %p2933_p3, %p2927_p0 }
 0x258   :  { %2879 = vmatprep.subr.mxu0 %v2720_v15 }
 0x259   :  { %2880 = vmatpush3.msra.mxu0 %v2704_v17 }
 0x25a   :  { %2881 = vmatprep.subr.mxu0 %v2719_v18 }
 0x25b   :  { %v2897_v44 = vpop.eup %2896  ;;  %2882 = vmatpush3.msra.mxu0 %v2703_v19 }
 0x25c   :  { %v2636_v59 = vadd.f32 1.0, %v2897_v44  ;;  %2883 = vmatprep.subr.mxu0 %v2718_v24  ;;  %v2596_v44 = vsub.s32 6, %v4120_v46 }
 0x25d   :  { %v2899_v49 = vpop.eup %2898  ;;  %2884 = vmatpush3.msra.mxu0 %v2702_v21 }
 0x25e   :  { %v2901_v33 = vpop.eup %2900  ;;  %v2637_v63 = vadd.f32 1.0, %v2899_v49  ;;  %2904 = vrcp.f32 %v2636_v59  ;;  %v2597_v53 = vrot.slane %v6302_v50, %v2596_v44 }
 0x25f   :  { %v2137_v35 = vpop.f32.mrf.mxu1  ;;  %v2625_v9 = vadd.f32 1.0, %v2901_v33  ;;  %v2903_v22 = vpop.eup %2902 }
 0x260   :  { %v2138_v52 = vadd.f32 %v2137_v35, %v2067_v41  ;;  %2906 = vrcp.f32 %v2637_v63 }
 0x261   :  { %v2139_v45 = vpop.f32.mrf.mxu1 }
 0x262   :  { %v2140_v60 = vadd.f32 %v2139_v45, %v2069_v51 }
 0x269   :  { %v2279_v58 = vpop.f32.mrf.mxu1 }
 0x26b   :  { %v2281_v10 = vpop.f32.mrf.mxu1  ;;  %v2905_v25 = vpop.eup %2904 }
 0x26c   :  { %v2668_v13 = vmul.f32 %v2905_v25, %v2849_v39 }
 0x26d   :  { %v2907_v27 = vpop.eup %2906 }
 0x26e   :  { %v2669_v35 = vmul.f32 %v2907_v27, %v2665_v56 }
 0x291   :  { %v2208_v7 = vpop.f32.mrf.mxu0 }
 0x292   :  { %v2209_v29 = vadd.f32 %v2208_v7, %v2138_v52  ;;  %v2601_v7 = vrot.slane %v6302_v50, %v2600_v20 }
 0x293   :  { %v2210_v0 = vpop.f32.mrf.mxu0 }
 0x294   :  { %v2280_v3 = vadd.f32 %v2279_v58, %v2209_v29  ;;  %v2211_v5 = vadd.f32 %v2210_v0, %v2140_v60 }
 0x296   :  { %v2614_v1 = vadd.f32 %v2589_v61, %v2280_v3  ;;  %v2282_v12 = vadd.f32 %v2281_v10, %v2211_v5 }
 0x298   :  { %2908 = vtanh.f32 %v2614_v1  ;;  %v2615_v16 = vadd.f32 %v2593_v6, %v2282_v12 }
 0x299   :  { %2910 = vrcp.f32 %v2625_v9 }
 0x29a   :  { %2912 = vtanh.f32 %v2615_v16 }
 0x2a5   :  { %v2909_v28 = vpop.eup %2908 }
 0x2a6   :  { %v2911_v30 = vpop.eup %2910  ;;  %v2670_v31 = vmul.f32 %v2909_v28, %v2903_v22 }
 0x2a7   :  { %v2913_v32 = vpop.eup %2912 }
 0x2a8   :  { %v2671_v34 = vmul.f32 %v2913_v32, %v2911_v30  ;;  %v2672_v4 = vadd.f32 %v2670_v31, %v2668_v13 }
 0x2aa   :  { %v2673_v36 = vadd.f32 %v2671_v34, %v2669_v35  ;;  %v2350_v38 = vpop.f32.mrf.mxu1 }
 0x2ab   :  { %v2351_v43 = vadd.f32 %v2350_v38, %v6290_v23 }
 0x2ac   :  { %v2680_v37 = vcombine.low %v2672_v4, %v2673_v36  ;;  %v2352_v40 = vpop.f32.mrf.mxu1 }
 0x2ad   :  { %v2353_v47 = vadd.f32 %v2352_v40, %v6292_v26 }
 0x2ae   :  { %2850 = vst.sshfl [vmem:[#allocation4] sm:$0x33 pattern:$0x76325410] %v2680_v37 }
 0x2d3   :  { %v2421_v41 = vpop.f32.mrf.mxu0 }
 0x2d4   :  { %v2422_v48 = vadd.f32 %v2421_v41, %v2351_v43 }
 0x2d5   :  { %v2423_v45 = vpop.f32.mrf.mxu0 }
 0x2d6   :  { %v2424_v51 = vadd.f32 %v2423_v45, %v2353_v47 }
 0x2ec   :  { %v2492_v42 = vpop.f32.mrf.mxu1 }
 0x2ed   :  { %v2493_v52 = vadd.f32 %v2492_v42, %v2422_v48 }
 0x2ee   :  { %v2494_v49 = vpop.f32.mrf.mxu1 }
 0x2ef   :  { %v2495_v55 = vadd.f32 %v2494_v49, %v2424_v51 }
 0x2f4   :  { %v2563_v54 = vpop.f32.mrf.mxu1 }
 0x2f5   :  { %v2564_v58 = vadd.f32 %v2563_v54, %v2493_v52 }
 0x2f6   :  { %v2565_v57 = vpop.f32.mrf.mxu1 }
 0x2f7   :  { %v2616_v23 = vadd.f32 %v2597_v53, %v2564_v58  ;;  %v2566_v33 = vadd.f32 %v2565_v57, %v2495_v55 }
 0x2f9   :  { %v2644_v59 = vsub.f32 0.0, %v2616_v23  ;;  %v2617_v60 = vadd.f32 %v2601_v7, %v2566_v33 }
 0x2fb   :  { %v2646_v29 = vmul.f32 1.442695, %v2644_v59  ;;  %v2645_v26 = vsub.f32 0.0, %v2617_v60 }
 0x2fd   :  { %2914 = vpow2.f32 %v2646_v29  ;;  %v2648_v61 = vmul.f32 1.442695, %v2645_v26 }
 0x2ff   :  { %2916 = vpow2.f32 %v2648_v61 }
 0x300   :  { %2918 = vtanh.f32 %v2672_v4 }
 0x30a   :  { %v2915_v46 = vpop.eup %2914 }
 0x30b   :  { %v2650_v62 = vadd.f32 1.0, %v2915_v46 }
 0x30c   :  { %v2917_v63 = vpop.eup %2916 }
 0x30d   :  { %2920 = vrcp.f32 %v2650_v62  ;;  %v2651_v0 = vadd.f32 1.0, %v2917_v63  ;;  %v2919_v2 = vpop.eup %2918 }
 0x30e   :  { %2922 = vtanh.f32 %v2673_v36 }
 0x30f   :  { %2924 = vrcp.f32 %v2651_v0 }
 0x31a   :  { %v2921_v50 = vpop.eup %2920 }
 0x31b   :  { %v2923_v3 = vpop.eup %2922  ;;  %v2676_v8 = vmul.f32 %v2921_v50, %v2919_v2 }
 0x31c   :  { %v2925_v5 = vpop.eup %2924 }
 0x31d   :  { %v2677_v6 = vmul.f32 %v2925_v5, %v2923_v3 }
 0x31f   :  { %2805 = vmatprep.mubr.f32.mxu0 %v2677_v6  ;;  %v2692_v9 = vcombine.low %v2676_v8, %v2677_v6 }
 0x320   :  { %2806 = vmatmul.mubr.f32.vlgmr.msra.gmra.mxu0 %v2676_v8 }
 0x321   :  { %2851 = vst.sshfl [vmem:[#allocation2] sm:$0x33 pattern:$0x76325410] %v2692_v9 }
 0x322   :  { %2937 = shalt.err (!%p2934_p4)
}
 0x323   :  { %2821 = dma.vmem_to_hbm [thread:$0]  %s2819_s6, 64, %s6442_s8, [#allocation3]  }
 0x324   :  { %s2946_s18 = scalar_lea.vmem %s2829_s14, 64  ;;  %p2951_p6 = scmp.lt.s32.totalorder %s2829_s14, %s2829_s14 }
 0x325   :  { %p2947_p5 = scmp.ne.s32.totalorder %s2829_s14, %s2946_s18  ;;  %p2952_p7 = scmp.lt.s32.totalorder %s2946_s18, %s2946_s18 }
 0x327   :  { %p2953_p8 = por %p2952_p7, %p2951_p6 }
 0x329   :  { %p2954_p9 = pnand %p2953_p8, %p2947_p5 }
 0x32b   :  { %2957 = shalt.err (!%p2954_p9)
}
 0x32c   :  { %2831 = dma.vmem_to_hbm [thread:$0]  %s2829_s14, 64, %s6443_s9, [#allocation5]   ;;  %v2852_v11 = vld [vmem:[%s6441_s7] ss:$0 sm:$0xff] }
 0x3e0   :  { %v2885_v10 = vpop.f32.mrf.mxu0 }
 0x3e2   :  { %v2886_v1 = vpop.f32.mrf.mxu0 }
 0x3e3   :  { %v2887_v12 = vadd.f32 %v2886_v1, %v2885_v10 }
 0x3e5   :  { %v2808_v14 = vadd.f32 %v2887_v12, %v2852_v11 }
 0x3e7   :  { %2811 = vst [vmem:[%s6444_s10] sm:$0x3] %v2808_v14 }
 0x3e8   :  { %2966 = dma.done.wait [#allocation3], 64  }
 0x3e9   :  { %2967 = vsyncadd [#allocation3], 4294967232 }
 0x3ea   :  { %2968 = dma.done.wait [#allocation5], 64  }
 0x3eb   :  { %2969 = vsyncadd [#allocation5], 4294967232 }
 0x3ec   :  { %2842 = vsyncpa [#allocation3], 1 }
 0x3ed   :  { %2843 = vsyncpa [#allocation5], 1 }

</bundles_post_ra>
